<compile_context>
chip_gen: v7x
topology: tpu7x:2x2x1
jax: 0.10.0
libtpu: 0.0.40
codegen_flags: <defaults>
</compile_context>

<pallas_src>
import functools
import math

import jax
import jax.numpy as jnp
import numpy as np
from jax.experimental import pallas as pl
from jax.experimental.pallas import tpu as pltpu

BN_EPS = 1e-5
_VMEM_LIMIT = 48 * 1024 * 1024  # < 64 MiB physical on v7x, > per-stage need


def _round_up(x, m):
    return ((x + m - 1) // m) * m


# ----------------------------- Pallas kernels -----------------------------

def _stem_kernel(p_ref, w_ref, b_ref, g_ref, o_ref):
    # conv7x7(s2,p3) as matmul on pre-extracted patches, BN folded into w/b,
    # relu, then 2x2 max pool via 4 one-hot gather matmuls.
    y = jnp.dot(p_ref[...], w_ref[...], preferred_element_type=jnp.float32)
    y = jnp.maximum(y + b_ref[...], 0.0).astype(jnp.bfloat16)
    m01 = jnp.maximum(jnp.dot(g_ref[0], y, preferred_element_type=jnp.float32),
                      jnp.dot(g_ref[1], y, preferred_element_type=jnp.float32))
    m23 = jnp.maximum(jnp.dot(g_ref[2], y, preferred_element_type=jnp.float32),
                      jnp.dot(g_ref[3], y, preferred_element_type=jnp.float32))
    o_ref[...] = jnp.maximum(m01, m23).astype(o_ref.dtype)


def _transition_kernel(x_ref, w_ref, b_ref, p_ref, o_ref):
    # 1x1 conv (BN folded) + relu, then 2x2 avg pool via averaging matmul.
    y = jnp.dot(x_ref[...], w_ref[...], preferred_element_type=jnp.float32)
    y = jnp.maximum(y + b_ref[...], 0.0).astype(jnp.bfloat16)
    o_ref[...] = jnp.dot(p_ref[...], y,
                         preferred_element_type=jnp.float32).astype(o_ref.dtype)


def _dense_stage_kernel(x_ref, w1_ref, b1_ref, w2_ref, b2_ref, e_ref, shift_ref,
                        pn_s_ref, pn_b_ref, o_ref, *, nblocks):
    # Fused dense stage: loop over bottleneck blocks with the concatenated
    # feature map carried in registers (bf16).  Per block:
    #   h   = relu(f @ W1 + b1)                       (1x1 conv, BN folded)
    #   p   = [S_t @ h for t in 9 taps]  (in-kernel im2col via shift matmuls)
    #   g   = relu(p @ W2 + b2)                       (3x3 conv, BN folded)
    #   f  += g @ E_i                                 (placement matmul == concat)
    m, c0pad = x_ref.shape
    cfin = o_ref.shape[1]
    f0 = x_ref[...]
    if cfin > c0pad:
        f0 = jnp.concatenate(
            [f0, jnp.zeros((m, cfin - c0pad), f0.dtype)], axis=1)

    def body(i, f):
        h = jnp.dot(f, w1_ref[i], preferred_element_type=jnp.float32)
        h = jnp.maximum(h + b1_ref[i], 0.0).astype(jnp.bfloat16)
        # TODO(synk): dropout (p=0.2) modeled in eval mode (identity).
        cols = [jnp.dot(shift_ref[t], h,
                        preferred_element_type=jnp.float32).astype(jnp.bfloat16)
                for t in range(9)]
        p = jnp.concatenate(cols, axis=1)                       # (m, 9*128)
        acc = jnp.dot(p, w2_ref[i], preferred_element_type=jnp.float32)
        g = jnp.maximum(acc + b2_ref[i], 0.0).astype(jnp.bfloat16)
        placed = jnp.dot(g, e_ref[i], preferred_element_type=jnp.float32)
        return f + placed.astype(f.dtype)

    f = jax.lax.fori_loop(0, nblocks, body, f0)
    out = f.astype(jnp.float32) * pn_s_ref[...] + pn_b_ref[...]  # post-norm (or identity)
    o_ref[...] = out.astype(o_ref.dtype)


# ----------------------------- Pallas wrappers -----------------------------

def stem_forward(patches, w, b, gather):
    m_in, kp = patches.shape
    m_out = gather.shape[1]
    cp = w.shape[1]
    return pl.pallas_call(
        _stem_kernel,
        out_shape=jax.ShapeDtypeStruct((m_out, cp), jnp.bfloat16),
        grid=(1,),
        in_specs=[
            pl.BlockSpec((m_in, kp), lambda i: (0, 0)),
            pl.BlockSpec((kp, cp), lambda i: (0, 0)),
            pl.BlockSpec((1, cp), lambda i: (0, 0)),
            pl.BlockSpec((4, m_out, m_in), lambda i: (0, 0, 0)),
        ],
        out_specs=pl.BlockSpec((m_out, cp), lambda i: (0, 0)),
        compiler_params=pltpu.CompilerParams(
            dimension_semantics=("arbitrary",),
            vmem_limit_bytes=_VMEM_LIMIT),
    )(patches, w, b, gather)


def transition_forward(x2d, w, b, pool):
    m_in, cin = x2d.shape
    cout = w.shape[1]
    m_out = pool.shape[0]
    return pl.pallas_call(
        _transition_kernel,
        out_shape=jax.ShapeDtypeStruct((m_out, cout), jnp.bfloat16),
        grid=(1,),
        in_specs=[
            pl.BlockSpec((m_in, cin), lambda i: (0, 0)),
            pl.BlockSpec((cin, cout), lambda i: (0, 0)),
            pl.BlockSpec((1, cout), lambda i: (0, 0)),
            pl.BlockSpec((m_out, m_in), lambda i: (0, 0)),
        ],
        out_specs=pl.BlockSpec((m_out, cout), lambda i: (0, 0)),
        compiler_params=pltpu.CompilerParams(
            dimension_semantics=("arbitrary",),
            vmem_limit_bytes=_VMEM_LIMIT),
    )(x2d, w, b, pool)


def dense_stage_forward(stage, x2d, out_dtype):
    m, c0pad = x2d.shape
    nb, cfin, inter = stage["w1"].shape
    hw = stage["shift"].shape[1]        # rows handled per grid step
    nblk = m // hw                      # == batch when per-image blocking is legal
    kernel = functools.partial(_dense_stage_kernel, nblocks=nb)
    return pl.pallas_call(
        kernel,
        out_shape=jax.ShapeDtypeStruct((m, cfin), out_dtype),
        grid=(nblk,),
        in_specs=[
            pl.BlockSpec((hw, c0pad), lambda i: (i, 0)),
            pl.BlockSpec((nb, cfin, inter), lambda i: (0, 0, 0)),
            pl.BlockSpec((nb, 1, inter), lambda i: (0, 0, 0)),
            pl.BlockSpec(stage["w2"].shape, lambda i: (0, 0, 0)),
            pl.BlockSpec(stage["b2"].shape, lambda i: (0, 0, 0)),
            pl.BlockSpec(stage["emb"].shape, lambda i: (0, 0, 0)),
            pl.BlockSpec(stage["shift"].shape, lambda i: (0, 0, 0)),
            pl.BlockSpec((1, cfin), lambda i: (0, 0)),
            pl.BlockSpec((1, cfin), lambda i: (0, 0)),
        ],
        out_specs=pl.BlockSpec((hw, cfin), lambda i: (i, 0)),
        compiler_params=pltpu.CompilerParams(
            dimension_semantics=("parallel",) if nblk > 1 else ("arbitrary",),
            vmem_limit_bytes=_VMEM_LIMIT),
    )(x2d, stage["w1"], stage["b1"], stage["w2"], stage["b2"],
      stage["emb"], stage["shift"], stage["pn_s"], stage["pn_b"])


# ------------------------------ host helpers -------------------------------

def _im2col(x, kh, kw, stride, pad):
    # XLA-side patch extraction, used only for the one-off 7x7 stem conv.
    N, H, W, C = x.shape
    x_p = jnp.pad(x, ((0, 0), (pad, pad), (pad, pad), (0, 0)))
    Ho = (H + 2 * pad - kh) // stride + 1
    Wo = (W + 2 * pad - kw) // stride + 1
    cols = []
    for i in range(kh):
        for j in range(kw):
            cols.append(
                x_p[:, i:i + (Ho - 1) * stride + 1:stride,
                    j:j + (Wo - 1) * stride + 1:stride, :])
    patches = jnp.concatenate(cols, axis=-1)
    return patches.reshape(N * Ho * Wo, kh * kw * C), (N, Ho, Wo)


def _shift_mats_np(n_img, h, w):
    """9 one-hot matrices implementing the zero-padded 3x3 tap shifts."""
    m = n_img * h * w
    s = np.zeros((9, m, m), np.float32)
    for a in range(3):
        for b in range(3):
            t = a * 3 + b
            for n in range(n_img):
                base = n * h * w
                for y in range(h):
                    yy = y + a - 1
                    if not (0 <= yy < h):
                        continue
                    for x in range(w):
                        xx = x + b - 1
                        if 0 <= xx < w:
                            s[t, base + y * w + x, base + yy * w + xx] = 1.0
    return s


def _maxpool_gather_np(n_img, h, w):
    # TODO(synk): ceil_mode pooling supported only for even spatial sizes (true here).
    assert h % 2 == 0 and w % 2 == 0
    ho, wo = h // 2, w // 2
    g = np.zeros((4, n_img * ho * wo, n_img * h * w), np.float32)
    for n in range(n_img):
        for yo in range(ho):
            for xo in range(wo):
                r = n * ho * wo + yo * wo + xo
                for k, (dy, dx) in enumerate(((0, 0), (0, 1), (1, 0), (1, 1))):
                    c = n * h * w + (2 * yo + dy) * w + (2 * xo + dx)
                    g[k, r, c] = 1.0
    return g


def _avgpool_mat_np(n_img, h, w):
    assert h % 2 == 0 and w % 2 == 0
    ho, wo = h // 2, w // 2
    p = np.zeros((n_img * ho * wo, n_img * h * w), np.float32)
    for n in range(n_img):
        for yo in range(ho):
            for xo in range(wo):
                r = n * ho * wo + yo * wo + xo
                for dy in (0, 1):
                    for dx in (0, 1):
                        c = n * h * w + (2 * yo + dy) * w + (2 * xo + dx)
                        p[r, c] = 0.25
    return p


def _stage_layout(n, h, w):
    # Per-image grid blocks (parallel over batch / v7x megacore) when each
    # image's row count is sublane aligned, otherwise one block for the batch.
    if (h * w) % 8 == 0:
        return 1, h, w
    return n, h, w


# ------------------------------- parameters -------------------------------

class _KeyGen:
    def __init__(self, seed):
        self._key = jax.random.PRNGKey(seed)

    def __call__(self):
        self._key, k = jax.random.split(self._key)
        return k


def _conv_w(kg, o, i, kh, kw):
    std = math.sqrt(2.0 / (i * kh * kw))
    return jax.random.normal(kg(), (o, i, kh, kw), jnp.float32) * std


def _bn(kg, c):
    gamma = 1.0 + 0.1 * jax.random.normal(kg(), (c,), jnp.float32)
    beta = 0.1 * jax.random.normal(kg(), (c,), jnp.float32)
    mean = 0.05 * jax.random.normal(kg(), (c,), jnp.float32)
    var = 0.5 + jax.random.uniform(kg(), (c,), jnp.float32)
    scale = gamma / jnp.sqrt(var + BN_EPS)
    bias = beta - mean * scale
    return {"scale": scale, "bias": bias}


def _bottleneck_params(kg, cin, growth):
    inter = 4 * growth
    return {
        "conv1_w": _conv_w(kg, inter, cin, 1, 1),
        "bn1": _bn(kg, inter),
        "conv2_w": _conv_w(kg, growth, inter, 3, 3),
        "bn2": _bn(kg, growth),
    }


def make_params(growth=32, reduction=0.5, seed=0):
    kg = _KeyGen(seed)
    p = {}
    n = 2 * growth
    p["conv1_w"] = _conv_w(kg, n, 2, 7, 7)
    p["norm1"] = _bn(kg, n)
    blocks = []
    for _ in range(6):
        blocks.append(_bottleneck_params(kg, n, growth)); n += growth
    p["dense1"] = blocks
    n_out = int(math.floor(n * reduction))
    p["trans1"] = {"conv_w": _conv_w(kg, n_out, n, 1, 1), "bn": _bn(kg, n_out)}
    n = n_out
    blocks = []
    for _ in range(12):
        blocks.append(_bottleneck_params(kg, n, growth)); n += growth
    p["dense2"] = blocks
    n_out = int(math.floor(n * reduction))
    p["trans2"] = {"conv_w": _conv_w(kg, n_out, n, 1, 1), "bn": _bn(kg, n_out)}
    n = n_out  # == 256 == num_features2
    p["ca2"] = {"fc1_w": _conv_w(kg, n // 16, n, 1, 1),
                "fc2_w": _conv_w(kg, n, n // 16, 1, 1)}
    p["sa2"] = {"conv_w": _conv_w(kg, 1, 2, 3, 3)}
    blocks = []
    for _ in range(24):
        blocks.append(_bottleneck_params(kg, n, growth)); n += growth
    p["dense3"] = blocks  # n == 1024 == num_features3
    p["post_norm"] = _bn(kg, n)
    p["ca3"] = {"fc1_w": _conv_w(kg, n // 16, n, 1, 1),
                "fc2_w": _conv_w(kg, n, n // 16, 1, 1)}
    p["sa3"] = {"conv_w": _conv_w(kg, 1, 2, 3, 3)}
    return p


# --------------------------- parameter preparation --------------------------

def _prep_dense_stage(blocks, c0, growth, n_img, h, w, pn_scale=None, pn_bias=None):
    nb = len(blocks)
    inter = 4 * growth
    cfin = c0 + nb * growth
    w1 = np.zeros((nb, cfin, inter), np.float32)
    b1 = np.zeros((nb, 1, inter), np.float32)
    w2 = np.zeros((nb, 9 * inter, growth), np.float32)
    b2 = np.zeros((nb, 1, growth), np.float32)
    emb = np.zeros((nb, growth, cfin), np.float32)
    for i, bp in enumerate(blocks):
        cin = c0 + i * growth
        s1 = np.asarray(bp["bn1"]["scale"]); bb1 = np.asarray(bp["bn1"]["bias"])
        w1m = np.asarray(bp["conv1_w"]).reshape(inter, cin).T * s1[None, :]
        w1[i, :cin, :] = w1m
        b1[i, 0, :] = bb1
        s2 = np.asarray(bp["bn2"]["scale"]); bb2 = np.asarray(bp["bn2"]["bias"])
        wc2 = np.asarray(bp["conv2_w"])                     # (growth, inter, 3, 3)
        for a in range(3):
            for b_ in range(3):
                t = a * 3 + b_
                w2[i, t * inter:(t + 1) * inter, :] = wc2[:, :, a, b_].T * s2[None, :]
        b2[i, 0, :] = bb2
        off = c0 + i * growth
        emb[i, np.arange(growth), off + np.arange(growth)] = 1.0
    if pn_scale is None:
        pn_s = np.ones((1, cfin), np.float32)
        pn_b = np.zeros((1, cfin), np.float32)
    else:
        pn_s = np.asarray(pn_scale, np.float32).reshape(1, cfin)
        pn_b = np.asarray(pn_bias, np.float32).reshape(1, cfin)
    return {
        "w1": jnp.asarray(w1, jnp.bfloat16),
        "b1": jnp.asarray(b1, jnp.float32),
        "w2": jnp.asarray(w2, jnp.bfloat16),
        "b2": jnp.asarray(b2, jnp.float32),
        "emb": jnp.asarray(emb, jnp.bfloat16),
        "shift": jnp.asarray(_shift_mats_np(n_img, h, w), jnp.bfloat16),
        "pn_s": jnp.asarray(pn_s, jnp.float32),
        "pn_b": jnp.asarray(pn_b, jnp.float32),
    }


def _prep_transition(tp):
    wt = np.asarray(tp["conv_w"])            # (cout, cin, 1, 1)
    cout, cin = wt.shape[0], wt.shape[1]
    s = np.asarray(tp["bn"]["scale"]); b = np.asarray(tp["bn"]["bias"])
    wm = wt.reshape(cout, cin).T * s[None, :]
    return (jnp.asarray(wm, jnp.bfloat16),
            jnp.asarray(b.reshape(1, cout), jnp.float32))


def prepare_params(params, x_shape, growth=32):
    n, cin_img, h, w = x_shape
    prep = {}

    # stem 7x7/s2/p3 conv (BN folded), padded to lane-friendly shapes
    wt = np.asarray(params["conv1_w"])                        # (64, cin, 7, 7)
    o = wt.shape[0]
    s = np.asarray(params["norm1"]["scale"]); b = np.asarray(params["norm1"]["bias"])
    wm = wt.transpose(2, 3, 1, 0).reshape(7 * 7 * cin_img, o) * s[None, :]
    kp = _round_up(wm.shape[0], 128)
    op = _round_up(o, 128)
    wp = np.zeros((kp, op), np.float32); wp[:wm.shape[0], :o] = wm
    bp = np.zeros((1, op), np.float32); bp[0, :o] = b
    prep["stem_w"] = jnp.asarray(wp, jnp.bfloat16)
    prep["stem_b"] = jnp.asarray(bp, jnp.float32)

    hs = (h + 2 * 3 - 7) // 2 + 1
    ws = (w + 2 * 3 - 7) // 2 + 1
    prep["stem_pool"] = jnp.asarray(_maxpool_gather_np(n, hs, ws), jnp.bfloat16)

    h1, w1_ = hs // 2, ws // 2
    c0 = 2 * growth
    prep["dense1"] = _prep_dense_stage(params["dense1"], c0, growth,
                                       *_stage_layout(n, h1, w1_))
    prep["trans1_w"], prep["trans1_b"] = _prep_transition(params["trans1"])
    prep["trans1_pool"] = jnp.asarray(_avgpool_mat_np(n, h1, w1_), jnp.bfloat16)

    h2, w2_ = h1 // 2, w1_ // 2
    c0_d2 = int(params["trans1"]["conv_w"].shape[0])
    prep["dense2"] = _prep_dense_stage(params["dense2"], c0_d2, growth,
                                       *_stage_layout(n, h2, w2_))
    prep["trans2_w"], prep["trans2_b"] = _prep_transition(params["trans2"])
    prep["trans2_pool"] = jnp.asarray(_avgpool_mat_np(n, h2, w2_), jnp.bfloat16)

    h3, w3_ = h2 // 2, w2_ // 2
    c0_d3 = int(params["trans2"]["conv_w"].shape[0])
    prep["dense3"] = _prep_dense_stage(params["dense3"], c0_d3, growth,
                                       *_stage_layout(n, h3, w3_),
                                       pn_scale=params["post_norm"]["scale"],
                                       pn_bias=params["post_norm"]["bias"])

    # CBAM attention params (run in plain XLA -- too tiny for a kernel)
    c2 = c0_d3
    prep["ca2_fc1"] = jnp.asarray(
        np.asarray(params["ca2"]["fc1_w"]).reshape(c2 // 16, c2).T, jnp.float32)
    prep["ca2_fc2"] = jnp.asarray(
        np.asarray(params["ca2"]["fc2_w"]).reshape(c2, c2 // 16).T, jnp.float32)
    prep["sa2_w"] = jnp.asarray(
        np.asarray(params["sa2"]["conv_w"]).transpose(2, 3, 1, 0), jnp.float32)
    c3 = c0_d3 + len(params["dense3"]) * growth
    prep["ca3_fc1"] = jnp.asarray(
        np.asarray(params["ca3"]["fc1_w"]).reshape(c3 // 16, c3).T, jnp.float32)
    prep["ca3_fc2"] = jnp.asarray(
        np.asarray(params["ca3"]["fc2_w"]).reshape(c3, c3 // 16).T, jnp.float32)
    prep["sa3_w"] = jnp.asarray(
        np.asarray(params["sa3"]["conv_w"]).transpose(2, 3, 1, 0), jnp.float32)
    return prep


# --------------------------- attention (plain XLA) --------------------------

def _channel_attention(x4, fc1, fc2):
    avg = jnp.mean(x4, axis=(1, 2))
    mx = jnp.max(x4, axis=(1, 2))

    def mlp(v):
        return jnp.maximum(v @ fc1, 0.0) @ fc2

    att = jax.nn.sigmoid(mlp(avg) + mlp(mx))
    return att[:, None, None, :]


def _spatial_attention(x4, w_hwio):
    avg = jnp.mean(x4, axis=-1, keepdims=True)
    mx = jnp.max(x4, axis=-1, keepdims=True)
    s = jnp.concatenate([avg, mx], axis=-1)
    c = jax.lax.conv_general_dilated(
        s, w_hwio, window_strides=(1, 1), padding=((1, 1), (1, 1)),
        dimension_numbers=("NHWC", "HWIO", "NHWC"))
    return jax.nn.sigmoid(c)


# -------------------------------- forward ---------------------------------

def densenet_forward(prep, x_nchw, x_mask):
    x = jnp.transpose(x_nchw, (0, 2, 3, 1)).astype(jnp.float32)   # NCHW -> NHWC
    n = x.shape[0]

    # stem: 7x7/s2 conv + BN + relu + 2x2 maxpool, one fused Pallas call
    patches, (_, hs, ws) = _im2col(x, 7, 7, 2, 3)
    kp = prep["stem_w"].shape[0]
    patches = jnp.pad(patches, ((0, 0), (0, kp - patches.shape[1]))).astype(jnp.bfloat16)
    out = stem_forward(patches, prep["stem_w"], prep["stem_b"], prep["stem_pool"])
    out_mask = x_mask[:, 0::2, 0::2]
    out_mask = out_mask[:, 0::2, 0::2]

    # dense1 + trans1 (fused stage kernels)
    out = dense_stage_forward(prep["dense1"], out, jnp.bfloat16)
    out = transition_forward(out, prep["trans1_w"], prep["trans1_b"], prep["trans1_pool"])
    out_mask = out_mask[:, 0::2, 0::2]

    # dense2 + trans2
    out = dense_stage_forward(prep["dense2"], out, jnp.bfloat16)
    out = transition_forward(out, prep["trans2_w"], prep["trans2_b"], prep["trans2_pool"])
    out_mask = out_mask[:, 0::2, 0::2]

    # CBAM attention 2 (plain XLA, tensors are tiny)
    h3, w3 = hs // 8, ws // 8
    x4 = out.reshape(n, h3, w3, out.shape[1]).astype(jnp.float32)
    x4 = x4 * _channel_attention(x4, prep["ca2_fc1"], prep["ca2_fc2"])
    x4 = x4 * _spatial_attention(x4, prep["sa2_w"])
    out = x4.reshape(n * h3 * w3, x4.shape[-1]).astype(jnp.bfloat16)

    # dense3 (post_norm folded into the kernel epilogue)
    out = dense_stage_forward(prep["dense3"], out, jnp.float32)

    # CBAM attention 3
    x4 = out.reshape(n, h3, w3, out.shape[1])
    x4 = x4 * _channel_attention(x4, prep["ca3_fc1"], prep["ca3_fc2"])
    x4 = x4 * _spatial_attention(x4, prep["sa3_w"])

    del out_mask  # computed for parity with the reference forward; not returned
    return jnp.transpose(x4, (0, 3, 1, 2))                        # NHWC -> NCHW


if __name__ == "__main__":
    # growth_rate must be 32 so trans2 / final widths match the hard-coded
    # num_features2 (256) and num_features3 (1024) of the attention blocks.
    params = make_params(growth=32, seed=0)
    prep = prepare_params(params, (2, 2, 32, 32), growth=32)

    key = jax.random.PRNGKey(0)
    kx, km = jax.random.split(key)
    x = jax.random.normal(kx, (2, 2, 32, 32), jnp.float32)        # NCHW, 2 input channels
    x_mask = (jax.random.uniform(km, (2, 32, 32)) > 0.5).astype(jnp.float32)

    fwd = jax.jit(densenet_forward)
    out = jax.block_until_ready(fwd(prep, x, x_mask))
    assert out.shape == (2, 1024, 2, 2), out.shape
    assert bool(jnp.all(jnp.isfinite(out))), "non-finite output"
    print("KERNEL_OK")
</pallas_src>

<mosaic_0001>
module attributes {stable_mosaic.version = 11 : i64} {
  func.func @_stem_kernel(%arg0: i32, %arg1: memref<512x128xbf16, #tpu.memory_space<vmem>>, %arg2: memref<128x128xbf16, #tpu.memory_space<vmem>>, %arg3: memref<1x128xf32, #tpu.memory_space<vmem>>, %arg4: memref<4x128x512xbf16, #tpu.memory_space<vmem>>, %arg5: memref<128x128xbf16, #tpu.memory_space<vmem>>) attributes {dimension_semantics = [#tpu.dimension_semantics<arbitrary>], iteration_bounds = array<i64: 1>, scalar_prefetch = 0 : i64, scratch_operands = 0 : i64, tpu.core_type = #tpu.core_type<tc>, window_params = [{pipeline_mode = #tpu.pipeline_mode<synchronous>, transform_indices = @transform_0, window_bounds = array<i64: 512, 128>}, {pipeline_mode = #tpu.pipeline_mode<synchronous>, transform_indices = @transform_1, window_bounds = array<i64: 128, 128>}, {pipeline_mode = #tpu.pipeline_mode<synchronous>, transform_indices = @transform_2, window_bounds = array<i64: 1, 128>}, {pipeline_mode = #tpu.pipeline_mode<synchronous>, transform_indices = @transform_3, window_bounds = array<i64: 4, 128, 512>}, {pipeline_mode = #tpu.pipeline_mode<synchronous>, transform_indices = @transform_4, window_bounds = array<i64: 128, 128>}]} {
    %c0 = arith.constant 0 : index
    %c0_0 = arith.constant 0 : index
    %0 = vector.load %arg1[%c0, %c0_0] : memref<512x128xbf16, #tpu.memory_space<vmem>>, vector<512x128xbf16>
    %c0_1 = arith.constant 0 : index
    %c0_2 = arith.constant 0 : index
    %1 = vector.load %arg2[%c0_1, %c0_2] : memref<128x128xbf16, #tpu.memory_space<vmem>>, vector<128x128xbf16>
    %cst = arith.constant dense<0.000000e+00> : vector<512x128xf32>
    %2 = tpu.matmul %0, %1, %cst {dimension_numbers = #tpu.dot_dimension_numbers<[1], [0], [0], [1], [0, 0, 1, 1], [], []>} : vector<512x128xbf16>, vector<128x128xbf16>, vector<512x128xf32> -> vector<512x128xf32>
    %c0_3 = arith.constant 0 : index
    %c0_4 = arith.constant 0 : index
    %3 = vector.load %arg3[%c0_3, %c0_4] : memref<1x128xf32, #tpu.memory_space<vmem>>, vector<1x128xf32>
    %4 = vector.broadcast %3 : vector<1x128xf32> to vector<512x128xf32>
    %5 = arith.addf %2, %4 : vector<512x128xf32>
    %cst_5 = arith.constant 0.000000e+00 : f32
    %6 = vector.broadcast %cst_5 : f32 to vector<512x128xf32>
    %7 = arith.maximumf %5, %6 : vector<512x128xf32>
    %8 = arith.truncf %7 : vector<512x128xf32> to vector<512x128xbf16>
    %c0_6 = arith.constant 0 : index
    %c0_7 = arith.constant 0 : index
    %c0_8 = arith.constant 0 : index
    %9 = vector.load %arg4[%c0_6, %c0_7, %c0_8] : memref<4x128x512xbf16, #tpu.memory_space<vmem>>, vector<1x128x512xbf16>
    %10 = vector.shape_cast %9 : vector<1x128x512xbf16> to vector<128x512xbf16>
    %cst_9 = arith.constant dense<0.000000e+00> : vector<128x128xf32>
    %11 = tpu.matmul %10, %8, %cst_9 {dimension_numbers = #tpu.dot_dimension_numbers<[1], [0], [0], [1], [0, 0, 1, 1], [], []>} : vector<128x512xbf16>, vector<512x128xbf16>, vector<128x128xf32> -> vector<128x128xf32>
    %c1 = arith.constant 1 : index
    %c0_10 = arith.constant 0 : index
    %c0_11 = arith.constant 0 : index
    %12 = vector.load %arg4[%c1, %c0_10, %c0_11] : memref<4x128x512xbf16, #tpu.memory_space<vmem>>, vector<1x128x512xbf16>
    %13 = vector.shape_cast %12 : vector<1x128x512xbf16> to vector<128x512xbf16>
    %cst_12 = arith.constant dense<0.000000e+00> : vector<128x128xf32>
    %14 = tpu.matmul %13, %8, %cst_12 {dimension_numbers = #tpu.dot_dimension_numbers<[1], [0], [0], [1], [0, 0, 1, 1], [], []>} : vector<128x512xbf16>, vector<512x128xbf16>, vector<128x128xf32> -> vector<128x128xf32>
    %15 = arith.maximumf %11, %14 : vector<128x128xf32>
    %c2 = arith.constant 2 : index
    %c0_13 = arith.constant 0 : index
    %c0_14 = arith.constant 0 : index
    %16 = vector.load %arg4[%c2, %c0_13, %c0_14] : memref<4x128x512xbf16, #tpu.memory_space<vmem>>, vector<1x128x512xbf16>
    %17 = vector.shape_cast %16 : vector<1x128x512xbf16> to vector<128x512xbf16>
    %cst_15 = arith.constant dense<0.000000e+00> : vector<128x128xf32>
    %18 = tpu.matmul %17, %8, %cst_15 {dimension_numbers = #tpu.dot_dimension_numbers<[1], [0], [0], [1], [0, 0, 1, 1], [], []>} : vector<128x512xbf16>, vector<512x128xbf16>, vector<128x128xf32> -> vector<128x128xf32>
    %c3 = arith.constant 3 : index
    %c0_16 = arith.constant 0 : index
    %c0_17 = arith.constant 0 : index
    %19 = vector.load %arg4[%c3, %c0_16, %c0_17] : memref<4x128x512xbf16, #tpu.memory_space<vmem>>, vector<1x128x512xbf16>
    %20 = vector.shape_cast %19 : vector<1x128x512xbf16> to vector<128x512xbf16>
    %cst_18 = arith.constant dense<0.000000e+00> : vector<128x128xf32>
    %21 = tpu.matmul %20, %8, %cst_18 {dimension_numbers = #tpu.dot_dimension_numbers<[1], [0], [0], [1], [0, 0, 1, 1], [], []>} : vector<128x512xbf16>, vector<512x128xbf16>, vector<128x128xf32> -> vector<128x128xf32>
    %22 = arith.maximumf %18, %21 : vector<128x128xf32>
    %23 = arith.maximumf %15, %22 : vector<128x128xf32>
    %24 = arith.truncf %23 : vector<128x128xf32> to vector<128x128xbf16>
    %c0_19 = arith.constant 0 : index
    %c0_20 = arith.constant 0 : index
    %25 = vector.load %arg5[%c0_19, %c0_20] : memref<128x128xbf16, #tpu.memory_space<vmem>>, vector<128x128xbf16>
    tpu.vector_store %arg5[%c0_19, %c0_20], %24 {strides = array<i32>} : memref<128x128xbf16, #tpu.memory_space<vmem>>, vector<128x128xbf16>,
    return
  }
  func.func @transform_0(%arg0: i32) -> (i32, i32) {
    %c0_i32 = arith.constant 0 : i32
    %c0_i32_0 = arith.constant 0 : i32
    %c0_i32_1 = arith.constant 0 : i32
    return %c0_i32, %c0_i32_0 : i32, i32
  }
  func.func @transform_1(%arg0: i32) -> (i32, i32) {
    %c0_i32 = arith.constant 0 : i32
    %c0_i32_0 = arith.constant 0 : i32
    %c0_i32_1 = arith.constant 0 : i32
    return %c0_i32, %c0_i32_0 : i32, i32
  }
  func.func @transform_2(%arg0: i32) -> (i32, i32) {
    %c0_i32 = arith.constant 0 : i32
    %c0_i32_0 = arith.constant 0 : i32
    %c0_i32_1 = arith.constant 0 : i32
    return %c0_i32, %c0_i32_0 : i32, i32
  }
  func.func @transform_3(%arg0: i32) -> (i32, i32, i32) {
    %c0_i32 = arith.constant 0 : i32
    %c0_i32_0 = arith.constant 0 : i32
    %c0_i32_1 = arith.constant 0 : i32
    %c0_i32_2 = arith.constant 0 : i32
    return %c0_i32, %c0_i32_0, %c0_i32_1 : i32, i32, i32
  }
  func.func @transform_4(%arg0: i32) -> (i32, i32) {
    %c0_i32 = arith.constant 0 : i32
    %c0_i32_0 = arith.constant 0 : i32
    %c0_i32_1 = arith.constant 0 : i32
    return %c0_i32, %c0_i32_0 : i32, i32
  }
}

module attributes {stable_mosaic.version = 11 : i64} {
  func.func @_transition_kernel(%arg0: i32, %arg1: memref<128x256xbf16, #tpu.memory_space<vmem>>, %arg2: memref<256x128xbf16, #tpu.memory_space<vmem>>, %arg3: memref<1x128xf32, #tpu.memory_space<vmem>>, %arg4: memref<32x128xbf16, #tpu.memory_space<vmem>>, %arg5: memref<32x128xbf16, #tpu.memory_space<vmem>>) attributes {dimension_semantics = [#tpu.dimension_semantics<arbitrary>], iteration_bounds = array<i64: 1>, scalar_prefetch = 0 : i64, scratch_operands = 0 : i64, tpu.core_type = #tpu.core_type<tc>, window_params = [{pipeline_mode = #tpu.pipeline_mode<synchronous>, transform_indices = @transform_0, window_bounds = array<i64: 128, 256>}, {pipeline_mode = #tpu.pipeline_mode<synchronous>, transform_indices = @transform_1, window_bounds = array<i64: 256, 128>}, {pipeline_mode = #tpu.pipeline_mode<synchronous>, transform_indices = @transform_2, window_bounds = array<i64: 1, 128>}, {pipeline_mode = #tpu.pipeline_mode<synchronous>, transform_indices = @transform_3, window_bounds = array<i64: 32, 128>}, {pipeline_mode = #tpu.pipeline_mode<synchronous>, transform_indices = @transform_4, window_bounds = array<i64: 32, 128>}]} {
    %c0 = arith.constant 0 : index
    %c0_0 = arith.constant 0 : index
    %0 = vector.load %arg1[%c0, %c0_0] : memref<128x256xbf16, #tpu.memory_space<vmem>>, vector<128x256xbf16>
    %c0_1 = arith.constant 0 : index
    %c0_2 = arith.constant 0 : index
    %1 = vector.load %arg2[%c0_1, %c0_2] : memref<256x128xbf16, #tpu.memory_space<vmem>>, vector<256x128xbf16>
    %cst = arith.constant dense<0.000000e+00> : vector<128x128xf32>
    %2 = tpu.matmul %0, %1, %cst {dimension_numbers = #tpu.dot_dimension_numbers<[1], [0], [0], [1], [0, 0, 1, 1], [], []>} : vector<128x256xbf16>, vector<256x128xbf16>, vector<128x128xf32> -> vector<128x128xf32>
    %c0_3 = arith.constant 0 : index
    %c0_4 = arith.constant 0 : index
    %3 = vector.load %arg3[%c0_3, %c0_4] : memref<1x128xf32, #tpu.memory_space<vmem>>, vector<1x128xf32>
    %4 = vector.broadcast %3 : vector<1x128xf32> to vector<128x128xf32>
    %5 = arith.addf %2, %4 : vector<128x128xf32>
    %cst_5 = arith.constant 0.000000e+00 : f32
    %6 = vector.broadcast %cst_5 : f32 to vector<128x128xf32>
    %7 = arith.maximumf %5, %6 : vector<128x128xf32>
    %8 = arith.truncf %7 : vector<128x128xf32> to vector<128x128xbf16>
    %c0_6 = arith.constant 0 : index
    %c0_7 = arith.constant 0 : index
    %9 = vector.load %arg4[%c0_6, %c0_7] : memref<32x128xbf16, #tpu.memory_space<vmem>>, vector<32x128xbf16>
    %cst_8 = arith.constant dense<0.000000e+00> : vector<32x128xf32>
    %10 = tpu.matmul %9, %8, %cst_8 {dimension_numbers = #tpu.dot_dimension_numbers<[1], [0], [0], [1], [0, 0, 1, 1], [], []>} : vector<32x128xbf16>, vector<128x128xbf16>, vector<32x128xf32> -> vector<32x128xf32>
    %11 = arith.truncf %10 : vector<32x128xf32> to vector<32x128xbf16>
    %c0_9 = arith.constant 0 : index
    %c0_10 = arith.constant 0 : index
    %12 = vector.load %arg5[%c0_9, %c0_10] : memref<32x128xbf16, #tpu.memory_space<vmem>>, vector<32x128xbf16>
    tpu.vector_store %arg5[%c0_9, %c0_10], %11 {strides = array<i32>} : memref<32x128xbf16, #tpu.memory_space<vmem>>, vector<32x128xbf16>,
    return
  }
  func.func @transform_0(%arg0: i32) -> (i32, i32) {
    %c0_i32 = arith.constant 0 : i32
    %c0_i32_0 = arith.constant 0 : i32
    %c0_i32_1 = arith.constant 0 : i32
    return %c0_i32, %c0_i32_0 : i32, i32
  }
  func.func @transform_1(%arg0: i32) -> (i32, i32) {
    %c0_i32 = arith.constant 0 : i32
    %c0_i32_0 = arith.constant 0 : i32
    %c0_i32_1 = arith.constant 0 : i32
    return %c0_i32, %c0_i32_0 : i32, i32
  }
  func.func @transform_2(%arg0: i32) -> (i32, i32) {
    %c0_i32 = arith.constant 0 : i32
    %c0_i32_0 = arith.constant 0 : i32
    %c0_i32_1 = arith.constant 0 : i32
    return %c0_i32, %c0_i32_0 : i32, i32
  }
  func.func @transform_3(%arg0: i32) -> (i32, i32) {
    %c0_i32 = arith.constant 0 : i32
    %c0_i32_0 = arith.constant 0 : i32
    %c0_i32_1 = arith.constant 0 : i32
    return %c0_i32, %c0_i32_0 : i32, i32
  }
  func.func @transform_4(%arg0: i32) -> (i32, i32) {
    %c0_i32 = arith.constant 0 : i32
    %c0_i32_0 = arith.constant 0 : i32
    %c0_i32_1 = arith.constant 0 : i32
    return %c0_i32, %c0_i32_0 : i32, i32
  }
}

module attributes {stable_mosaic.version = 11 : i64} {
  func.func @_dense_stage_kernel(%arg0: i32, %arg1: memref<64x128xbf16, #tpu.memory_space<vmem>>, %arg2: memref<6x256x128xbf16, #tpu.memory_space<vmem>>, %arg3: memref<6x1x128xf32, #tpu.memory_space<vmem>>, %arg4: memref<6x1152x32xbf16, #tpu.memory_space<vmem>>, %arg5: memref<6x1x32xf32, #tpu.memory_space<vmem>>, %arg6: memref<6x32x256xbf16, #tpu.memory_space<vmem>>, %arg7: memref<9x64x64xbf16, #tpu.memory_space<vmem>>, %arg8: memref<1x256xf32, #tpu.memory_space<vmem>>, %arg9: memref<1x256xf32, #tpu.memory_space<vmem>>, %arg10: memref<64x256xbf16, #tpu.memory_space<vmem>>) attributes {dimension_semantics = [#tpu.dimension_semantics<parallel>], iteration_bounds = array<i64: 2>, scalar_prefetch = 0 : i64, scratch_operands = 0 : i64, tpu.core_type = #tpu.core_type<tc>, window_params = [{transform_indices = @transform_0, window_bounds = array<i64: 64, 128>}, {pipeline_mode = #tpu.pipeline_mode<synchronous>, transform_indices = @transform_1, window_bounds = array<i64: 6, 256, 128>}, {pipeline_mode = #tpu.pipeline_mode<synchronous>, transform_indices = @transform_2, window_bounds = array<i64: 6, 1, 128>}, {pipeline_mode = #tpu.pipeline_mode<synchronous>, transform_indices = @transform_3, window_bounds = array<i64: 6, 1152, 32>}, {pipeline_mode = #tpu.pipeline_mode<synchronous>, transform_indices = @transform_4, window_bounds = array<i64: 6, 1, 32>}, {pipeline_mode = #tpu.pipeline_mode<synchronous>, transform_indices = @transform_5, window_bounds = array<i64: 6, 32, 256>}, {pipeline_mode = #tpu.pipeline_mode<synchronous>, transform_indices = @transform_6, window_bounds = array<i64: 9, 64, 64>}, {pipeline_mode = #tpu.pipeline_mode<synchronous>, transform_indices = @transform_7, window_bounds = array<i64: 1, 256>}, {pipeline_mode = #tpu.pipeline_mode<synchronous>, transform_indices = @transform_8, window_bounds = array<i64: 1, 256>}, {transform_indices = @transform_9, window_bounds = array<i64: 64, 256>}]} {
    %c0 = arith.constant 0 : index
    %c0_0 = arith.constant 0 : index
    %0 = vector.load %arg1[%c0, %c0_0] : memref<64x128xbf16, #tpu.memory_space<vmem>>, vector<64x128xbf16>
    %cst = arith.constant 0.000000e+00 : bf16
    %1 = vector.broadcast %cst : bf16 to vector<64x128xbf16>
    %2 = tpu.concatenate %0, %1 in 1 : vector<64x128xbf16>, vector<64x128xbf16> -> vector<64x256xbf16>
    %c0_i32 = arith.constant 0 : i32
    %c6_i32 = arith.constant 6 : i32
    %3 = arith.addi %c0_i32, %c6_i32 : i32
    %c1_i32 = arith.constant 1 : i32
    %4 = scf.for %arg11 = %c0_i32 to %3 step %c1_i32 iter_args(%arg12 = %2) -> (vector<64x256xbf16>)  : i32 {
      %14 = arith.index_cast %arg11 : i32 to index
      %c0_8 = arith.constant 0 : index
      %c0_9 = arith.constant 0 : index
      %15 = vector.load %arg2[%14, %c0_8, %c0_9] : memref<6x256x128xbf16, #tpu.memory_space<vmem>>, vector<1x256x128xbf16>
      %16 = vector.shape_cast %15 : vector<1x256x128xbf16> to vector<256x128xbf16>
      %cst_10 = arith.constant dense<0.000000e+00> : vector<64x128xf32>
      %17 = tpu.matmul %arg12, %16, %cst_10 {dimension_numbers = #tpu.dot_dimension_numbers<[1], [0], [0], [1], [0, 0, 1, 1], [], []>} : vector<64x256xbf16>, vector<256x128xbf16>, vector<64x128xf32> -> vector<64x128xf32>
      %18 = arith.index_cast %arg11 : i32 to index
      %c0_11 = arith.constant 0 : index
      %c0_12 = arith.constant 0 : index
      %19 = vector.load %arg3[%18, %c0_11, %c0_12] : memref<6x1x128xf32, #tpu.memory_space<vmem>>, vector<1x1x128xf32>
      %20 = vector.shape_cast %19 : vector<1x1x128xf32> to vector<1x128xf32>
      %21 = vector.broadcast %20 : vector<1x128xf32> to vector<64x128xf32>
      %22 = arith.addf %17, %21 : vector<64x128xf32>
      %cst_13 = arith.constant 0.000000e+00 : f32
      %23 = vector.broadcast %cst_13 : f32 to vector<64x128xf32>
      %24 = arith.maximumf %22, %23 : vector<64x128xf32>
      %25 = arith.truncf %24 : vector<64x128xf32> to vector<64x128xbf16>
      %c0_14 = arith.constant 0 : index
      %c0_15 = arith.constant 0 : index
      %c0_16 = arith.constant 0 : index
      %26 = vector.load %arg7[%c0_14, %c0_15, %c0_16] : memref<9x64x64xbf16, #tpu.memory_space<vmem>>, vector<1x64x64xbf16>
      %27 = vector.shape_cast %26 : vector<1x64x64xbf16> to vector<64x64xbf16>
      %cst_17 = arith.constant dense<0.000000e+00> : vector<64x128xf32>
      %28 = tpu.matmul %27, %25, %cst_17 {dimension_numbers = #tpu.dot_dimension_numbers<[1], [0], [0], [1], [0, 0, 1, 1], [], []>} : vector<64x64xbf16>, vector<64x128xbf16>, vector<64x128xf32> -> vector<64x128xf32>
      %29 = arith.truncf %28 : vector<64x128xf32> to vector<64x128xbf16>
      %c1 = arith.constant 1 : index
      %c0_18 = arith.constant 0 : index
      %c0_19 = arith.constant 0 : index
      %30 = vector.load %arg7[%c1, %c0_18, %c0_19] : memref<9x64x64xbf16, #tpu.memory_space<vmem>>, vector<1x64x64xbf16>
      %31 = vector.shape_cast %30 : vector<1x64x64xbf16> to vector<64x64xbf16>
      %cst_20 = arith.constant dense<0.000000e+00> : vector<64x128xf32>
      %32 = tpu.matmul %31, %25, %cst_20 {dimension_numbers = #tpu.dot_dimension_numbers<[1], [0], [0], [1], [0, 0, 1, 1], [], []>} : vector<64x64xbf16>, vector<64x128xbf16>, vector<64x128xf32> -> vector<64x128xf32>
      %33 = arith.truncf %32 : vector<64x128xf32> to vector<64x128xbf16>
      %c2 = arith.constant 2 : index
      %c0_21 = arith.constant 0 : index
      %c0_22 = arith.constant 0 : index
      %34 = vector.load %arg7[%c2, %c0_21, %c0_22] : memref<9x64x64xbf16, #tpu.memory_space<vmem>>, vector<1x64x64xbf16>
      %35 = vector.shape_cast %34 : vector<1x64x64xbf16> to vector<64x64xbf16>
      %cst_23 = arith.constant dense<0.000000e+00> : vector<64x128xf32>
      %36 = tpu.matmul %35, %25, %cst_23 {dimension_numbers = #tpu.dot_dimension_numbers<[1], [0], [0], [1], [0, 0, 1, 1], [], []>} : vector<64x64xbf16>, vector<64x128xbf16>, vector<64x128xf32> -> vector<64x128xf32>
      %37 = arith.truncf %36 : vector<64x128xf32> to vector<64x128xbf16>
      %c3 = arith.constant 3 : index
      %c0_24 = arith.constant 0 : index
      %c0_25 = arith.constant 0 : index
      %38 = vector.load %arg7[%c3, %c0_24, %c0_25] : memref<9x64x64xbf16, #tpu.memory_space<vmem>>, vector<1x64x64xbf16>
      %39 = vector.shape_cast %38 : vector<1x64x64xbf16> to vector<64x64xbf16>
      %cst_26 = arith.constant dense<0.000000e+00> : vector<64x128xf32>
      %40 = tpu.matmul %39, %25, %cst_26 {dimension_numbers = #tpu.dot_dimension_numbers<[1], [0], [0], [1], [0, 0, 1, 1], [], []>} : vector<64x64xbf16>, vector<64x128xbf16>, vector<64x128xf32> -> vector<64x128xf32>
      %41 = arith.truncf %40 : vector<64x128xf32> to vector<64x128xbf16>
      %c4 = arith.constant 4 : index
      %c0_27 = arith.constant 0 : index
      %c0_28 = arith.constant 0 : index
      %42 = vector.load %arg7[%c4, %c0_27, %c0_28] : memref<9x64x64xbf16, #tpu.memory_space<vmem>>, vector<1x64x64xbf16>
      %43 = vector.shape_cast %42 : vector<1x64x64xbf16> to vector<64x64xbf16>
      %cst_29 = arith.constant dense<0.000000e+00> : vector<64x128xf32>
      %44 = tpu.matmul %43, %25, %cst_29 {dimension_numbers = #tpu.dot_dimension_numbers<[1], [0], [0], [1], [0, 0, 1, 1], [], []>} : vector<64x64xbf16>, vector<64x128xbf16>, vector<64x128xf32> -> vector<64x128xf32>
      %45 = arith.truncf %44 : vector<64x128xf32> to vector<64x128xbf16>
      %c5 = arith.constant 5 : index
      %c0_30 = arith.constant 0 : index
      %c0_31 = arith.constant 0 : index
      %46 = vector.load %arg7[%c5, %c0_30, %c0_31] : memref<9x64x64xbf16, #tpu.memory_space<vmem>>, vector<1x64x64xbf16>
      %47 = vector.shape_cast %46 : vector<1x64x64xbf16> to vector<64x64xbf16>
      %cst_32 = arith.constant dense<0.000000e+00> : vector<64x128xf32>
      %48 = tpu.matmul %47, %25, %cst_32 {dimension_numbers = #tpu.dot_dimension_numbers<[1], [0], [0], [1], [0, 0, 1, 1], [], []>} : vector<64x64xbf16>, vector<64x128xbf16>, vector<64x128xf32> -> vector<64x128xf32>
      %49 = arith.truncf %48 : vector<64x128xf32> to vector<64x128xbf16>
      %c6 = arith.constant 6 : index
      %c0_33 = arith.constant 0 : index
      %c0_34 = arith.constant 0 : index
      %50 = vector.load %arg7[%c6, %c0_33, %c0_34] : memref<9x64x64xbf16, #tpu.memory_space<vmem>>, vector<1x64x64xbf16>
      %51 = vector.shape_cast %50 : vector<1x64x64xbf16> to vector<64x64xbf16>
      %cst_35 = arith.constant dense<0.000000e+00> : vector<64x128xf32>
      %52 = tpu.matmul %51, %25, %cst_35 {dimension_numbers = #tpu.dot_dimension_numbers<[1], [0], [0], [1], [0, 0, 1, 1], [], []>} : vector<64x64xbf16>, vector<64x128xbf16>, vector<64x128xf32> -> vector<64x128xf32>
      %53 = arith.truncf %52 : vector<64x128xf32> to vector<64x128xbf16>
      %c7 = arith.constant 7 : index
      %c0_36 = arith.constant 0 : index
      %c0_37 = arith.constant 0 : index
      %54 = vector.load %arg7[%c7, %c0_36, %c0_37] : memref<9x64x64xbf16, #tpu.memory_space<vmem>>, vector<1x64x64xbf16>
      %55 = vector.shape_cast %54 : vector<1x64x64xbf16> to vector<64x64xbf16>
      %cst_38 = arith.constant dense<0.000000e+00> : vector<64x128xf32>
      %56 = tpu.matmul %55, %25, %cst_38 {dimension_numbers = #tpu.dot_dimension_numbers<[1], [0], [0], [1], [0, 0, 1, 1], [], []>} : vector<64x64xbf16>, vector<64x128xbf16>, vector<64x128xf32> -> vector<64x128xf32>
      %57 = arith.truncf %56 : vector<64x128xf32> to vector<64x128xbf16>
      %c8 = arith.constant 8 : index
      %c0_39 = arith.constant 0 : index
      %c0_40 = arith.constant 0 : index
      %58 = vector.load %arg7[%c8, %c0_39, %c0_40] : memref<9x64x64xbf16, #tpu.memory_space<vmem>>, vector<1x64x64xbf16>
      %59 = vector.shape_cast %58 : vector<1x64x64xbf16> to vector<64x64xbf16>
      %cst_41 = arith.constant dense<0.000000e+00> : vector<64x128xf32>
      %60 = tpu.matmul %59, %25, %cst_41 {dimension_numbers = #tpu.dot_dimension_numbers<[1], [0], [0], [1], [0, 0, 1, 1], [], []>} : vector<64x64xbf16>, vector<64x128xbf16>, vector<64x128xf32> -> vector<64x128xf32>
      %61 = arith.truncf %60 : vector<64x128xf32> to vector<64x128xbf16>
      %62 = tpu.concatenate %29, %33, %37, %41, %45, %49, %53, %57, %61 in 1 : vector<64x128xbf16>, vector<64x128xbf16>, vector<64x128xbf16>, vector<64x128xbf16>, vector<64x128xbf16>, vector<64x128xbf16>, vector<64x128xbf16>, vector<64x128xbf16>, vector<64x128xbf16> -> vector<64x1152xbf16>
      %63 = arith.index_cast %arg11 : i32 to index
      %c0_42 = arith.constant 0 : index
      %c0_43 = arith.constant 0 : index
      %64 = vector.load %arg4[%63, %c0_42, %c0_43] : memref<6x1152x32xbf16, #tpu.memory_space<vmem>>, vector<1x1152x32xbf16>
      %65 = vector.shape_cast %64 : vector<1x1152x32xbf16> to vector<1152x32xbf16>
      %cst_44 = arith.constant dense<0.000000e+00> : vector<64x32xf32>
      %66 = tpu.matmul %62, %65, %cst_44 {dimension_numbers = #tpu.dot_dimension_numbers<[1], [0], [0], [1], [0, 0, 1, 1], [], []>} : vector<64x1152xbf16>, vector<1152x32xbf16>, vector<64x32xf32> -> vector<64x32xf32>
      %67 = arith.index_cast %arg11 : i32 to index
      %c0_45 = arith.constant 0 : index
      %c0_46 = arith.constant 0 : index
      %68 = vector.load %arg5[%67, %c0_45, %c0_46] : memref<6x1x32xf32, #tpu.memory_space<vmem>>, vector<1x1x32xf32>
      %69 = vector.shape_cast %68 : vector<1x1x32xf32> to vector<1x32xf32>
      %70 = vector.broadcast %69 : vector<1x32xf32> to vector<64x32xf32>
      %71 = arith.addf %66, %70 : vector<64x32xf32>
      %cst_47 = arith.constant 0.000000e+00 : f32
      %72 = vector.broadcast %cst_47 : f32 to vector<64x32xf32>
      %73 = arith.maximumf %71, %72 : vector<64x32xf32>
      %74 = arith.truncf %73 : vector<64x32xf32> to vector<64x32xbf16>
      %75 = arith.index_cast %arg11 : i32 to index
      %c0_48 = arith.constant 0 : index
      %c0_49 = arith.constant 0 : index
      %76 = vector.load %arg6[%75, %c0_48, %c0_49] : memref<6x32x256xbf16, #tpu.memory_space<vmem>>, vector<1x32x256xbf16>
      %77 = vector.shape_cast %76 : vector<1x32x256xbf16> to vector<32x256xbf16>
      %cst_50 = arith.constant dense<0.000000e+00> : vector<64x256xf32>
      %78 = tpu.matmul %74, %77, %cst_50 {dimension_numbers = #tpu.dot_dimension_numbers<[1], [0], [0], [1], [0, 0, 1, 1], [], []>} : vector<64x32xbf16>, vector<32x256xbf16>, vector<64x256xf32> -> vector<64x256xf32>
      %79 = arith.truncf %78 : vector<64x256xf32> to vector<64x256xbf16>
      %80 = arith.addf %arg12, %79 : vector<64x256xbf16>
      scf.yield %80 : vector<64x256xbf16>
    }
    %c6_i32_1 = arith.constant 6 : i32
    %5 = arith.extf %4 : vector<64x256xbf16> to vector<64x256xf32>
    %c0_2 = arith.constant 0 : index
    %c0_3 = arith.constant 0 : index
    %6 = vector.load %arg8[%c0_2, %c0_3] : memref<1x256xf32, #tpu.memory_space<vmem>>, vector<1x256xf32>
    %7 = vector.broadcast %6 : vector<1x256xf32> to vector<64x256xf32>
    %8 = arith.mulf %5, %7 : vector<64x256xf32>
    %c0_4 = arith.constant 0 : index
    %c0_5 = arith.constant 0 : index
    %9 = vector.load %arg9[%c0_4, %c0_5] : memref<1x256xf32, #tpu.memory_space<vmem>>, vector<1x256xf32>
    %10 = vector.broadcast %9 : vector<1x256xf32> to vector<64x256xf32>
    %11 = arith.addf %8, %10 : vector<64x256xf32>
    %12 = arith.truncf %11 : vector<64x256xf32> to vector<64x256xbf16>
    %c0_6 = arith.constant 0 : index
    %c0_7 = arith.constant 0 : index
    %13 = vector.load %arg10[%c0_6, %c0_7] : memref<64x256xbf16, #tpu.memory_space<vmem>>, vector<64x256xbf16>
    tpu.vector_store %arg10[%c0_6, %c0_7], %12 {strides = array<i32>} : memref<64x256xbf16, #tpu.memory_space<vmem>>, vector<64x256xbf16>,
    return
  }
  func.func @transform_0(%arg0: i32) -> (i32, i32) {
    %c0_i32 = arith.constant 0 : i32
    %c0_i32_0 = arith.constant 0 : i32
    return %arg0, %c0_i32 : i32, i32
  }
  func.func @transform_1(%arg0: i32) -> (i32, i32, i32) {
    %c0_i32 = arith.constant 0 : i32
    %c0_i32_0 = arith.constant 0 : i32
    %c0_i32_1 = arith.constant 0 : i32
    %c0_i32_2 = arith.constant 0 : i32
    return %c0_i32, %c0_i32_0, %c0_i32_1 : i32, i32, i32
  }
  func.func @transform_2(%arg0: i32) -> (i32, i32, i32) {
    %c0_i32 = arith.constant 0 : i32
    %c0_i32_0 = arith.constant 0 : i32
    %c0_i32_1 = arith.constant 0 : i32
    %c0_i32_2 = arith.constant 0 : i32
    return %c0_i32, %c0_i32_0, %c0_i32_1 : i32, i32, i32
  }
  func.func @transform_3(%arg0: i32) -> (i32, i32, i32) {
    %c0_i32 = arith.constant 0 : i32
    %c0_i32_0 = arith.constant 0 : i32
    %c0_i32_1 = arith.constant 0 : i32
    %c0_i32_2 = arith.constant 0 : i32
    return %c0_i32, %c0_i32_0, %c0_i32_1 : i32, i32, i32
  }
  func.func @transform_4(%arg0: i32) -> (i32, i32, i32) {
    %c0_i32 = arith.constant 0 : i32
    %c0_i32_0 = arith.constant 0 : i32
    %c0_i32_1 = arith.constant 0 : i32
    %c0_i32_2 = arith.constant 0 : i32
    return %c0_i32, %c0_i32_0, %c0_i32_1 : i32, i32, i32
  }
  func.func @transform_5(%arg0: i32) -> (i32, i32, i32) {
    %c0_i32 = arith.constant 0 : i32
    %c0_i32_0 = arith.constant 0 : i32
    %c0_i32_1 = arith.constant 0 : i32
    %c0_i32_2 = arith.constant 0 : i32
    return %c0_i32, %c0_i32_0, %c0_i32_1 : i32, i32, i32
  }
  func.func @transform_6(%arg0: i32) -> (i32, i32, i32) {
    %c0_i32 = arith.constant 0 : i32
    %c0_i32_0 = arith.constant 0 : i32
    %c0_i32_1 = arith.constant 0 : i32
    %c0_i32_2 = arith.constant 0 : i32
    return %c0_i32, %c0_i32_0, %c0_i32_1 : i32, i32, i32
  }
  func.func @transform_7(%arg0: i32) -> (i32, i32) {
    %c0_i32 = arith.constant 0 : i32
    %c0_i32_0 = arith.constant 0 : i32
    %c0_i32_1 = arith.constant 0 : i32
    return %c0_i32, %c0_i32_0 : i32, i32
  }
  func.func @transform_8(%arg0: i32) -> (i32, i32) {
    %c0_i32 = arith.constant 0 : i32
    %c0_i32_0 = arith.constant 0 : i32
    %c0_i32_1 = arith.constant 0 : i32
    return %c0_i32, %c0_i32_0 : i32, i32
  }
  func.func @transform_9(%arg0: i32) -> (i32, i32) {
    %c0_i32 = arith.constant 0 : i32
    %c0_i32_0 = arith.constant 0 : i32
    return %arg0, %c0_i32 : i32, i32
  }
}

module attributes {stable_mosaic.version = 11 : i64} {
  func.func @_dense_stage_kernel(%arg0: i32, %arg1: memref<16x128xbf16, #tpu.memory_space<vmem>>, %arg2: memref<12x512x128xbf16, #tpu.memory_space<vmem>>, %arg3: memref<12x1x128xf32, #tpu.memory_space<vmem>>, %arg4: memref<12x1152x32xbf16, #tpu.memory_space<vmem>>, %arg5: memref<12x1x32xf32, #tpu.memory_space<vmem>>, %arg6: memref<12x32x512xbf16, #tpu.memory_space<vmem>>, %arg7: memref<9x16x16xbf16, #tpu.memory_space<vmem>>, %arg8: memref<1x512xf32, #tpu.memory_space<vmem>>, %arg9: memref<1x512xf32, #tpu.memory_space<vmem>>, %arg10: memref<16x512xbf16, #tpu.memory_space<vmem>>) attributes {dimension_semantics = [#tpu.dimension_semantics<parallel>], iteration_bounds = array<i64: 2>, scalar_prefetch = 0 : i64, scratch_operands = 0 : i64, tpu.core_type = #tpu.core_type<tc>, window_params = [{transform_indices = @transform_0, window_bounds = array<i64: 16, 128>}, {pipeline_mode = #tpu.pipeline_mode<synchronous>, transform_indices = @transform_1, window_bounds = array<i64: 12, 512, 128>}, {pipeline_mode = #tpu.pipeline_mode<synchronous>, transform_indices = @transform_2, window_bounds = array<i64: 12, 1, 128>}, {pipeline_mode = #tpu.pipeline_mode<synchronous>, transform_indices = @transform_3, window_bounds = array<i64: 12, 1152, 32>}, {pipeline_mode = #tpu.pipeline_mode<synchronous>, transform_indices = @transform_4, window_bounds = array<i64: 12, 1, 32>}, {pipeline_mode = #tpu.pipeline_mode<synchronous>, transform_indices = @transform_5, window_bounds = array<i64: 12, 32, 512>}, {pipeline_mode = #tpu.pipeline_mode<synchronous>, transform_indices = @transform_6, window_bounds = array<i64: 9, 16, 16>}, {pipeline_mode = #tpu.pipeline_mode<synchronous>, transform_indices = @transform_7, window_bounds = array<i64: 1, 512>}, {pipeline_mode = #tpu.pipeline_mode<synchronous>, transform_indices = @transform_8, window_bounds = array<i64: 1, 512>}, {transform_indices = @transform_9, window_bounds = array<i64: 16, 512>}]} {
    %c0 = arith.constant 0 : index
    %c0_0 = arith.constant 0 : index
    %0 = vector.load %arg1[%c0, %c0_0] : memref<16x128xbf16, #tpu.memory_space<vmem>>, vector<16x128xbf16>
    %cst = arith.constant 0.000000e+00 : bf16
    %1 = vector.broadcast %cst : bf16 to vector<16x384xbf16>
    %2 = tpu.concatenate %0, %1 in 1 : vector<16x128xbf16>, vector<16x384xbf16> -> vector<16x512xbf16>
    %c0_i32 = arith.constant 0 : i32
    %c12_i32 = arith.constant 12 : i32
    %3 = arith.addi %c0_i32, %c12_i32 : i32
    %c1_i32 = arith.constant 1 : i32
    %4 = scf.for %arg11 = %c0_i32 to %3 step %c1_i32 iter_args(%arg12 = %2) -> (vector<16x512xbf16>)  : i32 {
      %14 = arith.index_cast %arg11 : i32 to index
      %c0_8 = arith.constant 0 : index
      %c0_9 = arith.constant 0 : index
      %15 = vector.load %arg2[%14, %c0_8, %c0_9] : memref<12x512x128xbf16, #tpu.memory_space<vmem>>, vector<1x512x128xbf16>
      %16 = vector.shape_cast %15 : vector<1x512x128xbf16> to vector<512x128xbf16>
      %cst_10 = arith.constant dense<0.000000e+00> : vector<16x128xf32>
      %17 = tpu.matmul %arg12, %16, %cst_10 {dimension_numbers = #tpu.dot_dimension_numbers<[1], [0], [0], [1], [0, 0, 1, 1], [], []>} : vector<16x512xbf16>, vector<512x128xbf16>, vector<16x128xf32> -> vector<16x128xf32>
      %18 = arith.index_cast %arg11 : i32 to index
      %c0_11 = arith.constant 0 : index
      %c0_12 = arith.constant 0 : index
      %19 = vector.load %arg3[%18, %c0_11, %c0_12] : memref<12x1x128xf32, #tpu.memory_space<vmem>>, vector<1x1x128xf32>
      %20 = vector.shape_cast %19 : vector<1x1x128xf32> to vector<1x128xf32>
      %21 = vector.broadcast %20 : vector<1x128xf32> to vector<16x128xf32>
      %22 = arith.addf %17, %21 : vector<16x128xf32>
      %cst_13 = arith.constant 0.000000e+00 : f32
      %23 = vector.broadcast %cst_13 : f32 to vector<16x128xf32>
      %24 = arith.maximumf %22, %23 : vector<16x128xf32>
      %25 = arith.truncf %24 : vector<16x128xf32> to vector<16x128xbf16>
      %c0_14 = arith.constant 0 : index
      %c0_15 = arith.constant 0 : index
      %c0_16 = arith.constant 0 : index
      %26 = vector.load %arg7[%c0_14, %c0_15, %c0_16] : memref<9x16x16xbf16, #tpu.memory_space<vmem>>, vector<1x16x16xbf16>
      %27 = vector.shape_cast %26 : vector<1x16x16xbf16> to vector<16x16xbf16>
      %cst_17 = arith.constant dense<0.000000e+00> : vector<16x128xf32>
      %28 = tpu.matmul %27, %25, %cst_17 {dimension_numbers = #tpu.dot_dimension_numbers<[1], [0], [0], [1], [0, 0, 1, 1], [], []>} : vector<16x16xbf16>, vector<16x128xbf16>, vector<16x128xf32> -> vector<16x128xf32>
      %29 = arith.truncf %28 : vector<16x128xf32> to vector<16x128xbf16>
      %c1 = arith.constant 1 : index
      %c0_18 = arith.constant 0 : index
      %c0_19 = arith.constant 0 : index
      %30 = vector.load %arg7[%c1, %c0_18, %c0_19] : memref<9x16x16xbf16, #tpu.memory_space<vmem>>, vector<1x16x16xbf16>
      %31 = vector.shape_cast %30 : vector<1x16x16xbf16> to vector<16x16xbf16>
      %cst_20 = arith.constant dense<0.000000e+00> : vector<16x128xf32>
      %32 = tpu.matmul %31, %25, %cst_20 {dimension_numbers = #tpu.dot_dimension_numbers<[1], [0], [0], [1], [0, 0, 1, 1], [], []>} : vector<16x16xbf16>, vector<16x128xbf16>, vector<16x128xf32> -> vector<16x128xf32>
      %33 = arith.truncf %32 : vector<16x128xf32> to vector<16x128xbf16>
      %c2 = arith.constant 2 : index
      %c0_21 = arith.constant 0 : index
      %c0_22 = arith.constant 0 : index
      %34 = vector.load %arg7[%c2, %c0_21, %c0_22] : memref<9x16x16xbf16, #tpu.memory_space<vmem>>, vector<1x16x16xbf16>
      %35 = vector.shape_cast %34 : vector<1x16x16xbf16> to vector<16x16xbf16>
      %cst_23 = arith.constant dense<0.000000e+00> : vector<16x128xf32>
      %36 = tpu.matmul %35, %25, %cst_23 {dimension_numbers = #tpu.dot_dimension_numbers<[1], [0], [0], [1], [0, 0, 1, 1], [], []>} : vector<16x16xbf16>, vector<16x128xbf16>, vector<16x128xf32> -> vector<16x128xf32>
      %37 = arith.truncf %36 : vector<16x128xf32> to vector<16x128xbf16>
      %c3 = arith.constant 3 : index
      %c0_24 = arith.constant 0 : index
      %c0_25 = arith.constant 0 : index
      %38 = vector.load %arg7[%c3, %c0_24, %c0_25] : memref<9x16x16xbf16, #tpu.memory_space<vmem>>, vector<1x16x16xbf16>
      %39 = vector.shape_cast %38 : vector<1x16x16xbf16> to vector<16x16xbf16>
      %cst_26 = arith.constant dense<0.000000e+00> : vector<16x128xf32>
      %40 = tpu.matmul %39, %25, %cst_26 {dimension_numbers = #tpu.dot_dimension_numbers<[1], [0], [0], [1], [0, 0, 1, 1], [], []>} : vector<16x16xbf16>, vector<16x128xbf16>, vector<16x128xf32> -> vector<16x128xf32>
      %41 = arith.truncf %40 : vector<16x128xf32> to vector<16x128xbf16>
      %c4 = arith.constant 4 : index
      %c0_27 = arith.constant 0 : index
      %c0_28 = arith.constant 0 : index
      %42 = vector.load %arg7[%c4, %c0_27, %c0_28] : memref<9x16x16xbf16, #tpu.memory_space<vmem>>, vector<1x16x16xbf16>
      %43 = vector.shape_cast %42 : vector<1x16x16xbf16> to vector<16x16xbf16>
      %cst_29 = arith.constant dense<0.000000e+00> : vector<16x128xf32>
      %44 = tpu.matmul %43, %25, %cst_29 {dimension_numbers = #tpu.dot_dimension_numbers<[1], [0], [0], [1], [0, 0, 1, 1], [], []>} : vector<16x16xbf16>, vector<16x128xbf16>, vector<16x128xf32> -> vector<16x128xf32>
      %45 = arith.truncf %44 : vector<16x128xf32> to vector<16x128xbf16>
      %c5 = arith.constant 5 : index
      %c0_30 = arith.constant 0 : index
      %c0_31 = arith.constant 0 : index
      %46 = vector.load %arg7[%c5, %c0_30, %c0_31] : memref<9x16x16xbf16, #tpu.memory_space<vmem>>, vector<1x16x16xbf16>
      %47 = vector.shape_cast %46 : vector<1x16x16xbf16> to vector<16x16xbf16>
      %cst_32 = arith.constant dense<0.000000e+00> : vector<16x128xf32>
      %48 = tpu.matmul %47, %25, %cst_32 {dimension_numbers = #tpu.dot_dimension_numbers<[1], [0], [0], [1], [0, 0, 1, 1], [], []>} : vector<16x16xbf16>, vector<16x128xbf16>, vector<16x128xf32> -> vector<16x128xf32>
      %49 = arith.truncf %48 : vector<16x128xf32> to vector<16x128xbf16>
      %c6 = arith.constant 6 : index
      %c0_33 = arith.constant 0 : index
      %c0_34 = arith.constant 0 : index
      %50 = vector.load %arg7[%c6, %c0_33, %c0_34] : memref<9x16x16xbf16, #tpu.memory_space<vmem>>, vector<1x16x16xbf16>
      %51 = vector.shape_cast %50 : vector<1x16x16xbf16> to vector<16x16xbf16>
      %cst_35 = arith.constant dense<0.000000e+00> : vector<16x128xf32>
      %52 = tpu.matmul %51, %25, %cst_35 {dimension_numbers = #tpu.dot_dimension_numbers<[1], [0], [0], [1], [0, 0, 1, 1], [], []>} : vector<16x16xbf16>, vector<16x128xbf16>, vector<16x128xf32> -> vector<16x128xf32>
      %53 = arith.truncf %52 : vector<16x128xf32> to vector<16x128xbf16>
      %c7 = arith.constant 7 : index
      %c0_36 = arith.constant 0 : index
      %c0_37 = arith.constant 0 : index
      %54 = vector.load %arg7[%c7, %c0_36, %c0_37] : memref<9x16x16xbf16, #tpu.memory_space<vmem>>, vector<1x16x16xbf16>
      %55 = vector.shape_cast %54 : vector<1x16x16xbf16> to vector<16x16xbf16>
      %cst_38 = arith.constant dense<0.000000e+00> : vector<16x128xf32>
      %56 = tpu.matmul %55, %25, %cst_38 {dimension_numbers = #tpu.dot_dimension_numbers<[1], [0], [0], [1], [0, 0, 1, 1], [], []>} : vector<16x16xbf16>, vector<16x128xbf16>, vector<16x128xf32> -> vector<16x128xf32>
      %57 = arith.truncf %56 : vector<16x128xf32> to vector<16x128xbf16>
      %c8 = arith.constant 8 : index
      %c0_39 = arith.constant 0 : index
      %c0_40 = arith.constant 0 : index
      %58 = vector.load %arg7[%c8, %c0_39, %c0_40] : memref<9x16x16xbf16, #tpu.memory_space<vmem>>, vector<1x16x16xbf16>
      %59 = vector.shape_cast %58 : vector<1x16x16xbf16> to vector<16x16xbf16>
      %cst_41 = arith.constant dense<0.000000e+00> : vector<16x128xf32>
      %60 = tpu.matmul %59, %25, %cst_41 {dimension_numbers = #tpu.dot_dimension_numbers<[1], [0], [0], [1], [0, 0, 1, 1], [], []>} : vector<16x16xbf16>, vector<16x128xbf16>, vector<16x128xf32> -> vector<16x128xf32>
      %61 = arith.truncf %60 : vector<16x128xf32> to vector<16x128xbf16>
      %62 = tpu.concatenate %29, %33, %37, %41, %45, %49, %53, %57, %61 in 1 : vector<16x128xbf16>, vector<16x128xbf16>, vector<16x128xbf16>, vector<16x128xbf16>, vector<16x128xbf16>, vector<16x128xbf16>, vector<16x128xbf16>, vector<16x128xbf16>, vector<16x128xbf16> -> vector<16x1152xbf16>
      %63 = arith.index_cast %arg11 : i32 to index
      %c0_42 = arith.constant 0 : index
      %c0_43 = arith.constant 0 : index
      %64 = vector.load %arg4[%63, %c0_42, %c0_43] : memref<12x1152x32xbf16, #tpu.memory_space<vmem>>, vector<1x1152x32xbf16>
      %65 = vector.shape_cast %64 : vector<1x1152x32xbf16> to vector<1152x32xbf16>
      %cst_44 = arith.constant dense<0.000000e+00> : vector<16x32xf32>
      %66 = tpu.matmul %62, %65, %cst_44 {dimension_numbers = #tpu.dot_dimension_numbers<[1], [0], [0], [1], [0, 0, 1, 1], [], []>} : vector<16x1152xbf16>, vector<1152x32xbf16>, vector<16x32xf32> -> vector<16x32xf32>
      %67 = arith.index_cast %arg11 : i32 to index
      %c0_45 = arith.constant 0 : index
      %c0_46 = arith.constant 0 : index
      %68 = vector.load %arg5[%67, %c0_45, %c0_46] : memref<12x1x32xf32, #tpu.memory_space<vmem>>, vector<1x1x32xf32>
      %69 = vector.shape_cast %68 : vector<1x1x32xf32> to vector<1x32xf32>
      %70 = vector.broadcast %69 : vector<1x32xf32> to vector<16x32xf32>
      %71 = arith.addf %66, %70 : vector<16x32xf32>
      %cst_47 = arith.constant 0.000000e+00 : f32
      %72 = vector.broadcast %cst_47 : f32 to vector<16x32xf32>
      %73 = arith.maximumf %71, %72 : vector<16x32xf32>
      %74 = arith.truncf %73 : vector<16x32xf32> to vector<16x32xbf16>
      %75 = arith.index_cast %arg11 : i32 to index
      %c0_48 = arith.constant 0 : index
      %c0_49 = arith.constant 0 : index
      %76 = vector.load %arg6[%75, %c0_48, %c0_49] : memref<12x32x512xbf16, #tpu.memory_space<vmem>>, vector<1x32x512xbf16>
      %77 = vector.shape_cast %76 : vector<1x32x512xbf16> to vector<32x512xbf16>
      %cst_50 = arith.constant dense<0.000000e+00> : vector<16x512xf32>
      %78 = tpu.matmul %74, %77, %cst_50 {dimension_numbers = #tpu.dot_dimension_numbers<[1], [0], [0], [1], [0, 0, 1, 1], [], []>} : vector<16x32xbf16>, vector<32x512xbf16>, vector<16x512xf32> -> vector<16x512xf32>
      %79 = arith.truncf %78 : vector<16x512xf32> to vector<16x512xbf16>
      %80 = arith.addf %arg12, %79 : vector<16x512xbf16>
      scf.yield %80 : vector<16x512xbf16>
    }
    %c12_i32_1 = arith.constant 12 : i32
    %5 = arith.extf %4 : vector<16x512xbf16> to vector<16x512xf32>
    %c0_2 = arith.constant 0 : index
    %c0_3 = arith.constant 0 : index
    %6 = vector.load %arg8[%c0_2, %c0_3] : memref<1x512xf32, #tpu.memory_space<vmem>>, vector<1x512xf32>
    %7 = vector.broadcast %6 : vector<1x512xf32> to vector<16x512xf32>
    %8 = arith.mulf %5, %7 : vector<16x512xf32>
    %c0_4 = arith.constant 0 : index
    %c0_5 = arith.constant 0 : index
    %9 = vector.load %arg9[%c0_4, %c0_5] : memref<1x512xf32, #tpu.memory_space<vmem>>, vector<1x512xf32>
    %10 = vector.broadcast %9 : vector<1x512xf32> to vector<16x512xf32>
    %11 = arith.addf %8, %10 : vector<16x512xf32>
    %12 = arith.truncf %11 : vector<16x512xf32> to vector<16x512xbf16>
    %c0_6 = arith.constant 0 : index
    %c0_7 = arith.constant 0 : index
    %13 = vector.load %arg10[%c0_6, %c0_7] : memref<16x512xbf16, #tpu.memory_space<vmem>>, vector<16x512xbf16>
    tpu.vector_store %arg10[%c0_6, %c0_7], %12 {strides = array<i32>} : memref<16x512xbf16, #tpu.memory_space<vmem>>, vector<16x512xbf16>,
    return
  }
  func.func @transform_0(%arg0: i32) -> (i32, i32) {
    %c0_i32 = arith.constant 0 : i32
    %c0_i32_0 = arith.constant 0 : i32
    return %arg0, %c0_i32 : i32, i32
  }
  func.func @transform_1(%arg0: i32) -> (i32, i32, i32) {
    %c0_i32 = arith.constant 0 : i32
    %c0_i32_0 = arith.constant 0 : i32
    %c0_i32_1 = arith.constant 0 : i32
    %c0_i32_2 = arith.constant 0 : i32
    return %c0_i32, %c0_i32_0, %c0_i32_1 : i32, i32, i32
  }
  func.func @transform_2(%arg0: i32) -> (i32, i32, i32) {
    %c0_i32 = arith.constant 0 : i32
    %c0_i32_0 = arith.constant 0 : i32
    %c0_i32_1 = arith.constant 0 : i32
    %c0_i32_2 = arith.constant 0 : i32
    return %c0_i32, %c0_i32_0, %c0_i32_1 : i32, i32, i32
  }
  func.func @transform_3(%arg0: i32) -> (i32, i32, i32) {
    %c0_i32 = arith.constant 0 : i32
    %c0_i32_0 = arith.constant 0 : i32
    %c0_i32_1 = arith.constant 0 : i32
    %c0_i32_2 = arith.constant 0 : i32
    return %c0_i32, %c0_i32_0, %c0_i32_1 : i32, i32, i32
  }
  func.func @transform_4(%arg0: i32) -> (i32, i32, i32) {
    %c0_i32 = arith.constant 0 : i32
    %c0_i32_0 = arith.constant 0 : i32
    %c0_i32_1 = arith.constant 0 : i32
    %c0_i32_2 = arith.constant 0 : i32
    return %c0_i32, %c0_i32_0, %c0_i32_1 : i32, i32, i32
  }
  func.func @transform_5(%arg0: i32) -> (i32, i32, i32) {
    %c0_i32 = arith.constant 0 : i32
    %c0_i32_0 = arith.constant 0 : i32
    %c0_i32_1 = arith.constant 0 : i32
    %c0_i32_2 = arith.constant 0 : i32
    return %c0_i32, %c0_i32_0, %c0_i32_1 : i32, i32, i32
  }
  func.func @transform_6(%arg0: i32) -> (i32, i32, i32) {
    %c0_i32 = arith.constant 0 : i32
    %c0_i32_0 = arith.constant 0 : i32
    %c0_i32_1 = arith.constant 0 : i32
    %c0_i32_2 = arith.constant 0 : i32
    return %c0_i32, %c0_i32_0, %c0_i32_1 : i32, i32, i32
  }
  func.func @transform_7(%arg0: i32) -> (i32, i32) {
    %c0_i32 = arith.constant 0 : i32
    %c0_i32_0 = arith.constant 0 : i32
    %c0_i32_1 = arith.constant 0 : i32
    return %c0_i32, %c0_i32_0 : i32, i32
  }
  func.func @transform_8(%arg0: i32) -> (i32, i32) {
    %c0_i32 = arith.constant 0 : i32
    %c0_i32_0 = arith.constant 0 : i32
    %c0_i32_1 = arith.constant 0 : i32
    return %c0_i32, %c0_i32_0 : i32, i32
  }
  func.func @transform_9(%arg0: i32) -> (i32, i32) {
    %c0_i32 = arith.constant 0 : i32
    %c0_i32_0 = arith.constant 0 : i32
    return %arg0, %c0_i32 : i32, i32
  }
}

module attributes {stable_mosaic.version = 11 : i64} {
  func.func @_transition_kernel(%arg0: i32, %arg1: memref<32x512xbf16, #tpu.memory_space<vmem>>, %arg2: memref<512x256xbf16, #tpu.memory_space<vmem>>, %arg3: memref<1x256xf32, #tpu.memory_space<vmem>>, %arg4: memref<8x32xbf16, #tpu.memory_space<vmem>>, %arg5: memref<8x256xbf16, #tpu.memory_space<vmem>>) attributes {dimension_semantics = [#tpu.dimension_semantics<arbitrary>], iteration_bounds = array<i64: 1>, scalar_prefetch = 0 : i64, scratch_operands = 0 : i64, tpu.core_type = #tpu.core_type<tc>, window_params = [{pipeline_mode = #tpu.pipeline_mode<synchronous>, transform_indices = @transform_0, window_bounds = array<i64: 32, 512>}, {pipeline_mode = #tpu.pipeline_mode<synchronous>, transform_indices = @transform_1, window_bounds = array<i64: 512, 256>}, {pipeline_mode = #tpu.pipeline_mode<synchronous>, transform_indices = @transform_2, window_bounds = array<i64: 1, 256>}, {pipeline_mode = #tpu.pipeline_mode<synchronous>, transform_indices = @transform_3, window_bounds = array<i64: 8, 32>}, {pipeline_mode = #tpu.pipeline_mode<synchronous>, transform_indices = @transform_4, window_bounds = array<i64: 8, 256>}]} {
    %c0 = arith.constant 0 : index
    %c0_0 = arith.constant 0 : index
    %0 = vector.load %arg1[%c0, %c0_0] : memref<32x512xbf16, #tpu.memory_space<vmem>>, vector<32x512xbf16>
    %c0_1 = arith.constant 0 : index
    %c0_2 = arith.constant 0 : index
    %1 = vector.load %arg2[%c0_1, %c0_2] : memref<512x256xbf16, #tpu.memory_space<vmem>>, vector<512x256xbf16>
    %cst = arith.constant dense<0.000000e+00> : vector<32x256xf32>
    %2 = tpu.matmul %0, %1, %cst {dimension_numbers = #tpu.dot_dimension_numbers<[1], [0], [0], [1], [0, 0, 1, 1], [], []>} : vector<32x512xbf16>, vector<512x256xbf16>, vector<32x256xf32> -> vector<32x256xf32>
    %c0_3 = arith.constant 0 : index
    %c0_4 = arith.constant 0 : index
    %3 = vector.load %arg3[%c0_3, %c0_4] : memref<1x256xf32, #tpu.memory_space<vmem>>, vector<1x256xf32>
    %4 = vector.broadcast %3 : vector<1x256xf32> to vector<32x256xf32>
    %5 = arith.addf %2, %4 : vector<32x256xf32>
    %cst_5 = arith.constant 0.000000e+00 : f32
    %6 = vector.broadcast %cst_5 : f32 to vector<32x256xf32>
    %7 = arith.maximumf %5, %6 : vector<32x256xf32>
    %8 = arith.truncf %7 : vector<32x256xf32> to vector<32x256xbf16>
    %c0_6 = arith.constant 0 : index
    %c0_7 = arith.constant 0 : index
    %9 = vector.load %arg4[%c0_6, %c0_7] : memref<8x32xbf16, #tpu.memory_space<vmem>>, vector<8x32xbf16>
    %cst_8 = arith.constant dense<0.000000e+00> : vector<8x256xf32>
    %10 = tpu.matmul %9, %8, %cst_8 {dimension_numbers = #tpu.dot_dimension_numbers<[1], [0], [0], [1], [0, 0, 1, 1], [], []>} : vector<8x32xbf16>, vector<32x256xbf16>, vector<8x256xf32> -> vector<8x256xf32>
    %11 = arith.truncf %10 : vector<8x256xf32> to vector<8x256xbf16>
    %c0_9 = arith.constant 0 : index
    %c0_10 = arith.constant 0 : index
    %12 = vector.load %arg5[%c0_9, %c0_10] : memref<8x256xbf16, #tpu.memory_space<vmem>>, vector<8x256xbf16>
    tpu.vector_store %arg5[%c0_9, %c0_10], %11 {strides = array<i32>} : memref<8x256xbf16, #tpu.memory_space<vmem>>, vector<8x256xbf16>,
    return
  }
  func.func @transform_0(%arg0: i32) -> (i32, i32) {
    %c0_i32 = arith.constant 0 : i32
    %c0_i32_0 = arith.constant 0 : i32
    %c0_i32_1 = arith.constant 0 : i32
    return %c0_i32, %c0_i32_0 : i32, i32
  }
  func.func @transform_1(%arg0: i32) -> (i32, i32) {
    %c0_i32 = arith.constant 0 : i32
    %c0_i32_0 = arith.constant 0 : i32
    %c0_i32_1 = arith.constant 0 : i32
    return %c0_i32, %c0_i32_0 : i32, i32
  }
  func.func @transform_2(%arg0: i32) -> (i32, i32) {
    %c0_i32 = arith.constant 0 : i32
    %c0_i32_0 = arith.constant 0 : i32
    %c0_i32_1 = arith.constant 0 : i32
    return %c0_i32, %c0_i32_0 : i32, i32
  }
  func.func @transform_3(%arg0: i32) -> (i32, i32) {
    %c0_i32 = arith.constant 0 : i32
    %c0_i32_0 = arith.constant 0 : i32
    %c0_i32_1 = arith.constant 0 : i32
    return %c0_i32, %c0_i32_0 : i32, i32
  }
  func.func @transform_4(%arg0: i32) -> (i32, i32) {
    %c0_i32 = arith.constant 0 : i32
    %c0_i32_0 = arith.constant 0 : i32
    %c0_i32_1 = arith.constant 0 : i32
    return %c0_i32, %c0_i32_0 : i32, i32
  }
}

module attributes {stable_mosaic.version = 11 : i64} {
  func.func @_dense_stage_kernel(%arg0: i32, %arg1: memref<8x256xbf16, #tpu.memory_space<vmem>>, %arg2: memref<24x1024x128xbf16, #tpu.memory_space<vmem>>, %arg3: memref<24x1x128xf32, #tpu.memory_space<vmem>>, %arg4: memref<24x1152x32xbf16, #tpu.memory_space<vmem>>, %arg5: memref<24x1x32xf32, #tpu.memory_space<vmem>>, %arg6: memref<24x32x1024xbf16, #tpu.memory_space<vmem>>, %arg7: memref<9x8x8xbf16, #tpu.memory_space<vmem>>, %arg8: memref<1x1024xf32, #tpu.memory_space<vmem>>, %arg9: memref<1x1024xf32, #tpu.memory_space<vmem>>, %arg10: memref<8x1024xf32, #tpu.memory_space<vmem>>) attributes {dimension_semantics = [#tpu.dimension_semantics<arbitrary>], iteration_bounds = array<i64: 1>, scalar_prefetch = 0 : i64, scratch_operands = 0 : i64, tpu.core_type = #tpu.core_type<tc>, window_params = [{transform_indices = @transform_0, window_bounds = array<i64: 8, 256>}, {pipeline_mode = #tpu.pipeline_mode<synchronous>, transform_indices = @transform_1, window_bounds = array<i64: 24, 1024, 128>}, {pipeline_mode = #tpu.pipeline_mode<synchronous>, transform_indices = @transform_2, window_bounds = array<i64: 24, 1, 128>}, {pipeline_mode = #tpu.pipeline_mode<synchronous>, transform_indices = @transform_3, window_bounds = array<i64: 24, 1152, 32>}, {pipeline_mode = #tpu.pipeline_mode<synchronous>, transform_indices = @transform_4, window_bounds = array<i64: 24, 1, 32>}, {pipeline_mode = #tpu.pipeline_mode<synchronous>, transform_indices = @transform_5, window_bounds = array<i64: 24, 32, 1024>}, {pipeline_mode = #tpu.pipeline_mode<synchronous>, transform_indices = @transform_6, window_bounds = array<i64: 9, 8, 8>}, {pipeline_mode = #tpu.pipeline_mode<synchronous>, transform_indices = @transform_7, window_bounds = array<i64: 1, 1024>}, {pipeline_mode = #tpu.pipeline_mode<synchronous>, transform_indices = @transform_8, window_bounds = array<i64: 1, 1024>}, {transform_indices = @transform_9, window_bounds = array<i64: 8, 1024>}]} {
    %c0 = arith.constant 0 : index
    %c0_0 = arith.constant 0 : index
    %0 = vector.load %arg1[%c0, %c0_0] : memref<8x256xbf16, #tpu.memory_space<vmem>>, vector<8x256xbf16>
    %cst = arith.constant 0.000000e+00 : bf16
    %1 = vector.broadcast %cst : bf16 to vector<8x768xbf16>
    %2 = tpu.concatenate %0, %1 in 1 : vector<8x256xbf16>, vector<8x768xbf16> -> vector<8x1024xbf16>
    %c0_i32 = arith.constant 0 : i32
    %c24_i32 = arith.constant 24 : i32
    %3 = arith.addi %c0_i32, %c24_i32 : i32
    %c1_i32 = arith.constant 1 : i32
    %4 = scf.for %arg11 = %c0_i32 to %3 step %c1_i32 iter_args(%arg12 = %2) -> (vector<8x1024xbf16>)  : i32 {
      %13 = arith.index_cast %arg11 : i32 to index
      %c0_8 = arith.constant 0 : index
      %c0_9 = arith.constant 0 : index
      %14 = vector.load %arg2[%13, %c0_8, %c0_9] : memref<24x1024x128xbf16, #tpu.memory_space<vmem>>, vector<1x1024x128xbf16>
      %15 = vector.shape_cast %14 : vector<1x1024x128xbf16> to vector<1024x128xbf16>
      %cst_10 = arith.constant dense<0.000000e+00> : vector<8x128xf32>
      %16 = tpu.matmul %arg12, %15, %cst_10 {dimension_numbers = #tpu.dot_dimension_numbers<[1], [0], [0], [1], [0, 0, 1, 1], [], []>} : vector<8x1024xbf16>, vector<1024x128xbf16>, vector<8x128xf32> -> vector<8x128xf32>
      %17 = arith.index_cast %arg11 : i32 to index
      %c0_11 = arith.constant 0 : index
      %c0_12 = arith.constant 0 : index
      %18 = vector.load %arg3[%17, %c0_11, %c0_12] : memref<24x1x128xf32, #tpu.memory_space<vmem>>, vector<1x1x128xf32>
      %19 = vector.shape_cast %18 : vector<1x1x128xf32> to vector<1x128xf32>
      %20 = vector.broadcast %19 : vector<1x128xf32> to vector<8x128xf32>
      %21 = arith.addf %16, %20 : vector<8x128xf32>
      %cst_13 = arith.constant 0.000000e+00 : f32
      %22 = vector.broadcast %cst_13 : f32 to vector<8x128xf32>
      %23 = arith.maximumf %21, %22 : vector<8x128xf32>
      %24 = arith.truncf %23 : vector<8x128xf32> to vector<8x128xbf16>
      %c0_14 = arith.constant 0 : index
      %c0_15 = arith.constant 0 : index
      %c0_16 = arith.constant 0 : index
      %25 = vector.load %arg7[%c0_14, %c0_15, %c0_16] : memref<9x8x8xbf16, #tpu.memory_space<vmem>>, vector<1x8x8xbf16>
      %26 = vector.shape_cast %25 : vector<1x8x8xbf16> to vector<8x8xbf16>
      %cst_17 = arith.constant dense<0.000000e+00> : vector<8x128xf32>
      %27 = tpu.matmul %26, %24, %cst_17 {dimension_numbers = #tpu.dot_dimension_numbers<[1], [0], [0], [1], [0, 0, 1, 1], [], []>} : vector<8x8xbf16>, vector<8x128xbf16>, vector<8x128xf32> -> vector<8x128xf32>
      %28 = arith.truncf %27 : vector<8x128xf32> to vector<8x128xbf16>
      %c1 = arith.constant 1 : index
      %c0_18 = arith.constant 0 : index
      %c0_19 = arith.constant 0 : index
      %29 = vector.load %arg7[%c1, %c0_18, %c0_19] : memref<9x8x8xbf16, #tpu.memory_space<vmem>>, vector<1x8x8xbf16>
      %30 = vector.shape_cast %29 : vector<1x8x8xbf16> to vector<8x8xbf16>
      %cst_20 = arith.constant dense<0.000000e+00> : vector<8x128xf32>
      %31 = tpu.matmul %30, %24, %cst_20 {dimension_numbers = #tpu.dot_dimension_numbers<[1], [0], [0], [1], [0, 0, 1, 1], [], []>} : vector<8x8xbf16>, vector<8x128xbf16>, vector<8x128xf32> -> vector<8x128xf32>
      %32 = arith.truncf %31 : vector<8x128xf32> to vector<8x128xbf16>
      %c2 = arith.constant 2 : index
      %c0_21 = arith.constant 0 : index
      %c0_22 = arith.constant 0 : index
      %33 = vector.load %arg7[%c2, %c0_21, %c0_22] : memref<9x8x8xbf16, #tpu.memory_space<vmem>>, vector<1x8x8xbf16>
      %34 = vector.shape_cast %33 : vector<1x8x8xbf16> to vector<8x8xbf16>
      %cst_23 = arith.constant dense<0.000000e+00> : vector<8x128xf32>
      %35 = tpu.matmul %34, %24, %cst_23 {dimension_numbers = #tpu.dot_dimension_numbers<[1], [0], [0], [1], [0, 0, 1, 1], [], []>} : vector<8x8xbf16>, vector<8x128xbf16>, vector<8x128xf32> -> vector<8x128xf32>
      %36 = arith.truncf %35 : vector<8x128xf32> to vector<8x128xbf16>
      %c3 = arith.constant 3 : index
      %c0_24 = arith.constant 0 : index
      %c0_25 = arith.constant 0 : index
      %37 = vector.load %arg7[%c3, %c0_24, %c0_25] : memref<9x8x8xbf16, #tpu.memory_space<vmem>>, vector<1x8x8xbf16>
      %38 = vector.shape_cast %37 : vector<1x8x8xbf16> to vector<8x8xbf16>
      %cst_26 = arith.constant dense<0.000000e+00> : vector<8x128xf32>
      %39 = tpu.matmul %38, %24, %cst_26 {dimension_numbers = #tpu.dot_dimension_numbers<[1], [0], [0], [1], [0, 0, 1, 1], [], []>} : vector<8x8xbf16>, vector<8x128xbf16>, vector<8x128xf32> -> vector<8x128xf32>
      %40 = arith.truncf %39 : vector<8x128xf32> to vector<8x128xbf16>
      %c4 = arith.constant 4 : index
      %c0_27 = arith.constant 0 : index
      %c0_28 = arith.constant 0 : index
      %41 = vector.load %arg7[%c4, %c0_27, %c0_28] : memref<9x8x8xbf16, #tpu.memory_space<vmem>>, vector<1x8x8xbf16>
      %42 = vector.shape_cast %41 : vector<1x8x8xbf16> to vector<8x8xbf16>
      %cst_29 = arith.constant dense<0.000000e+00> : vector<8x128xf32>
      %43 = tpu.matmul %42, %24, %cst_29 {dimension_numbers = #tpu.dot_dimension_numbers<[1], [0], [0], [1], [0, 0, 1, 1], [], []>} : vector<8x8xbf16>, vector<8x128xbf16>, vector<8x128xf32> -> vector<8x128xf32>
      %44 = arith.truncf %43 : vector<8x128xf32> to vector<8x128xbf16>
      %c5 = arith.constant 5 : index
      %c0_30 = arith.constant 0 : index
      %c0_31 = arith.constant 0 : index
      %45 = vector.load %arg7[%c5, %c0_30, %c0_31] : memref<9x8x8xbf16, #tpu.memory_space<vmem>>, vector<1x8x8xbf16>
      %46 = vector.shape_cast %45 : vector<1x8x8xbf16> to vector<8x8xbf16>
      %cst_32 = arith.constant dense<0.000000e+00> : vector<8x128xf32>
      %47 = tpu.matmul %46, %24, %cst_32 {dimension_numbers = #tpu.dot_dimension_numbers<[1], [0], [0], [1], [0, 0, 1, 1], [], []>} : vector<8x8xbf16>, vector<8x128xbf16>, vector<8x128xf32> -> vector<8x128xf32>
      %48 = arith.truncf %47 : vector<8x128xf32> to vector<8x128xbf16>
      %c6 = arith.constant 6 : index
      %c0_33 = arith.constant 0 : index
      %c0_34 = arith.constant 0 : index
      %49 = vector.load %arg7[%c6, %c0_33, %c0_34] : memref<9x8x8xbf16, #tpu.memory_space<vmem>>, vector<1x8x8xbf16>
      %50 = vector.shape_cast %49 : vector<1x8x8xbf16> to vector<8x8xbf16>
      %cst_35 = arith.constant dense<0.000000e+00> : vector<8x128xf32>
      %51 = tpu.matmul %50, %24, %cst_35 {dimension_numbers = #tpu.dot_dimension_numbers<[1], [0], [0], [1], [0, 0, 1, 1], [], []>} : vector<8x8xbf16>, vector<8x128xbf16>, vector<8x128xf32> -> vector<8x128xf32>
      %52 = arith.truncf %51 : vector<8x128xf32> to vector<8x128xbf16>
      %c7 = arith.constant 7 : index
      %c0_36 = arith.constant 0 : index
      %c0_37 = arith.constant 0 : index
      %53 = vector.load %arg7[%c7, %c0_36, %c0_37] : memref<9x8x8xbf16, #tpu.memory_space<vmem>>, vector<1x8x8xbf16>
      %54 = vector.shape_cast %53 : vector<1x8x8xbf16> to vector<8x8xbf16>
      %cst_38 = arith.constant dense<0.000000e+00> : vector<8x128xf32>
      %55 = tpu.matmul %54, %24, %cst_38 {dimension_numbers = #tpu.dot_dimension_numbers<[1], [0], [0], [1], [0, 0, 1, 1], [], []>} : vector<8x8xbf16>, vector<8x128xbf16>, vector<8x128xf32> -> vector<8x128xf32>
      %56 = arith.truncf %55 : vector<8x128xf32> to vector<8x128xbf16>
      %c8 = arith.constant 8 : index
      %c0_39 = arith.constant 0 : index
      %c0_40 = arith.constant 0 : index
      %57 = vector.load %arg7[%c8, %c0_39, %c0_40] : memref<9x8x8xbf16, #tpu.memory_space<vmem>>, vector<1x8x8xbf16>
      %58 = vector.shape_cast %57 : vector<1x8x8xbf16> to vector<8x8xbf16>
      %cst_41 = arith.constant dense<0.000000e+00> : vector<8x128xf32>
      %59 = tpu.matmul %58, %24, %cst_41 {dimension_numbers = #tpu.dot_dimension_numbers<[1], [0], [0], [1], [0, 0, 1, 1], [], []>} : vector<8x8xbf16>, vector<8x128xbf16>, vector<8x128xf32> -> vector<8x128xf32>
      %60 = arith.truncf %59 : vector<8x128xf32> to vector<8x128xbf16>
      %61 = tpu.concatenate %28, %32, %36, %40, %44, %48, %52, %56, %60 in 1 : vector<8x128xbf16>, vector<8x128xbf16>, vector<8x128xbf16>, vector<8x128xbf16>, vector<8x128xbf16>, vector<8x128xbf16>, vector<8x128xbf16>, vector<8x128xbf16>, vector<8x128xbf16> -> vector<8x1152xbf16>
      %62 = arith.index_cast %arg11 : i32 to index
      %c0_42 = arith.constant 0 : index
      %c0_43 = arith.constant 0 : index
      %63 = vector.load %arg4[%62, %c0_42, %c0_43] : memref<24x1152x32xbf16, #tpu.memory_space<vmem>>, vector<1x1152x32xbf16>
      %64 = vector.shape_cast %63 : vector<1x1152x32xbf16> to vector<1152x32xbf16>
      %cst_44 = arith.constant dense<0.000000e+00> : vector<8x32xf32>
      %65 = tpu.matmul %61, %64, %cst_44 {dimension_numbers = #tpu.dot_dimension_numbers<[1], [0], [0], [1], [0, 0, 1, 1], [], []>} : vector<8x1152xbf16>, vector<1152x32xbf16>, vector<8x32xf32> -> vector<8x32xf32>
      %66 = arith.index_cast %arg11 : i32 to index
      %c0_45 = arith.constant 0 : index
      %c0_46 = arith.constant 0 : index
      %67 = vector.load %arg5[%66, %c0_45, %c0_46] : memref<24x1x32xf32, #tpu.memory_space<vmem>>, vector<1x1x32xf32>
      %68 = vector.shape_cast %67 : vector<1x1x32xf32> to vector<1x32xf32>
      %69 = vector.broadcast %68 : vector<1x32xf32> to vector<8x32xf32>
      %70 = arith.addf %65, %69 : vector<8x32xf32>
      %cst_47 = arith.constant 0.000000e+00 : f32
      %71 = vector.broadcast %cst_47 : f32 to vector<8x32xf32>
      %72 = arith.maximumf %70, %71 : vector<8x32xf32>
      %73 = arith.truncf %72 : vector<8x32xf32> to vector<8x32xbf16>
      %74 = arith.index_cast %arg11 : i32 to index
      %c0_48 = arith.constant 0 : index
      %c0_49 = arith.constant 0 : index
      %75 = vector.load %arg6[%74, %c0_48, %c0_49] : memref<24x32x1024xbf16, #tpu.memory_space<vmem>>, vector<1x32x1024xbf16>
      %76 = vector.shape_cast %75 : vector<1x32x1024xbf16> to vector<32x1024xbf16>
      %cst_50 = arith.constant dense<0.000000e+00> : vector<8x1024xf32>
      %77 = tpu.matmul %73, %76, %cst_50 {dimension_numbers = #tpu.dot_dimension_numbers<[1], [0], [0], [1], [0, 0, 1, 1], [], []>} : vector<8x32xbf16>, vector<32x1024xbf16>, vector<8x1024xf32> -> vector<8x1024xf32>
      %78 = arith.truncf %77 : vector<8x1024xf32> to vector<8x1024xbf16>
      %79 = arith.addf %arg12, %78 : vector<8x1024xbf16>
      scf.yield %79 : vector<8x1024xbf16>
    }
    %c24_i32_1 = arith.constant 24 : i32
    %5 = arith.extf %4 : vector<8x1024xbf16> to vector<8x1024xf32>
    %c0_2 = arith.constant 0 : index
    %c0_3 = arith.constant 0 : index
    %6 = vector.load %arg8[%c0_2, %c0_3] : memref<1x1024xf32, #tpu.memory_space<vmem>>, vector<1x1024xf32>
    %7 = vector.broadcast %6 : vector<1x1024xf32> to vector<8x1024xf32>
    %8 = arith.mulf %5, %7 : vector<8x1024xf32>
    %c0_4 = arith.constant 0 : index
    %c0_5 = arith.constant 0 : index
    %9 = vector.load %arg9[%c0_4, %c0_5] : memref<1x1024xf32, #tpu.memory_space<vmem>>, vector<1x1024xf32>
    %10 = vector.broadcast %9 : vector<1x1024xf32> to vector<8x1024xf32>
    %11 = arith.addf %8, %10 : vector<8x1024xf32>
    %c0_6 = arith.constant 0 : index
    %c0_7 = arith.constant 0 : index
    %12 = vector.load %arg10[%c0_6, %c0_7] : memref<8x1024xf32, #tpu.memory_space<vmem>>, vector<8x1024xf32>
    tpu.vector_store %arg10[%c0_6, %c0_7], %11 {strides = array<i32>} : memref<8x1024xf32, #tpu.memory_space<vmem>>, vector<8x1024xf32>,
    return
  }
  func.func @transform_0(%arg0: i32) -> (i32, i32) {
    %c0_i32 = arith.constant 0 : i32
    %c0_i32_0 = arith.constant 0 : i32
    return %arg0, %c0_i32 : i32, i32
  }
  func.func @transform_1(%arg0: i32) -> (i32, i32, i32) {
    %c0_i32 = arith.constant 0 : i32
    %c0_i32_0 = arith.constant 0 : i32
    %c0_i32_1 = arith.constant 0 : i32
    %c0_i32_2 = arith.constant 0 : i32
    return %c0_i32, %c0_i32_0, %c0_i32_1 : i32, i32, i32
  }
  func.func @transform_2(%arg0: i32) -> (i32, i32, i32) {
    %c0_i32 = arith.constant 0 : i32
    %c0_i32_0 = arith.constant 0 : i32
    %c0_i32_1 = arith.constant 0 : i32
    %c0_i32_2 = arith.constant 0 : i32
    return %c0_i32, %c0_i32_0, %c0_i32_1 : i32, i32, i32
  }
  func.func @transform_3(%arg0: i32) -> (i32, i32, i32) {
    %c0_i32 = arith.constant 0 : i32
    %c0_i32_0 = arith.constant 0 : i32
    %c0_i32_1 = arith.constant 0 : i32
    %c0_i32_2 = arith.constant 0 : i32
    return %c0_i32, %c0_i32_0, %c0_i32_1 : i32, i32, i32
  }
  func.func @transform_4(%arg0: i32) -> (i32, i32, i32) {
    %c0_i32 = arith.constant 0 : i32
    %c0_i32_0 = arith.constant 0 : i32
    %c0_i32_1 = arith.constant 0 : i32
    %c0_i32_2 = arith.constant 0 : i32
    return %c0_i32, %c0_i32_0, %c0_i32_1 : i32, i32, i32
  }
  func.func @transform_5(%arg0: i32) -> (i32, i32, i32) {
    %c0_i32 = arith.constant 0 : i32
    %c0_i32_0 = arith.constant 0 : i32
    %c0_i32_1 = arith.constant 0 : i32
    %c0_i32_2 = arith.constant 0 : i32
    return %c0_i32, %c0_i32_0, %c0_i32_1 : i32, i32, i32
  }
  func.func @transform_6(%arg0: i32) -> (i32, i32, i32) {
    %c0_i32 = arith.constant 0 : i32
    %c0_i32_0 = arith.constant 0 : i32
    %c0_i32_1 = arith.constant 0 : i32
    %c0_i32_2 = arith.constant 0 : i32
    return %c0_i32, %c0_i32_0, %c0_i32_1 : i32, i32, i32
  }
  func.func @transform_7(%arg0: i32) -> (i32, i32) {
    %c0_i32 = arith.constant 0 : i32
    %c0_i32_0 = arith.constant 0 : i32
    %c0_i32_1 = arith.constant 0 : i32
    return %c0_i32, %c0_i32_0 : i32, i32
  }
  func.func @transform_8(%arg0: i32) -> (i32, i32) {
    %c0_i32 = arith.constant 0 : i32
    %c0_i32_0 = arith.constant 0 : i32
    %c0_i32_1 = arith.constant 0 : i32
    return %c0_i32, %c0_i32_0 : i32, i32
  }
  func.func @transform_9(%arg0: i32) -> (i32, i32) {
    %c0_i32 = arith.constant 0 : i32
    %c0_i32_0 = arith.constant 0 : i32
    return %arg0, %c0_i32 : i32, i32
  }
}

</mosaic_0001>

<bundles_post_ra>
// kernel: densenet_forward.8
= control target key start
LH: loop header
LB: loop body
LE: loop exit
PB: predicated region body
PF: predicated region fallthrough
CT: control target
= control target key end

     0   :  { %s803_s1 = inlined_call_operand.vmem [shape: bf16[256,128], index: 1, kind: input, shape index: {}]   ;;  %s804_s0 = inlined_call_operand.vmem [shape: bf16[128,256], index: 0, kind: input, shape index: {}]   ;;  %s805_s3 = inlined_call_operand.vmem [shape: bf16[32,128], index: 3, kind: input, shape index: {}]   ;;  %s806_s2 = inlined_call_operand.vmem [shape: f32[1,128], index: 2, kind: input, shape index: {}]   ;;  %s807_s4 = inlined_call_operand.vmem [shape: bf16[32,128], index: 4, kind: output, shape index: {}]  }
   0x1   :  { %v607_v0 = vld [vmem:[%s803_s1 + $0x40] sm:$0xff]   ;;  %v609_v2 = vld [vmem:[%s803_s1 + $0x48] sm:$0xff]   ;;  %v611_v4 = vld [vmem:[%s803_s1 + $0x50] sm:$0xff]  }
   0x2   :  { %v608_v1 = vld [vmem:[%s803_s1] sm:$0xff]   ;;  %513 = vmatprep.subr.bf16.mxu0 %v607_v0  ;;  %v610_v3 = vld [vmem:[%s803_s1 + $0x8] sm:$0xff]   ;;  %v612_v5 = vld [vmem:[%s803_s1 + $0x10] sm:$0xff]  }
   0x3   :  { %514 = vmatpush3.bf16.msra.mxu0 %v608_v1  ;;  %v613_v6 = vld [vmem:[%s803_s1 + $0x58] sm:$0xff]   ;;  %v615_v8 = vld [vmem:[%s803_s1 + $0x60] sm:$0xff]   ;;  %v617_v10 = vld [vmem:[%s803_s1 + $0x68] sm:$0xff]  }
   0x4   :  { %515 = vmatprep.subr.bf16.mxu0 %v609_v2  ;;  %v614_v7 = vld [vmem:[%s803_s1 + $0x18] sm:$0xff]   ;;  %v616_v9 = vld [vmem:[%s803_s1 + $0x20] sm:$0xff]   ;;  %v618_v12 = vld [vmem:[%s803_s1 + $0x28] sm:$0xff]  }
   0x5   :  { %v625_v11 = vld [vmem:[%s804_s0 + $0x4] ss:$8 sps:$4 sm:$0xff]   ;;  %v619_v13 = vld [vmem:[%s803_s1 + $0x70] sm:$0xff]   ;;  %v621_v15 = vld [vmem:[%s803_s1 + $0x78] sm:$0xff]  }
   0x6   :  { %281 = vmatprep.mubr.bf16.mxu0 %v625_v11  ;;  %v620_v14 = vld [vmem:[%s803_s1 + $0x30] sm:$0xff]   ;;  %v622_v16 = vld [vmem:[%s803_s1 + $0x38] sm:$0xff]   ;;  %v623_v17 = vld [vmem:[%s804_s0] ss:$8 sps:$4 sm:$0xff]  }
   0x7   :  { %516 = vmatpush3.bf16.msra.mxu0 %v610_v3  ;;  %v626_v18 = vld [vmem:[%s804_s0 + $0x14] ss:$8 sps:$4 sm:$0xff]   ;;  %v628_v19 = vld [vmem:[%s804_s0 + $0x10] ss:$8 sps:$4 sm:$0xff]   ;;  %v629_v20 = vld [vmem:[%s804_s0 + $0x24] ss:$8 sps:$4 sm:$0xff]  }
   0x8   :  { %517 = vmatprep.subr.bf16.mxu0 %v611_v4  ;;  %v631_v21 = vld [vmem:[%s804_s0 + $0x20] ss:$8 sps:$4 sm:$0xff]   ;;  %v632_v22 = vld [vmem:[%s804_s0 + $0x34] ss:$8 sps:$4 sm:$0xff]   ;;  %v634_v23 = vld [vmem:[%s804_s0 + $0x30] ss:$8 sps:$4 sm:$0xff]  }
   0x9   :  { %v635_v24 = vld [vmem:[%s804_s0 + $0x44] ss:$8 sps:$4 sm:$0xff]   ;;  %v637_v25 = vld [vmem:[%s804_s0 + $0x40] ss:$8 sps:$4 sm:$0xff]   ;;  %v638_v26 = vld [vmem:[%s804_s0 + $0x54] ss:$8 sps:$4 sm:$0xff]  }
   0xa   :  { %v640_v27 = vld [vmem:[%s804_s0 + $0x50] ss:$8 sps:$4 sm:$0xff]   ;;  %v641_v28 = vld [vmem:[%s804_s0 + $0x64] ss:$8 sps:$4 sm:$0xff]   ;;  %v643_v29 = vld [vmem:[%s804_s0 + $0x60] ss:$8 sps:$4 sm:$0xff]  }
   0xb   :  { %518 = vmatpush3.bf16.msra.mxu0 %v612_v5  ;;  %v644_v30 = vld [vmem:[%s804_s0 + $0x74] ss:$8 sps:$4 sm:$0xff]   ;;  %v646_v31 = vld [vmem:[%s804_s0 + $0x70] ss:$8 sps:$4 sm:$0xff]   ;;  %v647_v32 = vld [vmem:[%s805_s3] sm:$0xff]  }
   0xc   :  { %519 = vmatprep.subr.bf16.mxu0 %v613_v6  ;;  %603 = vmatprep.mubr.bf16.mxu1 %v647_v32  ;;  %v776_v34 = vld [vmem:[%s806_s2] ss:$0 sm:$0xff] }
   0xf   :  { %520 = vmatpush3.bf16.msra.mxu0 %v614_v7 }
  0x10   :  { %521 = vmatprep.subr.bf16.mxu0 %v615_v8 }
  0x13   :  { %522 = vmatpush3.bf16.msra.mxu0 %v616_v9 }
  0x14   :  { %523 = vmatprep.subr.bf16.mxu0 %v617_v10 }
  0x17   :  { %524 = vmatpush3.bf16.msra.mxu0 %v618_v12 }
  0x18   :  { %525 = vmatprep.subr.bf16.mxu0 %v619_v13 }
  0x1b   :  { %526 = vmatpush3.bf16.msra.mxu0 %v620_v14 }
  0x1c   :  { %527 = vmatprep.subr.bf16.mxu0 %v621_v15 }
  0x1f   :  { %528 = vmatpush3.bf16.msra.mxu0 %v622_v16 }
  0x22   :  { %282 = vmatmul.mubr.bf16.vlgmr.msra.gmra.mrb[0].mxu0 %v623_v17 }
  0x23   :  { %289 = vmatprep.mubr.bf16.mxu0 %v626_v18 }
  0x2a   :  { %290 = vmatmul.mubr.bf16.gmra.mrb[4].mxu0 %v628_v19 }
  0x2b   :  { %297 = vmatprep.mubr.bf16.mxu0 %v629_v20 }
  0x32   :  { %298 = vmatmul.mubr.bf16.gmra.mrb[8].mxu0 %v631_v21 }
  0x33   :  { %305 = vmatprep.mubr.bf16.mxu0 %v632_v22 }
  0x3a   :  { %306 = vmatmul.mubr.bf16.gmra.mrb[12].mxu0 %v634_v23 }
  0x3b   :  { %313 = vmatprep.mubr.bf16.mxu0 %v635_v24 }
  0x42   :  { %314 = vmatmul.mubr.bf16.gmra.mrb[16].mxu0 %v637_v25 }
  0x43   :  { %321 = vmatprep.mubr.bf16.mxu0 %v638_v26 }
  0x4a   :  { %322 = vmatmul.mubr.bf16.gmra.mrb[20].mxu0 %v640_v27 }
  0x4b   :  { %329 = vmatprep.mubr.bf16.mxu0 %v641_v28 }
  0x52   :  { %330 = vmatmul.mubr.bf16.gmra.mrb[24].mxu0 %v643_v29 }
  0x53   :  { %337 = vmatprep.mubr.bf16.mxu0 %v644_v30 }
  0x5a   :  { %338 = vmatmul.mubr.bf16.gmra.mrb[28].mxu0 %v646_v31 }
  0xf5   :  { %v529_v33 = vpop.f32.mrb[0].mxu0 }
  0xf6   :  { %v530_v35 = vpop.f32.mrb[1].mxu0 }
  0xf7   :  { %v531_v36 = vadd.f32 %v530_v35, %v529_v33  ;;  %v532_v37 = vpop.f32.mrb[2].mxu0 }
  0xf8   :  { %v533_v38 = vpop.f32.mrb[3].mxu0 }
  0xf9   :  { %v284_v39 = vadd.f32 %v531_v36, %v776_v34  ;;  %v534_v40 = vadd.f32 %v533_v38, %v532_v37 }
  0xfb   :  { %v287_v41 = vadd.f32 %v534_v40, %v776_v34  ;;  %v346_v42 = vmax.f32 %v284_v39, 0.0 }
  0xfd   :  { %v347_v43 = vmax.f32 %v287_v41, 0.0  ;;  %v535_v44 = vpop.f32.mrb[4].mxu0 }
  0xfe   :  { %v536_v45 = vpop.f32.mrb[5].mxu0 }
  0xff   :  { %v537_v46 = vadd.f32 %v536_v45, %v535_v44  ;;  %v538_v47 = vpop.f32.mrb[6].mxu0  ;;  %v362_v48 = vpack.c.bf16 %v347_v43, %v346_v42 }
 0x100   :  { %v539_v49 = vpop.f32.mrb[7].mxu0 }
 0x101   :  { %v292_v50 = vadd.f32 %v537_v46, %v776_v34  ;;  %v540_v51 = vadd.f32 %v539_v49, %v538_v47  ;;  %587 = vmatprep.subr.bf16.mxu1 %v362_v48 }
 0x102   :  { %588 = vmatpush3.bf16.msra.mxu1 %v362_v48 }
 0x103   :  { %v295_v52 = vadd.f32 %v540_v51, %v776_v34  ;;  %v348_v53 = vmax.f32 %v292_v50, 0.0 }
 0x105   :  { %v349_v54 = vmax.f32 %v295_v52, 0.0  ;;  %v541_v55 = vpop.f32.mrb[8].mxu0 }
 0x106   :  { %v542_v56 = vpop.f32.mrb[9].mxu0 }
 0x107   :  { %v543_v57 = vadd.f32 %v542_v56, %v541_v55  ;;  %v544_v58 = vpop.f32.mrb[10].mxu0  ;;  %v363_v59 = vpack.c.bf16 %v349_v54, %v348_v53 }
 0x108   :  { %v545_v60 = vpop.f32.mrb[11].mxu0 }
 0x109   :  { %v300_v61 = vadd.f32 %v543_v57, %v776_v34  ;;  %v546_v62 = vadd.f32 %v545_v60, %v544_v58  ;;  %589 = vmatprep.subr.bf16.mxu1 %v363_v59 }
 0x10a   :  { %590 = vmatpush3.bf16.msra.mxu1 %v363_v59  ;;  %v648_v59 = vld [vmem:[%s805_s3 + $0x8] sm:$0xff]  }
 0x10b   :  { %v303_v63 = vadd.f32 %v546_v62, %v776_v34  ;;  %v350_v0 = vmax.f32 %v300_v61, 0.0 }
 0x10d   :  { %v351_v1 = vmax.f32 %v303_v63, 0.0  ;;  %v547_v2 = vpop.f32.mrb[12].mxu0 }
 0x10e   :  { %v548_v3 = vpop.f32.mrb[13].mxu0 }
 0x10f   :  { %v549_v4 = vadd.f32 %v548_v3, %v547_v2  ;;  %v550_v5 = vpop.f32.mrb[14].mxu0  ;;  %v364_v6 = vpack.c.bf16 %v351_v1, %v350_v0 }
 0x110   :  { %v551_v7 = vpop.f32.mrb[15].mxu0 }
 0x111   :  { %v308_v8 = vadd.f32 %v549_v4, %v776_v34  ;;  %v552_v9 = vadd.f32 %v551_v7, %v550_v5  ;;  %591 = vmatprep.subr.bf16.mxu1 %v364_v6 }
 0x112   :  { %592 = vmatpush3.bf16.msra.mxu1 %v364_v6 }
 0x113   :  { %v311_v10 = vadd.f32 %v552_v9, %v776_v34  ;;  %v352_v11 = vmax.f32 %v308_v8, 0.0 }
 0x115   :  { %v353_v12 = vmax.f32 %v311_v10, 0.0  ;;  %v553_v13 = vpop.f32.mrb[16].mxu0 }
 0x116   :  { %v554_v14 = vpop.f32.mrb[17].mxu0 }
 0x117   :  { %v555_v15 = vadd.f32 %v554_v14, %v553_v13  ;;  %v556_v16 = vpop.f32.mrb[18].mxu0  ;;  %v365_v17 = vpack.c.bf16 %v353_v12, %v352_v11 }
 0x118   :  { %v557_v18 = vpop.f32.mrb[19].mxu0 }
 0x119   :  { %v316_v19 = vadd.f32 %v555_v15, %v776_v34  ;;  %v558_v20 = vadd.f32 %v557_v18, %v556_v16  ;;  %593 = vmatprep.subr.bf16.mxu1 %v365_v17 }
 0x11a   :  { %594 = vmatpush3.bf16.msra.mxu1 %v365_v17 }
 0x11b   :  { %v319_v21 = vadd.f32 %v558_v20, %v776_v34  ;;  %v354_v22 = vmax.f32 %v316_v19, 0.0 }
 0x11d   :  { %v355_v23 = vmax.f32 %v319_v21, 0.0  ;;  %v559_v24 = vpop.f32.mrb[20].mxu0 }
 0x11e   :  { %v560_v25 = vpop.f32.mrb[21].mxu0 }
 0x11f   :  { %v561_v26 = vadd.f32 %v560_v25, %v559_v24  ;;  %v562_v27 = vpop.f32.mrb[22].mxu0  ;;  %v366_v28 = vpack.c.bf16 %v355_v23, %v354_v22 }
 0x120   :  { %v563_v29 = vpop.f32.mrb[23].mxu0 }
 0x121   :  { %v324_v30 = vadd.f32 %v561_v26, %v776_v34  ;;  %v564_v31 = vadd.f32 %v563_v29, %v562_v27  ;;  %595 = vmatprep.subr.bf16.mxu1 %v366_v28 }
 0x122   :  { %596 = vmatpush3.bf16.msra.mxu1 %v366_v28 }
 0x123   :  { %v327_v32 = vadd.f32 %v564_v31, %v776_v34  ;;  %v356_v33 = vmax.f32 %v324_v30, 0.0 }
 0x125   :  { %v357_v35 = vmax.f32 %v327_v32, 0.0  ;;  %v565_v36 = vpop.f32.mrb[24].mxu0 }
 0x126   :  { %v566_v37 = vpop.f32.mrb[25].mxu0 }
 0x127   :  { %v567_v38 = vadd.f32 %v566_v37, %v565_v36  ;;  %v568_v39 = vpop.f32.mrb[26].mxu0  ;;  %v367_v40 = vpack.c.bf16 %v357_v35, %v356_v33 }
 0x128   :  { %v569_v41 = vpop.f32.mrb[27].mxu0 }
 0x129   :  { %v332_v42 = vadd.f32 %v567_v38, %v776_v34  ;;  %v570_v43 = vadd.f32 %v569_v41, %v568_v39  ;;  %597 = vmatprep.subr.bf16.mxu1 %v367_v40 }
 0x12a   :  { %598 = vmatpush3.bf16.msra.mxu1 %v367_v40 }
 0x12b   :  { %v335_v44 = vadd.f32 %v570_v43, %v776_v34  ;;  %v358_v45 = vmax.f32 %v332_v42, 0.0 }
 0x12d   :  { %v359_v46 = vmax.f32 %v335_v44, 0.0  ;;  %v571_v47 = vpop.f32.mrb[28].mxu0 }
 0x12e   :  { %v572_v48 = vpop.f32.mrb[29].mxu0 }
 0x12f   :  { %v573_v49 = vadd.f32 %v572_v48, %v571_v47  ;;  %v574_v50 = vpop.f32.mrb[30].mxu0  ;;  %v368_v51 = vpack.c.bf16 %v359_v46, %v358_v45 }
 0x130   :  { %v575_v52 = vpop.f32.mrb[31].mxu0 }
 0x131   :  { %v340_v53 = vadd.f32 %v573_v49, %v776_v34  ;;  %v576_v54 = vadd.f32 %v575_v52, %v574_v50  ;;  %599 = vmatprep.subr.bf16.mxu1 %v368_v51 }
 0x132   :  { %600 = vmatpush3.bf16.msra.mxu1 %v368_v51 }
 0x133   :  { %v343_v55 = vadd.f32 %v576_v54, %v776_v34  ;;  %v360_v56 = vmax.f32 %v340_v53, 0.0 }
 0x135   :  { %v361_v57 = vmax.f32 %v343_v55, 0.0 }
 0x137   :  { %v369_v58 = vpack.c.bf16 %v361_v57, %v360_v56 }
 0x139   :  { %601 = vmatprep.subr.bf16.mxu1 %v369_v58 }
 0x13a   :  { %602 = vmatpush3.bf16.msra.mxu1 %v369_v58 }
 0x13d   :  { %604 = vmatmul.mubr.bf16.vlgmr.msra.gmra.mrb[0].mxu1 %v648_v59 }
 0x210   :  { %v605_v60 = vpop.f32.mrb[0].mxu1 }
 0x211   :  { %v420_v61 = vpop.f32.mrb[1].mxu1 }
 0x212   :  { %v606_v62 = vpop.f32.mrb[2].mxu1 }
 0x213   :  { %v510_v63 = vpack.c.bf16 %v606_v62, %v605_v60  ;;  %v423_v0 = vpop.f32.mrb[3].mxu1 }
 0x214   :  { %v505_v1 = vpack.c.bf16 %v423_v0, %v420_v61 }
 0x215   :  { %512 = vst [vmem:[%s807_s4 + $0x8] sm:$0xff] %v510_v63  }
 0x216   :  { %506 = vst [vmem:[%s807_s4] sm:$0xff] %v505_v1  }

// kernel: densenet_forward.6
= control target key start
LH: loop header
LB: loop body
LE: loop exit
PB: predicated region body
PF: predicated region fallthrough
CT: control target
= control target key end

     0   :  { %s4815_s1 = inlined_call_operand.vmem [shape: bf16[128,128], index: 1, kind: input, shape index: {}]   ;;  %s4816_s0 = inlined_call_operand.vmem [shape: bf16[512,128], index: 0, kind: input, shape index: {}]   ;;  %s4817_s3 = inlined_call_operand.vmem [shape: bf16[4,128,512], index: 3, kind: input, shape index: {}]   ;;  %s4818_s2 = inlined_call_operand.vmem [shape: f32[1,128], index: 2, kind: input, shape index: {}]   ;;  %s4819_s4 = inlined_call_operand.vmem [shape: bf16[128,128], index: 4, kind: output, shape index: {}]  }
   0x1   :  { %v3385_v0 = vld [vmem:[%s4815_s1] sm:$0xff]   ;;  %v3386_v1 = vld [vmem:[%s4815_s1 + $0x8] sm:$0xff]   ;;  %v3387_v2 = vld [vmem:[%s4815_s1 + $0x10] sm:$0xff]  }
   0x2   :  { %3305 = vmatprep.subr.bf16.mxu0 %v3385_v0  ;;  %v3388_v3 = vld [vmem:[%s4815_s1 + $0x18] sm:$0xff]   ;;  %v3393_v4 = vld [vmem:[%s4816_s0] sm:$0xff]   ;;  %v3390_v6 = vld [vmem:[%s4815_s1 + $0x28] sm:$0xff]  }
   0x3   :  { %3306 = vmatpush3.bf16.msra.mxu0 %v3385_v0  ;;  %3321 = vmatprep.mubr.bf16.mxu0 %v3393_v4  ;;  %v3389_v5 = vld [vmem:[%s4815_s1 + $0x20] sm:$0xff]   ;;  %v3391_v7 = vld [vmem:[%s4815_s1 + $0x30] sm:$0xff]   ;;  %v3392_v8 = vld [vmem:[%s4815_s1 + $0x38] sm:$0xff]  }
   0x4   :  { %3307 = vmatprep.subr.bf16.mxu0 %v3386_v1  ;;  %v3394_v9 = vld [vmem:[%s4816_s0 + $0x8] sm:$0xff]   ;;  %v3395_v10 = vld [vmem:[%s4816_s0 + $0x10] sm:$0xff]   ;;  %v3396_v11 = vld [vmem:[%s4816_s0 + $0x18] sm:$0xff]  }
   0x5   :  { %v3397_v12 = vld [vmem:[%s4816_s0 + $0x20] sm:$0xff]   ;;  %v3398_v13 = vld [vmem:[%s4816_s0 + $0x28] sm:$0xff]   ;;  %v3399_v14 = vld [vmem:[%s4816_s0 + $0x30] sm:$0xff]  }
   0x6   :  { %v3400_v15 = vld [vmem:[%s4816_s0 + $0x38] sm:$0xff]   ;;  %v3401_v16 = vld [vmem:[%s4816_s0 + $0x40] sm:$0xff]   ;;  %v3402_v17 = vld [vmem:[%s4816_s0 + $0x48] sm:$0xff]  }
   0x7   :  { %3308 = vmatpush3.bf16.msra.mxu0 %v3386_v1  ;;  %v3403_v18 = vld [vmem:[%s4816_s0 + $0x50] sm:$0xff]   ;;  %v3404_v19 = vld [vmem:[%s4816_s0 + $0x58] sm:$0xff]   ;;  %v3405_v20 = vld [vmem:[%s4816_s0 + $0x60] sm:$0xff]  }
   0x8   :  { %3309 = vmatprep.subr.bf16.mxu0 %v3387_v2  ;;  %v3406_v21 = vld [vmem:[%s4816_s0 + $0x68] sm:$0xff]   ;;  %v3407_v22 = vld [vmem:[%s4816_s0 + $0x70] sm:$0xff]   ;;  %v3408_v23 = vld [vmem:[%s4816_s0 + $0x78] sm:$0xff]  }
   0x9   :  { %v3409_v24 = vld [vmem:[%s4816_s0 + $0x80] sm:$0xff]   ;;  %v3410_v25 = vld [vmem:[%s4816_s0 + $0x88] sm:$0xff]   ;;  %v3411_v26 = vld [vmem:[%s4816_s0 + $0x90] sm:$0xff]  }
   0xa   :  { %v3412_v27 = vld [vmem:[%s4816_s0 + $0x98] sm:$0xff]   ;;  %v3413_v28 = vld [vmem:[%s4816_s0 + $0xa0] sm:$0xff]   ;;  %v3414_v29 = vld [vmem:[%s4816_s0 + $0xa8] sm:$0xff]  }
   0xb   :  { %3310 = vmatpush3.bf16.msra.mxu0 %v3387_v2  ;;  %v3415_v30 = vld [vmem:[%s4816_s0 + $0xb0] sm:$0xff]   ;;  %v3416_v31 = vld [vmem:[%s4816_s0 + $0xb8] sm:$0xff]   ;;  %v3417_v32 = vld [vmem:[%s4816_s0 + $0xc0] sm:$0xff]  }
   0xc   :  { %3311 = vmatprep.subr.bf16.mxu0 %v3388_v3  ;;  %v3418_v33 = vld [vmem:[%s4816_s0 + $0xc8] sm:$0xff]   ;;  %v3419_v34 = vld [vmem:[%s4816_s0 + $0xd0] sm:$0xff]   ;;  %v3420_v35 = vld [vmem:[%s4816_s0 + $0xd8] sm:$0xff]  }
   0xd   :  { %v3421_v36 = vld [vmem:[%s4816_s0 + $0xe0] sm:$0xff]   ;;  %v3422_v37 = vld [vmem:[%s4816_s0 + $0xe8] sm:$0xff]   ;;  %v3423_v38 = vld [vmem:[%s4816_s0 + $0xf0] sm:$0xff]  }
   0xe   :  { %v3424_v39 = vld [vmem:[%s4816_s0 + $0xf8] sm:$0xff]   ;;  %v3427_v40 = vld [vmem:[%s4817_s3 + $0x4] ss:$16 sps:$4 sm:$0xff]   ;;  %v3771_v42 = vld [vmem:[%s4818_s2] ss:$0 sm:$0xff] }
   0xf   :  { %3312 = vmatpush3.bf16.msra.mxu0 %v3388_v3  ;;  %954 = vmatprep.mubr.bf16.mxu1 %v3427_v40  ;;  %v3430_v41 = vld [vmem:[%s4817_s3 + $0x104] ss:$16 sps:$4 sm:$0xff]  }
  0x10   :  { %3313 = vmatprep.subr.bf16.mxu0 %v3389_v5 }
  0x13   :  { %3314 = vmatpush3.bf16.msra.mxu0 %v3389_v5 }
  0x14   :  { %3315 = vmatprep.subr.bf16.mxu0 %v3390_v6 }
  0x17   :  { %3316 = vmatpush3.bf16.msra.mxu0 %v3390_v6 }
  0x18   :  { %3317 = vmatprep.subr.bf16.mxu0 %v3391_v7 }
  0x1b   :  { %3318 = vmatpush3.bf16.msra.mxu0 %v3391_v7 }
  0x1c   :  { %3319 = vmatprep.subr.bf16.mxu0 %v3392_v8 }
  0x1f   :  { %3320 = vmatpush3.bf16.msra.mxu0 %v3392_v8 }
  0x22   :  { %3322 = vmatmul.mubr.bf16.vlgmr.msra.gmra.mrb[0].mxu0 %v3394_v9 }
  0x23   :  { %3325 = vmatprep.mubr.bf16.mxu0 %v3395_v10 }
  0x2a   :  { %3326 = vmatmul.mubr.bf16.gmra.mrb[4].mxu0 %v3396_v11 }
  0x2b   :  { %3329 = vmatprep.mubr.bf16.mxu0 %v3397_v12 }
  0x32   :  { %3330 = vmatmul.mubr.bf16.gmra.mrb[8].mxu0 %v3398_v13 }
  0x33   :  { %3333 = vmatprep.mubr.bf16.mxu0 %v3399_v14 }
  0x3a   :  { %3334 = vmatmul.mubr.bf16.gmra.mrb[12].mxu0 %v3400_v15 }
  0x3b   :  { %3337 = vmatprep.mubr.bf16.mxu0 %v3401_v16 }
  0x42   :  { %3338 = vmatmul.mubr.bf16.gmra.mrb[16].mxu0 %v3402_v17 }
  0x43   :  { %3341 = vmatprep.mubr.bf16.mxu0 %v3403_v18 }
  0x4a   :  { %3342 = vmatmul.mubr.bf16.gmra.mrb[20].mxu0 %v3404_v19 }
  0x4b   :  { %3345 = vmatprep.mubr.bf16.mxu0 %v3405_v20 }
  0x52   :  { %3346 = vmatmul.mubr.bf16.gmra.mrb[24].mxu0 %v3406_v21 }
  0x53   :  { %3349 = vmatprep.mubr.bf16.mxu0 %v3407_v22 }
  0x5a   :  { %3350 = vmatmul.mubr.bf16.gmra.mrb[28].mxu0 %v3408_v23 }
  0x5b   :  { %3353 = vmatprep.mubr.bf16.mxu0 %v3409_v24 }
  0x62   :  { %3354 = vmatmul.mubr.bf16.gmra.mrb[32].mxu0 %v3410_v25 }
  0x63   :  { %3357 = vmatprep.mubr.bf16.mxu0 %v3411_v26 }
  0x6a   :  { %3358 = vmatmul.mubr.bf16.gmra.mrb[36].mxu0 %v3412_v27 }
  0x6b   :  { %3361 = vmatprep.mubr.bf16.mxu0 %v3413_v28 }
  0x72   :  { %3362 = vmatmul.mubr.bf16.gmra.mrb[40].mxu0 %v3414_v29 }
  0x73   :  { %3365 = vmatprep.mubr.bf16.mxu0 %v3415_v30 }
  0x7a   :  { %3366 = vmatmul.mubr.bf16.gmra.mrb[44].mxu0 %v3416_v31 }
  0x7b   :  { %3369 = vmatprep.mubr.bf16.mxu0 %v3417_v32 }
  0x82   :  { %3370 = vmatmul.mubr.bf16.gmra.mrb[48].mxu0 %v3418_v33 }
  0x83   :  { %3373 = vmatprep.mubr.bf16.mxu0 %v3419_v34 }
  0x8a   :  { %3374 = vmatmul.mubr.bf16.gmra.mrb[52].mxu0 %v3420_v35 }
  0x8b   :  { %3377 = vmatprep.mubr.bf16.mxu0 %v3421_v36 }
  0x92   :  { %3378 = vmatmul.mubr.bf16.gmra.mrb[56].mxu0 %v3422_v37 }
  0x93   :  { %3381 = vmatprep.mubr.bf16.mxu0 %v3423_v38 }
  0x9a   :  { %3382 = vmatmul.mubr.bf16.gmra.mrb[60].mxu0 %v3424_v39 }
  0x9b   :  { %1341 = vmatprep.mubr.bf16.mxu0 %v3430_v41 }
  0xf5   :  { %v3323_v43 = vpop.f32.mrb[0].mxu0 }
  0xf6   :  { %v388_v44 = vadd.f32 %v3323_v43, %v3771_v42  ;;  %v379_v45 = vpop.f32.mrb[1].mxu0 }
  0xf7   :  { %v380_v46 = vadd.f32 %v3771_v42, %v379_v45  ;;  %v3324_v47 = vpop.f32.mrb[2].mxu0 }
  0xf8   :  { %v391_v48 = vadd.f32 %v3324_v47, %v3771_v42  ;;  %v382_v49 = vpop.f32.mrb[3].mxu0  ;;  %v636_v51 = vmax.f32 %v388_v44, 0.0 }
  0xf9   :  { %v383_v50 = vadd.f32 %v3771_v42, %v382_v49  ;;  %v634_v53 = vmax.f32 %v380_v46, 0.0 }
  0xfa   :  { %v637_v52 = vmax.f32 %v391_v48, 0.0 }
  0xfb   :  { %v635_v54 = vmax.f32 %v383_v50, 0.0 }
  0xfc   :  { %v3777_v55 = vpack.c.bf16 %v637_v52, %v636_v51 }
  0xfd   :  { %v3779_v56 = vpack.c.bf16 %v635_v54, %v634_v53  ;;  %v3327_v57 = vpop.f32.mrb[4].mxu0 }
  0xfe   :  { %v404_v58 = vadd.f32 %v3327_v57, %v3771_v42  ;;  %v395_v59 = vpop.f32.mrb[5].mxu0 }
  0xff   :  { %v396_v60 = vadd.f32 %v3771_v42, %v395_v59  ;;  %v3328_v61 = vpop.f32.mrb[6].mxu0 }
 0x100   :  { %v407_v62 = vadd.f32 %v3328_v61, %v3771_v42  ;;  %v398_v63 = vpop.f32.mrb[7].mxu0  ;;  %v640_v1 = vmax.f32 %v404_v58, 0.0 }
 0x101   :  { %v399_v0 = vadd.f32 %v3771_v42, %v398_v63  ;;  %v638_v3 = vmax.f32 %v396_v60, 0.0 }
 0x102   :  { %v641_v2 = vmax.f32 %v407_v62, 0.0 }
 0x103   :  { %v639_v4 = vmax.f32 %v399_v0, 0.0 }
 0x104   :  { %v3785_v5 = vpack.c.bf16 %v641_v2, %v640_v1 }
 0x105   :  { %v3787_v6 = vpack.c.bf16 %v639_v4, %v638_v3  ;;  %v3331_v7 = vpop.f32.mrb[8].mxu0 }
 0x106   :  { %v420_v8 = vadd.f32 %v3331_v7, %v3771_v42  ;;  %v411_v9 = vpop.f32.mrb[9].mxu0 }
 0x107   :  { %v412_v10 = vadd.f32 %v3771_v42, %v411_v9  ;;  %v3332_v11 = vpop.f32.mrb[10].mxu0 }
 0x108   :  { %v423_v12 = vadd.f32 %v3332_v11, %v3771_v42  ;;  %v414_v13 = vpop.f32.mrb[11].mxu0  ;;  %v644_v15 = vmax.f32 %v420_v8, 0.0 }
 0x109   :  { %v415_v14 = vadd.f32 %v3771_v42, %v414_v13  ;;  %v642_v17 = vmax.f32 %v412_v10, 0.0 }
 0x10a   :  { %v645_v16 = vmax.f32 %v423_v12, 0.0 }
 0x10b   :  { %v643_v18 = vmax.f32 %v415_v14, 0.0 }
 0x10c   :  { %v3793_v19 = vpack.c.bf16 %v645_v16, %v644_v15 }
 0x10d   :  { %v3795_v20 = vpack.c.bf16 %v643_v18, %v642_v17  ;;  %v3335_v21 = vpop.f32.mrb[12].mxu0 }
 0x10e   :  { %v436_v22 = vadd.f32 %v3335_v21, %v3771_v42  ;;  %v427_v23 = vpop.f32.mrb[13].mxu0 }
 0x10f   :  { %v428_v24 = vadd.f32 %v3771_v42, %v427_v23  ;;  %v3336_v25 = vpop.f32.mrb[14].mxu0 }
 0x110   :  { %v439_v26 = vadd.f32 %v3336_v25, %v3771_v42  ;;  %v430_v27 = vpop.f32.mrb[15].mxu0  ;;  %v648_v29 = vmax.f32 %v436_v22, 0.0 }
 0x111   :  { %v431_v28 = vadd.f32 %v3771_v42, %v430_v27  ;;  %v646_v31 = vmax.f32 %v428_v24, 0.0 }
 0x112   :  { %v649_v30 = vmax.f32 %v439_v26, 0.0 }
 0x113   :  { %v647_v32 = vmax.f32 %v431_v28, 0.0 }
 0x114   :  { %v3801_v33 = vpack.c.bf16 %v649_v30, %v648_v29 }
 0x115   :  { %v3803_v34 = vpack.c.bf16 %v647_v32, %v646_v31  ;;  %v3339_v35 = vpop.f32.mrb[16].mxu0 }
 0x116   :  { %v452_v36 = vadd.f32 %v3339_v35, %v3771_v42  ;;  %v443_v37 = vpop.f32.mrb[17].mxu0 }
 0x117   :  { %v444_v38 = vadd.f32 %v3771_v42, %v443_v37  ;;  %v3340_v39 = vpop.f32.mrb[18].mxu0 }
 0x118   :  { %v455_v40 = vadd.f32 %v3340_v39, %v3771_v42  ;;  %v446_v41 = vpop.f32.mrb[19].mxu0  ;;  %v652_v44 = vmax.f32 %v452_v36, 0.0 }
 0x119   :  { %v447_v43 = vadd.f32 %v3771_v42, %v446_v41  ;;  %v650_v46 = vmax.f32 %v444_v38, 0.0 }
 0x11a   :  { %v653_v45 = vmax.f32 %v455_v40, 0.0 }
 0x11b   :  { %v651_v47 = vmax.f32 %v447_v43, 0.0 }
 0x11c   :  { %v3809_v48 = vpack.c.bf16 %v653_v45, %v652_v44 }
 0x11d   :  { %v3811_v49 = vpack.c.bf16 %v651_v47, %v650_v46  ;;  %v3343_v50 = vpop.f32.mrb[20].mxu0 }
 0x11e   :  { %v468_v51 = vadd.f32 %v3343_v50, %v3771_v42  ;;  %v459_v52 = vpop.f32.mrb[21].mxu0 }
 0x11f   :  { %v460_v53 = vadd.f32 %v3771_v42, %v459_v52  ;;  %v3344_v54 = vpop.f32.mrb[22].mxu0  ;;  %2793 = vmatprep.subr.bf16.mxu1 %v3811_v49  ;;  %2921 = vmatprep.subr.bf16.mxu0 %v3811_v49  ;;  %v3428_v52 = vld [vmem:[%s4817_s3 + $0x100] ss:$16 sps:$4 sm:$0xff]  }
 0x120   :  { %v471_v57 = vadd.f32 %v3344_v54, %v3771_v42  ;;  %v462_v58 = vpop.f32.mrb[23].mxu0  ;;  %2794 = vmatpush3.bf16.msra.mxu1 %v3779_v56  ;;  %2922 = vmatpush3.bf16.msra.mxu0 %v3779_v56  ;;  %v656_v60 = vmax.f32 %v468_v51, 0.0  ;;  %v3425_v51 = vld [vmem:[%s4817_s3] ss:$16 sps:$4 sm:$0xff]   ;;  %v3431_v54 = vld [vmem:[%s4817_s3 + $0x24] ss:$16 sps:$4 sm:$0xff]  }
 0x121   :  { %v463_v59 = vadd.f32 %v3771_v42, %v462_v58  ;;  %2795 = vmatprep.subr.bf16.mxu1 %v3809_v48  ;;  %2923 = vmatprep.subr.bf16.mxu0 %v3809_v48  ;;  %v654_v62 = vmax.f32 %v460_v53, 0.0 }
 0x122   :  { %v657_v61 = vmax.f32 %v471_v57, 0.0 }
 0x123   :  { %v655_v63 = vmax.f32 %v463_v59, 0.0  ;;  %v3433_v59 = vld [vmem:[%s4817_s3 + $0x124] ss:$16 sps:$4 sm:$0xff]  }
 0x124   :  { %v3823_v0 = vpack.c.bf16 %v657_v61, %v656_v60  ;;  %2796 = vmatpush3.bf16.msra.mxu1 %v3777_v55  ;;  %2924 = vmatpush3.bf16.msra.mxu0 %v3777_v55 }
 0x125   :  { %v3827_v1 = vpack.c.bf16 %v655_v63, %v654_v62  ;;  %v3347_v2 = vpop.f32.mrb[24].mxu0 }
 0x126   :  { %v484_v3 = vadd.f32 %v3347_v2, %v3771_v42  ;;  %v475_v4 = vpop.f32.mrb[25].mxu0 }
 0x127   :  { %v476_v7 = vadd.f32 %v3771_v42, %v475_v4  ;;  %v3348_v8 = vpop.f32.mrb[26].mxu0  ;;  %2797 = vmatprep.subr.bf16.mxu1 %v3827_v1  ;;  %2925 = vmatprep.subr.bf16.mxu0 %v3827_v1 }
 0x128   :  { %v487_v9 = vadd.f32 %v3348_v8, %v3771_v42  ;;  %v478_v10 = vpop.f32.mrb[27].mxu0  ;;  %2798 = vmatpush3.bf16.msra.mxu1 %v3787_v6  ;;  %2926 = vmatpush3.bf16.msra.mxu0 %v3787_v6  ;;  %v660_v12 = vmax.f32 %v484_v3, 0.0 }
 0x129   :  { %v479_v11 = vadd.f32 %v3771_v42, %v478_v10  ;;  %2799 = vmatprep.subr.bf16.mxu1 %v3823_v0  ;;  %2927 = vmatprep.subr.bf16.mxu0 %v3823_v0  ;;  %v658_v14 = vmax.f32 %v476_v7, 0.0 }
 0x12a   :  { %v661_v13 = vmax.f32 %v487_v9, 0.0 }
 0x12b   :  { %v659_v15 = vmax.f32 %v479_v11, 0.0  ;;  %v3435_v11 = vld [vmem:[%s4817_s3 + $0x20] ss:$16 sps:$4 sm:$0xff]  }
 0x12c   :  { %v3839_v16 = vpack.c.bf16 %v661_v13, %v660_v12  ;;  %2800 = vmatpush3.bf16.msra.mxu1 %v3785_v5  ;;  %2928 = vmatpush3.bf16.msra.mxu0 %v3785_v5  ;;  %v3436_v12 = vld [vmem:[%s4817_s3 + $0x120] ss:$16 sps:$4 sm:$0xff]  }
 0x12d   :  { %v3843_v17 = vpack.c.bf16 %v659_v15, %v658_v14  ;;  %v3351_v18 = vpop.f32.mrb[28].mxu0  ;;  %v3437_v14 = vld [vmem:[%s4817_s3 + $0x44] ss:$16 sps:$4 sm:$0xff]  }
 0x12e   :  { %v500_v21 = vadd.f32 %v3351_v18, %v3771_v42  ;;  %v491_v22 = vpop.f32.mrb[29].mxu0 }
 0x12f   :  { %v492_v23 = vadd.f32 %v3771_v42, %v491_v22  ;;  %v3352_v24 = vpop.f32.mrb[30].mxu0  ;;  %2801 = vmatprep.subr.bf16.mxu1 %v3843_v17  ;;  %2929 = vmatprep.subr.bf16.mxu0 %v3843_v17 }
 0x130   :  { %v503_v25 = vadd.f32 %v3352_v24, %v3771_v42  ;;  %v494_v26 = vpop.f32.mrb[31].mxu0  ;;  %2802 = vmatpush3.bf16.msra.mxu1 %v3795_v20  ;;  %2930 = vmatpush3.bf16.msra.mxu0 %v3795_v20  ;;  %v664_v28 = vmax.f32 %v500_v21, 0.0  ;;  %v3439_v21 = vld [vmem:[%s4817_s3 + $0x144] ss:$16 sps:$4 sm:$0xff]  }
 0x131   :  { %v495_v27 = vadd.f32 %v3771_v42, %v494_v26  ;;  %2803 = vmatprep.subr.bf16.mxu1 %v3839_v16  ;;  %2931 = vmatprep.subr.bf16.mxu0 %v3839_v16  ;;  %v662_v30 = vmax.f32 %v492_v23, 0.0 }
 0x132   :  { %v665_v29 = vmax.f32 %v503_v25, 0.0 }
 0x133   :  { %v663_v31 = vmax.f32 %v495_v27, 0.0 }
 0x134   :  { %v3855_v32 = vpack.c.bf16 %v665_v29, %v664_v28  ;;  %2804 = vmatpush3.bf16.msra.mxu1 %v3793_v19  ;;  %2932 = vmatpush3.bf16.msra.mxu0 %v3793_v19 }
 0x135   :  { %v3859_v35 = vpack.c.bf16 %v663_v31, %v662_v30  ;;  %v3355_v36 = vpop.f32.mrb[32].mxu0 }
 0x136   :  { %v516_v37 = vadd.f32 %v3355_v36, %v3771_v42  ;;  %v507_v38 = vpop.f32.mrb[33].mxu0 }
 0x137   :  { %v508_v39 = vadd.f32 %v3771_v42, %v507_v38  ;;  %v3356_v40 = vpop.f32.mrb[34].mxu0  ;;  %2805 = vmatprep.subr.bf16.mxu1 %v3859_v35  ;;  %2933 = vmatprep.subr.bf16.mxu0 %v3859_v35  ;;  %v3442_v38 = vld [vmem:[%s4817_s3 + $0x140] ss:$16 sps:$4 sm:$0xff]  }
 0x138   :  { %v519_v41 = vadd.f32 %v3356_v40, %v3771_v42  ;;  %v510_v43 = vpop.f32.mrb[35].mxu0  ;;  %2806 = vmatpush3.bf16.msra.mxu1 %v3803_v34  ;;  %2934 = vmatpush3.bf16.msra.mxu0 %v3803_v34  ;;  %v668_v45 = vmax.f32 %v516_v37, 0.0  ;;  %v3441_v37 = vld [vmem:[%s4817_s3 + $0x40] ss:$16 sps:$4 sm:$0xff]   ;;  %v3443_v40 = vld [vmem:[%s4817_s3 + $0x64] ss:$16 sps:$4 sm:$0xff]  }
 0x139   :  { %v511_v44 = vadd.f32 %v3771_v42, %v510_v43  ;;  %2807 = vmatprep.subr.bf16.mxu1 %v3855_v32  ;;  %2935 = vmatprep.subr.bf16.mxu0 %v3855_v32  ;;  %v666_v47 = vmax.f32 %v508_v39, 0.0 }
 0x13a   :  { %v669_v46 = vmax.f32 %v519_v41, 0.0 }
 0x13b   :  { %v667_v50 = vmax.f32 %v511_v44, 0.0  ;;  %v3445_v44 = vld [vmem:[%s4817_s3 + $0x164] ss:$16 sps:$4 sm:$0xff]  }
 0x13c   :  { %v3877_v53 = vpack.c.bf16 %v669_v46, %v668_v45  ;;  %2808 = vmatpush3.bf16.msra.mxu1 %v3801_v33  ;;  %2936 = vmatpush3.bf16.msra.mxu0 %v3801_v33 }
 0x13d   :  { %v3884_v57 = vpack.c.bf16 %v667_v50, %v666_v47  ;;  %v3359_v58 = vpop.f32.mrb[36].mxu0  ;;  %3049 = vmatprep.subr.bf16.mxu0 %v3811_v49 }
 0x13e   :  { %v532_v60 = vadd.f32 %v3359_v58, %v3771_v42  ;;  %v523_v61 = vpop.f32.mrb[37].mxu0 }
 0x13f   :  { %v524_v62 = vadd.f32 %v3771_v42, %v523_v61  ;;  %v3360_v63 = vpop.f32.mrb[38].mxu0  ;;  %955 = vmatmul.mubr.bf16.vlgmr.msra.gmra.mrb[0].mxu1 %v3425_v51  ;;  %1342 = vmatmul.mubr.bf16.vlgmr.msra.gmra.mrb[64].mxu0 %v3428_v52 }
 0x140   :  { %v535_v2 = vadd.f32 %v3360_v63, %v3771_v42  ;;  %v526_v3 = vpop.f32.mrb[39].mxu0  ;;  %3050 = vmatpush3.bf16.msra.mxu0 %v3779_v56  ;;  %962 = vmatprep.mubr.bf16.mxu1 %v3431_v54  ;;  %v672_v7 = vmax.f32 %v532_v60, 0.0  ;;  %v3448_v63 = vld [vmem:[%s4817_s3 + $0x160] ss:$16 sps:$4 sm:$0xff]  }
 0x141   :  { %v527_v4 = vadd.f32 %v3771_v42, %v526_v3  ;;  %3051 = vmatprep.subr.bf16.mxu0 %v3809_v48  ;;  %1349 = vmatprep.mubr.bf16.mxu0 %v3433_v59  ;;  %v670_v9 = vmax.f32 %v524_v62, 0.0  ;;  %v3447_v62 = vld [vmem:[%s4817_s3 + $0x60] ss:$16 sps:$4 sm:$0xff]   ;;  %v3449_v3 = vld [vmem:[%s4817_s3 + $0x84] ss:$16 sps:$4 sm:$0xff]  }
 0x142   :  { %v673_v8 = vmax.f32 %v535_v2, 0.0 }
 0x143   :  { %v671_v10 = vmax.f32 %v527_v4, 0.0 }
 0x144   :  { %v3902_v13 = vpack.c.bf16 %v673_v8, %v672_v7  ;;  %3052 = vmatpush3.bf16.msra.mxu0 %v3777_v55  ;;  %v3451_v8 = vld [vmem:[%s4817_s3 + $0x184] ss:$16 sps:$4 sm:$0xff]  }
 0x145   :  { %v3908_v15 = vpack.c.bf16 %v671_v10, %v670_v9  ;;  %v3363_v18 = vpop.f32.mrb[40].mxu0  ;;  %3053 = vmatprep.subr.bf16.mxu0 %v3827_v1 }
 0x146   :  { %v548_v22 = vadd.f32 %v3363_v18, %v3771_v42  ;;  %v539_v23 = vpop.f32.mrb[41].mxu0 }
 0x147   :  { %v540_v24 = vadd.f32 %v3771_v42, %v539_v23  ;;  %v3364_v25 = vpop.f32.mrb[42].mxu0  ;;  %963 = vmatmul.mubr.bf16.gmra.mrb[4].mxu1 %v3435_v11  ;;  %1350 = vmatmul.mubr.bf16.gmra.mrb[68].mxu0 %v3436_v12 }
 0x148   :  { %v551_v26 = vadd.f32 %v3364_v25, %v3771_v42  ;;  %v542_v27 = vpop.f32.mrb[43].mxu0  ;;  %3054 = vmatpush3.bf16.msra.mxu0 %v3787_v6  ;;  %970 = vmatprep.mubr.bf16.mxu1 %v3437_v14  ;;  %v676_v29 = vmax.f32 %v548_v22, 0.0 }
 0x149   :  { %v543_v28 = vadd.f32 %v3771_v42, %v542_v27  ;;  %3055 = vmatprep.subr.bf16.mxu0 %v3823_v0  ;;  %1357 = vmatprep.mubr.bf16.mxu0 %v3439_v21  ;;  %v674_v31 = vmax.f32 %v540_v24, 0.0 }
 0x14a   :  { %v677_v30 = vmax.f32 %v551_v26, 0.0  ;;  %v3453_v26 = vld [vmem:[%s4817_s3 + $0x80] ss:$16 sps:$4 sm:$0xff]  }
 0x14b   :  { %v675_v36 = vmax.f32 %v543_v28, 0.0  ;;  %v3454_v28 = vld [vmem:[%s4817_s3 + $0x180] ss:$16 sps:$4 sm:$0xff]  }
 0x14c   :  { %v3926_v39 = vpack.c.bf16 %v677_v30, %v676_v29  ;;  %3056 = vmatpush3.bf16.msra.mxu0 %v3785_v5 }
 0x14d   :  { %v3932_v41 = vpack.c.bf16 %v675_v36, %v674_v31  ;;  %v3367_v43 = vpop.f32.mrb[44].mxu0  ;;  %3057 = vmatprep.subr.bf16.mxu0 %v3843_v17  ;;  %v3455_v31 = vld [vmem:[%s4817_s3 + $0xa4] ss:$16 sps:$4 sm:$0xff]  }
 0x14e   :  { %v564_v45 = vadd.f32 %v3367_v43, %v3771_v42  ;;  %v555_v46 = vpop.f32.mrb[45].mxu0 }
 0x14f   :  { %v556_v47 = vadd.f32 %v3771_v42, %v555_v46  ;;  %v3368_v50 = vpop.f32.mrb[46].mxu0  ;;  %971 = vmatmul.mubr.bf16.gmra.mrb[8].mxu1 %v3441_v37  ;;  %1358 = vmatmul.mubr.bf16.gmra.mrb[72].mxu0 %v3442_v38  ;;  %v3457_v38 = vld [vmem:[%s4817_s3 + $0x1a4] ss:$16 sps:$4 sm:$0xff]  }
 0x150   :  { %v567_v51 = vadd.f32 %v3368_v50, %v3771_v42  ;;  %v558_v52 = vpop.f32.mrb[47].mxu0  ;;  %3058 = vmatpush3.bf16.msra.mxu0 %v3795_v20  ;;  %978 = vmatprep.mubr.bf16.mxu1 %v3443_v40  ;;  %v680_v58 = vmax.f32 %v564_v45, 0.0 }
 0x151   :  { %v559_v54 = vadd.f32 %v3771_v42, %v558_v52  ;;  %3059 = vmatprep.subr.bf16.mxu0 %v3839_v16  ;;  %1365 = vmatprep.mubr.bf16.mxu0 %v3445_v44  ;;  %v678_v60 = vmax.f32 %v556_v47, 0.0  ;;  %v3459_v52 = vld [vmem:[%s4817_s3 + $0xa0] ss:$16 sps:$4 sm:$0xff]  }
 0x152   :  { %v681_v59 = vmax.f32 %v567_v51, 0.0 }
 0x153   :  { %v679_v61 = vmax.f32 %v559_v54, 0.0 }
 0x154   :  { %v3950_v2 = vpack.c.bf16 %v681_v59, %v680_v58  ;;  %3060 = vmatpush3.bf16.msra.mxu0 %v3793_v19  ;;  %v3460_v58 = vld [vmem:[%s4817_s3 + $0x1a0] ss:$16 sps:$4 sm:$0xff]  }
 0x155   :  { %v3956_v4 = vpack.c.bf16 %v679_v61, %v678_v60  ;;  %v3371_v7 = vpop.f32.mrb[48].mxu0  ;;  %3061 = vmatprep.subr.bf16.mxu0 %v3859_v35  ;;  %v3461_v61 = vld [vmem:[%s4817_s3 + $0xc4] ss:$16 sps:$4 sm:$0xff]  }
 0x156   :  { %v580_v9 = vadd.f32 %v3371_v7, %v3771_v42  ;;  %v571_v10 = vpop.f32.mrb[49].mxu0 }
 0x157   :  { %v572_v11 = vadd.f32 %v3771_v42, %v571_v10  ;;  %v3372_v12 = vpop.f32.mrb[50].mxu0  ;;  %979 = vmatmul.mubr.bf16.gmra.mrb[12].mxu1 %v3447_v62  ;;  %1366 = vmatmul.mubr.bf16.gmra.mrb[76].mxu0 %v3448_v63 }
 0x158   :  { %v583_v14 = vadd.f32 %v3372_v12, %v3771_v42  ;;  %v574_v18 = vpop.f32.mrb[51].mxu0  ;;  %3062 = vmatpush3.bf16.msra.mxu0 %v3803_v34  ;;  %986 = vmatprep.mubr.bf16.mxu1 %v3449_v3  ;;  %v684_v22 = vmax.f32 %v580_v9, 0.0  ;;  %v3463_v3 = vld [vmem:[%s4817_s3 + $0x1c4] ss:$16 sps:$4 sm:$0xff]  }
 0x159   :  { %v575_v21 = vadd.f32 %v3771_v42, %v574_v18  ;;  %3063 = vmatprep.subr.bf16.mxu0 %v3855_v32  ;;  %1373 = vmatprep.mubr.bf16.mxu0 %v3451_v8  ;;  %v682_v24 = vmax.f32 %v572_v11, 0.0 }
 0x15a   :  { %v685_v23 = vmax.f32 %v583_v14, 0.0 }
 0x15b   :  { %v683_v25 = vmax.f32 %v575_v21, 0.0 }
 0x15c   :  { %v3971_v27 = vpack.c.bf16 %v685_v23, %v684_v22  ;;  %3064 = vmatpush3.bf16.msra.mxu0 %v3801_v33  ;;  %v3465_v22 = vld [vmem:[%s4817_s3 + $0xc0] ss:$16 sps:$4 sm:$0xff]  }
 0x15d   :  { %v3977_v29 = vpack.c.bf16 %v683_v25, %v682_v24  ;;  %v3375_v30 = vpop.f32.mrb[52].mxu0  ;;  %3177 = vmatprep.subr.bf16.mxu0 %v3811_v49  ;;  %v3466_v24 = vld [vmem:[%s4817_s3 + $0x1c0] ss:$16 sps:$4 sm:$0xff]  }
 0x15e   :  { %v596_v36 = vadd.f32 %v3375_v30, %v3771_v42  ;;  %v587_v37 = vpop.f32.mrb[53].mxu0 }
 0x15f   :  { %v588_v40 = vadd.f32 %v3771_v42, %v587_v37  ;;  %v3376_v43 = vpop.f32.mrb[54].mxu0  ;;  %987 = vmatmul.mubr.bf16.gmra.mrb[16].mxu1 %v3453_v26  ;;  %2857 = vmatprep.subr.bf16.mxu1 %v3977_v29 }
 0x160   :  { %v599_v44 = vadd.f32 %v3376_v43, %v3771_v42  ;;  %1374 = vmatmul.mubr.bf16.gmra.mrb[80].mxu0 %v3454_v28  ;;  %v590_v49 = vpop.f32.mrb[55].mxu0  ;;  %2858 = vmatpush3.bf16.msra.mxu1 %v3884_v57  ;;  %v688_v46 = vmax.f32 %v596_v36, 0.0  ;;  %v3467_v28 = vld [vmem:[%s4817_s3 + $0xe4] ss:$16 sps:$4 sm:$0xff]  }
 0x161   :  { %v591_v45 = vadd.f32 %v3771_v42, %v590_v49  ;;  %2859 = vmatprep.subr.bf16.mxu1 %v3971_v27  ;;  %994 = vmatprep.mubr.bf16.mxu1 %v3455_v31  ;;  %v686_v50 = vmax.f32 %v588_v40, 0.0  ;;  %v3469_v36 = vld [vmem:[%s4817_s3 + $0x1e4] ss:$16 sps:$4 sm:$0xff]  }
 0x162   :  { %v689_v47 = vmax.f32 %v599_v44, 0.0  ;;  %1381 = vmatprep.mubr.bf16.mxu0 %v3457_v38 }
 0x163   :  { %v687_v51 = vmax.f32 %v591_v45, 0.0 }
 0x164   :  { %v3996_v54 = vpack.c.bf16 %v689_v47, %v688_v46  ;;  %2860 = vmatpush3.bf16.msra.mxu1 %v3877_v53 }
 0x165   :  { %v4002_v59 = vpack.c.bf16 %v687_v51, %v686_v50  ;;  %v3379_v60 = vpop.f32.mrb[56].mxu0  ;;  %v3471_v50 = vld [vmem:[%s4817_s3 + $0xe0] ss:$16 sps:$4 sm:$0xff]  }
 0x166   :  { %v612_v62 = vadd.f32 %v3379_v60, %v3771_v42  ;;  %v603_v63 = vpop.f32.mrb[57].mxu0  ;;  %v3478_v60 = vld [vmem:[%s4817_s3 + $0x204] ss:$16 sps:$4 sm:$0xff]  }
 0x167   :  { %v604_v7 = vadd.f32 %v3771_v42, %v603_v63  ;;  %v3380_v8 = vpop.f32.mrb[58].mxu0  ;;  %995 = vmatmul.mubr.bf16.gmra.mrb[20].mxu1 %v3459_v52  ;;  %2861 = vmatprep.subr.bf16.mxu1 %v4002_v59  ;;  %v3479_v63 = vld [vmem:[%s4817_s3 + $0x2c] ss:$16 sps:$4 sm:$0xff]  }
 0x168   :  { %v615_v9 = vadd.f32 %v3380_v8, %v3771_v42  ;;  %1382 = vmatmul.mubr.bf16.gmra.mrb[84].mxu0 %v3460_v58  ;;  %v606_v10 = vpop.f32.mrb[59].mxu0  ;;  %2862 = vmatpush3.bf16.msra.mxu1 %v3908_v15  ;;  %v692_v12 = vmax.f32 %v612_v62, 0.0  ;;  %v3475_v58 = vld [vmem:[%s4817_s3 + $0xc] ss:$16 sps:$4 sm:$0xff]   ;;  %v3476_v62 = vld [vmem:[%s4817_s3 + $0x200] ss:$16 sps:$4 sm:$0xff]  }
 0x169   :  { %v607_v11 = vadd.f32 %v3771_v42, %v606_v10  ;;  %2863 = vmatprep.subr.bf16.mxu1 %v3996_v54  ;;  %1002 = vmatprep.mubr.bf16.mxu1 %v3461_v61  ;;  %v690_v18 = vmax.f32 %v604_v7, 0.0  ;;  %v3473_v61 = vld [vmem:[%s4817_s3 + $0x8] ss:$16 sps:$4 sm:$0xff]   ;;  %v3527_v7 = vld [vmem:[%s4817_s3 + $0x224] ss:$16 sps:$4 sm:$0xff]  }
 0x16a   :  { %v693_v14 = vmax.f32 %v615_v9, 0.0  ;;  %1389 = vmatprep.mubr.bf16.mxu0 %v3463_v3  ;;  %v3481_v3 = vld [vmem:[%s4817_s3 + $0x28] ss:$16 sps:$4 sm:$0xff]   ;;  %v3482_v8 = vld [vmem:[%s4817_s3 + $0x4c] ss:$16 sps:$4 sm:$0xff]  }
 0x16b   :  { %v691_v21 = vmax.f32 %v607_v11, 0.0  ;;  %v3493_v9 = vld [vmem:[%s4817_s3 + $0xa8] ss:$16 sps:$4 sm:$0xff]   ;;  %v3555_v10 = vld [vmem:[%s4817_s3 + $0x2a0] ss:$16 sps:$4 sm:$0xff]  }
 0x16c   :  { %v4020_v23 = vpack.c.bf16 %v693_v14, %v692_v12  ;;  %2864 = vmatpush3.bf16.msra.mxu1 %v3902_v13  ;;  %v3557_v11 = vld [vmem:[%s4817_s3 + $0x2c4] ss:$16 sps:$4 sm:$0xff]   ;;  %v3496_v12 = vld [vmem:[%s4817_s3 + $0xc8] ss:$16 sps:$4 sm:$0xff]   ;;  %v3497_v14 = vld [vmem:[%s4817_s3 + $0xec] ss:$16 sps:$4 sm:$0xff]  }
 0x16d   :  { %v4026_v25 = vpack.c.bf16 %v691_v21, %v690_v18  ;;  %v3383_v26 = vpop.f32.mrb[60].mxu0  ;;  %v3561_v18 = vld [vmem:[%s4817_s3 + $0x2c0] ss:$16 sps:$4 sm:$0xff]   ;;  %v3563_v21 = vld [vmem:[%s4817_s3 + $0x2e4] ss:$16 sps:$4 sm:$0xff]  }
 0x16e   :  { %v628_v30 = vadd.f32 %v3383_v26, %v3771_v42  ;;  %v619_v31 = vpop.f32.mrb[61].mxu0  ;;  %v3567_v26 = vld [vmem:[%s4817_s3 + $0x2e0] ss:$16 sps:$4 sm:$0xff]  }
 0x16f   :  { %v620_v37 = vadd.f32 %v3771_v42, %v619_v31  ;;  %v3384_v38 = vpop.f32.mrb[62].mxu0  ;;  %1003 = vmatmul.mubr.bf16.gmra.mrb[24].mxu1 %v3465_v22  ;;  %2865 = vmatprep.subr.bf16.mxu1 %v4026_v25  ;;  %v3499_v22 = vld [vmem:[%s4817_s3 + $0xe8] ss:$16 sps:$4 sm:$0xff]   ;;  %v3503_v31 = vld [vmem:[%s4817_s3 + $0x12c] ss:$16 sps:$4 sm:$0xff]  }
 0x170   :  { %v631_v40 = vadd.f32 %v3384_v38, %v3771_v42  ;;  %1390 = vmatmul.mubr.bf16.gmra.mrb[88].mxu0 %v3466_v24  ;;  %v622_v43 = vpop.f32.mrb[63].mxu0  ;;  %2866 = vmatpush3.bf16.msra.mxu1 %v3932_v41  ;;  %v696_v49 = vmax.f32 %v628_v30, 0.0  ;;  %v3502_v24 = vld [vmem:[%s4817_s3 + $0x10c] ss:$16 sps:$4 sm:$0xff]   ;;  %v3500_v30 = vld [vmem:[%s4817_s3 + $0x108] ss:$16 sps:$4 sm:$0xff]  }
 0x171   :  { %v623_v44 = vadd.f32 %v3771_v42, %v622_v43  ;;  %2867 = vmatprep.subr.bf16.mxu1 %v4020_v23  ;;  %1010 = vmatprep.mubr.bf16.mxu1 %v3467_v28  ;;  %v694_v46 = vmax.f32 %v620_v37, 0.0  ;;  %v3472_v42 = vld [vmem:[%s4817_s3 + $0x1e0] ss:$16 sps:$4 sm:$0xff]   ;;  %v3571_v28 = vld [vmem:[%s4817_s3 + $0x304] ss:$16 sps:$4 sm:$0xff]  }
 0x172   :  { %v697_v45 = vmax.f32 %v631_v40, 0.0  ;;  %1397 = vmatprep.mubr.bf16.mxu0 %v3469_v36  ;;  %v3569_v36 = vld [vmem:[%s4817_s3 + $0x300] ss:$16 sps:$4 sm:$0xff]   ;;  %v3575_v37 = vld [vmem:[%s4817_s3 + $0x324] ss:$16 sps:$4 sm:$0xff]  }
 0x173   :  { %v695_v47 = vmax.f32 %v623_v44, 0.0  ;;  %v3505_v38 = vld [vmem:[%s4817_s3 + $0x128] ss:$16 sps:$4 sm:$0xff]   ;;  %v3506_v40 = vld [vmem:[%s4817_s3 + $0x14c] ss:$16 sps:$4 sm:$0xff]  }
 0x174   :  { %v4044_v51 = vpack.c.bf16 %v697_v45, %v696_v49  ;;  %2868 = vmatpush3.bf16.msra.mxu1 %v3926_v39  ;;  %v3579_v43 = vld [vmem:[%s4817_s3 + $0x320] ss:$16 sps:$4 sm:$0xff]   ;;  %v3581_v44 = vld [vmem:[%s4817_s3 + $0x344] ss:$16 sps:$4 sm:$0xff]   ;;  %v3508_v49 = vld [vmem:[%s4817_s3 + $0x148] ss:$16 sps:$4 sm:$0xff]  }
 0x175   :  { %v4050_v52 = vpack.c.bf16 %v695_v47, %v694_v46  ;;  %v3509_v45 = vld [vmem:[%s4817_s3 + $0x16c] ss:$16 sps:$4 sm:$0xff]   ;;  %v3585_v46 = vld [vmem:[%s4817_s3 + $0x340] ss:$16 sps:$4 sm:$0xff]   ;;  %v3511_v47 = vld [vmem:[%s4817_s3 + $0x168] ss:$16 sps:$4 sm:$0xff]  }
 0x177   :  { %1011 = vmatmul.mubr.bf16.gmra.mrb[28].mxu1 %v3471_v50  ;;  %2869 = vmatprep.subr.bf16.mxu1 %v4050_v52  ;;  %v3587_v50 = vld [vmem:[%s4817_s3 + $0x364] ss:$16 sps:$4 sm:$0xff]  }
 0x178   :  { %1398 = vmatmul.mubr.bf16.gmra.mrb[92].mxu0 %v3472_v42  ;;  %2870 = vmatpush3.bf16.msra.mxu1 %v3956_v4  ;;  %v3512_v42 = vld [vmem:[%s4817_s3 + $0x18c] ss:$16 sps:$4 sm:$0xff]  }
 0x179   :  { %2871 = vmatprep.subr.bf16.mxu1 %v4044_v51  ;;  %1051 = vmatprep.mubr.bf16.mxu1 %v3475_v58  ;;  %v3591_v58 = vld [vmem:[%s4817_s3 + $0x360] ss:$16 sps:$4 sm:$0xff]  }
 0x17a   :  { %1744 = vmatprep.mubr.bf16.mxu0 %v3478_v60  ;;  %v3514_v60 = vld [vmem:[%s4817_s3 + $0x188] ss:$16 sps:$4 sm:$0xff]  }
 0x17c   :  { %2872 = vmatpush3.bf16.msra.mxu1 %v3950_v2 }
 0x17d   :  { %2985 = vmatprep.subr.bf16.mxu1 %v3977_v29 }
 0x17f   :  { %1052 = vmatmul.mubr.bf16.vlgmr.msra.gmra.mrb[32].mxu1 %v3473_v61  ;;  %v3593_v61 = vld [vmem:[%s4817_s3 + $0x384] ss:$16 sps:$4 sm:$0xff]  }
 0x180   :  { %1745 = vmatmul.mubr.bf16.vlgmr.msra.gmra.mrb[96].mxu0 %v3476_v62  ;;  %2986 = vmatpush3.bf16.msra.mxu1 %v3884_v57  ;;  %v3515_v62 = vld [vmem:[%s4817_s3 + $0x1ac] ss:$16 sps:$4 sm:$0xff]  }
 0x181   :  { %3178 = vmatpush3.bf16.msra.mxu0 %v3779_v56  ;;  %2987 = vmatprep.subr.bf16.mxu1 %v3971_v27  ;;  %v3531_v56 = vld [vmem:[%s4817_s3 + $0x220] ss:$16 sps:$4 sm:$0xff]  }
 0x182   :  { %3179 = vmatprep.subr.bf16.mxu0 %v3809_v48  ;;  %1059 = vmatprep.mubr.bf16.mxu1 %v3479_v63  ;;  %v3533_v48 = vld [vmem:[%s4817_s3 + $0x244] ss:$16 sps:$4 sm:$0xff]   ;;  %v3597_v63 = vld [vmem:[%s4817_s3 + $0x380] ss:$16 sps:$4 sm:$0xff]  }
 0x183   :  { %1752 = vmatprep.mubr.bf16.mxu0 %v3527_v7  ;;  %v3599_v7 = vld [vmem:[%s4817_s3 + $0x3a4] ss:$16 sps:$4 sm:$0xff]  }
 0x184   :  { %2988 = vmatpush3.bf16.msra.mxu1 %v3877_v53 }
 0x185   :  { %3180 = vmatpush3.bf16.msra.mxu0 %v3777_v55  ;;  %2989 = vmatprep.subr.bf16.mxu1 %v4002_v59  ;;  %v3484_v55 = vld [vmem:[%s4817_s3 + $0x48] ss:$16 sps:$4 sm:$0xff]  }
 0x186   :  { %3181 = vmatprep.subr.bf16.mxu0 %v3827_v1  ;;  %v3485_v1 = vld [vmem:[%s4817_s3 + $0x6c] ss:$16 sps:$4 sm:$0xff]  }
 0x187   :  { %1060 = vmatmul.mubr.bf16.gmra.mrb[36].mxu1 %v3481_v3  ;;  %v3517_v3 = vld [vmem:[%s4817_s3 + $0x1a8] ss:$16 sps:$4 sm:$0xff]  }
 0x188   :  { %2990 = vmatpush3.bf16.msra.mxu1 %v3908_v15  ;;  %1067 = vmatprep.mubr.bf16.mxu1 %v3482_v8  ;;  %v3603_v8 = vld [vmem:[%s4817_s3 + $0x3a0] ss:$16 sps:$4 sm:$0xff]  }
 0x189   :  { %3182 = vmatpush3.bf16.msra.mxu0 %v3787_v6  ;;  %2991 = vmatprep.subr.bf16.mxu1 %v3996_v54  ;;  %v3537_v6 = vld [vmem:[%s4817_s3 + $0x240] ss:$16 sps:$4 sm:$0xff]  }
 0x18a   :  { %3183 = vmatprep.subr.bf16.mxu0 %v3823_v0  ;;  %1753 = vmatmul.mubr.bf16.gmra.mrb[100].mxu0 %v3531_v56  ;;  %v3539_v0 = vld [vmem:[%s4817_s3 + $0x264] ss:$16 sps:$4 sm:$0xff]   ;;  %v3520_v56 = vld [vmem:[%s4817_s3 + $0x1c8] ss:$16 sps:$4 sm:$0xff]  }
 0x18b   :  { %1760 = vmatprep.mubr.bf16.mxu0 %v3533_v48  ;;  %v3521_v48 = vld [vmem:[%s4817_s3 + $0x1ec] ss:$16 sps:$4 sm:$0xff]  }
 0x18c   :  { %2992 = vmatpush3.bf16.msra.mxu1 %v3902_v13 }
 0x18d   :  { %3184 = vmatpush3.bf16.msra.mxu0 %v3785_v5  ;;  %2993 = vmatprep.subr.bf16.mxu1 %v4026_v25  ;;  %v3487_v5 = vld [vmem:[%s4817_s3 + $0x68] ss:$16 sps:$4 sm:$0xff]  }
 0x18e   :  { %3185 = vmatprep.subr.bf16.mxu0 %v3843_v17  ;;  %v3488_v17 = vld [vmem:[%s4817_s3 + $0x8c] ss:$16 sps:$4 sm:$0xff]  }
 0x18f   :  { %1068 = vmatmul.mubr.bf16.gmra.mrb[40].mxu1 %v3484_v55  ;;  %v3605_v55 = vld [vmem:[%s4817_s3 + $0x3c4] ss:$16 sps:$4 sm:$0xff]  }
 0x190   :  { %2994 = vmatpush3.bf16.msra.mxu1 %v3932_v41  ;;  %1075 = vmatprep.mubr.bf16.mxu1 %v3485_v1  ;;  %v3609_v1 = vld [vmem:[%s4817_s3 + $0x3c0] ss:$16 sps:$4 sm:$0xff]  }
 0x191   :  { %3186 = vmatpush3.bf16.msra.mxu0 %v3795_v20  ;;  %2995 = vmatprep.subr.bf16.mxu1 %v4020_v23  ;;  %v3543_v20 = vld [vmem:[%s4817_s3 + $0x260] ss:$16 sps:$4 sm:$0xff]  }
 0x192   :  { %3187 = vmatprep.subr.bf16.mxu0 %v3839_v16  ;;  %1761 = vmatmul.mubr.bf16.gmra.mrb[104].mxu0 %v3537_v6  ;;  %v3545_v16 = vld [vmem:[%s4817_s3 + $0x284] ss:$16 sps:$4 sm:$0xff]   ;;  %v3523_v6 = vld [vmem:[%s4817_s3 + $0x1e8] ss:$16 sps:$4 sm:$0xff]  }
 0x193   :  { %1768 = vmatprep.mubr.bf16.mxu0 %v3539_v0  ;;  %v3526_v0 = vld [vmem:[%s4817_s3 + $0x20c] ss:$16 sps:$4 sm:$0xff]  }
 0x194   :  { %2996 = vmatpush3.bf16.msra.mxu1 %v3926_v39 }
 0x195   :  { %3188 = vmatpush3.bf16.msra.mxu0 %v3793_v19  ;;  %2997 = vmatprep.subr.bf16.mxu1 %v4050_v52  ;;  %v3490_v19 = vld [vmem:[%s4817_s3 + $0x88] ss:$16 sps:$4 sm:$0xff]  }
 0x196   :  { %3189 = vmatprep.subr.bf16.mxu0 %v3859_v35  ;;  %v3491_v35 = vld [vmem:[%s4817_s3 + $0xac] ss:$16 sps:$4 sm:$0xff]  }
 0x197   :  { %1076 = vmatmul.mubr.bf16.gmra.mrb[44].mxu1 %v3487_v5  ;;  %v3611_v5 = vld [vmem:[%s4817_s3 + $0x3e4] ss:$16 sps:$4 sm:$0xff]  }
 0x198   :  { %2998 = vmatpush3.bf16.msra.mxu1 %v3956_v4  ;;  %1083 = vmatprep.mubr.bf16.mxu1 %v3488_v17  ;;  %v3615_v17 = vld [vmem:[%s4817_s3 + $0x3e0] ss:$16 sps:$4 sm:$0xff]  }
 0x199   :  { %3190 = vmatpush3.bf16.msra.mxu0 %v3803_v34  ;;  %2999 = vmatprep.subr.bf16.mxu1 %v4044_v51  ;;  %v3549_v34 = vld [vmem:[%s4817_s3 + $0x280] ss:$16 sps:$4 sm:$0xff]  }
 0x19a   :  { %3191 = vmatprep.subr.bf16.mxu0 %v3855_v32  ;;  %1769 = vmatmul.mubr.bf16.gmra.mrb[108].mxu0 %v3543_v20  ;;  %v3551_v32 = vld [vmem:[%s4817_s3 + $0x2a4] ss:$16 sps:$4 sm:$0xff]   ;;  %v3524_v20 = vld [vmem:[%s4817_s3 + $0x208] ss:$16 sps:$4 sm:$0xff]  }
 0x19b   :  { %1776 = vmatprep.mubr.bf16.mxu0 %v3545_v16  ;;  %v3532_v16 = vld [vmem:[%s4817_s3 + $0x228] ss:$16 sps:$4 sm:$0xff]  }
 0x19c   :  { %3000 = vmatpush3.bf16.msra.mxu1 %v3950_v2 }
 0x19d   :  { %3192 = vmatpush3.bf16.msra.mxu0 %v3801_v33  ;;  %3113 = vmatprep.subr.bf16.mxu1 %v3977_v29  ;;  %v3494_v33 = vld [vmem:[%s4817_s3 + $0xcc] ss:$16 sps:$4 sm:$0xff]  }
 0x19f   :  { %1084 = vmatmul.mubr.bf16.gmra.mrb[48].mxu1 %v3490_v19  ;;  %v3529_v19 = vld [vmem:[%s4817_s3 + $0x22c] ss:$16 sps:$4 sm:$0xff]  }
 0x1a0   :  { %1091 = vmatprep.mubr.bf16.mxu1 %v3491_v35  ;;  %v3535_v35 = vld [vmem:[%s4817_s3 + $0x24c] ss:$16 sps:$4 sm:$0xff]  }
 0x1a2   :  { %1777 = vmatmul.mubr.bf16.gmra.mrb[112].mxu0 %v3549_v34 }
 0x1a3   :  { %1784 = vmatprep.mubr.bf16.mxu0 %v3551_v32 }
 0x1a7   :  { %1092 = vmatmul.mubr.bf16.gmra.mrb[52].mxu1 %v3493_v9 }
 0x1a8   :  { %1099 = vmatprep.mubr.bf16.mxu1 %v3494_v33 }
 0x1aa   :  { %1785 = vmatmul.mubr.bf16.gmra.mrb[116].mxu0 %v3555_v10 }
 0x1ab   :  { %1792 = vmatprep.mubr.bf16.mxu0 %v3557_v11 }
 0x1af   :  { %1100 = vmatmul.mubr.bf16.gmra.mrb[56].mxu1 %v3496_v12 }
 0x1b0   :  { %1107 = vmatprep.mubr.bf16.mxu1 %v3497_v14  ;;  %v3550_v14 = vld [vmem:[%s4817_s3 + $0x288] ss:$16 sps:$4 sm:$0xff]  }
 0x1b2   :  { %1793 = vmatmul.mubr.bf16.gmra.mrb[120].mxu0 %v3561_v18 }
 0x1b3   :  { %1800 = vmatprep.mubr.bf16.mxu0 %v3563_v21  ;;  %v3553_v21 = vld [vmem:[%s4817_s3 + $0x2ac] ss:$16 sps:$4 sm:$0xff]  }
 0x1b7   :  { %1108 = vmatmul.mubr.bf16.gmra.mrb[60].mxu1 %v3499_v22 }
 0x1b8   :  { %1438 = vmatprep.mubr.bf16.mxu1 %v3502_v24 }
 0x1ba   :  { %1801 = vmatmul.mubr.bf16.gmra.mrb[124].mxu0 %v3567_v26 }
 0x1bb   :  { %2131 = vmatprep.mubr.bf16.mxu0 %v3571_v28 }
 0x1bf   :  { %1439 = vmatmul.mubr.bf16.vlgmr.msra.gmra.mrb[64].mxu1 %v3500_v30 }
 0x1c0   :  { %3114 = vmatpush3.bf16.msra.mxu1 %v3884_v57  ;;  %1446 = vmatprep.mubr.bf16.mxu1 %v3503_v31 }
 0x1c1   :  { %3115 = vmatprep.subr.bf16.mxu1 %v3971_v27 }
 0x1c2   :  { %2132 = vmatmul.mubr.bf16.vlgmr.msra.gmra.mrb[128].mxu0 %v3569_v36 }
 0x1c3   :  { %2139 = vmatprep.mubr.bf16.mxu0 %v3575_v37  ;;  %v3556_v37 = vld [vmem:[%s4817_s3 + $0x2a8] ss:$16 sps:$4 sm:$0xff]  }
 0x1c4   :  { %3116 = vmatpush3.bf16.msra.mxu1 %v3877_v53 }
 0x1c5   :  { %3117 = vmatprep.subr.bf16.mxu1 %v4002_v59 }
 0x1c7   :  { %1447 = vmatmul.mubr.bf16.gmra.mrb[68].mxu1 %v3505_v38 }
 0x1c8   :  { %3118 = vmatpush3.bf16.msra.mxu1 %v3908_v15  ;;  %1454 = vmatprep.mubr.bf16.mxu1 %v3506_v40 }
 0x1c9   :  { %3119 = vmatprep.subr.bf16.mxu1 %v3996_v54 }
 0x1ca   :  { %2140 = vmatmul.mubr.bf16.gmra.mrb[132].mxu0 %v3579_v43  ;;  %v3559_v43 = vld [vmem:[%s4817_s3 + $0x2cc] ss:$16 sps:$4 sm:$0xff]  }
 0x1cb   :  { %2147 = vmatprep.mubr.bf16.mxu0 %v3581_v44 }
 0x1cc   :  { %3120 = vmatpush3.bf16.msra.mxu1 %v3902_v13 }
 0x1cd   :  { %3121 = vmatprep.subr.bf16.mxu1 %v4026_v25 }
 0x1cf   :  { %1455 = vmatmul.mubr.bf16.gmra.mrb[72].mxu1 %v3508_v49 }
 0x1d0   :  { %3122 = vmatpush3.bf16.msra.mxu1 %v3932_v41  ;;  %1462 = vmatprep.mubr.bf16.mxu1 %v3509_v45 }
 0x1d1   :  { %3123 = vmatprep.subr.bf16.mxu1 %v4020_v23 }
 0x1d2   :  { %2148 = vmatmul.mubr.bf16.gmra.mrb[136].mxu0 %v3585_v46 }
 0x1d3   :  { %2155 = vmatprep.mubr.bf16.mxu0 %v3587_v50 }
 0x1d4   :  { %3124 = vmatpush3.bf16.msra.mxu1 %v3926_v39 }
 0x1d5   :  { %3125 = vmatprep.subr.bf16.mxu1 %v4050_v52 }
 0x1d7   :  { %1463 = vmatmul.mubr.bf16.gmra.mrb[76].mxu1 %v3511_v47 }
 0x1d8   :  { %3126 = vmatpush3.bf16.msra.mxu1 %v3956_v4  ;;  %1470 = vmatprep.mubr.bf16.mxu1 %v3512_v42 }
 0x1d9   :  { %3127 = vmatprep.subr.bf16.mxu1 %v4044_v51 }
 0x1da   :  { %2156 = vmatmul.mubr.bf16.gmra.mrb[140].mxu0 %v3591_v58 }
 0x1db   :  { %2163 = vmatprep.mubr.bf16.mxu0 %v3593_v61 }
 0x1dc   :  { %3128 = vmatpush3.bf16.msra.mxu1 %v3950_v2 }
 0x1dd   :  { %3241 = vmatprep.subr.bf16.mxu1 %v3977_v29  ;;  %v3518_v29 = vld [vmem:[%s4817_s3 + $0x1cc] ss:$16 sps:$4 sm:$0xff]  }
 0x1df   :  { %1471 = vmatmul.mubr.bf16.gmra.mrb[80].mxu1 %v3514_v60 }
 0x1e0   :  { %1478 = vmatprep.mubr.bf16.mxu1 %v3515_v62  ;;  %v3562_v62 = vld [vmem:[%s4817_s3 + $0x2c8] ss:$16 sps:$4 sm:$0xff]  }
 0x1e2   :  { %2164 = vmatmul.mubr.bf16.gmra.mrb[144].mxu0 %v3597_v63 }
 0x1e3   :  { %2171 = vmatprep.mubr.bf16.mxu0 %v3599_v7  ;;  %v3565_v7 = vld [vmem:[%s4817_s3 + $0x2ec] ss:$16 sps:$4 sm:$0xff]  }
 0x1e7   :  { %1479 = vmatmul.mubr.bf16.gmra.mrb[84].mxu1 %v3517_v3 }
 0x1e8   :  { %1486 = vmatprep.mubr.bf16.mxu1 %v3518_v29 }
 0x1ea   :  { %2172 = vmatmul.mubr.bf16.gmra.mrb[148].mxu0 %v3603_v8 }
 0x1eb   :  { %2179 = vmatprep.mubr.bf16.mxu0 %v3605_v55 }
 0x1ef   :  { %1487 = vmatmul.mubr.bf16.gmra.mrb[88].mxu1 %v3520_v56 }
 0x1f0   :  { %1494 = vmatprep.mubr.bf16.mxu1 %v3521_v48 }
 0x1f2   :  { %2180 = vmatmul.mubr.bf16.gmra.mrb[152].mxu0 %v3609_v1 }
 0x1f3   :  { %2187 = vmatprep.mubr.bf16.mxu0 %v3611_v5 }
 0x1f7   :  { %1495 = vmatmul.mubr.bf16.gmra.mrb[92].mxu1 %v3523_v6 }
 0x1f8   :  { %1841 = vmatprep.mubr.bf16.mxu1 %v3526_v0 }
 0x1fa   :  { %2188 = vmatmul.mubr.bf16.gmra.mrb[156].mxu0 %v3615_v17  ;;  %v3568_v17 = vld [vmem:[%s4817_s3 + $0x2e8] ss:$16 sps:$4 sm:$0xff]  }
 0x1ff   :  { %1842 = vmatmul.mubr.bf16.vlgmr.msra.gmra.mrb[96].mxu1 %v3524_v20 }
 0x200   :  { %3242 = vmatpush3.bf16.msra.mxu1 %v3884_v57  ;;  %1849 = vmatprep.mubr.bf16.mxu1 %v3529_v19  ;;  %v3538_v57 = vld [vmem:[%s4817_s3 + $0x248] ss:$16 sps:$4 sm:$0xff]  }
 0x201   :  { %3243 = vmatprep.subr.bf16.mxu1 %v3971_v27 }
 0x204   :  { %3244 = vmatpush3.bf16.msra.mxu1 %v3877_v53  ;;  %v3541_v53 = vld [vmem:[%s4817_s3 + $0x26c] ss:$16 sps:$4 sm:$0xff]  }
 0x205   :  { %3245 = vmatprep.subr.bf16.mxu1 %v4002_v59 }
 0x207   :  { %1850 = vmatmul.mubr.bf16.gmra.mrb[100].mxu1 %v3532_v16  ;;  %v3574_v16 = vld [vmem:[%s4817_s3 + $0x30c] ss:$16 sps:$4 sm:$0xff]  }
 0x208   :  { %3246 = vmatpush3.bf16.msra.mxu1 %v3908_v15  ;;  %1857 = vmatprep.mubr.bf16.mxu1 %v3535_v35 }
 0x209   :  { %3247 = vmatprep.subr.bf16.mxu1 %v3996_v54  ;;  %v3544_v54 = vld [vmem:[%s4817_s3 + $0x268] ss:$16 sps:$4 sm:$0xff]  }
 0x20c   :  { %3248 = vmatpush3.bf16.msra.mxu1 %v3902_v13 }
 0x20d   :  { %3249 = vmatprep.subr.bf16.mxu1 %v4026_v25  ;;  %v3547_v25 = vld [vmem:[%s4817_s3 + $0x28c] ss:$16 sps:$4 sm:$0xff]  }
 0x20f   :  { %1858 = vmatmul.mubr.bf16.gmra.mrb[104].mxu1 %v3538_v57 }
 0x210   :  { %3250 = vmatpush3.bf16.msra.mxu1 %v3932_v41  ;;  %1865 = vmatprep.mubr.bf16.mxu1 %v3541_v53 }
 0x211   :  { %3251 = vmatprep.subr.bf16.mxu1 %v4020_v23 }
 0x212   :  { %v2809_v15 = vpop.f32.mrb[0].mxu1  ;;  %v2937_v27 = vpop.f32.mrb[64].mxu0 }
 0x213   :  { %v2810_v59 = vpop.f32.mrb[1].mxu1  ;;  %v2938_v13 = vpop.f32.mrb[65].mxu0 }
 0x214   :  { %3252 = vmatpush3.bf16.msra.mxu1 %v3926_v39  ;;  %v4334_v34 = vadd.f32 %v2810_v59, %v2809_v15  ;;  %v2812_v41 = vpop.f32.mrb[2].mxu1  ;;  %v4336_v32 = vadd.f32 %v2938_v13, %v2937_v27  ;;  %v2940_v23 = vpop.f32.mrb[66].mxu0 }
 0x215   :  { %3253 = vmatprep.subr.bf16.mxu1 %v4050_v52  ;;  %v2813_v9 = vpop.f32.mrb[3].mxu1  ;;  %v2941_v33 = vpop.f32.mrb[67].mxu0 }
 0x216   :  { %v4339_v10 = vadd.f32 %v2813_v9, %v2812_v41  ;;  %v4341_v11 = vadd.f32 %v2941_v33, %v2940_v23  ;;  %v3572_v23 = vld [vmem:[%s4817_s3 + $0x308] ss:$16 sps:$4 sm:$0xff]  }
 0x217   :  { %1866 = vmatmul.mubr.bf16.gmra.mrb[108].mxu1 %v3544_v54 }
 0x218   :  { %3254 = vmatpush3.bf16.msra.mxu1 %v3956_v4  ;;  %1873 = vmatprep.mubr.bf16.mxu1 %v3547_v25 }
 0x219   :  { %3255 = vmatprep.subr.bf16.mxu1 %v4044_v51 }
 0x21a   :  { %v2815_v39 = vpop.f32.mrb[4].mxu1  ;;  %v2943_v12 = vpop.f32.mrb[68].mxu0 }
 0x21b   :  { %v2816_v18 = vpop.f32.mrb[5].mxu1  ;;  %v2944_v52 = vpop.f32.mrb[69].mxu0 }
 0x21c   :  { %3256 = vmatpush3.bf16.msra.mxu1 %v3950_v2  ;;  %v4352_v22 = vadd.f32 %v2816_v18, %v2815_v39  ;;  %v2818_v4 = vpop.f32.mrb[6].mxu1  ;;  %v4354_v24 = vadd.f32 %v2944_v52, %v2943_v12  ;;  %v2946_v51 = vpop.f32.mrb[70].mxu0  ;;  %v3577_v39 = vld [vmem:[%s4817_s3 + $0x32c] ss:$16 sps:$4 sm:$0xff]  }
 0x21d   :  { %v2819_v26 = vpop.f32.mrb[7].mxu1  ;;  %v2947_v28 = vpop.f32.mrb[71].mxu0 }
 0x21e   :  { %v4356_v30 = vadd.f32 %v2819_v26, %v2818_v4  ;;  %v4358_v31 = vadd.f32 %v2947_v28, %v2946_v51 }
 0x21f   :  { %1874 = vmatmul.mubr.bf16.gmra.mrb[112].mxu1 %v3550_v14 }
 0x220   :  { %1881 = vmatprep.mubr.bf16.mxu1 %v3553_v21 }
 0x222   :  { %v2821_v36 = vpop.f32.mrb[8].mxu1  ;;  %v2949_v2 = vpop.f32.mrb[72].mxu0 }
 0x223   :  { %v2822_v38 = vpop.f32.mrb[9].mxu1  ;;  %v2950_v40 = vpop.f32.mrb[73].mxu0 }
 0x224   :  { %v4366_v44 = vadd.f32 %v2822_v38, %v2821_v36  ;;  %v2824_v49 = vpop.f32.mrb[10].mxu1  ;;  %v4368_v45 = vadd.f32 %v2950_v40, %v2949_v2  ;;  %v2952_v46 = vpop.f32.mrb[74].mxu0  ;;  %v3580_v2 = vld [vmem:[%s4817_s3 + $0x328] ss:$16 sps:$4 sm:$0xff]  }
 0x225   :  { %v2825_v47 = vpop.f32.mrb[11].mxu1  ;;  %v2953_v50 = vpop.f32.mrb[75].mxu0 }
 0x226   :  { %v4370_v42 = vadd.f32 %v2825_v47, %v2824_v49  ;;  %v4372_v58 = vadd.f32 %v2953_v50, %v2952_v46  ;;  %v3583_v49 = vld [vmem:[%s4817_s3 + $0x34c] ss:$16 sps:$4 sm:$0xff]  }
 0x227   :  { %1882 = vmatmul.mubr.bf16.gmra.mrb[116].mxu1 %v3556_v37 }
 0x228   :  { %1889 = vmatprep.mubr.bf16.mxu1 %v3559_v43 }
 0x22a   :  { %v2827_v60 = vpop.f32.mrb[12].mxu1  ;;  %v2955_v61 = vpop.f32.mrb[76].mxu0 }
 0x22b   :  { %v2828_v63 = vpop.f32.mrb[13].mxu1  ;;  %v2956_v3 = vpop.f32.mrb[77].mxu0 }
 0x22c   :  { %v4380_v29 = vadd.f32 %v2828_v63, %v2827_v60  ;;  %v2830_v8 = vpop.f32.mrb[14].mxu1  ;;  %v4382_v56 = vadd.f32 %v2956_v3, %v2955_v61  ;;  %v2958_v55 = vpop.f32.mrb[78].mxu0 }
 0x22d   :  { %v2831_v48 = vpop.f32.mrb[15].mxu1  ;;  %v2959_v1 = vpop.f32.mrb[79].mxu0 }
 0x22e   :  { %v4384_v6 = vadd.f32 %v2831_v48, %v2830_v8  ;;  %v4386_v5 = vadd.f32 %v2959_v1, %v2958_v55  ;;  %v3586_v8 = vld [vmem:[%s4817_s3 + $0x348] ss:$16 sps:$4 sm:$0xff]  }
 0x22f   :  { %1890 = vmatmul.mubr.bf16.gmra.mrb[120].mxu1 %v3562_v62 }
 0x230   :  { %1897 = vmatprep.mubr.bf16.mxu1 %v3565_v7 }
 0x232   :  { %v2833_v0 = vpop.f32.mrb[16].mxu1 }
 0x233   :  { %v2834_v20 = vpop.f32.mrb[17].mxu1  ;;  %v2961_v19 = vpop.f32.mrb[80].mxu0 }
 0x234   :  { %v4394_v35 = vadd.f32 %v2834_v20, %v2833_v0  ;;  %v2836_v57 = vpop.f32.mrb[18].mxu1  ;;  %v2962_v53 = vpop.f32.mrb[81].mxu0  ;;  %v3589_v0 = vld [vmem:[%s4817_s3 + $0x36c] ss:$16 sps:$4 sm:$0xff]  }
 0x235   :  { %v2837_v15 = vpop.f32.mrb[19].mxu1  ;;  %v4396_v27 = vadd.f32 %v2962_v53, %v2961_v19  ;;  %v2964_v54 = vpop.f32.mrb[82].mxu0 }
 0x236   :  { %v4398_v59 = vadd.f32 %v2837_v15, %v2836_v57  ;;  %v2965_v13 = vpop.f32.mrb[83].mxu0 }
 0x237   :  { %1898 = vmatmul.mubr.bf16.gmra.mrb[124].mxu1 %v3568_v17  ;;  %v4400_v25 = vadd.f32 %v2965_v13, %v2964_v54 }
 0x238   :  { %2228 = vmatprep.mubr.bf16.mxu1 %v3574_v16 }
 0x23a   :  { %v2839_v41 = vpop.f32.mrb[20].mxu1 }
 0x23b   :  { %v2840_v9 = vpop.f32.mrb[21].mxu1  ;;  %v2967_v33 = vpop.f32.mrb[84].mxu0 }
 0x23c   :  { %v4408_v12 = vadd.f32 %v2840_v9, %v2839_v41  ;;  %v2842_v14 = vpop.f32.mrb[22].mxu1  ;;  %v2968_v18 = vpop.f32.mrb[85].mxu0  ;;  %v3592_v41 = vld [vmem:[%s4817_s3 + $0x368] ss:$16 sps:$4 sm:$0xff]  }
 0x23d   :  { %v2843_v52 = vpop.f32.mrb[23].mxu1  ;;  %v4410_v21 = vadd.f32 %v2968_v18, %v2967_v33  ;;  %v2970_v4 = vpop.f32.mrb[86].mxu0 }
 0x23e   :  { %v4412_v51 = vadd.f32 %v2843_v52, %v2842_v14  ;;  %v2971_v26 = vpop.f32.mrb[87].mxu0 }
 0x23f   :  { %2229 = vmatmul.mubr.bf16.vlgmr.msra.gmra.mrb[128].mxu1 %v3572_v23  ;;  %v4414_v28 = vadd.f32 %v2971_v26, %v2970_v4 }
 0x240   :  { %2236 = vmatprep.mubr.bf16.mxu1 %v3577_v39  ;;  %v3595_v39 = vld [vmem:[%s4817_s3 + $0x38c] ss:$16 sps:$4 sm:$0xff]  }
 0x242   :  { %v2845_v36 = vpop.f32.mrb[24].mxu1 }
 0x243   :  { %v2846_v37 = vpop.f32.mrb[25].mxu1  ;;  %v2973_v38 = vpop.f32.mrb[88].mxu0 }
 0x244   :  { %v4419_v40 = vadd.f32 %v2846_v37, %v2845_v36  ;;  %v2848_v43 = vpop.f32.mrb[26].mxu1  ;;  %v2974_v46 = vpop.f32.mrb[89].mxu0 }
 0x245   :  { %v2849_v47 = vpop.f32.mrb[27].mxu1  ;;  %v4424_v50 = vadd.f32 %v2974_v46, %v2973_v38  ;;  %v2976_v60 = vpop.f32.mrb[90].mxu0  ;;  %v3598_v46 = vld [vmem:[%s4817_s3 + $0x388] ss:$16 sps:$4 sm:$0xff]  }
 0x246   :  { %v4426_v61 = vadd.f32 %v2849_v47, %v2848_v43  ;;  %v2977_v62 = vpop.f32.mrb[91].mxu0 }
 0x247   :  { %2237 = vmatmul.mubr.bf16.gmra.mrb[132].mxu1 %v3580_v2  ;;  %v4428_v63 = vadd.f32 %v2977_v62, %v2976_v60 }
 0x248   :  { %2244 = vmatprep.mubr.bf16.mxu1 %v3583_v49 }
 0x24a   :  { %v2851_v3 = vpop.f32.mrb[28].mxu1 }
 0x24b   :  { %v2852_v7 = vpop.f32.mrb[29].mxu1  ;;  %v2979_v55 = vpop.f32.mrb[92].mxu0 }
 0x24c   :  { %v4433_v48 = vadd.f32 %v2852_v7, %v2851_v3  ;;  %v2854_v1 = vpop.f32.mrb[30].mxu1  ;;  %v2980_v17 = vpop.f32.mrb[93].mxu0 }
 0x24d   :  { %v2855_v20 = vpop.f32.mrb[31].mxu1  ;;  %v4438_v19 = vadd.f32 %v2980_v17, %v2979_v55  ;;  %v2982_v16 = vpop.f32.mrb[94].mxu0 }
 0x24e   :  { %v4440_v57 = vadd.f32 %v2855_v20, %v2854_v1  ;;  %v2983_v53 = vpop.f32.mrb[95].mxu0 }
 0x24f   :  { %2245 = vmatmul.mubr.bf16.gmra.mrb[136].mxu1 %v3586_v8  ;;  %v4442_v15 = vadd.f32 %v2983_v53, %v2982_v16 }
 0x250   :  { %2252 = vmatprep.mubr.bf16.mxu1 %v3589_v0 }
 0x252   :  { %v2873_v54 = vpop.f32.mrb[32].mxu1 }
 0x253   :  { %v2874_v13 = vpop.f32.mrb[33].mxu1  ;;  %v3065_v23 = vpop.f32.mrb[96].mxu0 }
 0x254   :  { %v2875_v9 = vadd.f32 %v2874_v13, %v2873_v54  ;;  %v2876_v33 = vpop.f32.mrb[34].mxu1  ;;  %v3066_v14 = vpop.f32.mrb[97].mxu0 }
 0x255   :  { %v2877_v18 = vpop.f32.mrb[35].mxu1  ;;  %v4450_v52 = vadd.f32 %v3066_v14, %v3065_v23  ;;  %v3068_v4 = vpop.f32.mrb[98].mxu0 }
 0x256   :  { %v4453_v26 = vadd.f32 %v2875_v9, %v4334_v34  ;;  %v2878_v36 = vadd.f32 %v2877_v18, %v2876_v33  ;;  %v3069_v2 = vpop.f32.mrb[99].mxu0  ;;  %v3601_v34 = vld [vmem:[%s4817_s3 + $0x3ac] ss:$16 sps:$4 sm:$0xff]  }
 0x257   :  { %2253 = vmatmul.mubr.bf16.gmra.mrb[140].mxu1 %v3592_v41  ;;  %v4455_v37 = vadd.f32 %v3069_v2, %v3068_v4  ;;  %v3607_v41 = vld [vmem:[%s4817_s3 + $0x3cc] ss:$16 sps:$4 sm:$0xff]  }
 0x258   :  { %v4458_v38 = vadd.f32 %v2878_v36, %v4339_v10  ;;  %2260 = vmatprep.mubr.bf16.mxu1 %v3595_v39 }
 0x25a   :  { %v2879_v43 = vpop.f32.mrb[36].mxu1 }
 0x25b   :  { %v2880_v49 = vpop.f32.mrb[37].mxu1 }
 0x25c   :  { %v2881_v47 = vadd.f32 %v2880_v49, %v2879_v43  ;;  %v2882_v60 = vpop.f32.mrb[38].mxu1 }
 0x25d   :  { %v2883_v62 = vpop.f32.mrb[39].mxu1  ;;  %v3071_v3 = vpop.f32.mrb[100].mxu0 }
 0x25e   :  { %v4467_v7 = vadd.f32 %v2881_v47, %v4352_v22  ;;  %v2884_v10 = vadd.f32 %v2883_v62, %v2882_v60  ;;  %v3072_v8 = vpop.f32.mrb[101].mxu0  ;;  %v3604_v22 = vld [vmem:[%s4817_s3 + $0x3a8] ss:$16 sps:$4 sm:$0xff]   ;;  %v3613_v60 = vld [vmem:[%s4817_s3 + $0x3ec] ss:$16 sps:$4 sm:$0xff]  }
 0x25f   :  { %2261 = vmatmul.mubr.bf16.gmra.mrb[144].mxu1 %v3598_v46  ;;  %v4469_v55 = vadd.f32 %v3072_v8, %v3071_v3  ;;  %v3074_v1 = vpop.f32.mrb[102].mxu0 }
 0x260   :  { %v4472_v0 = vadd.f32 %v2884_v10, %v4356_v30  ;;  %2268 = vmatprep.mubr.bf16.mxu1 %v3601_v34  ;;  %v3075_v17 = vpop.f32.mrb[103].mxu0 }
 0x261   :  { %v4474_v20 = vadd.f32 %v3075_v17, %v3074_v1 }
 0x262   :  { %v2885_v16 = vpop.f32.mrb[40].mxu1 }
 0x263   :  { %v2886_v53 = vpop.f32.mrb[41].mxu1 }
 0x264   :  { %v2887_v54 = vadd.f32 %v2886_v53, %v2885_v16  ;;  %v2888_v13 = vpop.f32.mrb[42].mxu1 }
 0x265   :  { %v2889_v23 = vpop.f32.mrb[43].mxu1  ;;  %v3077_v9 = vpop.f32.mrb[104].mxu0 }
 0x266   :  { %v4483_v30 = vadd.f32 %v2887_v54, %v4366_v44  ;;  %v2890_v33 = vadd.f32 %v2889_v23, %v2888_v13  ;;  %v3078_v39 = vpop.f32.mrb[105].mxu0  ;;  %v3610_v44 = vld [vmem:[%s4817_s3 + $0x3c8] ss:$16 sps:$4 sm:$0xff]  }
 0x267   :  { %2269 = vmatmul.mubr.bf16.gmra.mrb[148].mxu1 %v3604_v22  ;;  %v4485_v14 = vadd.f32 %v3078_v39, %v3077_v9  ;;  %v3080_v18 = vpop.f32.mrb[106].mxu0 }
 0x268   :  { %v4488_v4 = vadd.f32 %v2890_v33, %v4370_v42  ;;  %2276 = vmatprep.mubr.bf16.mxu1 %v3607_v41  ;;  %v3081_v36 = vpop.f32.mrb[107].mxu0 }
 0x269   :  { %v4490_v2 = vadd.f32 %v3081_v36, %v3080_v18 }
 0x26a   :  { %v2891_v43 = vpop.f32.mrb[44].mxu1 }
 0x26b   :  { %v2892_v49 = vpop.f32.mrb[45].mxu1 }
 0x26c   :  { %v2893_v46 = vadd.f32 %v2892_v49, %v2891_v43  ;;  %v2894_v47 = vpop.f32.mrb[46].mxu1 }
 0x26d   :  { %v2895_v34 = vpop.f32.mrb[47].mxu1  ;;  %v3083_v62 = vpop.f32.mrb[108].mxu0 }
 0x26e   :  { %v4499_v42 = vadd.f32 %v2893_v46, %v4380_v29  ;;  %v2896_v3 = vadd.f32 %v2895_v34, %v2894_v47  ;;  %v3084_v10 = vpop.f32.mrb[109].mxu0  ;;  %v3616_v29 = vld [vmem:[%s4817_s3 + $0x3e8] ss:$16 sps:$4 sm:$0xff]  }
 0x26f   :  { %2277 = vmatmul.mubr.bf16.gmra.mrb[152].mxu1 %v3610_v44  ;;  %v4501_v8 = vadd.f32 %v3084_v10, %v3083_v62  ;;  %v3086_v1 = vpop.f32.mrb[110].mxu0 }
 0x270   :  { %v4504_v17 = vadd.f32 %v2896_v3, %v4384_v6  ;;  %2284 = vmatprep.mubr.bf16.mxu1 %v3613_v60  ;;  %v3087_v16 = vpop.f32.mrb[111].mxu0 }
 0x271   :  { %v4506_v53 = vadd.f32 %v3087_v16, %v3086_v1 }
 0x272   :  { %v2897_v22 = vpop.f32.mrb[48].mxu1 }
 0x273   :  { %v2898_v54 = vpop.f32.mrb[49].mxu1 }
 0x274   :  { %v2899_v13 = vadd.f32 %v2898_v54, %v2897_v22  ;;  %v2900_v41 = vpop.f32.mrb[50].mxu1 }
 0x275   :  { %v2901_v23 = vpop.f32.mrb[51].mxu1  ;;  %v3089_v9 = vpop.f32.mrb[112].mxu0 }
 0x276   :  { %v4512_v33 = vadd.f32 %v2899_v13, %v4394_v35  ;;  %v2902_v39 = vadd.f32 %v2901_v23, %v2900_v41  ;;  %v3090_v6 = vpop.f32.mrb[113].mxu0 }
 0x277   :  { %2285 = vmatmul.mubr.bf16.gmra.mrb[156].mxu1 %v3616_v29  ;;  %v4514_v18 = vadd.f32 %v3090_v6, %v3089_v9  ;;  %v3092_v36 = vpop.f32.mrb[114].mxu0 }
 0x278   :  { %v4517_v43 = vadd.f32 %v2902_v39, %v4398_v59  ;;  %v3093_v49 = vpop.f32.mrb[115].mxu0 }
 0x279   :  { %v4519_v44 = vadd.f32 %v3093_v49, %v3092_v36 }
 0x27a   :  { %v2903_v46 = vpop.f32.mrb[52].mxu1 }
 0x27b   :  { %v2904_v47 = vpop.f32.mrb[53].mxu1 }
 0x27c   :  { %v2905_v60 = vadd.f32 %v2904_v47, %v2903_v46  ;;  %v2906_v34 = vpop.f32.mrb[54].mxu1 }
 0x27d   :  { %v2907_v62 = vpop.f32.mrb[55].mxu1  ;;  %v3095_v3 = vpop.f32.mrb[116].mxu0 }
 0x27e   :  { %v4522_v35 = vadd.f32 %v2905_v60, %v4408_v12  ;;  %v2908_v10 = vadd.f32 %v2907_v62, %v2906_v34  ;;  %v3096_v1 = vpop.f32.mrb[117].mxu0 }
 0x27f   :  { %v4524_v16 = vadd.f32 %v3096_v1, %v3095_v3  ;;  %v3098_v22 = vpop.f32.mrb[118].mxu0 }
 0x280   :  { %v4527_v59 = vadd.f32 %v2908_v10, %v4412_v51  ;;  %v3099_v54 = vpop.f32.mrb[119].mxu0 }
 0x281   :  { %v4529_v29 = vadd.f32 %v3099_v54, %v3098_v22 }
 0x282   :  { %v2909_v13 = vpop.f32.mrb[56].mxu1 }
 0x283   :  { %v2910_v41 = vpop.f32.mrb[57].mxu1 }
 0x284   :  { %v2911_v23 = vadd.f32 %v2910_v41, %v2909_v13  ;;  %v2912_v9 = vpop.f32.mrb[58].mxu1 }
 0x285   :  { %v2913_v39 = vpop.f32.mrb[59].mxu1  ;;  %v3101_v6 = vpop.f32.mrb[120].mxu0 }
 0x286   :  { %v4532_v12 = vadd.f32 %v2911_v23, %v4419_v40  ;;  %v2914_v36 = vadd.f32 %v2913_v39, %v2912_v9  ;;  %v3102_v49 = vpop.f32.mrb[121].mxu0 }
 0x287   :  { %v4534_v46 = vadd.f32 %v3102_v49, %v3101_v6  ;;  %v3104_v47 = vpop.f32.mrb[122].mxu0 }
 0x288   :  { %v4537_v51 = vadd.f32 %v2914_v36, %v4426_v61  ;;  %v3105_v60 = vpop.f32.mrb[123].mxu0 }
 0x289   :  { %v4539_v34 = vadd.f32 %v3105_v60, %v3104_v47 }
 0x28a   :  { %v2915_v62 = vpop.f32.mrb[60].mxu1 }
 0x28b   :  { %v2916_v3 = vpop.f32.mrb[61].mxu1 }
 0x28c   :  { %v2917_v10 = vadd.f32 %v2916_v3, %v2915_v62  ;;  %v2918_v1 = vpop.f32.mrb[62].mxu1 }
 0x28d   :  { %v2919_v22 = vpop.f32.mrb[63].mxu1  ;;  %v3107_v54 = vpop.f32.mrb[124].mxu0 }
 0x28e   :  { %v4542_v40 = vadd.f32 %v2917_v10, %v4433_v48  ;;  %v2920_v13 = vadd.f32 %v2919_v22, %v2918_v1  ;;  %v3108_v41 = vpop.f32.mrb[125].mxu0 }
 0x28f   :  { %v4544_v23 = vadd.f32 %v3108_v41, %v3107_v54  ;;  %v3110_v9 = vpop.f32.mrb[126].mxu0 }
 0x290   :  { %4831 = vst [vmem:[#allocation2_spill] sm:$0xff] %v4542_v40  ;;  %v4547_v61 = vadd.f32 %v2920_v13, %v4440_v57  ;;  %v3111_v39 = vpop.f32.mrb[127].mxu0 }
 0x291   :  { %v4549_v6 = vadd.f32 %v3111_v39, %v3110_v9 }
 0x292   :  { %4832 = vst [vmem:[#allocation3_spill] sm:$0xff] %v4547_v61  ;;  %v3001_v36 = vpop.f32.mrb[64].mxu1 }
 0x293   :  { %v3002_v49 = vpop.f32.mrb[65].mxu1 }
 0x294   :  { %v3003_v47 = vadd.f32 %v3002_v49, %v3001_v36  ;;  %v3004_v60 = vpop.f32.mrb[66].mxu1 }
 0x295   :  { %v3005_v62 = vpop.f32.mrb[67].mxu1  ;;  %v3193_v3 = vpop.f32.mrb[128].mxu0 }
 0x296   :  { %v4552_v48 = vadd.f32 %v3003_v47, %v4336_v32  ;;  %v3006_v10 = vadd.f32 %v3005_v62, %v3004_v60  ;;  %v3194_v1 = vpop.f32.mrb[129].mxu0 }
 0x297   :  { %v4554_v22 = vadd.f32 %v3194_v1, %v3193_v3  ;;  %v3196_v54 = vpop.f32.mrb[130].mxu0 }
 0x298   :  { %4833 = vst [vmem:[#allocation4_spill] sm:$0xff] %v4552_v48  ;;  %v4559_v13 = vadd.f32 %v3006_v10, %v4341_v11  ;;  %v3197_v41 = vpop.f32.mrb[131].mxu0 }
 0x299   :  { %v4561_v9 = vadd.f32 %v3197_v41, %v3196_v54 }
 0x29a   :  { %v3007_v36 = vpop.f32.mrb[68].mxu1 }
 0x29b   :  { %v3008_v32 = vpop.f32.mrb[69].mxu1 }
 0x29c   :  { %v3009_v49 = vadd.f32 %v3008_v32, %v3007_v36  ;;  %v3010_v47 = vpop.f32.mrb[70].mxu1 }
 0x29d   :  { %v3011_v60 = vpop.f32.mrb[71].mxu1  ;;  %v3199_v62 = vpop.f32.mrb[132].mxu0 }
 0x29e   :  { %v4566_v3 = vadd.f32 %v3009_v49, %v4354_v24  ;;  %v3012_v1 = vadd.f32 %v3011_v60, %v3010_v47  ;;  %v3200_v57 = vpop.f32.mrb[133].mxu0 }
 0x29f   :  { %v4568_v48 = vadd.f32 %v3200_v57, %v3199_v62  ;;  %v3202_v11 = vpop.f32.mrb[134].mxu0 }
 0x2a0   :  { %4834 = vst [vmem:[#allocation5_spill] sm:$0xff] %v4566_v3  ;;  %v4573_v54 = vadd.f32 %v3012_v1, %v4358_v31  ;;  %v3203_v41 = vpop.f32.mrb[135].mxu0 }
 0x2a1   :  { %4835 = vst [vmem:[#allocation6_spill] sm:$0xff] %v4568_v48  ;;  %v4575_v39 = vadd.f32 %v3203_v41, %v3202_v11 }
 0x2a2   :  { %v3013_v32 = vpop.f32.mrb[72].mxu1 }
 0x2a3   :  { %v3014_v24 = vpop.f32.mrb[73].mxu1 }
 0x2a4   :  { %v3015_v49 = vadd.f32 %v3014_v24, %v3013_v32  ;;  %v3016_v47 = vpop.f32.mrb[74].mxu1 }
 0x2a5   :  { %v3017_v60 = vpop.f32.mrb[75].mxu1  ;;  %v3205_v57 = vpop.f32.mrb[136].mxu0 }
 0x2a6   :  { %v4580_v62 = vadd.f32 %v3015_v49, %v4368_v45  ;;  %v3018_v48 = vadd.f32 %v3017_v60, %v3016_v47  ;;  %v3206_v10 = vpop.f32.mrb[137].mxu0 }
 0x2a7   :  { %v4582_v3 = vadd.f32 %v3206_v10, %v3205_v57  ;;  %v3208_v31 = vpop.f32.mrb[138].mxu0 }
 0x2a8   :  { %4836 = vst [vmem:[#allocation7_spill] sm:$0xff] %v4580_v62  ;;  %v4587_v11 = vadd.f32 %v3018_v48, %v4372_v58  ;;  %v3209_v41 = vpop.f32.mrb[139].mxu0 }
 0x2a9   :  { %4837 = vst [vmem:[#allocation8_spill] sm:$0xff] %v4582_v3  ;;  %v4589_v36 = vadd.f32 %v3209_v41, %v3208_v31 }
 0x2aa   :  { %v3019_v24 = vpop.f32.mrb[76].mxu1 }
 0x2ab   :  { %v3020_v45 = vpop.f32.mrb[77].mxu1 }
 0x2ac   :  { %v3021_v49 = vadd.f32 %v3020_v45, %v3019_v24  ;;  %v3022_v47 = vpop.f32.mrb[78].mxu1 }
 0x2ad   :  { %v3023_v60 = vpop.f32.mrb[79].mxu1  ;;  %v3211_v10 = vpop.f32.mrb[140].mxu0 }
 0x2ae   :  { %v4594_v57 = vadd.f32 %v3021_v49, %v4382_v56  ;;  %v3024_v3 = vadd.f32 %v3023_v60, %v3022_v47  ;;  %v3212_v1 = vpop.f32.mrb[141].mxu0 }
 0x2af   :  { %v4596_v62 = vadd.f32 %v3212_v1, %v3211_v10  ;;  %v3214_v58 = vpop.f32.mrb[142].mxu0 }
 0x2b0   :  { %4838 = vst [vmem:[#allocation9_spill] sm:$0xff] %v4594_v57  ;;  %v4601_v31 = vadd.f32 %v3024_v3, %v4386_v5  ;;  %v3215_v41 = vpop.f32.mrb[143].mxu0 }
 0x2b1   :  { %4839 = vst [vmem:[#allocation10_spill] sm:$0xff] %v4596_v62  ;;  %v4603_v32 = vadd.f32 %v3215_v41, %v3214_v58 }
 0x2b2   :  { %v3025_v45 = vpop.f32.mrb[80].mxu1 }
 0x2b3   :  { %v3026_v56 = vpop.f32.mrb[81].mxu1 }
 0x2b4   :  { %v3027_v49 = vadd.f32 %v3026_v56, %v3025_v45  ;;  %v3028_v47 = vpop.f32.mrb[82].mxu1 }
 0x2b5   :  { %v3029_v60 = vpop.f32.mrb[83].mxu1  ;;  %v3217_v1 = vpop.f32.mrb[144].mxu0 }
 0x2b6   :  { %v4608_v10 = vadd.f32 %v3027_v49, %v4396_v27  ;;  %v3030_v62 = vadd.f32 %v3029_v60, %v3028_v47  ;;  %v3218_v48 = vpop.f32.mrb[145].mxu0 }
 0x2b7   :  { %v4610_v57 = vadd.f32 %v3218_v48, %v3217_v1  ;;  %v3220_v5 = vpop.f32.mrb[146].mxu0 }
 0x2b8   :  { %4840 = vst [vmem:[#allocation11_spill] sm:$0xff] %v4608_v10  ;;  %v4615_v58 = vadd.f32 %v3030_v62, %v4400_v25  ;;  %v3221_v41 = vpop.f32.mrb[147].mxu0 }
 0x2b9   :  { %4841 = vst [vmem:[#allocation12_spill] sm:$0xff] %v4610_v57  ;;  %v4617_v24 = vadd.f32 %v3221_v41, %v3220_v5 }
 0x2ba   :  { %v3031_v56 = vpop.f32.mrb[84].mxu1 }
 0x2bb   :  { %v3032_v27 = vpop.f32.mrb[85].mxu1 }
 0x2bc   :  { %v3033_v49 = vadd.f32 %v3032_v27, %v3031_v56  ;;  %v3034_v47 = vpop.f32.mrb[86].mxu1 }
 0x2bd   :  { %v3035_v60 = vpop.f32.mrb[87].mxu1  ;;  %v3223_v48 = vpop.f32.mrb[148].mxu0 }
 0x2be   :  { %v4622_v1 = vadd.f32 %v3033_v49, %v4410_v21  ;;  %v3036_v57 = vadd.f32 %v3035_v60, %v3034_v47  ;;  %v3224_v3 = vpop.f32.mrb[149].mxu0 }
 0x2bf   :  { %v4624_v10 = vadd.f32 %v3224_v3, %v3223_v48  ;;  %v3226_v25 = vpop.f32.mrb[150].mxu0 }
 0x2c0   :  { %4842 = vst [vmem:[#allocation13_spill] sm:$0xff] %v4622_v1  ;;  %v4629_v5 = vadd.f32 %v3036_v57, %v4414_v28  ;;  %v3227_v41 = vpop.f32.mrb[151].mxu0 }
 0x2c1   :  { %4843 = vst [vmem:[#allocation14_spill] sm:$0xff] %v4624_v10  ;;  %v4631_v45 = vadd.f32 %v3227_v41, %v3226_v25 }
 0x2c2   :  { %v3037_v27 = vpop.f32.mrb[88].mxu1 }
 0x2c3   :  { %v3038_v21 = vpop.f32.mrb[89].mxu1 }
 0x2c4   :  { %v3039_v49 = vadd.f32 %v3038_v21, %v3037_v27  ;;  %v3040_v47 = vpop.f32.mrb[90].mxu1 }
 0x2c5   :  { %v3041_v60 = vpop.f32.mrb[91].mxu1  ;;  %v3229_v3 = vpop.f32.mrb[152].mxu0 }
 0x2c6   :  { %v4636_v48 = vadd.f32 %v3039_v49, %v4424_v50  ;;  %v3042_v10 = vadd.f32 %v3041_v60, %v3040_v47  ;;  %v3230_v62 = vpop.f32.mrb[153].mxu0 }
 0x2c7   :  { %v4638_v1 = vadd.f32 %v3230_v62, %v3229_v3  ;;  %v3232_v28 = vpop.f32.mrb[154].mxu0 }
 0x2c8   :  { %4844 = vst [vmem:[#allocation15_spill] sm:$0xff] %v4636_v48  ;;  %v4643_v25 = vadd.f32 %v3042_v10, %v4428_v63  ;;  %v3233_v41 = vpop.f32.mrb[155].mxu0 }
 0x2c9   :  { %4845 = vst [vmem:[#allocation16_spill] sm:$0xff] %v4638_v1  ;;  %v4645_v56 = vadd.f32 %v3233_v41, %v3232_v28 }
 0x2ca   :  { %v3043_v21 = vpop.f32.mrb[92].mxu1 }
 0x2cb   :  { %v3044_v50 = vpop.f32.mrb[93].mxu1 }
 0x2cc   :  { %v3045_v49 = vadd.f32 %v3044_v50, %v3043_v21  ;;  %v3046_v47 = vpop.f32.mrb[94].mxu1 }
 0x2cd   :  { %v3047_v60 = vpop.f32.mrb[95].mxu1  ;;  %v3235_v62 = vpop.f32.mrb[156].mxu0 }
 0x2ce   :  { %v4650_v3 = vadd.f32 %v3045_v49, %v4438_v19  ;;  %v3048_v1 = vadd.f32 %v3047_v60, %v3046_v47  ;;  %v3236_v57 = vpop.f32.mrb[157].mxu0 }
 0x2cf   :  { %v4652_v48 = vadd.f32 %v3236_v57, %v3235_v62  ;;  %v3238_v63 = vpop.f32.mrb[158].mxu0 }
 0x2d0   :  { %4846 = vst [vmem:[#allocation17_spill] sm:$0xff] %v4650_v3  ;;  %v4657_v28 = vadd.f32 %v3048_v1, %v4442_v15  ;;  %v3239_v41 = vpop.f32.mrb[159].mxu0 }
 0x2d1   :  { %v4659_v27 = vadd.f32 %v3239_v41, %v3238_v63 }
 0x2d2   :  { %4847 = vst [vmem:[#allocation18_spill] sm:$0xff] %v4657_v28  ;;  %v3129_v50 = vpop.f32.mrb[96].mxu1 }
 0x2d3   :  { %v3130_v19 = vpop.f32.mrb[97].mxu1 }
 0x2d4   :  { %v3131_v49 = vadd.f32 %v3130_v19, %v3129_v50  ;;  %v3132_v47 = vpop.f32.mrb[98].mxu1 }
 0x2d5   :  { %v3133_v60 = vpop.f32.mrb[99].mxu1 }
 0x2d6   :  { %v4664_v57 = vadd.f32 %v3131_v49, %v4450_v52  ;;  %v3134_v62 = vadd.f32 %v3133_v60, %v3132_v47 }
 0x2d8   :  { %v4667_v10 = vadd.f32 %v3134_v62, %v4455_v37 }
 0x2da   :  { %v3135_v15 = vpop.f32.mrb[100].mxu1 }
 0x2db   :  { %v3136_v1 = vpop.f32.mrb[101].mxu1 }
 0x2dc   :  { %v3137_v3 = vadd.f32 %v3136_v1, %v3135_v15  ;;  %v3138_v63 = vpop.f32.mrb[102].mxu1 }
 0x2dd   :  { %v3139_v41 = vpop.f32.mrb[103].mxu1 }
 0x2de   :  { %v4670_v40 = vadd.f32 %v3137_v3, %v4469_v55  ;;  %v3140_v21 = vadd.f32 %v3139_v41, %v3138_v63 }
 0x2e0   :  { %v4673_v50 = vadd.f32 %v3140_v21, %v4474_v20 }
 0x2e2   :  { %v3141_v19 = vpop.f32.mrb[104].mxu1 }
 0x2e3   :  { %v3142_v28 = vpop.f32.mrb[105].mxu1 }
 0x2e4   :  { %v3143_v52 = vadd.f32 %v3142_v28, %v3141_v19  ;;  %v3144_v49 = vpop.f32.mrb[106].mxu1 }
 0x2e5   :  { %v3145_v47 = vpop.f32.mrb[107].mxu1 }
 0x2e6   :  { %v4676_v37 = vadd.f32 %v3143_v52, %v4485_v14  ;;  %v3146_v60 = vadd.f32 %v3145_v47, %v3144_v49 }
 0x2e8   :  { %v4679_v62 = vadd.f32 %v3146_v60, %v4490_v2 }
 0x2ea   :  { %v3147_v15 = vpop.f32.mrb[108].mxu1 }
 0x2eb   :  { %v3148_v1 = vpop.f32.mrb[109].mxu1 }
 0x2ec   :  { %v3149_v55 = vadd.f32 %v3148_v1, %v3147_v15  ;;  %v3150_v3 = vpop.f32.mrb[110].mxu1 }
 0x2ed   :  { %v3151_v63 = vpop.f32.mrb[111].mxu1 }
 0x2ee   :  { %v4682_v20 = vadd.f32 %v3149_v55, %v4501_v8  ;;  %v3152_v21 = vadd.f32 %v3151_v63, %v3150_v3 }
 0x2f0   :  { %v4685_v28 = vadd.f32 %v3152_v21, %v4506_v53 }
 0x2f2   :  { %v3153_v41 = vpop.f32.mrb[112].mxu1 }
 0x2f3   :  { %v3154_v19 = vpop.f32.mrb[113].mxu1 }
 0x2f4   :  { %v3155_v14 = vadd.f32 %v3154_v19, %v3153_v41  ;;  %v3156_v52 = vpop.f32.mrb[114].mxu1 }
 0x2f5   :  { %v3157_v49 = vpop.f32.mrb[115].mxu1 }
 0x2f6   :  { %v4688_v2 = vadd.f32 %v3155_v14, %v4514_v18  ;;  %v3158_v47 = vadd.f32 %v3157_v49, %v3156_v52 }
 0x2f8   :  { %v4691_v60 = vadd.f32 %v3158_v47, %v4519_v44 }
 0x2fa   :  { %v3159_v15 = vpop.f32.mrb[116].mxu1 }
 0x2fb   :  { %v3160_v1 = vpop.f32.mrb[117].mxu1 }
 0x2fc   :  { %v3161_v8 = vadd.f32 %v3160_v1, %v3159_v15  ;;  %v3162_v55 = vpop.f32.mrb[118].mxu1 }
 0x2fd   :  { %v3163_v3 = vpop.f32.mrb[119].mxu1 }
 0x2fe   :  { %v4694_v53 = vadd.f32 %v3161_v8, %v4524_v16  ;;  %v3164_v63 = vadd.f32 %v3163_v3, %v3162_v55 }
 0x300   :  { %v4697_v21 = vadd.f32 %v3164_v63, %v4529_v29 }
 0x302   :  { %v3165_v41 = vpop.f32.mrb[120].mxu1 }
 0x303   :  { %v3166_v19 = vpop.f32.mrb[121].mxu1 }
 0x304   :  { %v3167_v18 = vadd.f32 %v3166_v19, %v3165_v41  ;;  %v3168_v14 = vpop.f32.mrb[122].mxu1 }
 0x305   :  { %v3169_v52 = vpop.f32.mrb[123].mxu1 }
 0x306   :  { %v4700_v44 = vadd.f32 %v3167_v18, %v4534_v46  ;;  %v3170_v49 = vadd.f32 %v3169_v52, %v3168_v14 }
 0x308   :  { %v4703_v47 = vadd.f32 %v3170_v49, %v4539_v34 }
 0x30a   :  { %v3171_v15 = vpop.f32.mrb[124].mxu1 }
 0x30b   :  { %v3172_v1 = vpop.f32.mrb[125].mxu1 }
 0x30c   :  { %v3173_v16 = vadd.f32 %v3172_v1, %v3171_v15  ;;  %v3174_v8 = vpop.f32.mrb[126].mxu1  ;;  %v4848_v1 = vld [vmem:[#allocation4_spill] sm:$0xff] }
 0x30d   :  { %v3175_v55 = vpop.f32.mrb[127].mxu1 }
 0x30e   :  { %v4706_v29 = vadd.f32 %v3173_v16, %v4544_v23  ;;  %v3176_v3 = vadd.f32 %v3175_v55, %v3174_v8  ;;  %v4849_v23 = vmax.f32 %v4453_v26, %v4848_v1 }
 0x310   :  { %v4709_v63 = vadd.f32 %v3176_v3, %v4549_v6  ;;  %v4850_v3 = vmax.f32 %v4458_v38, %v4559_v13 }
 0x312   :  { %v3257_v41 = vpop.f32.mrb[128].mxu1 }
 0x313   :  { %v3258_v19 = vpop.f32.mrb[129].mxu1 }
 0x314   :  { %v3259_v46 = vadd.f32 %v3258_v19, %v3257_v41  ;;  %v3260_v18 = vpop.f32.mrb[130].mxu1 }
 0x315   :  { %v3261_v14 = vpop.f32.mrb[131].mxu1 }
 0x316   :  { %v2231_v34 = vadd.f32 %v3259_v46, %v4554_v22  ;;  %v3262_v52 = vadd.f32 %v3261_v14, %v3260_v18  ;;  %v4851_v18 = vld [vmem:[#allocation6_spill] sm:$0xff] }
 0x318   :  { %v2293_v49 = vmax.f32 %v4664_v57, %v2231_v34  ;;  %v2234_v15 = vadd.f32 %v3262_v52, %v4561_v9 }
 0x31a   :  { %v2309_v16 = vmax.f32 %v4849_v23, %v2293_v49  ;;  %v2294_v8 = vmax.f32 %v4667_v10, %v2234_v15  ;;  %v3263_v6 = vpop.f32.mrb[132].mxu1  ;;  %v4852_v10 = vld [vmem:[#allocation5_spill] sm:$0xff]  ;;  %v4854_v15 = vmax.f32 %v4472_v0, %v4573_v54 }
 0x31b   :  { %v3264_v55 = vpop.f32.mrb[133].mxu1  ;;  %v4853_v34 = vmax.f32 %v4467_v7, %v4852_v10 }
 0x31c   :  { %v2310_v41 = vmax.f32 %v4850_v3, %v2294_v8  ;;  %v3265_v19 = vadd.f32 %v3264_v55, %v3263_v6  ;;  %v3266_v61 = vpop.f32.mrb[134].mxu1  ;;  %v4855_v6 = vld [vmem:[#allocation8_spill] sm:$0xff] }
 0x31d   :  { %v3267_v22 = vpop.f32.mrb[135].mxu1 }
 0x31e   :  { %v2709_v46 = vpack.c.bf16 %v2310_v41, %v2309_v16  ;;  %v2239_v57 = vadd.f32 %v3265_v19, %v4851_v18  ;;  %v3268_v14 = vadd.f32 %v3267_v22, %v3266_v61  ;;  %v4858_v22 = vmax.f32 %v4488_v4, %v4587_v11 }
 0x320   :  { %2710 = vst [vmem:[%s4819_s4] sm:$0xff] %v2709_v46   ;;  %v2295_v26 = vmax.f32 %v4670_v40, %v2239_v57  ;;  %v2242_v9 = vadd.f32 %v3268_v14, %v4575_v39 }
 0x322   :  { %v2311_v38 = vmax.f32 %v4853_v34, %v2295_v26  ;;  %v2296_v13 = vmax.f32 %v4673_v50, %v2242_v9  ;;  %v3269_v52 = vpop.f32.mrb[136].mxu1  ;;  %v4856_v50 = vld [vmem:[#allocation7_spill] sm:$0xff]  ;;  %v4859_v9 = vld [vmem:[#allocation10_spill] sm:$0xff] }
 0x323   :  { %v3270_v49 = vpop.f32.mrb[137].mxu1  ;;  %v4857_v3 = vmax.f32 %v4483_v30, %v4856_v50 }
 0x324   :  { %v2312_v61 = vmax.f32 %v4854_v15, %v2296_v13  ;;  %v3271_v1 = vadd.f32 %v3270_v49, %v3269_v52  ;;  %v3272_v23 = vpop.f32.mrb[138].mxu1  ;;  %v4862_v52 = vmax.f32 %v4504_v17, %v4601_v31 }
 0x325   :  { %v3273_v16 = vpop.f32.mrb[139].mxu1 }
 0x326   :  { %v2714_v8 = vpack.c.bf16 %v2312_v61, %v2311_v38  ;;  %v2247_v40 = vadd.f32 %v3271_v1, %v4855_v6  ;;  %v3274_v55 = vadd.f32 %v3273_v16, %v3272_v23  ;;  %v4863_v16 = vld [vmem:[#allocation12_spill] sm:$0xff] }
 0x328   :  { %2746 = vst [vmem:[%s4819_s4 + $0x8] sm:$0xff] %v2714_v8   ;;  %v2297_v7 = vmax.f32 %v4676_v37, %v2247_v40  ;;  %v2250_v39 = vadd.f32 %v3274_v55, %v4589_v36 }
 0x32a   :  { %v2313_v0 = vmax.f32 %v4857_v3, %v2297_v7  ;;  %v2298_v54 = vmax.f32 %v4679_v62, %v2250_v39  ;;  %v3275_v41 = vpop.f32.mrb[140].mxu1  ;;  %v4860_v62 = vld [vmem:[#allocation9_spill] sm:$0xff]  ;;  %v4866_v7 = vmax.f32 %v4517_v43, %v4615_v58 }
 0x32b   :  { %v3276_v19 = vpop.f32.mrb[141].mxu1  ;;  %v4861_v34 = vmax.f32 %v4499_v42, %v4860_v62 }
 0x32c   :  { %v2314_v46 = vmax.f32 %v4858_v22, %v2298_v54  ;;  %v3277_v18 = vadd.f32 %v3276_v19, %v3275_v41  ;;  %v3278_v57 = vpop.f32.mrb[142].mxu1  ;;  %v4867_v41 = vld [vmem:[#allocation14_spill] sm:$0xff] }
 0x32d   :  { %v3279_v14 = vpop.f32.mrb[143].mxu1 }
 0x32e   :  { %v2719_v26 = vpack.c.bf16 %v2314_v46, %v2313_v0  ;;  %v2255_v37 = vadd.f32 %v3277_v18, %v4859_v9  ;;  %v3280_v10 = vadd.f32 %v3279_v14, %v3278_v57  ;;  %v4870_v57 = vmax.f32 %v4527_v59, %v4629_v5 }
 0x330   :  { %2747 = vst [vmem:[%s4819_s4 + $0x10] sm:$0xff] %v2719_v26   ;;  %v2299_v30 = vmax.f32 %v4682_v20, %v2255_v37  ;;  %v2258_v36 = vadd.f32 %v3280_v10, %v4603_v32 }
 0x332   :  { %v2315_v4 = vmax.f32 %v4861_v34, %v2299_v30  ;;  %v2300_v11 = vmax.f32 %v4685_v28, %v2258_v36  ;;  %v3281_v38 = vpop.f32.mrb[144].mxu1  ;;  %v4864_v28 = vld [vmem:[#allocation11_spill] sm:$0xff]  ;;  %v4871_v30 = vld [vmem:[#allocation16_spill] sm:$0xff] }
 0x333   :  { %v3282_v13 = vpop.f32.mrb[145].mxu1  ;;  %v4865_v6 = vmax.f32 %v4512_v33, %v4864_v28 }
 0x334   :  { %v2316_v49 = vmax.f32 %v4862_v52, %v2300_v11  ;;  %v3283_v15 = vadd.f32 %v3282_v13, %v3281_v38  ;;  %v3284_v61 = vpop.f32.mrb[146].mxu1  ;;  %v4874_v11 = vmax.f32 %v4537_v51, %v4643_v25 }
 0x335   :  { %v3285_v1 = vpop.f32.mrb[147].mxu1 }
 0x336   :  { %v2724_v23 = vpack.c.bf16 %v2316_v49, %v2315_v4  ;;  %v2263_v20 = vadd.f32 %v3283_v15, %v4863_v16  ;;  %v3286_v8 = vadd.f32 %v3285_v1, %v3284_v61  ;;  %v4876_v1 = vld [vmem:[#allocation17_spill] sm:$0xff]  ;;  %v4878_v16 = vld [vmem:[#allocation3_spill] sm:$0xff] }
 0x338   :  { %2748 = vst [vmem:[%s4819_s4 + $0x18] sm:$0xff] %v2724_v23   ;;  %v2301_v42 = vmax.f32 %v4688_v2, %v2263_v20  ;;  %v2266_v32 = vadd.f32 %v3286_v8, %v4617_v24  ;;  %v4879_v20 = vld [vmem:[#allocation18_spill] sm:$0xff] }
 0x339   :  { %v4880_v8 = vmax.f32 %v4878_v16, %v4879_v20 }
 0x33a   :  { %v2317_v17 = vmax.f32 %v4865_v6, %v2301_v42  ;;  %v2302_v31 = vmax.f32 %v4691_v60, %v2266_v32  ;;  %v3287_v40 = vpop.f32.mrb[148].mxu1  ;;  %v4868_v60 = vld [vmem:[#allocation13_spill] sm:$0xff] }
 0x33b   :  { %v3288_v55 = vpop.f32.mrb[149].mxu1  ;;  %v4869_v22 = vmax.f32 %v4522_v35, %v4868_v60 }
 0x33c   :  { %v2318_v39 = vmax.f32 %v4866_v7, %v2302_v31  ;;  %v3289_v50 = vadd.f32 %v3288_v55, %v3287_v40  ;;  %v3290_v3 = vpop.f32.mrb[150].mxu1 }
 0x33d   :  { %v3291_v0 = vpop.f32.mrb[151].mxu1 }
 0x33e   :  { %v2729_v54 = vpack.c.bf16 %v2318_v39, %v2317_v17  ;;  %v2271_v2 = vadd.f32 %v3289_v50, %v4867_v41  ;;  %v3292_v19 = vadd.f32 %v3291_v0, %v3290_v3 }
 0x340   :  { %2749 = vst [vmem:[%s4819_s4 + $0x20] sm:$0xff] %v2729_v54   ;;  %v2303_v33 = vmax.f32 %v4694_v53, %v2271_v2  ;;  %v2274_v24 = vadd.f32 %v3292_v19, %v4631_v45 }
 0x342   :  { %v2319_v43 = vmax.f32 %v4869_v22, %v2303_v33  ;;  %v2304_v58 = vmax.f32 %v4697_v21, %v2274_v24  ;;  %v3293_v46 = vpop.f32.mrb[152].mxu1  ;;  %v4872_v21 = vld [vmem:[#allocation15_spill] sm:$0xff] }
 0x343   :  { %v3294_v18 = vpop.f32.mrb[153].mxu1  ;;  %v4873_v62 = vmax.f32 %v4532_v12, %v4872_v21 }
 0x344   :  { %v2320_v14 = vmax.f32 %v4870_v57, %v2304_v58  ;;  %v3295_v26 = vadd.f32 %v3294_v18, %v3293_v46  ;;  %v3296_v9 = vpop.f32.mrb[154].mxu1 }
 0x345   :  { %v3297_v37 = vpop.f32.mrb[155].mxu1 }
 0x346   :  { %v2734_v10 = vpack.c.bf16 %v2320_v14, %v2319_v43  ;;  %v2279_v53 = vadd.f32 %v3295_v26, %v4871_v30  ;;  %v3298_v36 = vadd.f32 %v3297_v37, %v3296_v9 }
 0x348   :  { %2750 = vst [vmem:[%s4819_s4 + $0x28] sm:$0xff] %v2734_v10   ;;  %v2305_v35 = vmax.f32 %v4700_v44, %v2279_v53  ;;  %v2282_v45 = vadd.f32 %v3298_v36, %v4645_v56 }
 0x34a   :  { %v2321_v59 = vmax.f32 %v4873_v62, %v2305_v35  ;;  %v2306_v5 = vmax.f32 %v4703_v47, %v2282_v45  ;;  %v3299_v34 = vpop.f32.mrb[156].mxu1  ;;  %v4875_v47 = vld [vmem:[#allocation2_spill] sm:$0xff] }
 0x34b   :  { %v3300_v4 = vpop.f32.mrb[157].mxu1  ;;  %v4877_v23 = vmax.f32 %v4875_v47, %v4876_v1 }
 0x34c   :  { %v2322_v38 = vmax.f32 %v4874_v11, %v2306_v5  ;;  %v3301_v13 = vadd.f32 %v3300_v4, %v3299_v34  ;;  %v3302_v52 = vpop.f32.mrb[158].mxu1 }
 0x34d   :  { %v3303_v49 = vpop.f32.mrb[159].mxu1 }
 0x34e   :  { %v2739_v15 = vpack.c.bf16 %v2322_v38, %v2321_v59  ;;  %v2287_v44 = vadd.f32 %v3301_v13, %v4652_v48  ;;  %v3304_v61 = vadd.f32 %v3303_v49, %v3302_v52 }
 0x350   :  { %2751 = vst [vmem:[%s4819_s4 + $0x30] sm:$0xff] %v2739_v15   ;;  %v2307_v12 = vmax.f32 %v4706_v29, %v2287_v44  ;;  %v2290_v56 = vadd.f32 %v3304_v61, %v4659_v27 }
 0x352   :  { %v2323_v51 = vmax.f32 %v4877_v23, %v2307_v12  ;;  %v2308_v25 = vmax.f32 %v4709_v63, %v2290_v56 }
 0x354   :  { %v2324_v42 = vmax.f32 %v4880_v8, %v2308_v25 }
 0x356   :  { %v2744_v48 = vpack.c.bf16 %v2324_v42, %v2323_v51 }
 0x358   :  { %2752 = vst [vmem:[%s4819_s4 + $0x38] sm:$0xff] %v2744_v48  }

// kernel: densenet_forward.7
= control target key start
LH: loop header
LB: loop body
LE: loop exit
PB: predicated region body
PF: predicated region fallthrough
CT: control target
= control target key end

     0   :  { %s3944_s30 = smov 0   ;;  %s4536_s0 = inlined_call_operand.vmem [shape: bf16[128,128], index: 0, kind: input, shape index: {}]   ;;  %s4537_s1 = inlined_call_operand.vmem [shape: bf16[6,256,128], index: 1, kind: input, shape index: {}]   ;;  %s4538_s2 = inlined_call_operand.vmem [shape: f32[6,1,128], index: 2, kind: input, shape index: {}]   ;;  %s4539_s3 = inlined_call_operand.vmem [shape: bf16[6,1152,32], index: 3, kind: input, shape index: {}]   ;;  %s4540_s4 = inlined_call_operand.vmem [shape: f32[6,1,32], index: 4, kind: input, shape index: {}]   ;;  %s4541_s5 = inlined_call_operand.vmem [shape: bf16[6,32,256], index: 5, kind: input, shape index: {}]   ;;  %s4542_s6 = inlined_call_operand.vmem [shape: bf16[9,64,64], index: 6, kind: input, shape index: {}]   ;;  %s4543_s7 = inlined_call_operand.vmem [shape: f32[1,256], index: 7, kind: input, shape index: {}]   ;;  %s4544_s8 = inlined_call_operand.vmem [shape: f32[1,256], index: 8, kind: input, shape index: {}]   ;;  %s4545_s9 = inlined_call_operand.vmem [shape: bf16[128,256], index: 9, kind: output, shape index: {}]  }
   0x1 LB: > { %s2867_s10 = sadd.s32 4294967295, %s3855_s30   ;;  %p2871_p0 = scmp.ge.s32.totalorder %s3855_s30, 1  ;;  %s3855_s30 = sphi %s3944_s30, %s19_s30  }
   0x2   : > { %p288_p1 = scmp.lt.s32.totalorder %s3855_s30, 3 }
   0x4   : > { %p289_p2 = pnand %p2871_p0, %p288_p1 }
   0x5   : > { %s2872_s11 = sshll.u32 (!%p289_p2), %s2867_s10, 3  ;;  %v3960_v4 = vmov (!%p289_p2), 0   ;;  %v3964_v5 = vmov (!%p289_p2), 0   ;;  %v3968_v6 = vmov (!%p289_p2), 0   ;;  %v3972_v7 = vmov (!%p289_p2), 0   ;;  %s3976_s20 = smov (!%p289_p2), 0  }
   0x6   : > { %292 = sbr.rel (%p289_p2) target bundleno = 1070 (0x42e), region = 56  ;;  %p326_p3 = scmp.lt.s32.totalorder (!%p289_p2), %s2872_s11, 15 }
   0xd   : > { %s4561_s11 = smov (!%p326_p3, %s2872_s11), 15 }
   0xe   : > { %s2873_s12 = sshll.u32 %s4561_s11, 2  ;;  %s3130_s13 = sshll.u32 %s4561_s11, 3 }
   0xf   : > { %s329_s16 = scalar_lea.vmem %s4536_s0, %s2873_s12  ;;  %s3958_s19 = scalar_lea.vmem %s4545_s9, %s3130_s13 }
  0x10   : > { %v3679_v0 = vld [vmem:[%s329_s16] sm:$0xff]   ;;  %v3680_v1 = vld [vmem:[%s329_s16 + $0x8] sm:$0xff]   ;;  %v3681_v2 = vld [vmem:[%s329_s16 + $0x10] sm:$0xff]  }
  0x11   : > { %v3682_v3 = vld [vmem:[%s329_s16 + $0x18] sm:$0xff]  }
  0x12 LB: >> { %s3131_s21 = sshll.u32 %s3891_s20, 7  ;;  %556 = vmatprep.mubr.bf16.mxu0 %v3883_v7  ;;  %s3132_s25 = smul.u32 576, %s3891_s20  ;;  %v3699_v24 = vld [vmem:[%s4542_s6] sm:$0xff]   ;;  %vm629_vm0 = vcmask 523264   ;;  %vm2542_vm1 = vcmask 261120   ;;  %s3891_s20 = sphi %s3976_s20, %s376_s20   ;;  %v3887_v0 = vphi %v3679_v0, %v4559_v0   ;;  %v3883_v7 = vphi %v3972_v7, %v4558_v7   ;;  %v3879_v1 = vphi %v3680_v1, %v4557_v1   ;;  %v3875_v6 = vphi %v3968_v6, %v4556_v6   ;;  %v3871_v2 = vphi %v3681_v2, %v4555_v2   ;;  %v3867_v5 = vphi %v3964_v5, %v4554_v5   ;;  %v3863_v3 = vphi %v3682_v3, %v4553_v3   ;;  %v3859_v4 = vphi %v3960_v4, %v4552_v4  }
  0x13   : >> { %s387_s24 = scalar_lea.vmem %s4537_s1, %s3131_s21  ;;  %v3701_v25 = vld [vmem:[%s4542_s6 + $0x60] sm:$0xff]   ;;  %3434 = vmatprep.mubr.msk.bf16.mxu1 %vm629_vm0, %v3699_v24  ;;  %s420_s15 = scalar_lea.vmem %s4538_s2, %s3891_s20  ;;  %v3710_v24 = vld [vmem:[%s4542_s6 + $0xa8] sm:$0xff]  }
  0x14   : >> { %v3683_v8 = vld [vmem:[%s387_s24 + $0x40] sm:$0xff]   ;;  %v3685_v10 = vld [vmem:[%s387_s24 + $0x48] sm:$0xff]   ;;  %v3687_v12 = vld [vmem:[%s387_s24 + $0x50] sm:$0xff]   ;;  %s4015_s28 = scalar_lea.vmem %s4539_s3, %s3132_s25  ;;  %s1738_s23 = scalar_lea.vmem %s4540_s4, %s3891_s20 }
  0x15   : >> { %v3684_v9 = vld [vmem:[%s387_s24] sm:$0xff]   ;;  %3142 = vmatprep.subr.bf16.mxu0 %v3683_v8  ;;  %v3686_v11 = vld [vmem:[%s387_s24 + $0x8] sm:$0xff]   ;;  %v3688_v13 = vld [vmem:[%s387_s24 + $0x10] sm:$0xff]  }
  0x16   : >> { %3143 = vmatpush3.bf16.msra.mxu0 %v3684_v9  ;;  %v3689_v14 = vld [vmem:[%s387_s24 + $0x58] sm:$0xff]   ;;  %v3691_v16 = vld [vmem:[%s387_s24 + $0x60] sm:$0xff]   ;;  %v3693_v18 = vld [vmem:[%s387_s24 + $0x68] sm:$0xff]  }
  0x17   : >> { %3144 = vmatprep.subr.bf16.mxu0 %v3685_v10  ;;  %v3690_v15 = vld [vmem:[%s387_s24 + $0x18] sm:$0xff]   ;;  %v3692_v17 = vld [vmem:[%s387_s24 + $0x20] sm:$0xff]   ;;  %v3694_v19 = vld [vmem:[%s387_s24 + $0x28] sm:$0xff]  }
  0x18   : >> { %v3695_v20 = vld [vmem:[%s387_s24 + $0x70] sm:$0xff]   ;;  %v3697_v22 = vld [vmem:[%s387_s24 + $0x78] sm:$0xff]   ;;  %v2883_v27 = vld [vmem:[%s420_s15] ss:$0 sm:$0xff] }
  0x19   : >> { %v3696_v21 = vld [vmem:[%s387_s24 + $0x30] sm:$0xff]   ;;  %v3698_v23 = vld [vmem:[%s387_s24 + $0x38] sm:$0xff]  }
  0x1a   : >> { %3145 = vmatpush3.bf16.msra.mxu0 %v3686_v11 }
  0x1b   : >> { %3146 = vmatprep.subr.bf16.mxu0 %v3687_v12 }
  0x1e   : >> { %3147 = vmatpush3.bf16.msra.mxu0 %v3688_v13 }
  0x1f   : >> { %3148 = vmatprep.subr.bf16.mxu0 %v3689_v14 }
  0x22   : >> { %3149 = vmatpush3.bf16.msra.mxu0 %v3690_v15  ;;  %v3700_v15 = vld [vmem:[%s4542_s6 + $0x8] sm:$0xff]  }
  0x23   : >> { %3150 = vmatprep.subr.bf16.mxu0 %v3691_v16  ;;  %v3702_v16 = vld [vmem:[%s4542_s6 + $0x68] sm:$0xff]  }
  0x26   : >> { %3151 = vmatpush3.bf16.msra.mxu0 %v3692_v17  ;;  %v3703_v17 = vld [vmem:[%s4542_s6 + $0x10] sm:$0xff]  }
  0x27   : >> { %3152 = vmatprep.subr.bf16.mxu0 %v3693_v18  ;;  %v3705_v18 = vld [vmem:[%s4542_s6 + $0x70] sm:$0xff]  }
  0x2a   : >> { %3153 = vmatpush3.bf16.msra.mxu0 %v3694_v19  ;;  %v3704_v19 = vld [vmem:[%s4542_s6 + $0x18] sm:$0xff]  }
  0x2b   : >> { %3154 = vmatprep.subr.bf16.mxu0 %v3695_v20  ;;  %v3706_v20 = vld [vmem:[%s4542_s6 + $0x78] sm:$0xff]  }
  0x2e   : >> { %3155 = vmatpush3.bf16.msra.mxu0 %v3696_v21  ;;  %v3707_v21 = vld [vmem:[%s4542_s6 + $0x20] sm:$0xff]  }
  0x2f   : >> { %3156 = vmatprep.subr.bf16.mxu0 %v3697_v22  ;;  %v3709_v22 = vld [vmem:[%s4542_s6 + $0xa0] sm:$0xff]  }
  0x32   : >> { %3157 = vmatpush3.bf16.msra.mxu0 %v3698_v23  ;;  %v3708_v23 = vld [vmem:[%s4542_s6 + $0x28] sm:$0xff]  }
  0x35   : >> { %557 = vmatmul.mubr.bf16.vlgmr.msra.gmra.mrb[0].mxu0 %v3887_v0 }
  0x36   : >> { %564 = vmatprep.mubr.bf16.mxu0 %v3875_v6 }
  0x3d   : >> { %565 = vmatmul.mubr.bf16.gmra.mrb[4].mxu0 %v3879_v1 }
  0x3e   : >> { %572 = vmatprep.mubr.bf16.mxu0 %v3867_v5 }
  0x45   : >> { %573 = vmatmul.mubr.bf16.gmra.mrb[8].mxu0 %v3871_v2 }
  0x46   : >> { %580 = vmatprep.mubr.bf16.mxu0 %v3859_v4 }
  0x4d   : >> { %581 = vmatmul.mubr.bf16.gmra.mrb[12].mxu0 %v3863_v3 }
  0x4e   : >> { %3482 = vmatprep.mubr.msk.bf16.mxu0 %vm629_vm0, %v3701_v25  ;;  %v3711_v25 = vld [vmem:[%s4542_s6 + $0x30] sm:$0xff]  }
 0x108   : >> { %v3158_v26 = vpop.f32.mrb[0].mxu0 }
 0x109   : >> { %v3159_v28 = vpop.f32.mrb[1].mxu0 }
 0x10a   : >> { %v3160_v29 = vadd.f32 %v3159_v28, %v3158_v26  ;;  %v3161_v30 = vpop.f32.mrb[2].mxu0  ;;  %v3719_v26 = vld [vmem:[%s4542_s6 + $0xb0] sm:$0xff]   ;;  %v3721_v28 = vld [vmem:[%s4542_s6 + $0xb8] sm:$0xff]  }
 0x10b   : >> { %v3162_v31 = vpop.f32.mrb[3].mxu0 }
 0x10c   : >> { %v559_v32 = vadd.f32 %v3160_v29, %v2883_v27  ;;  %v3163_v33 = vadd.f32 %v3162_v31, %v3161_v30  ;;  %v3713_v29 = vld [vmem:[%s4542_s6 + $0x40] sm:$0xff]  }
 0x10d   : >> { %v3723_v30 = vld [vmem:[%s4542_s6 + $0xe0] sm:$0xff]  }
 0x10e   : >> { %v562_v34 = vadd.f32 %v3163_v33, %v2883_v27  ;;  %v589_v35 = vmax.f32 %v559_v32, 0.0  ;;  %v3735_v31 = vld [vmem:[%s4015_s28 + $0x40] sm:$0xff]   ;;  %v3714_v32 = vld [vmem:[%s4542_s6 + $0x48] sm:$0xff]  }
 0x10f   : >> { %v3725_v33 = vld [vmem:[%s4542_s6 + $0xe8] sm:$0xff]  }
 0x110   : >> { %v590_v36 = vmax.f32 %v562_v34, 0.0  ;;  %v3164_v37 = vpop.f32.mrb[4].mxu0  ;;  %v3715_v34 = vld [vmem:[%s4542_s6 + $0x50] sm:$0xff]  }
 0x111   : >> { %v3165_v38 = vpop.f32.mrb[5].mxu0 }
 0x112   : >> { %v4035_v39 = vpack.c.bf16 %v590_v36, %v589_v35  ;;  %v3166_v40 = vadd.f32 %v3165_v38, %v3164_v37  ;;  %v3167_v41 = vpop.f32.mrb[6].mxu0  ;;  %v3729_v35 = vld [vmem:[%s4542_s6 + $0xf0] sm:$0xff]   ;;  %v3736_v36 = vld [vmem:[%s4015_s28] sm:$0xff]   ;;  %v3737_v37 = vld [vmem:[%s4015_s28 + $0x48] sm:$0xff]  }
 0x113   : >> { %v3168_v42 = vpop.f32.mrb[7].mxu0  ;;  %v3738_v38 = vld [vmem:[%s4015_s28 + $0x8] sm:$0xff]  }
 0x114   : >> { %v567_v43 = vadd.f32 %v3166_v40, %v2883_v27  ;;  %v3169_v44 = vadd.f32 %v3168_v42, %v3167_v41  ;;  %3426 = vmatprep.subr.bf16.mxu1 %v4035_v39  ;;  %3474 = vmatprep.subr.bf16.mxu0 %v4035_v39  ;;  %v3716_v40 = vld [vmem:[%s4542_s6 + $0x58] sm:$0xff]   ;;  %v3717_v42 = vld [vmem:[%s4542_s6 + $0x80] sm:$0xff]  }
 0x115   : >> { %3427 = vmatpush3.bf16.msra.mxu1 %v4035_v39  ;;  %3475 = vmatpush3.bf16.msra.mxu0 %v4035_v39  ;;  %v3730_v41 = vld [vmem:[%s4542_s6 + $0xf8] sm:$0xff]  }
 0x116   : >> { %v570_v45 = vadd.f32 %v3169_v44, %v2883_v27  ;;  %v591_v46 = vmax.f32 %v567_v43, 0.0  ;;  %v3739_v43 = vld [vmem:[%s4015_s28 + $0x50] sm:$0xff]   ;;  %v3718_v44 = vld [vmem:[%s4542_s6 + $0x88] sm:$0xff]  }
 0x118   : >> { %v592_v47 = vmax.f32 %v570_v45, 0.0  ;;  %v3170_v48 = vpop.f32.mrb[8].mxu0  ;;  %v3720_v45 = vld [vmem:[%s4542_s6 + $0x90] sm:$0xff]  }
 0x119   : >> { %v3171_v49 = vpop.f32.mrb[9].mxu0 }
 0x11a   : >> { %v4041_v50 = vpack.c.bf16 %v592_v47, %v591_v46  ;;  %v3172_v51 = vadd.f32 %v3171_v49, %v3170_v48  ;;  %v3173_v52 = vpop.f32.mrb[10].mxu0  ;;  %v3722_v46 = vld [vmem:[%s4542_s6 + $0x98] sm:$0xff]   ;;  %v3724_v47 = vld [vmem:[%s4542_s6 + $0xc0] sm:$0xff]   ;;  %v3726_v48 = vld [vmem:[%s4542_s6 + $0xc8] sm:$0xff]  }
 0x11b   : >> { %v3174_v53 = vpop.f32.mrb[11].mxu0  ;;  %v3727_v49 = vld [vmem:[%s4542_s6 + $0xd0] sm:$0xff]  }
 0x11c   : >> { %v575_v54 = vadd.f32 %v3172_v51, %v2883_v27  ;;  %v3175_v55 = vadd.f32 %v3174_v53, %v3173_v52  ;;  %3428 = vmatprep.subr.bf16.mxu1 %v4041_v50  ;;  %3476 = vmatprep.subr.bf16.mxu0 %v4041_v50  ;;  %v3728_v51 = vld [vmem:[%s4542_s6 + $0xd8] sm:$0xff]   ;;  %v3731_v52 = vld [vmem:[%s4542_s6 + $0x100] sm:$0xff]   ;;  %v3740_v53 = vld [vmem:[%s4015_s28 + $0x10] sm:$0xff]  }
 0x11d   : >> { %3429 = vmatpush3.bf16.msra.mxu1 %v4041_v50  ;;  %3477 = vmatpush3.bf16.msra.mxu0 %v4041_v50 }
 0x11e   : >> { %v578_v56 = vadd.f32 %v3175_v55, %v2883_v27  ;;  %v593_v57 = vmax.f32 %v575_v54, 0.0  ;;  %v3734_v54 = vld [vmem:[%s4542_s6 + $0x118] sm:$0xff]  }
 0x11f   : >> { %v3741_v55 = vld [vmem:[%s4015_s28 + $0x58] sm:$0xff]  }
 0x120   : >> { %v594_v58 = vmax.f32 %v578_v56, 0.0  ;;  %v3176_v59 = vpop.f32.mrb[12].mxu0  ;;  %v3742_v56 = vld [vmem:[%s4015_s28 + $0x18] sm:$0xff]  }
 0x121   : >> { %v3177_v60 = vpop.f32.mrb[13].mxu0 }
 0x122   : >> { %v4047_v61 = vpack.c.bf16 %v594_v58, %v593_v57  ;;  %v3178_v62 = vadd.f32 %v3177_v60, %v3176_v59  ;;  %v3179_v63 = vpop.f32.mrb[14].mxu0  ;;  %v3743_v57 = vld [vmem:[%s4015_s28 + $0xc0] sm:$0xff]  }
 0x123   : >> { %v3180_v8 = vpop.f32.mrb[15].mxu0  ;;  %v3744_v58 = vld [vmem:[%s4015_s28 + $0x60] sm:$0xff]  }
 0x124   : >> { %v583_v9 = vadd.f32 %v3178_v62, %v2883_v27  ;;  %v3181_v10 = vadd.f32 %v3180_v8, %v3179_v63  ;;  %3430 = vmatprep.subr.bf16.mxu1 %v4047_v61  ;;  %3478 = vmatprep.subr.bf16.mxu0 %v4047_v61  ;;  %v3745_v59 = vld [vmem:[%s4015_s28 + $0x80] sm:$0xff]   ;;  %v3748_v62 = vld [vmem:[%s4015_s28 + $0x68] sm:$0xff]  }
 0x125   : >> { %3431 = vmatpush3.bf16.msra.mxu1 %v4047_v61  ;;  %3479 = vmatpush3.bf16.msra.mxu0 %v4047_v61  ;;  %v3746_v60 = vld [vmem:[%s4015_s28 + $0x20] sm:$0xff]   ;;  %v3749_v63 = vld [vmem:[%s4015_s28 + $0x88] sm:$0xff]  }
 0x126   : >> { %v586_v11 = vadd.f32 %v3181_v10, %v2883_v27  ;;  %v595_v12 = vmax.f32 %v583_v9, 0.0  ;;  %v3712_v27 = vld [vmem:[%s4542_s6 + $0x38] sm:$0xff]   ;;  %v3750_v8 = vld [vmem:[%s4015_s28 + $0x28] sm:$0xff]   ;;  %v3751_v9 = vld [vmem:[%s4015_s28 + $0xd0] sm:$0xff]  }
 0x127   : >> { %v3752_v10 = vld [vmem:[%s4015_s28 + $0x70] sm:$0xff]  }
 0x128   : >> { %v596_v13 = vmax.f32 %v586_v11, 0.0  ;;  %v3753_v11 = vld [vmem:[%s4015_s28 + $0x90] sm:$0xff]  }
 0x12a   : >> { %v4053_v14 = vpack.c.bf16 %v596_v13, %v595_v12  ;;  %v3754_v12 = vld [vmem:[%s4015_s28 + $0x30] sm:$0xff]   ;;  %v3755_v13 = vld [vmem:[%s4015_s28 + $0xd8] sm:$0xff]  }
 0x12c   : >> { %3432 = vmatprep.subr.bf16.mxu1 %v4053_v14  ;;  %3480 = vmatprep.subr.bf16.mxu0 %v4053_v14 }
 0x12d   : >> { %3433 = vmatpush3.bf16.msra.mxu1 %v4053_v14  ;;  %3481 = vmatpush3.bf16.msra.mxu0 %v4053_v14 }
 0x12e   : >> { %3442 = vmatprep.subr.bf16.mxu1 %v4035_v39  ;;  %3506 = vmatprep.subr.bf16.mxu0 %v4035_v39 }
 0x130   : >> { %3435 = vmatmul.mubr.msk.bf16.vlgmr.msra.gmra.mrb[0].mxu1 %vm629_vm0, %v3700_v15  ;;  %3483 = vmatmul.mubr.msk.bf16.vlgmr.msra.gmra.mrb[16].mxu0 %vm629_vm0, %v3702_v16  ;;  %v3757_v15 = vld [vmem:[%s4015_s28 + $0x98] sm:$0xff]  }
 0x131   : >> { %3443 = vmatpush3.bf16.msra.mxu1 %v4035_v39  ;;  %3507 = vmatpush3.bf16.msra.mxu0 %v4035_v39  ;;  %v3758_v16 = vld [vmem:[%s4015_s28 + $0x38] sm:$0xff]  }
 0x132   : >> { %3444 = vmatprep.subr.bf16.mxu1 %v4041_v50  ;;  %3508 = vmatprep.subr.bf16.mxu0 %v4041_v50 }
 0x133   : >> { %3438 = vmatprep.mubr.msk.bf16.mxu1 %vm629_vm0, %v3703_v17  ;;  %3486 = vmatprep.mubr.msk.bf16.mxu0 %vm629_vm0, %v3705_v18  ;;  %v3759_v17 = vld [vmem:[%s4015_s28 + $0xe0] sm:$0xff]  }
 0x134   : >> { %v3760_v18 = vld [vmem:[%s4015_s28 + $0xa0] sm:$0xff]  }
 0x135   : >> { %3445 = vmatpush3.bf16.msra.mxu1 %v4041_v50  ;;  %3509 = vmatpush3.bf16.msra.mxu0 %v4041_v50 }
 0x136   : >> { %3446 = vmatprep.subr.bf16.mxu1 %v4047_v61  ;;  %3510 = vmatprep.subr.bf16.mxu0 %v4047_v61 }
 0x138   : >> { %3439 = vmatmul.mubr.msk.bf16.gmra.mrb[4].mxu1 %vm629_vm0, %v3704_v19  ;;  %3487 = vmatmul.mubr.msk.bf16.gmra.mrb[20].mxu0 %vm629_vm0, %v3706_v20  ;;  %v3761_v19 = vld [vmem:[%s4015_s28 + $0x140] sm:$0xff]   ;;  %v3763_v20 = vld [vmem:[%s4015_s28 + $0xe8] sm:$0xff]  }
 0x139   : >> { %3447 = vmatpush3.bf16.msra.mxu1 %v4047_v61  ;;  %3511 = vmatpush3.bf16.msra.mxu0 %v4047_v61 }
 0x13a   : >> { %3448 = vmatprep.subr.bf16.mxu1 %v4053_v14  ;;  %3512 = vmatprep.subr.bf16.mxu0 %v4053_v14 }
 0x13b   : >> { %3450 = vmatprep.mubr.msk.bf16.mxu1 %vm629_vm0, %v3707_v21  ;;  %3514 = vmatprep.mubr.msk.bf16.mxu0 %vm629_vm0, %v3709_v22  ;;  %v3764_v21 = vld [vmem:[%s4015_s28 + $0xa8] sm:$0xff]   ;;  %v3767_v22 = vld [vmem:[%s4015_s28 + $0xf0] sm:$0xff]  }
 0x13d   : >> { %3449 = vmatpush3.bf16.msra.mxu1 %v4053_v14  ;;  %3513 = vmatpush3.bf16.msra.mxu0 %v4053_v14 }
 0x13e   : >> { %3458 = vmatprep.subr.bf16.mxu1 %v4035_v39  ;;  %3538 = vmatprep.subr.bf16.mxu0 %v4035_v39 }
 0x140   : >> { %3451 = vmatmul.mubr.msk.bf16.vlgmr.msra.gmra.mrb[8].mxu1 %vm629_vm0, %v3708_v23  ;;  %3515 = vmatmul.mubr.msk.bf16.vlgmr.msra.gmra.mrb[24].mxu0 %vm629_vm0, %v3710_v24  ;;  %v3768_v23 = vld [vmem:[%s4015_s28 + $0xb0] sm:$0xff]   ;;  %v3771_v24 = vld [vmem:[%s4015_s28 + $0xf8] sm:$0xff]  }
 0x141   : >> { %3459 = vmatpush3.bf16.msra.mxu1 %v4035_v39  ;;  %3539 = vmatpush3.bf16.msra.mxu0 %v4035_v39 }
 0x142   : >> { %3460 = vmatprep.subr.bf16.mxu1 %v4041_v50  ;;  %3540 = vmatprep.subr.bf16.mxu0 %v4041_v50 }
 0x143   : >> { %3454 = vmatprep.mubr.msk.bf16.mxu1 %vm629_vm0, %v3711_v25  ;;  %3518 = vmatprep.mubr.msk.bf16.mxu0 %vm629_vm0, %v3719_v26  ;;  %v3772_v25 = vld [vmem:[%s4015_s28 + $0xb8] sm:$0xff]   ;;  %v3775_v26 = vld [vmem:[%s4015_s28 + $0x1c0] sm:$0xff]  }
 0x145   : >> { %3461 = vmatpush3.bf16.msra.mxu1 %v4041_v50  ;;  %3541 = vmatpush3.bf16.msra.mxu0 %v4041_v50 }
 0x146   : >> { %3462 = vmatprep.subr.bf16.mxu1 %v4047_v61  ;;  %3542 = vmatprep.subr.bf16.mxu0 %v4047_v61 }
 0x148   : >> { %3455 = vmatmul.mubr.msk.bf16.gmra.mrb[12].mxu1 %vm629_vm0, %v3712_v27  ;;  %3519 = vmatmul.mubr.msk.bf16.gmra.mrb[28].mxu0 %vm629_vm0, %v3721_v28 }
 0x149   : >> { %3463 = vmatpush3.bf16.msra.mxu1 %v4047_v61  ;;  %3543 = vmatpush3.bf16.msra.mxu0 %v4047_v61 }
 0x14a   : >> { %3464 = vmatprep.subr.bf16.mxu1 %v4053_v14  ;;  %3544 = vmatprep.subr.bf16.mxu0 %v4053_v14 }
 0x14b   : >> { %3466 = vmatprep.mubr.msk.bf16.mxu1 %vm629_vm0, %v3713_v29  ;;  %3546 = vmatprep.mubr.msk.bf16.mxu0 %vm629_vm0, %v3723_v30 }
 0x14d   : >> { %3465 = vmatpush3.bf16.msra.mxu1 %v4053_v14  ;;  %3545 = vmatpush3.bf16.msra.mxu0 %v4053_v14 }
 0x14e   : >> { %3490 = vmatprep.subr.bf16.mxu1 %v4035_v39  ;;  %3254 = vmatprep.subr.bf16.mxu0 %v3735_v31 }
 0x150   : >> { %3467 = vmatmul.mubr.msk.bf16.vlgmr.msra.gmra.mrb[16].mxu1 %vm629_vm0, %v3714_v32  ;;  %3547 = vmatmul.mubr.msk.bf16.vlgmr.msra.gmra.mrb[32].mxu0 %vm629_vm0, %v3725_v33 }
 0x151   : >> { %3491 = vmatpush3.bf16.msra.mxu1 %v4035_v39  ;;  %3470 = vmatprep.mubr.msk.bf16.mxu1 %vm629_vm0, %v3715_v34 }
 0x152   : >> { %3492 = vmatprep.subr.bf16.mxu1 %v4041_v50  ;;  %3550 = vmatprep.mubr.msk.bf16.mxu0 %vm629_vm0, %v3729_v35 }
 0x153   : >> { %3255 = vmatpush3.bf16.msra.mxu0 %v3736_v36 }
 0x154   : >> { %3256 = vmatprep.subr.bf16.mxu0 %v3737_v37 }
 0x155   : >> { %3493 = vmatpush3.bf16.msra.mxu1 %v4041_v50 }
 0x156   : >> { %3494 = vmatprep.subr.bf16.mxu1 %v4047_v61 }
 0x157   : >> { %3257 = vmatpush3.bf16.msra.mxu0 %v3738_v38 }
 0x158   : >> { %3471 = vmatmul.mubr.msk.bf16.gmra.mrb[20].mxu1 %vm629_vm0, %v3716_v40  ;;  %3551 = vmatmul.mubr.msk.bf16.gmra.mrb[36].mxu0 %vm629_vm0, %v3730_v41 }
 0x159   : >> { %3495 = vmatpush3.bf16.msra.mxu1 %v4047_v61  ;;  %3498 = vmatprep.mubr.msk.bf16.mxu1 %vm629_vm0, %v3717_v42 }
 0x15a   : >> { %3496 = vmatprep.subr.bf16.mxu1 %v4053_v14  ;;  %3258 = vmatprep.subr.bf16.mxu0 %v3739_v43 }
 0x15b   : >> { %3259 = vmatpush3.bf16.msra.mxu0 %v3740_v53 }
 0x15c   : >> { %3260 = vmatprep.subr.bf16.mxu0 %v3741_v55 }
 0x15d   : >> { %3497 = vmatpush3.bf16.msra.mxu1 %v4053_v14 }
 0x15e   : >> { %3522 = vmatprep.subr.bf16.mxu1 %v4035_v39 }
 0x15f   : >> { %3261 = vmatpush3.bf16.msra.mxu0 %v3742_v56 }
 0x160   : >> { %3499 = vmatmul.mubr.msk.bf16.vlgmr.msra.gmra.mrb[24].mxu1 %vm629_vm0, %v3718_v44  ;;  %3262 = vmatprep.subr.bf16.mxu0 %v3744_v58 }
 0x161   : >> { %3523 = vmatpush3.bf16.msra.mxu1 %v4035_v39  ;;  %3502 = vmatprep.mubr.msk.bf16.mxu1 %vm629_vm0, %v3720_v45 }
 0x162   : >> { %3524 = vmatprep.subr.bf16.mxu1 %v4041_v50 }
 0x163   : >> { %3263 = vmatpush3.bf16.msra.mxu0 %v3746_v60 }
 0x164   : >> { %3264 = vmatprep.subr.bf16.mxu0 %v3748_v62  ;;  %v3762_v62 = vld [vmem:[%s4015_s28 + $0x100] sm:$0xff]  }
 0x165   : >> { %3525 = vmatpush3.bf16.msra.mxu1 %v4041_v50 }
 0x166   : >> { %3526 = vmatprep.subr.bf16.mxu1 %v4047_v61 }
 0x167   : >> { %3265 = vmatpush3.bf16.msra.mxu0 %v3750_v8  ;;  %v3765_v8 = vld [vmem:[%s4015_s28 + $0x148] sm:$0xff]  }
 0x168   : >> { %3503 = vmatmul.mubr.msk.bf16.gmra.mrb[28].mxu1 %vm629_vm0, %v3722_v46  ;;  %3266 = vmatprep.subr.bf16.mxu0 %v3752_v10  ;;  %v3766_v10 = vld [vmem:[%s4015_s28 + $0x108] sm:$0xff]  }
 0x169   : >> { %3527 = vmatpush3.bf16.msra.mxu1 %v4047_v61  ;;  %3530 = vmatprep.mubr.msk.bf16.mxu1 %vm629_vm0, %v3724_v47 }
 0x16a   : >> { %3528 = vmatprep.subr.bf16.mxu1 %v4053_v14 }
 0x16b   : >> { %3267 = vmatpush3.bf16.msra.mxu0 %v3754_v12 }
 0x16d   : >> { %3529 = vmatpush3.bf16.msra.mxu1 %v4053_v14 }
 0x16e   : >> { %3554 = vmatprep.subr.bf16.mxu1 %v4035_v39 }
 0x170   : >> { %3531 = vmatmul.mubr.msk.bf16.vlgmr.msra.gmra.mrb[32].mxu1 %vm629_vm0, %v3726_v48 }
 0x171   : >> { %3555 = vmatpush3.bf16.msra.mxu1 %v4035_v39  ;;  %3534 = vmatprep.mubr.msk.bf16.mxu1 %vm629_vm0, %v3727_v49  ;;  %v3732_v39 = vld [vmem:[%s4542_s6 + $0x108] sm:$0xff]  }
 0x172   : >> { %3556 = vmatprep.subr.bf16.mxu1 %v4041_v50 }
 0x175   : >> { %3557 = vmatpush3.bf16.msra.mxu1 %v4041_v50  ;;  %v3733_v50 = vld [vmem:[%s4542_s6 + $0x110] sm:$0xff]  }
 0x176   : >> { %3558 = vmatprep.subr.bf16.mxu1 %v4047_v61 }
 0x178   : >> { %3535 = vmatmul.mubr.msk.bf16.gmra.mrb[36].mxu1 %vm629_vm0, %v3728_v51 }
 0x179   : >> { %3559 = vmatpush3.bf16.msra.mxu1 %v4047_v61  ;;  %3562 = vmatprep.mubr.msk.bf16.mxu1 %vm629_vm0, %v3731_v52  ;;  %v3747_v61 = vld [vmem:[%s4015_s28 + $0xc8] sm:$0xff]  }
 0x17a   : >> { %3560 = vmatprep.subr.bf16.mxu1 %v4053_v14 }
 0x17d   : >> { %3561 = vmatpush3.bf16.msra.mxu1 %v4053_v14  ;;  %v3756_v14 = vld [vmem:[%s4015_s28 + $0x78] sm:$0xff]  }
 0x17e   : >> { %3294 = vmatprep.subr.bf16.mxu1 %v3743_v57  ;;  %3268 = vmatprep.subr.bf16.mxu0 %v3756_v14 }
 0x17f   : >> { %3269 = vmatpush3.bf16.msra.mxu0 %v3758_v16 }
 0x180   : >> { %3563 = vmatmul.mubr.msk.bf16.vlgmr.msra.gmra.mrb[40].mxu1 %vm629_vm0, %v3732_v39  ;;  %3334 = vmatprep.subr.bf16.mxu0 %v3761_v19 }
 0x181   : >> { %3566 = vmatprep.mubr.msk.bf16.mxu1 %vm629_vm0, %v3733_v50  ;;  %3295 = vmatpush3.bf16.msra.mxu1 %v3745_v59 }
 0x182   : >> { %3296 = vmatprep.subr.bf16.mxu1 %v3747_v61 }
 0x185   : >> { %3297 = vmatpush3.bf16.msra.mxu1 %v3749_v63 }
 0x186   : >> { %3298 = vmatprep.subr.bf16.mxu1 %v3751_v9 }
 0x188   : >> { %3567 = vmatmul.mubr.msk.bf16.gmra.mrb[44].mxu1 %vm629_vm0, %v3734_v54 }
 0x189   : >> { %3299 = vmatpush3.bf16.msra.mxu1 %v3753_v11 }
 0x18a   : >> { %3300 = vmatprep.subr.bf16.mxu1 %v3755_v13  ;;  %v3769_v13 = vld [vmem:[%s4015_s28 + $0x150] sm:$0xff]  }
 0x18d   : >> { %3301 = vmatpush3.bf16.msra.mxu1 %v3757_v15 }
 0x18e   : >> { %3302 = vmatprep.subr.bf16.mxu1 %v3759_v17 }
 0x191   : >> { %3303 = vmatpush3.bf16.msra.mxu1 %v3760_v18 }
 0x192   : >> { %3304 = vmatprep.subr.bf16.mxu1 %v3763_v20 }
 0x195   : >> { %3305 = vmatpush3.bf16.msra.mxu1 %v3764_v21 }
 0x196   : >> { %3306 = vmatprep.subr.bf16.mxu1 %v3767_v22  ;;  %v3770_v22 = vld [vmem:[%s4015_s28 + $0x110] sm:$0xff]  }
 0x199   : >> { %3307 = vmatpush3.bf16.msra.mxu1 %v3768_v23 }
 0x19a   : >> { %3308 = vmatprep.subr.bf16.mxu1 %v3771_v24  ;;  %v3773_v24 = vld [vmem:[%s4015_s28 + $0x158] sm:$0xff]  }
 0x19d   : >> { %3309 = vmatpush3.bf16.msra.mxu1 %v3772_v25 }
 0x19e   : >> { %3374 = vmatprep.subr.bf16.mxu1 %v3775_v26  ;;  %v3774_v26 = vld [vmem:[%s4015_s28 + $0x118] sm:$0xff]  }
 0x203   : >> { %v3436_v27 = vpop.f32.mrb[0].mxu1  ;;  %v4285_v28 = vpop.f32.mrb[16].mxu0 }
 0x204   : >> { %v676_v29 = vpop.f32.mrb[1].mxu1  ;;  %v1006_v30 = vpop.f32.mrb[17].mxu0 }
 0x205   : >> { %v3437_v31 = vpop.f32.mrb[2].mxu1  ;;  %v4287_v32 = vpop.f32.mrb[18].mxu0 }
 0x206   : >> { %v708_v33 = vpack.c.bf16 %v3437_v31, %v3436_v27  ;;  %v679_v34 = vpop.f32.mrb[3].mxu1  ;;  %v1038_v35 = vpack.c.bf16 %v4287_v32, %v4285_v28  ;;  %v1009_v36 = vpop.f32.mrb[19].mxu0  ;;  %v3784_v28 = vld [vmem:[%s4015_s28 + $0x170] sm:$0xff]  }
 0x207   : >> { %v707_v37 = vpack.c.bf16 %v679_v34, %v676_v29  ;;  %v1037_v38 = vpack.c.bf16 %v1009_v36, %v1006_v30  ;;  %v3776_v30 = vld [vmem:[%s4015_s28 + $0x160] sm:$0xff]  }
 0x209   : >> { %2275 = vmatprep.mubr.bf16.mxu1 %v1037_v38 }
 0x20b   : >> { %v4291_v40 = vpop.f32.mrb[4].mxu1  ;;  %v4293_v41 = vpop.f32.mrb[20].mxu0 }
 0x20c   : >> { %v4295_v42 = vpop.f32.mrb[5].mxu1  ;;  %v4297_v43 = vpop.f32.mrb[21].mxu0 }
 0x20d   : >> { %v4299_v44 = vpop.f32.mrb[6].mxu1  ;;  %v4301_v45 = vpop.f32.mrb[22].mxu0 }
 0x20e   : >> { %v710_v46 = vpack.c.bf16 %v4299_v44, %v4291_v40  ;;  %v4305_v47 = vpop.f32.mrb[7].mxu1  ;;  %v1040_v48 = vpack.c.bf16 %v4301_v45, %v4293_v41  ;;  %v4309_v49 = vpop.f32.mrb[23].mxu0  ;;  %v3791_v40 = vld [vmem:[%s4015_s28 + $0x1e0] sm:$0xff]  }
 0x20f   : >> { %v709_v51 = vpack.c.bf16 %v4305_v47, %v4295_v42  ;;  %v1039_v52 = vpack.c.bf16 %v4309_v49, %v4297_v43 }
 0x213   : >> { %v3452_v39 = vpop.f32.mrb[8].mxu1  ;;  %v4315_v50 = vpop.f32.mrb[24].mxu0 }
 0x214   : >> { %v786_v53 = vpop.f32.mrb[9].mxu1  ;;  %v4317_v54 = vpop.f32.mrb[25].mxu0 }
 0x215   : >> { %v3453_v55 = vpop.f32.mrb[10].mxu1  ;;  %v4319_v56 = vpop.f32.mrb[26].mxu0 }
 0x216   : >> { %v818_v57 = vpack.c.bf16 %v3453_v55, %v3452_v39  ;;  %v789_v58 = vpop.f32.mrb[11].mxu1  ;;  %v1258_v59 = vpack.c.bf16 %v4319_v56, %v4315_v50  ;;  %v4323_v60 = vpop.f32.mrb[27].mxu0  ;;  %v3777_v55 = vld [vmem:[%s4015_s28 + $0x180] sm:$0xff]   ;;  %v3800_v50 = vld [vmem:[%s4015_s28 + $0x1f8] sm:$0xff]  }
 0x217   : >> { %v817_v61 = vpack.c.bf16 %v789_v58, %v786_v53  ;;  %v1257_v63 = vpack.c.bf16 %v4323_v60, %v4317_v54  ;;  %v3778_v58 = vld [vmem:[%s4015_s28 + $0x120] sm:$0xff]   ;;  %v3794_v54 = vld [vmem:[%s4015_s28 + $0x1e8] sm:$0xff]   ;;  %v3802_v56 = vld [vmem:[%s4015_s28 + $0x218] sm:$0xff]  }
 0x218   : >> { %v3796_v60 = vld [vmem:[%s4015_s28 + $0x208] sm:$0xff]  }
 0x219   : >> { %2210 = vmatprep.mubr.bf16.mxu0 %v817_v61  ;;  %v3779_v61 = vld [vmem:[%s4015_s28 + $0x1c8] sm:$0xff]  }
 0x21a   : >> { %2211 = vmatmul.mubr.bf16.vlgmr.msra.gmra.mrb[40].mxu0 %v707_v37 }
 0x21b   : >> { %v3456_v9 = vpop.f32.mrb[12].mxu1  ;;  %2218 = vmatprep.mubr.bf16.mxu0 %v818_v57  ;;  %3335 = vmatpush3.bf16.msra.mxu0 %v3762_v62  ;;  %v4330_v11 = vpop.f32.mrb[28].mxu0  ;;  %v3780_v62 = vld [vmem:[%s4015_s28 + $0x168] sm:$0xff]  }
 0x21c   : >> { %v802_v12 = vpop.f32.mrb[13].mxu1  ;;  %3336 = vmatprep.subr.bf16.mxu0 %v3765_v8  ;;  %v4333_v14 = vpop.f32.mrb[29].mxu0 }
 0x21d   : >> { %v3457_v15 = vpop.f32.mrb[14].mxu1  ;;  %v4335_v16 = vpop.f32.mrb[30].mxu0 }
 0x21e   : >> { %v820_v17 = vpack.c.bf16 %v3457_v15, %v3456_v9  ;;  %v805_v18 = vpop.f32.mrb[15].mxu1  ;;  %v1260_v19 = vpack.c.bf16 %v4335_v16, %v4330_v11  ;;  %v4339_v20 = vpop.f32.mrb[31].mxu0  ;;  %v3781_v9 = vld [vmem:[%s4015_s28 + $0x188] sm:$0xff]   ;;  %v3783_v15 = vld [vmem:[%s4015_s28 + $0x1d0] sm:$0xff]  }
 0x21f   : >> { %v819_v21 = vpack.c.bf16 %v805_v18, %v802_v12  ;;  %3337 = vmatpush3.bf16.msra.mxu0 %v3766_v10  ;;  %v1259_v23 = vpack.c.bf16 %v4339_v20, %v4333_v14 }
 0x220   : >> { %3338 = vmatprep.subr.bf16.mxu0 %v3769_v13  ;;  %v3782_v13 = vld [vmem:[%s4015_s28 + $0x128] sm:$0xff]  }
 0x222   : >> { %2219 = vmatmul.mubr.bf16.gmra.mrb[44].mxu0 %v708_v33 }
 0x223   : >> { %v3468_v25 = vpop.f32.mrb[16].mxu1  ;;  %2226 = vmatprep.mubr.bf16.mxu0 %v819_v21  ;;  %3339 = vmatpush3.bf16.msra.mxu0 %v3770_v22  ;;  %v4346_v27 = vpop.f32.mrb[32].mxu0  ;;  %v3785_v22 = vld [vmem:[%s4015_s28 + $0x190] sm:$0xff]  }
 0x224   : >> { %v896_v29 = vpop.f32.mrb[17].mxu1  ;;  %3340 = vmatprep.subr.bf16.mxu0 %v3773_v24  ;;  %v4349_v31 = vpop.f32.mrb[33].mxu0 }
 0x225   : >> { %v3469_v34 = vpop.f32.mrb[18].mxu1  ;;  %v4351_v36 = vpop.f32.mrb[34].mxu0 }
 0x226   : >> { %v928_v37 = vpack.c.bf16 %v3469_v34, %v3468_v25  ;;  %v899_v33 = vpop.f32.mrb[19].mxu1  ;;  %v1478_v38 = vpack.c.bf16 %v4351_v36, %v4346_v27  ;;  %v4355_v39 = vpop.f32.mrb[35].mxu0  ;;  %v3786_v25 = vld [vmem:[%s4015_s28 + $0x130] sm:$0xff]   ;;  %v3789_v34 = vld [vmem:[%s4015_s28 + $0x198] sm:$0xff]  }
 0x227   : >> { %v927_v53 = vpack.c.bf16 %v899_v33, %v896_v29  ;;  %3341 = vmatpush3.bf16.msra.mxu0 %v3774_v26  ;;  %v1477_v57 = vpack.c.bf16 %v4355_v39, %v4349_v31  ;;  %v3787_v26 = vld [vmem:[%s4015_s28 + $0x1d8] sm:$0xff]   ;;  %v3804_v39 = vld [vmem:[%s4015_s28 + $0x228] sm:$0xff]  }
 0x228   : >> { %3342 = vmatprep.subr.bf16.mxu0 %v3776_v30  ;;  %v3788_v29 = vld [vmem:[%s4015_s28 + $0x178] sm:$0xff]  }
 0x229   : >> { %2276 = vmatmul.mubr.bf16.vlgmr.msra.gmra.mrb[48].mxu1 %v927_v53  ;;  %v3790_v33 = vld [vmem:[%s4015_s28 + $0x138] sm:$0xff]   ;;  %v3792_v53 = vld [vmem:[%s4015_s28 + $0x1a0] sm:$0xff]  }
 0x22a   : >> { %2227 = vmatmul.mubr.bf16.gmra.mrb[48].mxu0 %v709_v51  ;;  %2283 = vmatprep.mubr.bf16.mxu1 %v1038_v35 }
 0x22b   : >> { %3375 = vmatpush3.bf16.msra.mxu1 %v3777_v55  ;;  %v4369_v8 = vpop.f32.mrb[20].mxu1  ;;  %2234 = vmatprep.mubr.bf16.mxu0 %v820_v17  ;;  %v4372_v10 = vpop.f32.mrb[36].mxu0  ;;  %v3795_v55 = vld [vmem:[%s4015_s28 + $0x1a8] sm:$0xff]  }
 0x22c   : >> { %3343 = vmatpush3.bf16.msra.mxu0 %v3778_v58  ;;  %v912_v12 = vpop.f32.mrb[21].mxu1  ;;  %3376 = vmatprep.subr.bf16.mxu1 %v3779_v61  ;;  %v4376_v42 = vpop.f32.mrb[37].mxu0  ;;  %v3797_v61 = vld [vmem:[%s4015_s28 + $0x1f0] sm:$0xff]  }
 0x22d   : >> { %v4378_v47 = vpop.f32.mrb[22].mxu1  ;;  %3344 = vmatprep.subr.bf16.mxu0 %v3780_v62  ;;  %v4381_v32 = vpop.f32.mrb[38].mxu0 }
 0x22e   : >> { %v930_v35 = vpack.c.bf16 %v4378_v47, %v4369_v8  ;;  %v915_v51 = vpop.f32.mrb[23].mxu1  ;;  %v1480_v17 = vpack.c.bf16 %v4381_v32, %v4372_v10  ;;  %v4387_v18 = vpop.f32.mrb[39].mxu0  ;;  %v3799_v8 = vld [vmem:[%s4015_s28 + $0x210] sm:$0xff]   ;;  %v3803_v47 = vld [vmem:[%s4015_s28 + $0x220] sm:$0xff]  }
 0x22f   : >> { %v929_v21 = vpack.c.bf16 %v915_v51, %v912_v12  ;;  %3377 = vmatpush3.bf16.msra.mxu1 %v3781_v9  ;;  %v1479_v24 = vpack.c.bf16 %v4387_v18, %v4376_v42  ;;  %v3798_v9 = vld [vmem:[%s4015_s28 + $0x1b0] sm:$0xff]   ;;  %v3801_v12 = vld [vmem:[%s4015_s28 + $0x1b8] sm:$0xff]  }
 0x230   : >> { %3345 = vmatpush3.bf16.msra.mxu0 %v3782_v13  ;;  %3378 = vmatprep.subr.bf16.mxu1 %v3783_v15 }
 0x231   : >> { %2284 = vmatmul.mubr.bf16.gmra.mrb[52].mxu1 %v928_v37  ;;  %3346 = vmatprep.subr.bf16.mxu0 %v3784_v28 }
 0x232   : >> { %2235 = vmatmul.mubr.bf16.gmra.mrb[52].mxu0 %v710_v46  ;;  %2291 = vmatprep.mubr.bf16.mxu1 %v1039_v52  ;;  %v3793_v46 = vld [vmem:[%s4015_s28 + $0x200] sm:$0xff]  }
 0x233   : >> { %3379 = vmatpush3.bf16.msra.mxu1 %v3785_v22  ;;  %v3500_v30 = vpop.f32.mrb[24].mxu1  ;;  %2340 = vmatprep.mubr.bf16.mxu0 %v1257_v63 }
 0x234   : >> { %3347 = vmatpush3.bf16.msra.mxu0 %v3786_v25  ;;  %v1116_v37 = vpop.f32.mrb[25].mxu1  ;;  %3380 = vmatprep.subr.bf16.mxu1 %v3787_v26  ;;  %v3806_v25 = vld [vmem:[%s4015_s28 + $0x238] sm:$0xff]  }
 0x235   : >> { %v3501_v44 = vpop.f32.mrb[26].mxu1  ;;  %3348 = vmatprep.subr.bf16.mxu0 %v3788_v29 }
 0x236   : >> { %v1148_v43 = vpack.c.bf16 %v3501_v44, %v3500_v30  ;;  %v1119_v49 = vpop.f32.mrb[27].mxu1 }
 0x237   : >> { %v1147_v52 = vpack.c.bf16 %v1119_v49, %v1116_v37  ;;  %3381 = vmatpush3.bf16.msra.mxu1 %v3789_v34 }
 0x238   : >> { %3349 = vmatpush3.bf16.msra.mxu0 %v3790_v33  ;;  %3382 = vmatprep.subr.bf16.mxu1 %v3791_v40 }
 0x239   : >> { %2292 = vmatmul.mubr.bf16.gmra.mrb[56].mxu1 %v929_v21  ;;  %3570 = vmatprep.subr.bf16.mxu0 %v3793_v46 }
 0x23a   : >> { %2299 = vmatprep.mubr.bf16.mxu1 %v1040_v48 }
 0x23b   : >> { %2341 = vmatmul.mubr.bf16.vlgmr.msra.gmra.mrb[56].mxu0 %v1147_v52  ;;  %3383 = vmatpush3.bf16.msra.mxu1 %v3792_v53  ;;  %v3504_v63 = vpop.f32.mrb[28].mxu1 }
 0x23c   : >> { %2348 = vmatprep.mubr.bf16.mxu0 %v1258_v59  ;;  %3571 = vmatpush3.bf16.msra.mxu0 %v3793_v46  ;;  %v1132_v58 = vpop.f32.mrb[29].mxu1 }
 0x23d   : >> { %v3505_v62 = vpop.f32.mrb[30].mxu1  ;;  %3384 = vmatprep.subr.bf16.mxu1 %v3794_v54  ;;  %3572 = vmatprep.subr.bf16.mxu0 %v3796_v60 }
 0x23e   : >> { %v1150_v41 = vpack.c.bf16 %v3505_v62, %v3504_v63  ;;  %v1135_v45 = vpop.f32.mrb[31].mxu1 }
 0x23f   : >> { %v1149_v48 = vpack.c.bf16 %v1135_v45, %v1132_v58  ;;  %3385 = vmatpush3.bf16.msra.mxu1 %v3795_v55  ;;  %v3037_v58 = vld [vmem:[%s1738_s23] ss:$0 sm:$0xff] }
 0x240   : >> { %3573 = vmatpush3.bf16.msra.mxu0 %v3796_v60  ;;  %3386 = vmatprep.subr.bf16.mxu1 %v3797_v61 }
 0x241   : >> { %2300 = vmatmul.mubr.bf16.gmra.mrb[60].mxu1 %v930_v35  ;;  %3574 = vmatprep.subr.bf16.mxu0 %v3799_v8 }
 0x242   : >> { %2405 = vmatprep.mubr.bf16.mxu1 %v1477_v57 }
 0x243   : >> { %2349 = vmatmul.mubr.bf16.gmra.mrb[60].mxu0 %v1148_v43  ;;  %3387 = vmatpush3.bf16.msra.mxu1 %v3798_v9  ;;  %v3532_v59 = vpop.f32.mrb[32].mxu1 }
 0x244   : >> { %2356 = vmatprep.mubr.bf16.mxu0 %v1259_v23  ;;  %3575 = vmatpush3.bf16.msra.mxu0 %v3799_v8  ;;  %v1336_v13 = vpop.f32.mrb[33].mxu1  ;;  %v3805_v23 = vld [vmem:[%s4015_s28 + $0x230] sm:$0xff]   ;;  %s3133_s28 = sshll.u32 %s3891_s20, 5  ;;  %s376_s20 = sadd.s32 1, %s3891_s20  }
 0x245   : >> { %v3533_v15 = vpop.f32.mrb[34].mxu1  ;;  %3388 = vmatprep.subr.bf16.mxu1 %v3800_v50  ;;  %3576 = vmatprep.subr.bf16.mxu0 %v3802_v56  ;;  %s2517_s18 = scalar_lea.vmem %s4541_s5, %s3133_s28  ;;  %p373_p4 = scmp.ge.s32.totalorder %s376_s20, 6  }
 0x246   : >> { %v1368_v28 = vpack.c.bf16 %v3533_v15, %v3532_v59  ;;  %v1339_v35 = vpop.f32.mrb[35].mxu1  ;;  %v3807_v34 = vld [vmem:[%s2517_s18] ss:$8 sps:$4 sm:$0xff]   ;;  %v3809_v37 = vld [vmem:[%s2517_s18 + $0x4] ss:$8 sps:$4 sm:$0xff]  }
 0x247   : >> { %v1367_v31 = vpack.c.bf16 %v1339_v35, %v1336_v13  ;;  %3389 = vmatpush3.bf16.msra.mxu1 %v3801_v12  ;;  %v3810_v10 = vld [vmem:[%s2517_s18 + $0x10] ss:$8 sps:$4 sm:$0xff]   ;;  %v3812_v32 = vld [vmem:[%s2517_s18 + $0x14] ss:$8 sps:$4 sm:$0xff]  }
 0x248   : >> { %3577 = vmatpush3.bf16.msra.mxu0 %v3802_v56  ;;  %3594 = vmatprep.subr.bf16.mxu1 %v3809_v37 }
 0x249   : >> { %3578 = vmatprep.subr.bf16.mxu0 %v3803_v47 }
 0x24a   : >> { %2406 = vmatmul.mubr.bf16.vlgmr.msra.gmra.mrb[64].mxu1 %v1367_v31 }
 0x24b   : >> { %2357 = vmatmul.mubr.bf16.gmra.mrb[64].mxu0 %v1149_v48  ;;  %v3536_v57 = vpop.f32.mrb[36].mxu1  ;;  %2413 = vmatprep.mubr.bf16.mxu1 %v1478_v38 }
 0x24c   : >> { %2364 = vmatprep.mubr.bf16.mxu0 %v1260_v19  ;;  %3579 = vmatpush3.bf16.msra.mxu0 %v3803_v47  ;;  %v1352_v14 = vpop.f32.mrb[37].mxu1 }
 0x24d   : >> { %v3537_v20 = vpop.f32.mrb[38].mxu1  ;;  %3580 = vmatprep.subr.bf16.mxu0 %v3804_v39  ;;  %3596 = vmatpush1.bf16.msra.mxu1 %v3807_v34 }
 0x24e   : >> { %v1370_v51 = vpack.c.bf16 %v3537_v20, %v3536_v57  ;;  %v1355_v21 = vpop.f32.mrb[39].mxu1  ;;  %3595 = vmatprep.subr.bf16.mxu1 %v3812_v32 }
 0x24f   : >> { %v1369_v22 = vpack.c.bf16 %v1355_v21, %v1352_v14 }
 0x250   : >> { %3581 = vmatpush3.bf16.msra.mxu0 %v3804_v39 }
 0x251   : >> { %3582 = vmatprep.subr.bf16.mxu0 %v3805_v23  ;;  %3597 = vmatpush1.bf16.msra.mxu1 %v3810_v10 }
 0x252   : >> { %2414 = vmatmul.mubr.bf16.gmra.mrb[68].mxu1 %v1368_v28 }
 0x253   : >> { %2365 = vmatmul.mubr.bf16.gmra.mrb[68].mxu0 %v1150_v41  ;;  %v3564_v26 = vpop.f32.mrb[40].mxu1  ;;  %2421 = vmatprep.mubr.bf16.mxu1 %v1479_v24 }
 0x254   : >> { %3583 = vmatpush3.bf16.msra.mxu0 %v3805_v23  ;;  %v1556_v11 = vpop.f32.mrb[41].mxu1 }
 0x255   : >> { %v3565_v16 = vpop.f32.mrb[42].mxu1  ;;  %3584 = vmatprep.subr.bf16.mxu0 %v3806_v25 }
 0x256   : >> { %v1588_v19 = vpack.c.bf16 %v3565_v16, %v3564_v26  ;;  %v1559_v27 = vpop.f32.mrb[43].mxu1 }
 0x257   : >> { %v1587_v36 = vpack.c.bf16 %v1559_v27, %v1556_v11 }
 0x258   : >> { %3585 = vmatpush3.bf16.msra.mxu0 %v3806_v25 }
 0x259   : >> { %3586 = vmatprep.mubr.bf16.mxu0 %v1587_v36  ;;  %2555 = vmatprep.subr.bf16.mxu0 %v3809_v37 }
 0x25a   : >> { %2422 = vmatmul.mubr.bf16.gmra.mrb[72].mxu1 %v1369_v22 }
 0x25b   : >> { %3587 = vmatmul.mubr.bf16.vlgmr.msra.gmra.mrb[72].mxu0 %v1588_v19  ;;  %v3568_v38 = vpop.f32.mrb[44].mxu1  ;;  %2429 = vmatprep.mubr.bf16.mxu1 %v1480_v17  ;;  %v3893_v17 = vmov 0  }
 0x25c   : >> { %v1572_v29 = vpop.f32.mrb[45].mxu1  ;;  %2556 = vmatpush1.bf16.msra.mxu0 %v3807_v34 }
 0x25d   : >> { %v3569_v42 = vpop.f32.mrb[46].mxu1  ;;  %2557 = vmatprep.subr.bf16.mxu0 %v3812_v32 }
 0x25e   : >> { %v1590_v18 = vpack.c.bf16 %v3569_v42, %v3568_v38  ;;  %v1575_v24 = vpop.f32.mrb[47].mxu1 }
 0x25f   : >> { %v1589_v30 = vpack.c.bf16 %v1575_v24, %v1572_v29 }
 0x260   : >> { %2558 = vmatpush1.bf16.msra.mxu0 %v3810_v10 }
 0x261   : >> { %3590 = vmatprep.mubr.bf16.mxu0 %v1589_v30 }
 0x262   : >> { %2430 = vmatmul.mubr.bf16.gmra.mrb[76].mxu1 %v1370_v51 }
 0x263   : >> { %3591 = vmatmul.mubr.bf16.gmra.mrb[76].mxu0 %v1590_v18  ;;  %2597 = vmatprep.mubr.bf16.mxu1 %v3893_v17 }
 0x264   : >> { %2587 = vmatprep.mubr.bf16.mxu0 %v3893_v17 }
 0x2ed   : >> { %v3270_v33 = vpop.f32.mrb[40].mxu0 }
 0x2ee   : >> { %v3271_v40 = vpop.f32.mrb[41].mxu0 }
 0x2ef   : >> { %v3272_v44 = vadd.f32 %v3271_v40, %v3270_v33  ;;  %v3273_v46 = vpop.f32.mrb[42].mxu0 }
 0x2f0   : >> { %v3274_v43 = vpop.f32.mrb[43].mxu0 }
 0x2f1   : >> { %v3275_v49 = vadd.f32 %v3274_v43, %v3273_v46  ;;  %v2213_v41 = vadd.f32 %v3272_v44, %v3037_v58 }
 0x2f3   : >> { %v2216_v12 = vadd.f32 %v3275_v49, %v3037_v58 }
 0x2f5   : >> { %v3276_v52 = vpop.f32.mrb[44].mxu0 }
 0x2f6   : >> { %v3277_v53 = vpop.f32.mrb[45].mxu0 }
 0x2f7   : >> { %v3278_v54 = vadd.f32 %v3277_v53, %v3276_v52  ;;  %v3279_v60 = vpop.f32.mrb[46].mxu0 }
 0x2f8   : >> { %v3280_v63 = vpop.f32.mrb[47].mxu0 }
 0x2f9   : >> { %v3281_v55 = vadd.f32 %v3280_v63, %v3279_v60  ;;  %v2221_v14 = vadd.f32 %v3278_v54, %v3037_v58 }
 0x2fb   : >> { %v2224_v26 = vadd.f32 %v3281_v55, %v3037_v58 }
 0x2fc   : >> { %v3310_v61 = vpop.f32.mrb[48].mxu1 }
 0x2fd   : >> { %v3282_v62 = vpop.f32.mrb[48].mxu0  ;;  %v3311_v8 = vpop.f32.mrb[49].mxu1 }
 0x2fe   : >> { %v3312_v45 = vadd.f32 %v3311_v8, %v3310_v61  ;;  %v3283_v48 = vpop.f32.mrb[49].mxu0  ;;  %v3313_v9 = vpop.f32.mrb[50].mxu1 }
 0x2ff   : >> { %v3284_v50 = vadd.f32 %v3283_v48, %v3282_v62  ;;  %v3285_v56 = vpop.f32.mrb[50].mxu0  ;;  %v3314_v59 = vpop.f32.mrb[51].mxu1 }
 0x300   : >> { %v2278_v13 = vadd.f32 %v3312_v45, %v2213_v41  ;;  %v3315_v15 = vadd.f32 %v3314_v59, %v3313_v9  ;;  %v3286_v47 = vpop.f32.mrb[51].mxu0 }
 0x301   : >> { %v3287_v28 = vadd.f32 %v3286_v47, %v3285_v56  ;;  %v2229_v42 = vadd.f32 %v3284_v50, %v3037_v58 }
 0x302   : >> { %v2281_v35 = vadd.f32 %v3315_v15, %v2216_v12 }
 0x303   : >> { %v2232_v10 = vadd.f32 %v3287_v28, %v3037_v58 }
 0x304   : >> { %v3316_v31 = vpop.f32.mrb[52].mxu1 }
 0x305   : >> { %v3288_v39 = vpop.f32.mrb[52].mxu0  ;;  %v3317_v57 = vpop.f32.mrb[53].mxu1 }
 0x306   : >> { %v3318_v20 = vadd.f32 %v3317_v57, %v3316_v31  ;;  %v3289_v23 = vpop.f32.mrb[53].mxu0  ;;  %v3319_v51 = vpop.f32.mrb[54].mxu1 }
 0x307   : >> { %v3290_v21 = vadd.f32 %v3289_v23, %v3288_v39  ;;  %v3291_v22 = vpop.f32.mrb[54].mxu0  ;;  %v3320_v25 = vpop.f32.mrb[55].mxu1 }
 0x308   : >> { %v2286_v11 = vadd.f32 %v3318_v20, %v2221_v14  ;;  %v3321_v16 = vadd.f32 %v3320_v25, %v3319_v51  ;;  %v3292_v19 = vpop.f32.mrb[55].mxu0 }
 0x309   : >> { %v3293_v27 = vadd.f32 %v3292_v19, %v3291_v22  ;;  %v2237_v63 = vadd.f32 %v3290_v21, %v3037_v58 }
 0x30a   : >> { %v2289_v36 = vadd.f32 %v3321_v16, %v2224_v26 }
 0x30b   : >> { %v2240_v45 = vadd.f32 %v3293_v27, %v3037_v58 }
 0x30c   : >> { %v3322_v38 = vpop.f32.mrb[56].mxu1 }
 0x30d   : >> { %v3323_v29 = vpop.f32.mrb[57].mxu1 }
 0x30e   : >> { %v3324_v18 = vadd.f32 %v3323_v29, %v3322_v38  ;;  %v3350_v24 = vpop.f32.mrb[56].mxu0  ;;  %v3325_v30 = vpop.f32.mrb[58].mxu1 }
 0x30f   : >> { %v3351_v34 = vpop.f32.mrb[57].mxu0  ;;  %v3326_v37 = vpop.f32.mrb[59].mxu1 }
 0x310   : >> { %v2294_v32 = vadd.f32 %v3324_v18, %v2229_v42  ;;  %v3352_v33 = vadd.f32 %v3351_v34, %v3350_v24  ;;  %v3327_v40 = vadd.f32 %v3326_v37, %v3325_v30  ;;  %v3353_v44 = vpop.f32.mrb[58].mxu0 }
 0x311   : >> { %v3354_v46 = vpop.f32.mrb[59].mxu0 }
 0x312   : >> { %v2343_v43 = vadd.f32 %v3352_v33, %v2278_v13  ;;  %v2297_v49 = vadd.f32 %v3327_v40, %v2232_v10  ;;  %v3355_v52 = vadd.f32 %v3354_v46, %v3353_v44 }
 0x314   : >> { %v2346_v53 = vadd.f32 %v3355_v52, %v2281_v35  ;;  %v3328_v54 = vpop.f32.mrb[60].mxu1 }
 0x315   : >> { %v3329_v60 = vpop.f32.mrb[61].mxu1 }
 0x316   : >> { %v3330_v55 = vadd.f32 %v3329_v60, %v3328_v54  ;;  %v3356_v61 = vpop.f32.mrb[60].mxu0  ;;  %v3331_v62 = vpop.f32.mrb[62].mxu1 }
 0x317   : >> { %v3357_v8 = vpop.f32.mrb[61].mxu0  ;;  %v3332_v41 = vpop.f32.mrb[63].mxu1 }
 0x318   : >> { %v2302_v48 = vadd.f32 %v3330_v55, %v2237_v63  ;;  %v3358_v9 = vadd.f32 %v3357_v8, %v3356_v61  ;;  %v3333_v50 = vadd.f32 %v3332_v41, %v3331_v62  ;;  %v3359_v56 = vpop.f32.mrb[62].mxu0 }
 0x319   : >> { %v3360_v59 = vpop.f32.mrb[63].mxu0 }
 0x31a   : >> { %v2351_v12 = vadd.f32 %v3358_v9, %v2286_v11  ;;  %v2305_v15 = vadd.f32 %v3333_v50, %v2240_v45  ;;  %v3361_v13 = vadd.f32 %v3360_v59, %v3359_v56 }
 0x31c   : >> { %v2354_v47 = vadd.f32 %v3361_v13, %v2289_v36 }
 0x31d   : >> { %v3390_v28 = vpop.f32.mrb[64].mxu1 }
 0x31e   : >> { %v3362_v35 = vpop.f32.mrb[64].mxu0  ;;  %v3391_v31 = vpop.f32.mrb[65].mxu1 }
 0x31f   : >> { %v3392_v39 = vadd.f32 %v3391_v31, %v3390_v28  ;;  %v3363_v57 = vpop.f32.mrb[65].mxu0  ;;  %v3393_v14 = vpop.f32.mrb[66].mxu1 }
 0x320   : >> { %v3364_v20 = vadd.f32 %v3363_v57, %v3362_v35  ;;  %v3365_v23 = vpop.f32.mrb[66].mxu0  ;;  %v3394_v51 = vpop.f32.mrb[67].mxu1 }
 0x321   : >> { %v3395_v21 = vadd.f32 %v3394_v51, %v3393_v14  ;;  %v3366_v58 = vpop.f32.mrb[67].mxu0  ;;  %v2408_v22 = vadd.f32 %v3392_v39, %v2343_v43 }
 0x322   : >> { %v2359_v25 = vadd.f32 %v3364_v20, %v2294_v32  ;;  %v3367_v26 = vadd.f32 %v3366_v58, %v3365_v23 }
 0x323   : >> { %v2411_v16 = vadd.f32 %v3395_v21, %v2346_v53 }
 0x324   : >> { %v2362_v19 = vadd.f32 %v3367_v26, %v2297_v49 }
 0x325   : >> { %v3396_v11 = vpop.f32.mrb[68].mxu1 }
 0x326   : >> { %v3368_v27 = vpop.f32.mrb[68].mxu0  ;;  %v3397_v38 = vpop.f32.mrb[69].mxu1 }
 0x327   : >> { %v3398_v36 = vadd.f32 %v3397_v38, %v3396_v11  ;;  %v3369_v29 = vpop.f32.mrb[69].mxu0  ;;  %v3399_v42 = vpop.f32.mrb[70].mxu1 }
 0x328   : >> { %v3370_v18 = vadd.f32 %v3369_v29, %v3368_v27  ;;  %v3371_v24 = vpop.f32.mrb[70].mxu0  ;;  %v3400_v30 = vpop.f32.mrb[71].mxu1 }
 0x329   : >> { %v3401_v34 = vadd.f32 %v3400_v30, %v3399_v42  ;;  %v3372_v37 = vpop.f32.mrb[71].mxu0  ;;  %v2416_v10 = vadd.f32 %v3398_v36, %v2351_v12 }
 0x32a   : >> { %v2367_v33 = vadd.f32 %v3370_v18, %v2302_v48  ;;  %v3373_v40 = vadd.f32 %v3372_v37, %v3371_v24 }
 0x32b   : >> { %v2419_v44 = vadd.f32 %v3401_v34, %v2354_v47 }
 0x32c   : >> { %v2370_v46 = vadd.f32 %v3373_v40, %v2305_v15 }
 0x32d   : >> { %v3402_v32 = vpop.f32.mrb[72].mxu1 }
 0x32e   : >> { %v3403_v43 = vpop.f32.mrb[73].mxu1  ;;  %v3588_v52 = vpop.f32.mrb[72].mxu0 }
 0x32f   : >> { %v3404_v49 = vadd.f32 %v3403_v43, %v3402_v32  ;;  %v2481_v53 = vadd.f32 %v3588_v52, %v2416_v10  ;;  %v3405_v54 = vpop.f32.mrb[74].mxu1  ;;  %v2472_v60 = vpop.f32.mrb[73].mxu0 }
 0x330   : >> { %v2473_v63 = vadd.f32 %v2472_v60, %v2408_v22  ;;  %v3406_v55 = vpop.f32.mrb[75].mxu1  ;;  %v3589_v61 = vpop.f32.mrb[74].mxu0 }
 0x331   : >> { %v3407_v62 = vadd.f32 %v3406_v55, %v3405_v54  ;;  %v2484_v8 = vadd.f32 %v3589_v61, %v2419_v44  ;;  %v2475_v41 = vpop.f32.mrb[75].mxu0  ;;  %v2424_v45 = vadd.f32 %v3404_v49, %v2359_v25  ;;  %v2505_v50 = vmax.f32 %v2481_v53, 0.0 }
 0x332   : >> { %v2476_v9 = vadd.f32 %v2475_v41, %v2411_v16  ;;  %v2503_v59 = vmax.f32 %v2473_v63, 0.0 }
 0x333   : >> { %v2506_v48 = vmax.f32 %v2484_v8, 0.0  ;;  %v2427_v56 = vadd.f32 %v3407_v62, %v2362_v19 }
 0x334   : >> { %v2504_v12 = vmax.f32 %v2476_v9, 0.0 }
 0x335   : >> { %v2512_v15 = vpack.c.bf16 %v2506_v48, %v2505_v50  ;;  %v3408_v13 = vpop.f32.mrb[76].mxu1 }
 0x336   : >> { %v2511_v47 = vpack.c.bf16 %v2504_v12, %v2503_v59  ;;  %v3409_v28 = vpop.f32.mrb[77].mxu1  ;;  %v3592_v35 = vpop.f32.mrb[76].mxu0 }
 0x337   : >> { %v3410_v31 = vadd.f32 %v3409_v28, %v3408_v13  ;;  %v3411_v39 = vpop.f32.mrb[78].mxu1  ;;  %v2488_v57 = vpop.f32.mrb[77].mxu0  ;;  %3117 = vmatmul.mubr.msk.bf16.vlgmr.msra.gmra.mrb[80].mxu1 %vm2542_vm1, %v2512_v15  ;;  %v2660_v13 = vld [vmem:[%s4543_s7] sm:$0x3] (%p373_p4) }
 0x338   : >> { %v2489_v14 = vadd.f32 %v2488_v57, %v2424_v45  ;;  %v3412_v20 = vpop.f32.mrb[79].mxu1  ;;  %v3593_v23 = vpop.f32.mrb[78].mxu0  ;;  %3116 = vmatmul.mubr.msk.bf16.vlgmr.msra.gmra.mrb[80].mxu0 %vm2542_vm1, %v2511_v47  ;;  %2607 = vmatprep.mubr.bf16.mxu1 %v3893_v17  ;;  %v2688_v47 = vld [vmem:[%s4544_s8] sm:$0x3] (%p373_p4) }
 0x339   : >> { %v2432_v51 = vadd.f32 %v3410_v31, %v2367_v33  ;;  %v3413_v21 = vadd.f32 %v3412_v20, %v3411_v39  ;;  %v2491_v58 = vpop.f32.mrb[79].mxu0 }
 0x33a   : >> { %v2492_v22 = vadd.f32 %v2491_v58, %v2427_v56  ;;  %v2507_v16 = vmax.f32 %v2489_v14, 0.0  ;;  %v2662_v56 = vlaneseq (%p373_p4) }
 0x33b   : >> { %v2497_v25 = vadd.f32 %v3592_v35, %v2432_v51  ;;  %v2435_v26 = vadd.f32 %v3413_v21, %v2370_v46 }
 0x33c   : >> { %v2508_v19 = vmax.f32 %v2492_v22, 0.0  ;;  %v2663_v15 = vshrl.u32 (%p373_p4), %v2662_v56, 7 }
 0x33d   : >> { %v2500_v11 = vadd.f32 %v3593_v23, %v2435_v26  ;;  %v2509_v38 = vmax.f32 %v2497_v25, 0.0 }
 0x33e   : >> { %v2513_v27 = vpack.c.bf16 %v2508_v19, %v2507_v16  ;;  %v2664_v57 = vsub.s32 (%p373_p4), 0, %v2663_v15  ;;  %v2668_v14 = vsub.s32 (%p373_p4), 1, %v2663_v15 }
 0x33f   : >> { %v2510_v36 = vmax.f32 %v2500_v11, 0.0 }
 0x340   : >> { %3118 = vmatmul.mubr.msk.bf16.gmra.mrb[84].mxu1 %vm2542_vm1, %v2513_v27  ;;  %v2665_v23 = vrot.slane (%p373_p4), %v2660_v13, %v2664_v57  ;;  %v2669_v51 = vrot.slane (%p373_p4), %v2660_v13, %v2668_v14  ;;  %v2693_v21 = vrot.slane (%p373_p4), %v2688_v47, %v2664_v57  ;;  %v2697_v58 = vrot.slane (%p373_p4), %v2688_v47, %v2668_v14 }
 0x341   : >> { %v2514_v29 = vpack.c.bf16 %v2510_v36, %v2509_v38  ;;  %2617 = vmatprep.mubr.bf16.mxu1 %v3893_v17 }
 0x348   : >> { %3119 = vmatmul.mubr.msk.bf16.gmra.mrb[88].mxu1 %vm2542_vm1, %v2514_v29 }
 0x40a   : >> { %v2599_v42 = vpop.f32.mrb[80].mxu1 }
 0x40b   : >> { %v2589_v18 = vpop.f32.mrb[80].mxu0  ;;  %v2601_v24 = vpop.f32.mrb[81].mxu1 }
 0x40c   : >> { %v2591_v30 = vpop.f32.mrb[81].mxu0  ;;  %v2603_v34 = vpop.f32.mrb[82].mxu1 }
 0x40d   : >> { %v2630_v37 = vpack.c.bf16 %v2603_v34, %v2599_v42  ;;  %v2593_v10 = vpop.f32.mrb[82].mxu0  ;;  %v2605_v33 = vpop.f32.mrb[83].mxu1 }
 0x40e   : >> { %v2628_v40 = vpack.c.bf16 %v2593_v10, %v2589_v18  ;;  %v2631_v44 = vpack.c.bf16 %v2605_v33, %v2601_v24  ;;  %v2595_v46 = vpop.f32.mrb[83].mxu0 }
 0x40f   : >> { %v4463_v1 = vadd.bf16 %v3879_v1, %v2630_v37   ;;  %v2629_v43 = vpack.c.bf16 %v2595_v46, %v2591_v30 }
 0x410   : >> { %v2636_v52 = vadd.bf16 %v3887_v0, %v2628_v40   ;;  %v4467_v6 = vadd.bf16 %v3875_v6, %v2631_v44  }
 0x411   : >> { %v4546_v32 = vmov %v4463_v1  ;;  %v2637_v49 = vadd.bf16 %v3883_v7, %v2629_v43  }
 0x412   : >> { %v4547_v17 = vmov %v4467_v6  ;;  %v2644_v59 = vunpack.c.l.bf16 (%p373_p4), %v2636_v52  ;;  %v2646_v28 = vunpack.c.h.bf16 (%p373_p4), %v2636_v52  ;;  %v2648_v31 = vunpack.c.l.bf16 (%p373_p4), %v4546_v32 }
 0x413   : >> { %v2609_v53 = vpop.f32.mrb[84].mxu1  ;;  %v4558_v7 = vmov %v2637_v49  ;;  %v2645_v12 = vunpack.c.l.bf16 (%p373_p4), %v2637_v49  ;;  %v2647_v35 = vunpack.c.h.bf16 (%p373_p4), %v2637_v49  ;;  %v2649_v39 = vunpack.c.l.bf16 (%p373_p4), %v4547_v17 }
 0x414   : >> { %v2611_v54 = vpop.f32.mrb[85].mxu1  ;;  %v2672_v19 = vmul.f32 (%p373_p4), %v2665_v23, %v2644_v59  ;;  %v2674_v27 = vmul.f32 (%p373_p4), %v2665_v23, %v2646_v28  ;;  %v2676_v36 = vmul.f32 (%p373_p4), %v2665_v23, %v2648_v31 }
 0x415   : >> { %v2613_v60 = vpop.f32.mrb[86].mxu1  ;;  %v2673_v11 = vmul.f32 (%p373_p4), %v2669_v51, %v2645_v12  ;;  %v2675_v38 = vmul.f32 (%p373_p4), %v2669_v51, %v2647_v35  ;;  %v2677_v29 = vmul.f32 (%p373_p4), %v2669_v51, %v2649_v39 }
 0x416   : >> { %v2632_v63 = vpack.c.bf16 %v2613_v60, %v2609_v53  ;;  %v2615_v55 = vpop.f32.mrb[87].mxu1  ;;  %v2700_v24 = vadd.f32 (%p373_p4), %v2693_v21, %v2672_v19  ;;  %v2702_v34 = vadd.f32 (%p373_p4), %v2693_v21, %v2674_v27  ;;  %v2704_v10 = vadd.f32 (%p373_p4), %v2693_v21, %v2676_v36 }
 0x417   : >> { %v2633_v61 = vpack.c.bf16 %v2615_v55, %v2611_v54  ;;  %v2701_v30 = vadd.f32 (%p373_p4), %v2697_v58, %v2673_v11  ;;  %v2703_v37 = vadd.f32 (%p373_p4), %v2697_v58, %v2675_v38  ;;  %v2705_v33 = vadd.f32 (%p373_p4), %v2697_v58, %v2677_v29 }
 0x418   : >> { %v4471_v2 = vadd.bf16 %v3871_v2, %v2632_v63  }
 0x419   : >> { %v4474_v5 = vadd.bf16 %v3867_v5, %v2633_v61   ;;  %v3134_v46 = vpack.c.bf16 (%p373_p4), %v2701_v30, %v2700_v24 }
 0x41a   : >> { %v4548_v62 = vmov %v4471_v2 }
 0x41b   : >> { %v4549_v8 = vmov %v4474_v5  ;;  %v2619_v1 = vpop.f32.mrb[88].mxu1  ;;  %v4555_v2 = vmov %v4548_v62  ;;  %v2654_v7 = vunpack.c.h.bf16 (%p373_p4), %v4548_v62  ;;  %2764 = vst [vmem:[%s3958_s19] sm:$0xff] (%p373_p4), %v3134_v46 }
 0x41c   : >> { %v2621_v41 = vpop.f32.mrb[89].mxu1  ;;  %v4554_v5 = vmov %v4549_v8  ;;  %v2650_v2 = vunpack.c.h.bf16 (%p373_p4), %v4546_v32  ;;  %v2655_v20 = vunpack.c.h.bf16 (%p373_p4), %v4549_v8 }
 0x41d   : >> { %v2623_v0 = vpop.f32.mrb[90].mxu1  ;;  %v2653_v5 = vunpack.c.l.bf16 (%p373_p4), %v4549_v8  ;;  %v2682_v53 = vmul.f32 (%p373_p4), %v2665_v23, %v2654_v7 }
 0x41e   : >> { %v2634_v45 = vpack.c.bf16 %v2623_v0, %v2619_v1  ;;  %v2625_v9 = vpop.f32.mrb[91].mxu1  ;;  %v4557_v1 = vmov %v4546_v32  ;;  %v4559_v0 = vmov %v2636_v52  ;;  %375 = sbr.rel (!%p373_p4) target bundleno = 18 (0x12), region = 106  ;;  %v2678_v42 = vmul.f32 (%p373_p4), %v2665_v23, %v2650_v2 }
 0x41f   : >> { %v2635_v6 = vpack.c.bf16 %v2625_v9, %v2621_v41  ;;  %v3135_v32 = vpack.c.bf16 (%p373_p4), %v2703_v37, %v2702_v34  ;;  %v2681_v52 = vmul.f32 (%p373_p4), %v2669_v51, %v2653_v5  ;;  %v2683_v54 = vmul.f32 (%p373_p4), %v2669_v51, %v2655_v20 }
 0x420   : >> { %v4477_v3 = vadd.bf16 %v3863_v3, %v2634_v45   ;;  %v2706_v40 = vadd.f32 (%p373_p4), %v2693_v21, %v2678_v42 }
 0x421   : >> { %v4480_v4 = vadd.bf16 %v3859_v4, %v2635_v6   ;;  %v4556_v6 = vmov %v4547_v17  ;;  %2765 = vst [vmem:[%s3958_s19 + $0x8] sm:$0xff] (%p373_p4), %v3135_v32  ;;  %v2709_v63 = vadd.f32 (%p373_p4), %v2697_v58, %v2681_v52  ;;  %v2711_v8 = vadd.f32 (%p373_p4), %v2697_v58, %v2683_v54 }
 0x422   : >> { %v4550_v50 = vmov %v4477_v3 }
 0x423   : >> { %v4551_v48 = vmov %v4480_v4  ;;  %v4553_v3 = vmov %v4550_v50  ;;  %v2656_v22 = vunpack.c.l.bf16 (%p373_p4), %v4550_v50  ;;  %v2658_v26 = vunpack.c.h.bf16 (%p373_p4), %v4550_v50 }
 0x424   : >> { %v4552_v4 = vmov %v4551_v48  ;;  %v2651_v3 = vunpack.c.h.bf16 (%p373_p4), %v4547_v17  ;;  %v2657_v25 = vunpack.c.l.bf16 (%p373_p4), %v4551_v48  ;;  %v2659_v16 = vunpack.c.h.bf16 (%p373_p4), %v4551_v48 }
 0x425   : > { %v2652_v4 = vunpack.c.l.bf16 %v4548_v62  ;;  %v3136_v17 = vpack.c.bf16 %v2705_v33, %v2704_v10  ;;  %v2684_v55 = vmul.f32 %v2665_v23, %v2656_v22  ;;  %v2710_v62 = vadd.f32 %v2693_v21, %v2682_v53 }
 0x426   : > { %v2679_v18 = vmul.f32 %v2669_v51, %v2651_v3  ;;  %v2685_v61 = vmul.f32 %v2669_v51, %v2657_v25  ;;  %v2686_v1 = vmul.f32 %v2665_v23, %v2658_v26  ;;  %v2687_v41 = vmul.f32 %v2669_v51, %v2659_v16 }
 0x427   : > { %v2680_v43 = vmul.f32 %v2665_v23, %v2652_v4  ;;  %2766 = vst [vmem:[%s3958_s19 + $0x10] sm:$0xff] %v3136_v17  ;;  %v2712_v45 = vadd.f32 %v2693_v21, %v2684_v55  ;;  %v3139_v6 = vpack.c.bf16 %v2711_v8, %v2710_v62 }
 0x428   : > { %v2707_v44 = vadd.f32 %v2697_v58, %v2679_v18  ;;  %v2713_v9 = vadd.f32 %v2697_v58, %v2685_v61  ;;  %v2714_v50 = vadd.f32 %v2693_v21, %v2686_v1  ;;  %v2715_v48 = vadd.f32 %v2697_v58, %v2687_v41 }
 0x429   : > { %v2708_v60 = vadd.f32 %v2693_v21, %v2680_v43  ;;  %2769 = vst [vmem:[%s3958_s19 + $0x28] sm:$0xff] %v3139_v6 }
 0x42a   : > { %v3137_v49 = vpack.c.bf16 %v2707_v44, %v2706_v40  ;;  %v3140_v56 = vpack.c.bf16 %v2713_v9, %v2712_v45  ;;  %v3141_v59 = vpack.c.bf16 %v2715_v48, %v2714_v50 }
 0x42b   : > { %v3138_v0 = vpack.c.bf16 %v2709_v63, %v2708_v60 }
 0x42c   : > { %2767 = vst [vmem:[%s3958_s19 + $0x18] sm:$0xff] %v3137_v49  ;;  %2770 = vst [vmem:[%s3958_s19 + $0x30] sm:$0xff] %v3140_v56 }
 0x42d   : > { %2768 = vst [vmem:[%s3958_s19 + $0x20] sm:$0xff] %v3138_v0  ;;  %2771 = vst [vmem:[%s3958_s19 + $0x38] sm:$0xff] %v3141_v59 }
 0x42e PF: > { %s19_s30 = sadd.s32 1, %s3855_s30  }
 0x42f   : > { %p16_p5 = scmp.ge.s32.totalorder %s19_s30, 4  }
 0x431   :  { %18 = sbr.rel (!%p16_p5) target bundleno = 1 (0x1), region = 117 }

// kernel: densenet_forward.10
= control target key start
LH: loop header
LB: loop body
LE: loop exit
PB: predicated region body
PF: predicated region fallthrough
CT: control target
= control target key end

     0   :  { %vm581_vm0 = vcmask 261120   ;;  %s1090_s1 = inlined_call_operand.vmem [shape: bf16[512,256], index: 1, kind: input, shape index: {}]   ;;  %s1091_s0 = inlined_call_operand.vmem [shape: bf16[32,512], index: 0, kind: input, shape index: {}]   ;;  %s1092_s2 = inlined_call_operand.vmem [shape: f32[1,256], index: 2, kind: input, shape index: {}]   ;;  %s1093_s3 = inlined_call_operand.vmem [shape: bf16[8,32], index: 3, kind: input, shape index: {}]   ;;  %s1094_s4 = inlined_call_operand.vmem [shape: bf16[8,256], index: 4, kind: output, shape index: {}]  }
   0x1   :  { %v731_v0 = vld [vmem:[%s1090_s1 + $0x4] ss:$8 sps:$4 sm:$0xff]   ;;  %v735_v2 = vld [vmem:[%s1090_s1] ss:$8 sps:$4 sm:$0xff]   ;;  %v737_v4 = vld [vmem:[%s1090_s1 + $0x14] ss:$8 sps:$4 sm:$0xff]  }
   0x2   :  { %v733_v1 = vld [vmem:[%s1090_s1 + $0x104] ss:$8 sps:$4 sm:$0xff]   ;;  %462 = vmatprep.subr.bf16.mxu1 %v731_v0  ;;  %v736_v3 = vld [vmem:[%s1090_s1 + $0x100] ss:$8 sps:$4 sm:$0xff]   ;;  %v739_v5 = vld [vmem:[%s1090_s1 + $0x114] ss:$8 sps:$4 sm:$0xff]  }
   0x3   :  { %515 = vmatprep.subr.bf16.mxu0 %v733_v1  ;;  %463 = vmatpush1.bf16.msra.mxu1 %v735_v2  ;;  %v741_v6 = vld [vmem:[%s1090_s1 + $0x10] ss:$8 sps:$4 sm:$0xff]   ;;  %v743_v8 = vld [vmem:[%s1090_s1 + $0x24] ss:$8 sps:$4 sm:$0xff]   ;;  %v747_v10 = vld [vmem:[%s1090_s1 + $0x20] ss:$8 sps:$4 sm:$0xff]  }
   0x4   :  { %516 = vmatpush1.bf16.msra.mxu0 %v736_v3  ;;  %464 = vmatprep.subr.bf16.mxu1 %v737_v4  ;;  %v742_v7 = vld [vmem:[%s1090_s1 + $0x110] ss:$8 sps:$4 sm:$0xff]   ;;  %v745_v9 = vld [vmem:[%s1090_s1 + $0x124] ss:$8 sps:$4 sm:$0xff]   ;;  %v748_v11 = vld [vmem:[%s1090_s1 + $0x120] ss:$8 sps:$4 sm:$0xff]  }
   0x5   :  { %517 = vmatprep.subr.bf16.mxu0 %v739_v5  ;;  %v749_v12 = vld [vmem:[%s1090_s1 + $0x34] ss:$8 sps:$4 sm:$0xff]   ;;  %v753_v14 = vld [vmem:[%s1090_s1 + $0x30] ss:$8 sps:$4 sm:$0xff]   ;;  %v755_v16 = vld [vmem:[%s1090_s1 + $0x44] ss:$8 sps:$4 sm:$0xff]  }
   0x6   :  { %v751_v13 = vld [vmem:[%s1090_s1 + $0x134] ss:$8 sps:$4 sm:$0xff]   ;;  %v754_v15 = vld [vmem:[%s1090_s1 + $0x130] ss:$8 sps:$4 sm:$0xff]   ;;  %v757_v17 = vld [vmem:[%s1090_s1 + $0x144] ss:$8 sps:$4 sm:$0xff]  }
   0x7   :  { %465 = vmatpush1.bf16.msra.mxu1 %v741_v6  ;;  %v759_v18 = vld [vmem:[%s1090_s1 + $0x40] ss:$8 sps:$4 sm:$0xff]   ;;  %v761_v20 = vld [vmem:[%s1090_s1 + $0x54] ss:$8 sps:$4 sm:$0xff]   ;;  %v765_v22 = vld [vmem:[%s1090_s1 + $0x50] ss:$8 sps:$4 sm:$0xff]  }
   0x8   :  { %518 = vmatpush1.bf16.msra.mxu0 %v742_v7  ;;  %466 = vmatprep.subr.bf16.mxu1 %v743_v8  ;;  %v760_v19 = vld [vmem:[%s1090_s1 + $0x140] ss:$8 sps:$4 sm:$0xff]   ;;  %v763_v21 = vld [vmem:[%s1090_s1 + $0x154] ss:$8 sps:$4 sm:$0xff]   ;;  %v766_v23 = vld [vmem:[%s1090_s1 + $0x150] ss:$8 sps:$4 sm:$0xff]  }
   0x9   :  { %519 = vmatprep.subr.bf16.mxu0 %v745_v9  ;;  %v767_v24 = vld [vmem:[%s1090_s1 + $0x64] ss:$8 sps:$4 sm:$0xff]   ;;  %v771_v26 = vld [vmem:[%s1090_s1 + $0x60] ss:$8 sps:$4 sm:$0xff]   ;;  %v773_v28 = vld [vmem:[%s1090_s1 + $0x74] ss:$8 sps:$4 sm:$0xff]   ;;  %v92_v9 = vlaneseq }
   0xa   :  { %v769_v25 = vld [vmem:[%s1090_s1 + $0x164] ss:$8 sps:$4 sm:$0xff]   ;;  %v772_v27 = vld [vmem:[%s1090_s1 + $0x160] ss:$8 sps:$4 sm:$0xff]   ;;  %v775_v29 = vld [vmem:[%s1090_s1 + $0x174] ss:$8 sps:$4 sm:$0xff]  }
   0xb   :  { %467 = vmatpush1.bf16.msra.mxu1 %v747_v10  ;;  %v777_v30 = vld [vmem:[%s1090_s1 + $0x70] ss:$8 sps:$4 sm:$0xff]   ;;  %v779_v32 = vld [vmem:[%s1090_s1 + $0x84] ss:$8 sps:$4 sm:$0xff]   ;;  %v783_v34 = vld [vmem:[%s1090_s1 + $0x80] ss:$8 sps:$4 sm:$0xff]  }
   0xc   :  { %520 = vmatpush1.bf16.msra.mxu0 %v748_v11  ;;  %468 = vmatprep.subr.bf16.mxu1 %v749_v12  ;;  %v778_v31 = vld [vmem:[%s1090_s1 + $0x170] ss:$8 sps:$4 sm:$0xff]   ;;  %v781_v33 = vld [vmem:[%s1090_s1 + $0x184] ss:$8 sps:$4 sm:$0xff]   ;;  %v784_v35 = vld [vmem:[%s1090_s1 + $0x180] ss:$8 sps:$4 sm:$0xff]  }
   0xd   :  { %521 = vmatprep.subr.bf16.mxu0 %v751_v13  ;;  %v785_v36 = vld [vmem:[%s1090_s1 + $0x94] ss:$8 sps:$4 sm:$0xff]   ;;  %v789_v38 = vld [vmem:[%s1090_s1 + $0x90] ss:$8 sps:$4 sm:$0xff]   ;;  %v791_v40 = vld [vmem:[%s1090_s1 + $0xa4] ss:$8 sps:$4 sm:$0xff]  }
   0xe   :  { %v787_v37 = vld [vmem:[%s1090_s1 + $0x194] ss:$8 sps:$4 sm:$0xff]   ;;  %v790_v39 = vld [vmem:[%s1090_s1 + $0x190] ss:$8 sps:$4 sm:$0xff]   ;;  %v793_v41 = vld [vmem:[%s1090_s1 + $0x1a4] ss:$8 sps:$4 sm:$0xff]  }
   0xf   :  { %469 = vmatpush1.bf16.msra.mxu1 %v753_v14  ;;  %v795_v42 = vld [vmem:[%s1090_s1 + $0xa0] ss:$8 sps:$4 sm:$0xff]   ;;  %v797_v44 = vld [vmem:[%s1090_s1 + $0xb4] ss:$8 sps:$4 sm:$0xff]   ;;  %v801_v46 = vld [vmem:[%s1090_s1 + $0xb0] ss:$8 sps:$4 sm:$0xff]  }
  0x10   :  { %522 = vmatpush1.bf16.msra.mxu0 %v754_v15  ;;  %470 = vmatprep.subr.bf16.mxu1 %v755_v16  ;;  %v796_v43 = vld [vmem:[%s1090_s1 + $0x1a0] ss:$8 sps:$4 sm:$0xff]   ;;  %v799_v45 = vld [vmem:[%s1090_s1 + $0x1b4] ss:$8 sps:$4 sm:$0xff]   ;;  %v802_v47 = vld [vmem:[%s1090_s1 + $0x1b0] ss:$8 sps:$4 sm:$0xff]  }
  0x11   :  { %523 = vmatprep.subr.bf16.mxu0 %v757_v17  ;;  %v803_v48 = vld [vmem:[%s1090_s1 + $0xc4] ss:$8 sps:$4 sm:$0xff]   ;;  %v807_v52 = vld [vmem:[%s1090_s1 + $0xc0] ss:$8 sps:$4 sm:$0xff]   ;;  %v809_v54 = vld [vmem:[%s1090_s1 + $0xd4] ss:$8 sps:$4 sm:$0xff]  }
  0x12   :  { %v829_v49 = vld [vmem:[%s1091_s0 + $0x4] ss:$16 sps:$4 sm:$0xff]   ;;  %v832_v51 = vld [vmem:[%s1091_s0 + $0xc] ss:$16 sps:$4 sm:$0xff]   ;;  %v808_v53 = vld [vmem:[%s1090_s1 + $0x1c0] ss:$8 sps:$4 sm:$0xff]  }
  0x13   :  { %471 = vmatpush1.bf16.msra.mxu1 %v759_v18  ;;  %v805_v50 = vld [vmem:[%s1090_s1 + $0x1c4] ss:$8 sps:$4 sm:$0xff]   ;;  %494 = vmatprep.mubr.bf16.mxu1 %v829_v49  ;;  %v811_v55 = vld [vmem:[%s1090_s1 + $0x1d4] ss:$8 sps:$4 sm:$0xff]   ;;  %v813_v56 = vld [vmem:[%s1090_s1 + $0xd0] ss:$8 sps:$4 sm:$0xff]  }
  0x14   :  { %524 = vmatpush1.bf16.msra.mxu0 %v760_v19  ;;  %472 = vmatprep.subr.bf16.mxu1 %v761_v20  ;;  %v814_v57 = vld [vmem:[%s1090_s1 + $0x1d0] ss:$8 sps:$4 sm:$0xff]   ;;  %v815_v58 = vld [vmem:[%s1090_s1 + $0xe4] ss:$8 sps:$4 sm:$0xff]   ;;  %v819_v60 = vld [vmem:[%s1090_s1 + $0xe0] ss:$8 sps:$4 sm:$0xff]  }
  0x15   :  { %525 = vmatprep.subr.bf16.mxu0 %v763_v21  ;;  %547 = vmatprep.mubr.bf16.mxu0 %v832_v51  ;;  %v817_v59 = vld [vmem:[%s1090_s1 + $0x1e4] ss:$8 sps:$4 sm:$0xff]   ;;  %v820_v61 = vld [vmem:[%s1090_s1 + $0x1e0] ss:$8 sps:$4 sm:$0xff]   ;;  %v821_v62 = vld [vmem:[%s1090_s1 + $0xf4] ss:$8 sps:$4 sm:$0xff]  }
  0x16   :  { %v823_v63 = vld [vmem:[%s1090_s1 + $0x1f4] ss:$8 sps:$4 sm:$0xff]   ;;  %v825_v0 = vld [vmem:[%s1090_s1 + $0xf0] ss:$8 sps:$4 sm:$0xff]   ;;  %v839_v8 = vmov 0   ;;  %v93_v10 = vshrl.u32 %v92_v9, 7 }
  0x17   :  { %473 = vmatpush1.bf16.msra.mxu1 %v765_v22  ;;  %v826_v1 = vld [vmem:[%s1090_s1 + $0x1f0] ss:$8 sps:$4 sm:$0xff]   ;;  %v833_v4 = vld [vmem:[%s1091_s0 + $0x24] ss:$16 sps:$4 sm:$0xff]   ;;  %v835_v5 = vld [vmem:[%s1091_s0 + $0x2c] ss:$16 sps:$4 sm:$0xff]  }
  0x18   :  { %526 = vmatpush1.bf16.msra.mxu0 %v766_v23  ;;  %474 = vmatprep.subr.bf16.mxu1 %v767_v24  ;;  %v827_v2 = vld [vmem:[%s1091_s0] ss:$16 sps:$4 sm:$0xff]   ;;  %v830_v3 = vld [vmem:[%s1091_s0 + $0x8] ss:$16 sps:$4 sm:$0xff]   ;;  %v94_v11 = vsub.s32 0, %v93_v10  ;;  %v98_v13 = vsub.s32 1, %v93_v10 }
  0x19   :  { %527 = vmatprep.subr.bf16.mxu0 %v769_v25  ;;  %v837_v6 = vld [vmem:[%s1091_s0 + $0x20] ss:$16 sps:$4 sm:$0xff]   ;;  %v838_v7 = vld [vmem:[%s1091_s0 + $0x28] ss:$16 sps:$4 sm:$0xff]  }
  0x1a   :  { %v90_v12 = vld [vmem:[%s1092_s2] sm:$0x3] }
  0x1b   :  { %475 = vmatpush1.bf16.msra.mxu1 %v771_v26  ;;  %v95_v14 = vrot.slane %v90_v12, %v94_v11  ;;  %v99_v15 = vrot.slane %v90_v12, %v98_v13 }
  0x1c   :  { %528 = vmatpush1.bf16.msra.mxu0 %v772_v27  ;;  %476 = vmatprep.subr.bf16.mxu1 %v773_v28 }
  0x1d   :  { %529 = vmatprep.subr.bf16.mxu0 %v775_v29 }
  0x1f   :  { %477 = vmatpush1.bf16.msra.mxu1 %v777_v30 }
  0x20   :  { %530 = vmatpush1.bf16.msra.mxu0 %v778_v31  ;;  %478 = vmatprep.subr.bf16.mxu1 %v779_v32 }
  0x21   :  { %531 = vmatprep.subr.bf16.mxu0 %v781_v33 }
  0x23   :  { %479 = vmatpush1.bf16.msra.mxu1 %v783_v34 }
  0x24   :  { %532 = vmatpush1.bf16.msra.mxu0 %v784_v35  ;;  %480 = vmatprep.subr.bf16.mxu1 %v785_v36 }
  0x25   :  { %533 = vmatprep.subr.bf16.mxu0 %v787_v37 }
  0x27   :  { %481 = vmatpush1.bf16.msra.mxu1 %v789_v38 }
  0x28   :  { %534 = vmatpush1.bf16.msra.mxu0 %v790_v39  ;;  %482 = vmatprep.subr.bf16.mxu1 %v791_v40 }
  0x29   :  { %535 = vmatprep.subr.bf16.mxu0 %v793_v41 }
  0x2b   :  { %483 = vmatpush1.bf16.msra.mxu1 %v795_v42 }
  0x2c   :  { %536 = vmatpush1.bf16.msra.mxu0 %v796_v43  ;;  %484 = vmatprep.subr.bf16.mxu1 %v797_v44 }
  0x2d   :  { %537 = vmatprep.subr.bf16.mxu0 %v799_v45 }
  0x2f   :  { %485 = vmatpush1.bf16.msra.mxu1 %v801_v46 }
  0x30   :  { %538 = vmatpush1.bf16.msra.mxu0 %v802_v47  ;;  %486 = vmatprep.subr.bf16.mxu1 %v803_v48 }
  0x31   :  { %539 = vmatprep.subr.bf16.mxu0 %v805_v50 }
  0x33   :  { %487 = vmatpush1.bf16.msra.mxu1 %v807_v52 }
  0x34   :  { %540 = vmatpush1.bf16.msra.mxu0 %v808_v53  ;;  %488 = vmatprep.subr.bf16.mxu1 %v809_v54 }
  0x35   :  { %541 = vmatprep.subr.bf16.mxu0 %v811_v55 }
  0x37   :  { %489 = vmatpush1.bf16.msra.mxu1 %v813_v56 }
  0x38   :  { %542 = vmatpush1.bf16.msra.mxu0 %v814_v57  ;;  %490 = vmatprep.subr.bf16.mxu1 %v815_v58 }
  0x39   :  { %543 = vmatprep.subr.bf16.mxu0 %v817_v59 }
  0x3b   :  { %491 = vmatpush1.bf16.msra.mxu1 %v819_v60  ;;  %v580_v60 = vld [vmem:[%s1093_s3] sm:$0xf] }
  0x3c   :  { %544 = vmatpush1.bf16.msra.mxu0 %v820_v61  ;;  %492 = vmatprep.subr.bf16.mxu1 %v821_v62 }
  0x3d   :  { %545 = vmatprep.subr.bf16.mxu0 %v823_v63 }
  0x3f   :  { %493 = vmatpush1.bf16.msra.mxu1 %v825_v0 }
  0x40   :  { %546 = vmatpush1.bf16.msra.mxu0 %v826_v1 }
  0x42   :  { %495 = vmatmul.mubr.bf16.vlgmr.msra.gmra.mrb[0].mxu1 %v827_v2 }
  0x43   :  { %548 = vmatmul.mubr.bf16.vlgmr.msra.gmra.mrb[0].mxu0 %v830_v3  ;;  %504 = vmatprep.mubr.bf16.mxu1 %v833_v4 }
  0x44   :  { %557 = vmatprep.mubr.bf16.mxu0 %v835_v5 }
  0x4a   :  { %505 = vmatmul.mubr.bf16.gmra.mrb[4].mxu1 %v837_v6 }
  0x4b   :  { %558 = vmatmul.mubr.bf16.gmra.mrb[4].mxu0 %v838_v7  ;;  %617 = vmatprep.mubr.bf16.mxu1 %v839_v8 }
 0x115   :  { %v496_v16 = vpop.f32.mrb[0].mxu1 }
 0x116   :  { %v549_v17 = vpop.f32.mrb[0].mxu0  ;;  %v497_v18 = vadd.f32 %v496_v16, %v95_v14  ;;  %v498_v19 = vpop.f32.mrb[1].mxu1 }
 0x117   :  { %v551_v20 = vpop.f32.mrb[1].mxu0  ;;  %v499_v21 = vadd.f32 %v498_v19, %v99_v15  ;;  %v500_v22 = vpop.f32.mrb[2].mxu1 }
 0x118   :  { %v553_v23 = vpop.f32.mrb[2].mxu0  ;;  %v550_v24 = vadd.f32 %v549_v17, %v497_v18  ;;  %v501_v25 = vadd.f32 %v500_v22, %v95_v14  ;;  %v502_v26 = vpop.f32.mrb[3].mxu1 }
 0x119   :  { %v555_v27 = vpop.f32.mrb[3].mxu0  ;;  %v552_v28 = vadd.f32 %v551_v20, %v499_v21  ;;  %v503_v29 = vadd.f32 %v502_v26, %v99_v15 }
 0x11a   :  { %v554_v30 = vadd.f32 %v553_v23, %v501_v25  ;;  %v568_v32 = vmax.f32 %v550_v24, 0.0 }
 0x11b   :  { %v556_v31 = vadd.f32 %v555_v27, %v503_v29  ;;  %v569_v34 = vmax.f32 %v552_v28, 0.0 }
 0x11c   :  { %v570_v33 = vmax.f32 %v554_v30, 0.0 }
 0x11d   :  { %v571_v35 = vmax.f32 %v556_v31, 0.0  ;;  %v506_v36 = vpop.f32.mrb[4].mxu1 }
 0x11e   :  { %v559_v37 = vpop.f32.mrb[4].mxu0  ;;  %v576_v38 = vpack.c.bf16 %v570_v33, %v568_v32  ;;  %v507_v39 = vadd.f32 %v506_v36, %v95_v14  ;;  %v508_v40 = vpop.f32.mrb[5].mxu1 }
 0x11f   :  { %v561_v41 = vpop.f32.mrb[5].mxu0  ;;  %v577_v42 = vpack.c.bf16 %v571_v35, %v569_v34  ;;  %v509_v43 = vadd.f32 %v508_v40, %v99_v15  ;;  %v510_v44 = vpop.f32.mrb[6].mxu1 }
 0x120   :  { %v563_v45 = vpop.f32.mrb[6].mxu0  ;;  %v560_v46 = vadd.f32 %v559_v37, %v507_v39  ;;  %v511_v47 = vadd.f32 %v510_v44, %v95_v14  ;;  %v512_v48 = vpop.f32.mrb[7].mxu1 }
 0x121   :  { %v565_v49 = vpop.f32.mrb[7].mxu0  ;;  %v562_v50 = vadd.f32 %v561_v41, %v509_v43  ;;  %v513_v51 = vadd.f32 %v512_v48, %v99_v15  ;;  %585 = vmatprep.subr.bf16.mxu1 %v577_v42 }
 0x122   :  { %v564_v52 = vadd.f32 %v563_v45, %v511_v47  ;;  %586 = vmatpush1.bf16.msra.mxu1 %v576_v38  ;;  %v572_v54 = vmax.f32 %v560_v46, 0.0 }
 0x123   :  { %v566_v53 = vadd.f32 %v565_v49, %v513_v51  ;;  %v573_v56 = vmax.f32 %v562_v50, 0.0 }
 0x124   :  { %v574_v55 = vmax.f32 %v564_v52, 0.0 }
 0x125   :  { %v575_v57 = vmax.f32 %v566_v53, 0.0 }
 0x126   :  { %v578_v58 = vpack.c.bf16 %v574_v55, %v572_v54 }
 0x127   :  { %v579_v59 = vpack.c.bf16 %v575_v57, %v573_v56 }
 0x129   :  { %587 = vmatprep.subr.bf16.mxu1 %v579_v59 }
 0x12a   :  { %588 = vmatpush1.bf16.msra.mxu1 %v578_v58 }
 0x12d   :  { %711 = vmatmul.mubr.msk.bf16.vlgmr.msra.gmra.mrb[8].mxu1 %vm581_vm0, %v580_v60 }
 0x200   :  { %v619_v61 = vpop.f32.mrb[8].mxu1 }
 0x201   :  { %v621_v62 = vpop.f32.mrb[9].mxu1 }
 0x202   :  { %v713_v63 = vpack.c.bf16 %v621_v62, %v619_v61  ;;  %v623_v0 = vpop.f32.mrb[10].mxu1 }
 0x203   :  { %v624_v1 = vpop.f32.mrb[11].mxu1 }
 0x204   :  { %634 = vst [vmem:[%s1094_s4] sm:$0xff] %v713_v63 }

// kernel: densenet_forward.9
= control target key start
LH: loop header
LB: loop body
LE: loop exit
PB: predicated region body
PF: predicated region fallthrough
CT: control target
= control target key end

     0   :  { %s3000_s30 = smov 0   ;;  %s3287_s0 = inlined_call_operand.vmem [shape: bf16[32,128], index: 0, kind: input, shape index: {}]   ;;  %s3288_s1 = inlined_call_operand.vmem [shape: bf16[12,512,128], index: 1, kind: input, shape index: {}]   ;;  %s3289_s2 = inlined_call_operand.vmem [shape: f32[12,1,128], index: 2, kind: input, shape index: {}]   ;;  %s3290_s3 = inlined_call_operand.vmem [shape: bf16[12,1152,32], index: 3, kind: input, shape index: {}]   ;;  %s3291_s4 = inlined_call_operand.vmem [shape: f32[12,1,32], index: 4, kind: input, shape index: {}]   ;;  %s3292_s5 = inlined_call_operand.vmem [shape: bf16[12,32,512], index: 5, kind: input, shape index: {}]   ;;  %s3293_s6 = inlined_call_operand.vmem [shape: bf16[9,16,16], index: 6, kind: input, shape index: {}]   ;;  %s3294_s7 = inlined_call_operand.vmem [shape: f32[1,512], index: 7, kind: input, shape index: {}]   ;;  %s3295_s8 = inlined_call_operand.vmem [shape: f32[1,512], index: 8, kind: input, shape index: {}]   ;;  %s3296_s9 = inlined_call_operand.vmem [shape: bf16[32,512], index: 9, kind: output, shape index: {}]  }
   0x1 LB: > { %s2309_s10 = sadd.s32 4294967295, %s2925_s30   ;;  %p2313_p0 = scmp.ge.s32.totalorder %s2925_s30, 1  ;;  %s2925_s30 = sphi %s3000_s30, %s19_s30  }
   0x2   : > { %p288_p1 = scmp.lt.s32.totalorder %s2925_s30, 3 }
   0x4   : > { %p289_p2 = pnand %p2313_p0, %p288_p1 }
   0x5   : > { %s2314_s11 = sshll.u32 (!%p289_p2), %s2309_s10, 1  ;;  %v3016_v1 = vmov (!%p289_p2), 0   ;;  %v3018_v2 = vmov (!%p289_p2), 0   ;;  %v3020_v3 = vmov (!%p289_p2), 0   ;;  %s3024_s20 = smov (!%p289_p2), 0  }
   0x6   : > { %292 = sbr.rel (%p289_p2) target bundleno = 1019 (0x3fb), region = 56  ;;  %p326_p3 = scmp.lt.s32.totalorder (!%p289_p2), %s2314_s11, 3 }
   0xd   : > { %s3302_s11 = smov (!%p326_p3, %s2314_s11), 3 }
   0xe   : > { %s2315_s12 = sshll.u32 %s3302_s11, 2  ;;  %s2481_s13 = sshll.u32 %s3302_s11, 4 }
   0xf   : > { %s329_s16 = scalar_lea.vmem %s3287_s0, %s2315_s12  ;;  %s3014_s19 = scalar_lea.vmem %s3296_s9, %s2481_s13 }
  0x10   : > { %v2773_v0 = vld [vmem:[%s329_s16] sm:$0xff]  }
  0x11 LB: >> { %s2482_s21 = sshll.u32 %s2945_s20, 8  ;;  %656 = vmatprep.mubr.bf16.mxu0 %v2937_v3  ;;  %697 = vmatprep.mubr.bf16.mxu1 %v2929_v1  ;;  %s2483_s25 = smul.u32 576, %s2945_s20  ;;  %v2947_v36 = vmov 0.0   ;;  %vm2948_vm0 = vmmov 0   ;;  %v2806_v57 = vld [vmem:[%s3293_s6] sm:$0xff]   ;;  %v2807_v58 = vld [vmem:[%s3293_s6 + $0x8] sm:$0xff]   ;;  %s2945_s20 = sphi %s3024_s20, %s352_s20   ;;  %v2941_v0 = vphi %v2773_v0, %v3300_v0   ;;  %v2937_v3 = vphi %v3020_v3, %v3299_v3   ;;  %v2933_v2 = vphi %v3018_v2, %v3298_v2   ;;  %v2929_v1 = vphi %v3016_v1, %v3297_v1  }
  0x12   : >> { %s3047_s24 = scalar_lea.vmem %s3288_s1, %s2482_s21  ;;  %s424_s11 = scalar_lea.vmem %s3289_s2, %s2945_s20  ;;  %vm716_vm1 = vcmask 130048   ;;  %v2808_v59 = vld [vmem:[%s3293_s6 + $0x10] sm:$0xff]   ;;  %v2809_v60 = vld [vmem:[%s3293_s6 + $0x18] sm:$0xff]   ;;  %v2810_v61 = vld [vmem:[%s3293_s6 + $0x20] sm:$0xff]   ;;  %vm2032_vm2 = vcmask 261120  }
  0x13   : >> { %v2774_v4 = vld [vmem:[%s3047_s24 + $0x40] sm:$0xff]   ;;  %v2778_v8 = vld [vmem:[%s3047_s24 + $0x48] sm:$0xff]   ;;  %v2782_v12 = vld [vmem:[%s3047_s24 + $0x50] sm:$0xff]   ;;  %s3085_s28 = scalar_lea.vmem %s3290_s3, %s2483_s25  ;;  %s2484_s13 = sshll.u32 %s2945_s20, 6 }
  0x14   : >> { %v2775_v5 = vld [vmem:[%s3047_s24 + $0xc0] sm:$0xff]   ;;  %2489 = vmatprep.subr.bf16.mxu0 %v2774_v4  ;;  %v2779_v9 = vld [vmem:[%s3047_s24 + $0xc8] sm:$0xff]   ;;  %v2783_v13 = vld [vmem:[%s3047_s24 + $0xd0] sm:$0xff]   ;;  %s3245_s16 = scalar_lea.vmem %s3292_s5, %s2484_s13  ;;  %s1333_s18 = scalar_lea.vmem %s3291_s4, %s2945_s20 }
  0x15   : >> { %v2776_v6 = vld [vmem:[%s3047_s24] sm:$0xff]   ;;  %2511 = vmatprep.subr.bf16.mxu1 %v2775_v5  ;;  %v2780_v10 = vld [vmem:[%s3047_s24 + $0x8] sm:$0xff]   ;;  %v2784_v14 = vld [vmem:[%s3047_s24 + $0x10] sm:$0xff]   ;;  %s352_s20 = sadd.s32 1, %s2945_s20  }
  0x16   : >> { %v2777_v7 = vld [vmem:[%s3047_s24 + $0x80] sm:$0xff]   ;;  %2490 = vmatpush3.bf16.msra.mxu0 %v2776_v6  ;;  %v2781_v11 = vld [vmem:[%s3047_s24 + $0x88] sm:$0xff]   ;;  %v2785_v15 = vld [vmem:[%s3047_s24 + $0x90] sm:$0xff]   ;;  %p349_p4 = scmp.ge.s32.totalorder %s352_s20, 12  }
  0x17   : >> { %2512 = vmatpush3.bf16.msra.mxu1 %v2777_v7  ;;  %2491 = vmatprep.subr.bf16.mxu0 %v2778_v8  ;;  %v2786_v16 = vld [vmem:[%s3047_s24 + $0x58] sm:$0xff]   ;;  %v2790_v20 = vld [vmem:[%s3047_s24 + $0x60] sm:$0xff]   ;;  %v2794_v24 = vld [vmem:[%s3047_s24 + $0x68] sm:$0xff]  }
  0x18   : >> { %2513 = vmatprep.subr.bf16.mxu1 %v2779_v9  ;;  %v2787_v17 = vld [vmem:[%s3047_s24 + $0xd8] sm:$0xff]   ;;  %v2791_v21 = vld [vmem:[%s3047_s24 + $0xe0] sm:$0xff]   ;;  %v2795_v25 = vld [vmem:[%s3047_s24 + $0xe8] sm:$0xff]  }
  0x19   : >> { %v2788_v18 = vld [vmem:[%s3047_s24 + $0x18] sm:$0xff]   ;;  %v2792_v22 = vld [vmem:[%s3047_s24 + $0x20] sm:$0xff]   ;;  %v2796_v26 = vld [vmem:[%s3047_s24 + $0x28] sm:$0xff]  }
  0x1a   : >> { %2492 = vmatpush3.bf16.msra.mxu0 %v2780_v10  ;;  %v2789_v19 = vld [vmem:[%s3047_s24 + $0x98] sm:$0xff]   ;;  %v2793_v23 = vld [vmem:[%s3047_s24 + $0xa0] sm:$0xff]   ;;  %v2797_v27 = vld [vmem:[%s3047_s24 + $0xa8] sm:$0xff]  }
  0x1b   : >> { %2514 = vmatpush3.bf16.msra.mxu1 %v2781_v11  ;;  %2493 = vmatprep.subr.bf16.mxu0 %v2782_v12  ;;  %v2798_v28 = vld [vmem:[%s3047_s24 + $0x70] sm:$0xff]   ;;  %v2802_v32 = vld [vmem:[%s3047_s24 + $0x78] sm:$0xff]   ;;  %v2322_v39 = vld [vmem:[%s424_s11] ss:$0 sm:$0xff] }
  0x1c   : >> { %2515 = vmatprep.subr.bf16.mxu1 %v2783_v13  ;;  %v2799_v29 = vld [vmem:[%s3047_s24 + $0xf0] sm:$0xff]   ;;  %v2803_v33 = vld [vmem:[%s3047_s24 + $0xf8] sm:$0xff]   ;;  %v2811_v62 = vld [vmem:[%s3293_s6 + $0x28] sm:$0xff]  }
  0x1d   : >> { %v2800_v30 = vld [vmem:[%s3047_s24 + $0x30] sm:$0xff]   ;;  %v2804_v34 = vld [vmem:[%s3047_s24 + $0x38] sm:$0xff]   ;;  %v2815_v63 = vld [vmem:[%s3085_s28 + $0x40] sm:$0xff]  }
  0x1e   : >> { %2494 = vmatpush3.bf16.msra.mxu0 %v2784_v14  ;;  %v2801_v31 = vld [vmem:[%s3047_s24 + $0xb0] sm:$0xff]   ;;  %v2805_v35 = vld [vmem:[%s3047_s24 + $0xb8] sm:$0xff]   ;;  %v2816_v6 = vld [vmem:[%s3085_s28] sm:$0xff]  }
  0x1f   : >> { %2516 = vmatpush3.bf16.msra.mxu1 %v2785_v15  ;;  %2495 = vmatprep.subr.bf16.mxu0 %v2786_v16  ;;  %v2812_v4 = vld [vmem:[%s3293_s6 + $0x30] sm:$0xff]   ;;  %v2813_v5 = vld [vmem:[%s3293_s6 + $0x38] sm:$0xff]   ;;  %v2820_v7 = vld [vmem:[%s3085_s28 + $0xc0] sm:$0xff]  }
  0x20   : >> { %2517 = vmatprep.subr.bf16.mxu1 %v2787_v17  ;;  %v2817_v8 = vld [vmem:[%s3085_s28 + $0x48] sm:$0xff]   ;;  %v2819_v10 = vld [vmem:[%s3085_s28 + $0x50] sm:$0xff]   ;;  %v2814_v11 = vld [vmem:[%s3293_s6 + $0x40] sm:$0xff]  }
  0x21   : >> { %v2818_v9 = vld [vmem:[%s3085_s28 + $0x8] sm:$0xff]   ;;  %v2822_v12 = vld [vmem:[%s3085_s28 + $0x80] sm:$0xff]   ;;  %v2821_v13 = vld [vmem:[%s3085_s28 + $0x10] sm:$0xff]  }
  0x22   : >> { %2496 = vmatpush3.bf16.msra.mxu0 %v2788_v18  ;;  %v2824_v14 = vld [vmem:[%s3085_s28 + $0xc8] sm:$0xff]   ;;  %v2823_v15 = vld [vmem:[%s3085_s28 + $0x58] sm:$0xff]   ;;  %v2828_v18 = vld [vmem:[%s3085_s28 + $0xd0] sm:$0xff]  }
  0x23   : >> { %2518 = vmatpush3.bf16.msra.mxu1 %v2789_v19  ;;  %2497 = vmatprep.subr.bf16.mxu0 %v2790_v20  ;;  %v2826_v16 = vld [vmem:[%s3085_s28 + $0x88] sm:$0xff]   ;;  %v2825_v17 = vld [vmem:[%s3085_s28 + $0x18] sm:$0xff]   ;;  %v2827_v19 = vld [vmem:[%s3085_s28 + $0x60] sm:$0xff]  }
  0x24   : >> { %2519 = vmatprep.subr.bf16.mxu1 %v2791_v21  ;;  %v2830_v20 = vld [vmem:[%s3085_s28 + $0x90] sm:$0xff]   ;;  %v2829_v21 = vld [vmem:[%s3085_s28 + $0x20] sm:$0xff]  }
  0x26   : >> { %2498 = vmatpush3.bf16.msra.mxu0 %v2792_v22  ;;  %v2832_v22 = vld [vmem:[%s3085_s28 + $0xd8] sm:$0xff]  }
  0x27   : >> { %2520 = vmatpush3.bf16.msra.mxu1 %v2793_v23  ;;  %2499 = vmatprep.subr.bf16.mxu0 %v2794_v24  ;;  %v2831_v23 = vld [vmem:[%s3085_s28 + $0x68] sm:$0xff]   ;;  %v2834_v24 = vld [vmem:[%s3085_s28 + $0x98] sm:$0xff]  }
  0x28   : >> { %2521 = vmatprep.subr.bf16.mxu1 %v2795_v25  ;;  %v2833_v25 = vld [vmem:[%s3085_s28 + $0x28] sm:$0xff]  }
  0x2a   : >> { %2500 = vmatpush3.bf16.msra.mxu0 %v2796_v26  ;;  %v2836_v26 = vld [vmem:[%s3085_s28 + $0xe0] sm:$0xff]  }
  0x2b   : >> { %2522 = vmatpush3.bf16.msra.mxu1 %v2797_v27  ;;  %2501 = vmatprep.subr.bf16.mxu0 %v2798_v28  ;;  %v2835_v27 = vld [vmem:[%s3085_s28 + $0x70] sm:$0xff]   ;;  %v2838_v28 = vld [vmem:[%s3085_s28 + $0xa0] sm:$0xff]  }
  0x2c   : >> { %2523 = vmatprep.subr.bf16.mxu1 %v2799_v29  ;;  %v2837_v29 = vld [vmem:[%s3085_s28 + $0x30] sm:$0xff]  }
  0x2e   : >> { %2502 = vmatpush3.bf16.msra.mxu0 %v2800_v30  ;;  %v2839_v30 = vld [vmem:[%s3085_s28 + $0x78] sm:$0xff]  }
  0x2f   : >> { %2524 = vmatpush3.bf16.msra.mxu1 %v2801_v31  ;;  %2503 = vmatprep.subr.bf16.mxu0 %v2802_v32  ;;  %v2840_v31 = vld [vmem:[%s3085_s28 + $0xe8] sm:$0xff]   ;;  %v2841_v32 = vld [vmem:[%s3085_s28 + $0x38] sm:$0xff]  }
  0x30   : >> { %2525 = vmatprep.subr.bf16.mxu1 %v2803_v33  ;;  %v2842_v33 = vld [vmem:[%s3085_s28 + $0xa8] sm:$0xff]  }
  0x32   : >> { %2504 = vmatpush3.bf16.msra.mxu0 %v2804_v34  ;;  %v2843_v34 = vld [vmem:[%s3085_s28 + $0xf0] sm:$0xff]  }
  0x33   : >> { %2526 = vmatpush3.bf16.msra.mxu1 %v2805_v35  ;;  %2648 = vmatprep.subr.bf16.mxu0 %v2947_v36  ;;  %v2844_v35 = vld [vmem:[%s3085_s28 + $0x140] sm:$0xff]  }
  0x34   : >> { %2654 = vmatprep.subr.bf16.mxu1 %v2947_v36 }
  0x35   : >> { %657 = vmatmul.mubr.bf16.vlgmr.msra.gmra.mrb[0].mxu0 %v2941_v0 }
  0x36   : >> { %698 = vmatmul.mubr.bf16.vlgmr.msra.gmra.mrb[0].mxu1 %v2933_v2  ;;  %2650 = vmatprep.mubr.msk.bf16.mxu0 %vm2948_vm0, %v2947_v36 }
  0x37   : >> { %2656 = vmatprep.mubr.msk.bf16.mxu1 %vm2948_vm0, %v2947_v36 }
 0x108   : >> { %v2505_v37 = vpop.f32.mrb[0].mxu0 }
 0x109   : >> { %v2527_v38 = vpop.f32.mrb[0].mxu1  ;;  %v2506_v40 = vpop.f32.mrb[1].mxu0 }
 0x10a   : >> { %v2507_v41 = vadd.f32 %v2506_v40, %v2505_v37  ;;  %v2528_v42 = vpop.f32.mrb[1].mxu1  ;;  %v2508_v43 = vpop.f32.mrb[2].mxu0  ;;  %v2845_v37 = vld [vmem:[%s3085_s28 + $0xb0] sm:$0xff]   ;;  %v2852_v40 = vld [vmem:[%s3085_s28 + $0x1c0] sm:$0xff]  }
 0x10b   : >> { %v2529_v44 = vadd.f32 %v2528_v42, %v2527_v38  ;;  %v2530_v45 = vpop.f32.mrb[2].mxu1  ;;  %v2509_v46 = vpop.f32.mrb[3].mxu0  ;;  %v2847_v38 = vld [vmem:[%s3085_s28 + $0xf8] sm:$0xff]  }
 0x10c   : >> { %v659_v47 = vadd.f32 %v2507_v41, %v2322_v39  ;;  %v2510_v48 = vadd.f32 %v2509_v46, %v2508_v43  ;;  %v2531_v49 = vpop.f32.mrb[3].mxu1 }
 0x10d   : >> { %v2532_v50 = vadd.f32 %v2531_v49, %v2530_v45 }
 0x10e   : >> { %v700_v51 = vadd.f32 %v2529_v44, %v659_v47  ;;  %v662_v52 = vadd.f32 %v2510_v48, %v2322_v39  ;;  %v2849_v39 = vld [vmem:[%s3085_s28 + $0xb8] sm:$0xff]  }
 0x110   : >> { %v703_v53 = vadd.f32 %v2532_v50, %v662_v52  ;;  %v706_v54 = vmax.f32 %v700_v51, 0.0  ;;  %v2846_v51 = vld [vmem:[%s3085_s28 + $0x100] sm:$0xff]   ;;  %v2848_v52 = vld [vmem:[%s3085_s28 + $0x148] sm:$0xff]  }
 0x112   : >> { %v707_v55 = vmax.f32 %v703_v53, 0.0  ;;  %v2850_v53 = vld [vmem:[%s3085_s28 + $0x108] sm:$0xff]  }
 0x114   : >> { %v708_v56 = vpack.c.bf16 %v707_v55, %v706_v54 }
 0x116   : >> { %2649 = vmatpush3.bf16.msra.mxu0 %v708_v56  ;;  %2655 = vmatpush3.bf16.msra.mxu1 %v708_v56 }
 0x117   : >> { %2660 = vmatprep.subr.bf16.mxu0 %v2947_v36  ;;  %2666 = vmatprep.subr.bf16.mxu1 %v2947_v36 }
 0x119   : >> { %2651 = vmatmul.mubr.msk.bf16.vlgmr.msra.gmra.mrb[4].mxu0 %vm716_vm1, %v2806_v57  ;;  %2657 = vmatmul.mubr.msk.bf16.vlgmr.msra.gmra.mrb[4].mxu1 %vm716_vm1, %v2807_v58 }
 0x11a   : >> { %2661 = vmatpush3.bf16.msra.mxu0 %v708_v56  ;;  %2667 = vmatpush3.bf16.msra.mxu1 %v708_v56 }
 0x11b   : >> { %2662 = vmatprep.mubr.msk.bf16.mxu0 %vm2948_vm0, %v2947_v36  ;;  %2668 = vmatprep.mubr.msk.bf16.mxu1 %vm2948_vm0, %v2947_v36 }
 0x11c   : >> { %2672 = vmatprep.subr.bf16.mxu0 %v2947_v36  ;;  %2678 = vmatprep.subr.bf16.mxu1 %v2947_v36 }
 0x121   : >> { %2663 = vmatmul.mubr.msk.bf16.vlgmr.msra.gmra.mrb[8].mxu0 %vm716_vm1, %v2808_v59  ;;  %2669 = vmatmul.mubr.msk.bf16.vlgmr.msra.gmra.mrb[8].mxu1 %vm716_vm1, %v2809_v60 }
 0x122   : >> { %2673 = vmatpush3.bf16.msra.mxu0 %v708_v56  ;;  %2679 = vmatpush3.bf16.msra.mxu1 %v708_v56 }
 0x123   : >> { %2674 = vmatprep.mubr.msk.bf16.mxu0 %vm2948_vm0, %v2947_v36  ;;  %2680 = vmatprep.mubr.msk.bf16.mxu1 %vm2948_vm0, %v2947_v36 }
 0x124   : >> { %2684 = vmatprep.subr.bf16.mxu0 %v2947_v36  ;;  %2690 = vmatprep.subr.bf16.mxu1 %v2947_v36 }
 0x129   : >> { %2675 = vmatmul.mubr.msk.bf16.vlgmr.msra.gmra.mrb[12].mxu0 %vm716_vm1, %v2810_v61  ;;  %2681 = vmatmul.mubr.msk.bf16.vlgmr.msra.gmra.mrb[12].mxu1 %vm716_vm1, %v2811_v62 }
 0x12a   : >> { %2685 = vmatpush3.bf16.msra.mxu0 %v708_v56  ;;  %2691 = vmatpush3.bf16.msra.mxu1 %v708_v56 }
 0x12b   : >> { %2686 = vmatprep.mubr.msk.bf16.mxu0 %vm2948_vm0, %v2947_v36  ;;  %2696 = vmatprep.subr.bf16.mxu0 %v2947_v36 }
 0x12c   : >> { %2692 = vmatprep.mubr.msk.bf16.mxu1 %vm2948_vm0, %v2947_v36  ;;  %2551 = vmatprep.subr.bf16.mxu1 %v2815_v63  ;;  %v2853_v63 = vld [vmem:[%s3085_s28 + $0x110] sm:$0xff]  }
 0x131   : >> { %2687 = vmatmul.mubr.msk.bf16.vlgmr.msra.gmra.mrb[16].mxu0 %vm716_vm1, %v2812_v4  ;;  %2693 = vmatmul.mubr.msk.bf16.vlgmr.msra.gmra.mrb[16].mxu1 %vm716_vm1, %v2813_v5  ;;  %v2854_v4 = vld [vmem:[%s3085_s28 + $0x180] sm:$0xff]  }
 0x132   : >> { %2697 = vmatpush3.bf16.msra.mxu0 %v708_v56  ;;  %2698 = vmatprep.mubr.msk.bf16.mxu0 %vm2948_vm0, %v2947_v36  ;;  %v2851_v56 = vld [vmem:[%s3085_s28 + $0x150] sm:$0xff]  }
 0x133   : >> { %2552 = vmatpush3.bf16.msra.mxu1 %v2816_v6  ;;  %2573 = vmatprep.subr.bf16.mxu0 %v2820_v7  ;;  %v2855_v7 = vld [vmem:[%s3085_s28 + $0x158] sm:$0xff]  }
 0x134   : >> { %2553 = vmatprep.subr.bf16.mxu1 %v2817_v8  ;;  %v2856_v8 = vld [vmem:[%s3085_s28 + $0x1c8] sm:$0xff]  }
 0x137   : >> { %2554 = vmatpush3.bf16.msra.mxu1 %v2818_v9  ;;  %v2857_v9 = vld [vmem:[%s3085_s28 + $0x118] sm:$0xff]  }
 0x138   : >> { %2555 = vmatprep.subr.bf16.mxu1 %v2819_v10  ;;  %v2858_v10 = vld [vmem:[%s3085_s28 + $0x188] sm:$0xff]  }
 0x139   : >> { %2699 = vmatmul.mubr.msk.bf16.vlgmr.msra.gmra.mrb[20].mxu0 %vm716_vm1, %v2814_v11  ;;  %v2859_v11 = vld [vmem:[%s3085_s28 + $0x160] sm:$0xff]  }
 0x13a   : >> { %2574 = vmatpush3.bf16.msra.mxu0 %v2822_v12  ;;  %v2860_v12 = vld [vmem:[%s3085_s28 + $0x1d0] sm:$0xff]  }
 0x13b   : >> { %2556 = vmatpush3.bf16.msra.mxu1 %v2821_v13  ;;  %2575 = vmatprep.subr.bf16.mxu0 %v2824_v14 }
 0x13c   : >> { %2557 = vmatprep.subr.bf16.mxu1 %v2823_v15 }
 0x13e   : >> { %2576 = vmatpush3.bf16.msra.mxu0 %v2826_v16 }
 0x13f   : >> { %2558 = vmatpush3.bf16.msra.mxu1 %v2825_v17  ;;  %2577 = vmatprep.subr.bf16.mxu0 %v2828_v18 }
 0x140   : >> { %2559 = vmatprep.subr.bf16.mxu1 %v2827_v19  ;;  %v2861_v19 = vld [vmem:[%s3085_s28 + $0x120] sm:$0xff]  }
 0x142   : >> { %2578 = vmatpush3.bf16.msra.mxu0 %v2830_v20  ;;  %v2862_v20 = vld [vmem:[%s3085_s28 + $0x190] sm:$0xff]  }
 0x143   : >> { %2560 = vmatpush3.bf16.msra.mxu1 %v2829_v21  ;;  %2579 = vmatprep.subr.bf16.mxu0 %v2832_v22 }
 0x144   : >> { %2561 = vmatprep.subr.bf16.mxu1 %v2831_v23 }
 0x146   : >> { %2580 = vmatpush3.bf16.msra.mxu0 %v2834_v24 }
 0x147   : >> { %2562 = vmatpush3.bf16.msra.mxu1 %v2833_v25  ;;  %2581 = vmatprep.subr.bf16.mxu0 %v2836_v26  ;;  %v2863_v25 = vld [vmem:[%s3085_s28 + $0x168] sm:$0xff]   ;;  %v2864_v26 = vld [vmem:[%s3085_s28 + $0x1d8] sm:$0xff]  }
 0x148   : >> { %2563 = vmatprep.subr.bf16.mxu1 %v2835_v27  ;;  %v2865_v27 = vld [vmem:[%s3085_s28 + $0x128] sm:$0xff]  }
 0x14a   : >> { %2582 = vmatpush3.bf16.msra.mxu0 %v2838_v28  ;;  %v2866_v28 = vld [vmem:[%s3085_s28 + $0x198] sm:$0xff]  }
 0x14b   : >> { %2564 = vmatpush3.bf16.msra.mxu1 %v2837_v29  ;;  %2583 = vmatprep.subr.bf16.mxu0 %v2840_v31  ;;  %v2867_v29 = vld [vmem:[%s3085_s28 + $0x170] sm:$0xff]  }
 0x14c   : >> { %2565 = vmatprep.subr.bf16.mxu1 %v2839_v30  ;;  %v2868_v30 = vld [vmem:[%s3085_s28 + $0x1e0] sm:$0xff]  }
 0x14e   : >> { %2584 = vmatpush3.bf16.msra.mxu0 %v2842_v33 }
 0x14f   : >> { %2566 = vmatpush3.bf16.msra.mxu1 %v2841_v32  ;;  %2585 = vmatprep.subr.bf16.mxu0 %v2843_v34 }
 0x150   : >> { %2595 = vmatprep.subr.bf16.mxu1 %v2844_v35 }
 0x152   : >> { %2586 = vmatpush3.bf16.msra.mxu0 %v2845_v37 }
 0x153   : >> { %2587 = vmatprep.subr.bf16.mxu0 %v2847_v38  ;;  %v2869_v38 = vld [vmem:[%s3085_s28 + $0x130] sm:$0xff]  }
 0x156   : >> { %2588 = vmatpush3.bf16.msra.mxu0 %v2849_v39  ;;  %v2870_v39 = vld [vmem:[%s3085_s28 + $0x1a0] sm:$0xff]  }
 0x157   : >> { %2617 = vmatprep.subr.bf16.mxu0 %v2852_v40 }
 0x1ec   : >> { %v807_v41 = vpop.f32.mrb[4].mxu1  ;;  %v754_v42 = vpop.f32.mrb[4].mxu0 }
 0x1ed   : >> { %v2658_v43 = vpop.f32.mrb[5].mxu1  ;;  %v2652_v44 = vpop.f32.mrb[5].mxu0 }
 0x1ee   : >> { %v810_v45 = vpop.f32.mrb[6].mxu1  ;;  %v757_v46 = vpop.f32.mrb[6].mxu0  ;;  %v2871_v44 = vld [vmem:[%s3085_s28 + $0x178] sm:$0xff]  }
 0x1ef   : >> { %v814_v47 = vpack.c.bf16 %v810_v45, %v807_v41  ;;  %v761_v48 = vpack.c.bf16 %v757_v46, %v754_v42  ;;  %v2659_v49 = vpop.f32.mrb[7].mxu1  ;;  %v2653_v50 = vpop.f32.mrb[7].mxu0  ;;  %v2872_v45 = vld [vmem:[%s3085_s28 + $0x1e8] sm:$0xff]   ;;  %v2873_v46 = vld [vmem:[%s3085_s28 + $0x138] sm:$0xff]  }
 0x1f1   : >> { %1805 = vmatprep.mubr.bf16.mxu1 %v814_v47  ;;  %v2874_v47 = vld [vmem:[%s3085_s28 + $0x1a8] sm:$0xff]  }
 0x1f2   : >> { %1806 = vmatmul.mubr.bf16.vlgmr.msra.gmra.mrb[20].mxu1 %v761_v48  ;;  %v2875_v48 = vld [vmem:[%s3085_s28 + $0x1f0] sm:$0xff]  }
 0x1f3   : >> { %2596 = vmatpush3.bf16.msra.mxu1 %v2846_v51 }
 0x1f4   : >> { %v913_v54 = vpop.f32.mrb[8].mxu1  ;;  %v860_v55 = vpop.f32.mrb[8].mxu0  ;;  %2597 = vmatprep.subr.bf16.mxu1 %v2848_v52  ;;  %v2876_v52 = vld [vmem:[%s3085_s28 + $0x1b0] sm:$0xff]  }
 0x1f5   : >> { %v2670_v57 = vpop.f32.mrb[9].mxu1  ;;  %v2664_v58 = vpop.f32.mrb[9].mxu0 }
 0x1f6   : >> { %v916_v59 = vpop.f32.mrb[10].mxu1  ;;  %v863_v60 = vpop.f32.mrb[10].mxu0  ;;  %v2879_v57 = vld [vmem:[%s3085_s28 + $0x1b8] sm:$0xff]   ;;  %v2880_v58 = vld [vmem:[%s3085_s28 + $0x208] sm:$0xff]  }
 0x1f7   : >> { %v920_v61 = vpack.c.bf16 %v916_v59, %v913_v54  ;;  %2598 = vmatpush3.bf16.msra.mxu1 %v2850_v53  ;;  %v867_v62 = vpack.c.bf16 %v863_v60, %v860_v55  ;;  %v2671_v5 = vpop.f32.mrb[11].mxu1  ;;  %v2665_v6 = vpop.f32.mrb[11].mxu0  ;;  %v2877_v53 = vld [vmem:[%s3085_s28 + $0x200] sm:$0xff]   ;;  %v2881_v59 = vld [vmem:[%s3085_s28 + $0x210] sm:$0xff]   ;;  %v2882_v60 = vld [vmem:[%s3085_s28 + $0x218] sm:$0xff]  }
 0x1f8   : >> { %2599 = vmatprep.subr.bf16.mxu1 %v2851_v56  ;;  %v2878_v56 = vld [vmem:[%s3085_s28 + $0x1f8] sm:$0xff]   ;;  %v2889_v5 = vld [vmem:[%s3245_s16 + $0x4] ss:$16 sps:$4 sm:$0xff]   ;;  %v2887_v6 = vld [vmem:[%s3245_s16] ss:$16 sps:$4 sm:$0xff]  }
 0x1f9   : >> { %1846 = vmatprep.mubr.bf16.mxu0 %v920_v61  ;;  %v2883_v61 = vld [vmem:[%s3085_s28 + $0x220] sm:$0xff]  }
 0x1fa   : >> { %1847 = vmatmul.mubr.bf16.vlgmr.msra.gmra.mrb[24].mxu0 %v867_v62  ;;  %v2884_v62 = vld [vmem:[%s3085_s28 + $0x228] sm:$0xff]  }
 0x1fb   : >> { %2600 = vmatpush3.bf16.msra.mxu1 %v2853_v63  ;;  %2618 = vmatpush3.bf16.msra.mxu0 %v2854_v4  ;;  %v2885_v63 = vld [vmem:[%s3085_s28 + $0x230] sm:$0xff]   ;;  %v2886_v4 = vld [vmem:[%s3085_s28 + $0x238] sm:$0xff]  }
 0x1fc   : >> { %2601 = vmatprep.subr.bf16.mxu1 %v2855_v7  ;;  %2619 = vmatprep.subr.bf16.mxu0 %v2856_v8  ;;  %v1019_v13 = vpop.f32.mrb[12].mxu1  ;;  %v3202_v14 = vpop.f32.mrb[12].mxu0  ;;  %v2892_v7 = vld [vmem:[%s3245_s16 + $0x24] ss:$16 sps:$4 sm:$0xff]   ;;  %v2895_v8 = vld [vmem:[%s3245_s16 + $0xc] ss:$16 sps:$4 sm:$0xff]  }
 0x1fd   : >> { %v2682_v15 = vpop.f32.mrb[13].mxu1  ;;  %v2676_v16 = vpop.f32.mrb[13].mxu0 }
 0x1fe   : >> { %v1022_v17 = vpop.f32.mrb[14].mxu1  ;;  %v969_v18 = vpop.f32.mrb[14].mxu0  ;;  %v2390_v16 = vld [vmem:[%s1333_s18] ss:$0 sm:$0xff] }
 0x1ff   : >> { %2602 = vmatpush3.bf16.msra.mxu1 %v2857_v9  ;;  %2620 = vmatpush3.bf16.msra.mxu0 %v2858_v10  ;;  %v1026_v21 = vpack.c.bf16 %v1022_v17, %v1019_v13  ;;  %v973_v22 = vpack.c.bf16 %v969_v18, %v3202_v14  ;;  %v2683_v23 = vpop.f32.mrb[15].mxu1  ;;  %v2677_v24 = vpop.f32.mrb[15].mxu0  ;;  %v2949_v9 = vmov 0  }
 0x200   : >> { %2603 = vmatprep.subr.bf16.mxu1 %v2859_v11  ;;  %2621 = vmatprep.subr.bf16.mxu0 %v2860_v12 }
 0x201   : >> { %1887 = vmatprep.mubr.bf16.mxu1 %v1026_v21 }
 0x203   : >> { %2604 = vmatpush3.bf16.msra.mxu1 %v2861_v19  ;;  %2622 = vmatpush3.bf16.msra.mxu0 %v2862_v20 }
 0x204   : >> { %2605 = vmatprep.subr.bf16.mxu1 %v2863_v25  ;;  %2623 = vmatprep.subr.bf16.mxu0 %v2864_v26  ;;  %v1125_v31 = vpop.f32.mrb[16].mxu1  ;;  %v1072_v32 = vpop.f32.mrb[16].mxu0 }
 0x205   : >> { %v2694_v33 = vpop.f32.mrb[17].mxu1  ;;  %v2688_v34 = vpop.f32.mrb[17].mxu0 }
 0x206   : >> { %v1128_v35 = vpop.f32.mrb[18].mxu1  ;;  %v1075_v37 = vpop.f32.mrb[18].mxu0 }
 0x207   : >> { %2606 = vmatpush3.bf16.msra.mxu1 %v2865_v27  ;;  %2624 = vmatpush3.bf16.msra.mxu0 %v2866_v28  ;;  %v1132_v40 = vpack.c.bf16 %v1128_v35, %v1125_v31  ;;  %v1079_v41 = vpack.c.bf16 %v1075_v37, %v1072_v32  ;;  %v2689_v42 = vpop.f32.mrb[19].mxu0  ;;  %v2695_v43 = vpop.f32.mrb[19].mxu1 }
 0x208   : >> { %2607 = vmatprep.subr.bf16.mxu1 %v2867_v29  ;;  %2625 = vmatprep.subr.bf16.mxu0 %v2868_v30 }
 0x209   : >> { %1928 = vmatprep.mubr.bf16.mxu0 %v1132_v40 }
 0x20b   : >> { %2608 = vmatpush3.bf16.msra.mxu1 %v2869_v38  ;;  %2626 = vmatpush3.bf16.msra.mxu0 %v2870_v39 }
 0x20c   : >> { %2609 = vmatprep.subr.bf16.mxu1 %v2871_v44  ;;  %2627 = vmatprep.subr.bf16.mxu0 %v2872_v45  ;;  %v1178_v49 = vpop.f32.mrb[20].mxu0 }
 0x20d   : >> { %v2700_v50 = vpop.f32.mrb[21].mxu0 }
 0x20e   : >> { %v1181_v51 = vpop.f32.mrb[22].mxu0 }
 0x20f   : >> { %2610 = vmatpush3.bf16.msra.mxu1 %v2873_v46  ;;  %2628 = vmatpush3.bf16.msra.mxu0 %v2874_v47  ;;  %v1185_v54 = vpack.c.bf16 %v1181_v51, %v1178_v49  ;;  %v2701_v55 = vpop.f32.mrb[23].mxu0 }
 0x210   : >> { %2629 = vmatprep.subr.bf16.mxu0 %v2875_v48  ;;  %2702 = vmatprep.subr.bf16.mxu1 %v2947_v36  ;;  %v2896_v55 = vld [vmem:[%s3245_s16 + $0x28] ss:$16 sps:$4 sm:$0xff]  }
 0x212   : >> { %1888 = vmatmul.mubr.bf16.vlgmr.msra.gmra.mrb[24].mxu1 %v973_v22 }
 0x213   : >> { %2630 = vmatpush3.bf16.msra.mxu0 %v2876_v52  ;;  %2703 = vmatpush3.bf16.msra.mxu1 %v2877_v53  ;;  %v2893_v52 = vld [vmem:[%s3245_s16 + $0x8] ss:$16 sps:$4 sm:$0xff]  }
 0x214   : >> { %2631 = vmatprep.subr.bf16.mxu0 %v2878_v56  ;;  %2704 = vmatprep.subr.bf16.mxu1 %v2947_v36 }
 0x215   : >> { %2718 = vmatprep.mubr.msk.bf16.mxu1 %vm2948_vm0, %v2947_v36 }
 0x217   : >> { %2632 = vmatpush3.bf16.msra.mxu0 %v2879_v57  ;;  %2705 = vmatpush3.bf16.msra.mxu1 %v2880_v58 }
 0x218   : >> { %2706 = vmatprep.subr.bf16.mxu1 %v2947_v36  ;;  %2036 = vmatprep.subr.bf16.mxu0 %v2889_v5 }
 0x21a   : >> { %1929 = vmatmul.mubr.bf16.vlgmr.msra.gmra.mrb[28].mxu0 %v1079_v41 }
 0x21b   : >> { %2707 = vmatpush3.bf16.msra.mxu1 %v2881_v59  ;;  %2037 = vmatpush1.bf16.msra.mxu0 %v2887_v6 }
 0x21c   : >> { %2708 = vmatprep.subr.bf16.mxu1 %v2947_v36  ;;  %2038 = vmatprep.subr.bf16.mxu0 %v2892_v7 }
 0x21d   : >> { %2068 = vmatprep.mubr.bf16.mxu0 %v2949_v9 }
 0x21f   : >> { %2709 = vmatpush3.bf16.msra.mxu1 %v2882_v60 }
 0x220   : >> { %2710 = vmatprep.subr.bf16.mxu1 %v2947_v36 }
 0x223   : >> { %2711 = vmatpush3.bf16.msra.mxu1 %v2883_v61 }
 0x224   : >> { %2712 = vmatprep.subr.bf16.mxu1 %v2947_v36 }
 0x227   : >> { %2713 = vmatpush3.bf16.msra.mxu1 %v2884_v62 }
 0x228   : >> { %2714 = vmatprep.subr.bf16.mxu1 %v2947_v36 }
 0x22b   : >> { %2715 = vmatpush3.bf16.msra.mxu1 %v2885_v63 }
 0x22c   : >> { %2716 = vmatprep.subr.bf16.mxu1 %v2947_v36  ;;  %v2890_v36 = vld [vmem:[%s3245_s16 + $0x20] ss:$16 sps:$4 sm:$0xff]  }
 0x22d   : >> { %2039 = vmatpush1.bf16.msra.mxu0 %v2890_v36 }
 0x22e   : >> { %2079 = vmatprep.subr.bf16.mxu0 %v2895_v8 }
 0x22f   : >> { %2717 = vmatpush3.bf16.msra.mxu1 %v2886_v4 }
 0x232   : >> { %2719 = vmatmul.mubr.bf16.vlgmr.msra.gmra.mrb[28].mxu1 %v1185_v54  ;;  %v2898_v54 = vld [vmem:[%s3245_s16 + $0x2c] ss:$16 sps:$4 sm:$0xff]  }
 0x2c5   : >> { %v2567_v10 = vpop.f32.mrb[20].mxu1 }
 0x2c6   : >> { %v2568_v11 = vpop.f32.mrb[21].mxu1 }
 0x2c7   : >> { %v2569_v12 = vadd.f32 %v2568_v11, %v2567_v10  ;;  %v2570_v13 = vpop.f32.mrb[22].mxu1 }
 0x2c8   : >> { %v2571_v14 = vpop.f32.mrb[23].mxu1 }
 0x2c9   : >> { %v2572_v15 = vadd.f32 %v2571_v14, %v2570_v13  ;;  %v1808_v19 = vadd.f32 %v2569_v12, %v2390_v16  ;;  %v2138_v14 = vld [vmem:[%s3294_s7] sm:$0xf] (%p349_p4) }
 0x2cb   : >> { %v1811_v23 = vadd.f32 %v2572_v15, %v2390_v16  ;;  %v2168_v15 = vld [vmem:[%s3295_s8] sm:$0xf] (%p349_p4) }
 0x2cd   : >> { %v2589_v17 = vpop.f32.mrb[24].mxu0 }
 0x2ce   : >> { %v2590_v18 = vpop.f32.mrb[25].mxu0 }
 0x2cf   : >> { %v2591_v20 = vadd.f32 %v2590_v18, %v2589_v17  ;;  %v2592_v21 = vpop.f32.mrb[26].mxu0 }
 0x2d0   : >> { %v2593_v22 = vpop.f32.mrb[27].mxu0 }
 0x2d1   : >> { %v1849_v24 = vadd.f32 %v2591_v20, %v1808_v19  ;;  %v2594_v25 = vadd.f32 %v2593_v22, %v2592_v21 }
 0x2d3   : >> { %v1852_v26 = vadd.f32 %v2594_v25, %v1811_v23 }
 0x2e5   : >> { %v2611_v27 = vpop.f32.mrb[24].mxu1 }
 0x2e6   : >> { %v2612_v28 = vpop.f32.mrb[25].mxu1 }
 0x2e7   : >> { %v2613_v29 = vadd.f32 %v2612_v28, %v2611_v27  ;;  %v2614_v30 = vpop.f32.mrb[26].mxu1 }
 0x2e8   : >> { %v2615_v31 = vpop.f32.mrb[27].mxu1 }
 0x2e9   : >> { %v1890_v32 = vadd.f32 %v2613_v29, %v1849_v24  ;;  %v2616_v33 = vadd.f32 %v2615_v31, %v2614_v30 }
 0x2eb   : >> { %v1893_v34 = vadd.f32 %v2616_v33, %v1852_v26 }
 0x2ed   : >> { %v2633_v35 = vpop.f32.mrb[28].mxu0 }
 0x2ee   : >> { %v2634_v37 = vpop.f32.mrb[29].mxu0 }
 0x2ef   : >> { %v2635_v38 = vadd.f32 %v2634_v37, %v2633_v35  ;;  %v2636_v39 = vpop.f32.mrb[30].mxu0 }
 0x2f0   : >> { %v2637_v40 = vpop.f32.mrb[31].mxu0 }
 0x2f1   : >> { %v2638_v41 = vadd.f32 %v2637_v40, %v2636_v39  ;;  %v1931_v42 = vadd.f32 %v2635_v38, %v1890_v32 }
 0x2f3   : >> { %v1934_v43 = vadd.f32 %v2638_v41, %v1893_v34 }
 0x305   : >> { %v1971_v44 = vpop.f32.mrb[28].mxu1 }
 0x306   : >> { %v1972_v45 = vadd.f32 %v1971_v44, %v1931_v42  ;;  %v2720_v46 = vpop.f32.mrb[29].mxu1 }
 0x307   : >> { %v1974_v47 = vpop.f32.mrb[30].mxu1 }
 0x308   : >> { %v1975_v48 = vadd.f32 %v1974_v47, %v1934_v43  ;;  %v2721_v49 = vpop.f32.mrb[31].mxu1  ;;  %v1978_v50 = vmax.f32 %v1972_v45, 0.0 }
 0x30a   : >> { %v1979_v51 = vmax.f32 %v1975_v48, 0.0 }
 0x30c   : >> { %v1980_v53 = vpack.c.bf16 %v1979_v51, %v1978_v50 }
 0x30e   : >> { %2473 = vmatmul.mubr.msk.bf16.vlgmr.msra.gmra.mrb[32].mxu0 %vm2032_vm2, %v1980_v53 }
 0x30f   : >> { %2080 = vmatpush1.bf16.msra.mxu0 %v2893_v52  ;;  %2111 = vmatprep.mubr.bf16.mxu0 %v2949_v9 }
 0x310   : >> { %2081 = vmatprep.subr.bf16.mxu0 %v2898_v54 }
 0x313   : >> { %2082 = vmatpush1.bf16.msra.mxu0 %v2896_v55 }
 0x316   : >> { %2474 = vmatmul.mubr.msk.bf16.vlgmr.msra.gmra.mrb[36].mxu0 %vm2032_vm2, %v1980_v53 }
 0x3e1   : >> { %v2070_v56 = vpop.f32.mrb[32].mxu0 }
 0x3e2   : >> { %v2072_v57 = vpop.f32.mrb[33].mxu0 }
 0x3e3   : >> { %v2074_v58 = vpop.f32.mrb[34].mxu0 }
 0x3e4   : >> { %v2122_v59 = vpack.c.bf16 %v2074_v58, %v2070_v56  ;;  %v2076_v60 = vpop.f32.mrb[35].mxu0 }
 0x3e5   : >> { %v2123_v61 = vpack.c.bf16 %v2076_v60, %v2072_v57 }
 0x3e6   : >> { %v2126_v62 = vadd.bf16 %v2941_v0, %v2122_v59  }
 0x3e7   : >> { %v2127_v63 = vadd.bf16 %v2937_v3, %v2123_v61  }
 0x3e8   : >> { %v3300_v0 = vmov %v2126_v62  ;;  %v2130_v12 = vunpack.c.l.bf16 (%p349_p4), %v2126_v62  ;;  %v2134_v16 = vunpack.c.h.bf16 (%p349_p4), %v2126_v62 }
 0x3e9   : >> { %v2113_v4 = vpop.f32.mrb[36].mxu0  ;;  %v3299_v3 = vmov %v2127_v63  ;;  %v2140_v0 = vlaneseq (%p349_p4)  ;;  %v2131_v13 = vunpack.c.l.bf16 (%p349_p4), %v2127_v63  ;;  %v2135_v17 = vunpack.c.h.bf16 (%p349_p4), %v2127_v63 }
 0x3ea   : >> { %v2115_v5 = vpop.f32.mrb[37].mxu0 }
 0x3eb   : >> { %v2117_v6 = vpop.f32.mrb[38].mxu0  ;;  %351 = sbr.rel (!%p349_p4) target bundleno = 17 (0x11), region = 106  ;;  %v2141_v11 = vshrl.u32 (%p349_p4), %v2140_v0, 7 }
 0x3ec   : >> { %v2124_v7 = vpack.c.bf16 %v2117_v6, %v2113_v4  ;;  %v2119_v36 = vpop.f32.mrb[39].mxu0 }
 0x3ed   : >> { %v2125_v8 = vpack.c.bf16 %v2119_v36, %v2115_v5  ;;  %v2142_v18 = vsub.s32 (%p349_p4), 0, %v2141_v11  ;;  %v2146_v19 = vsub.s32 (%p349_p4), 1, %v2141_v11  ;;  %v2150_v20 = vsub.s32 (%p349_p4), 2, %v2141_v11 }
 0x3ee   : >> { %v2128_v9 = vadd.bf16 %v2933_v2, %v2124_v7   ;;  %v2154_v21 = vsub.s32 (%p349_p4), 3, %v2141_v11 }
 0x3ef   : >> { %v2129_v10 = vadd.bf16 %v2929_v1, %v2125_v8   ;;  %v2143_v3 = vrot.slane (%p349_p4), %v2138_v14, %v2142_v18  ;;  %v2147_v24 = vrot.slane (%p349_p4), %v2138_v14, %v2146_v19  ;;  %v2173_v25 = vrot.slane (%p349_p4), %v2168_v15, %v2142_v18 }
 0x3f0   : >> { %v3298_v2 = vmov %v2128_v9  ;;  %v2132_v22 = vunpack.c.l.bf16 (%p349_p4), %v2128_v9  ;;  %v2177_v26 = vrot.slane (%p349_p4), %v2168_v15, %v2146_v19  ;;  %v2151_v27 = vrot.slane (%p349_p4), %v2138_v14, %v2150_v20 }
 0x3f1   : >> { %v3297_v1 = vmov %v2129_v10  ;;  %v2133_v23 = vunpack.c.l.bf16 (%p349_p4), %v2129_v10  ;;  %v2137_v2 = vunpack.c.h.bf16 (%p349_p4), %v2129_v10  ;;  %v2155_v28 = vrot.slane (%p349_p4), %v2138_v14, %v2154_v21 }
 0x3f2   : > { %v2136_v1 = vunpack.c.h.bf16 %v2128_v9  ;;  %v2181_v29 = vrot.slane %v2168_v15, %v2150_v20  ;;  %v2185_v30 = vrot.slane %v2168_v15, %v2154_v21  ;;  %v2160_v31 = vmul.f32 %v2143_v3, %v2130_v12 }
 0x3f3   : > { %v2161_v32 = vmul.f32 %v2147_v24, %v2131_v13  ;;  %v2164_v33 = vmul.f32 %v2143_v3, %v2134_v16  ;;  %v2165_v34 = vmul.f32 %v2147_v24, %v2135_v17  ;;  %v2162_v35 = vmul.f32 %v2151_v27, %v2132_v22 }
 0x3f4   : > { %v2163_v37 = vmul.f32 %v2155_v28, %v2133_v23  ;;  %v2166_v38 = vmul.f32 %v2151_v27, %v2136_v1  ;;  %v2167_v39 = vmul.f32 %v2155_v28, %v2137_v2  ;;  %v2190_v40 = vadd.f32 %v2173_v25, %v2160_v31 }
 0x3f5   : > { %v2191_v41 = vadd.f32 %v2177_v26, %v2161_v32  ;;  %v2194_v42 = vadd.f32 %v2173_v25, %v2164_v33  ;;  %v2195_v43 = vadd.f32 %v2177_v26, %v2165_v34  ;;  %v2192_v44 = vadd.f32 %v2181_v29, %v2162_v35 }
 0x3f6   : > { %v2193_v45 = vadd.f32 %v2185_v30, %v2163_v37  ;;  %v2196_v46 = vadd.f32 %v2181_v29, %v2166_v38  ;;  %v2197_v47 = vadd.f32 %v2185_v30, %v2167_v39 }
 0x3f7   : > { %v2485_v48 = vpack.c.bf16 %v2191_v41, %v2190_v40  ;;  %v2487_v49 = vpack.c.bf16 %v2195_v43, %v2194_v42 }
 0x3f8   : > { %v2486_v50 = vpack.c.bf16 %v2193_v45, %v2192_v44  ;;  %v2488_v51 = vpack.c.bf16 %v2197_v47, %v2196_v46 }
 0x3f9   : > { %2222 = vst [vmem:[%s3014_s19] sm:$0xff] %v2485_v48  ;;  %2224 = vst [vmem:[%s3014_s19 + $0x10] sm:$0xff] %v2487_v49 }
 0x3fa   : > { %2223 = vst [vmem:[%s3014_s19 + $0x8] sm:$0xff] %v2486_v50  ;;  %2225 = vst [vmem:[%s3014_s19 + $0x18] sm:$0xff] %v2488_v51 }
 0x3fb PF: > { %s19_s30 = sadd.s32 1, %s2925_s30  }
 0x3fc   : > { %p16_p5 = scmp.ge.s32.totalorder %s19_s30, 4  }
 0x3fe   :  { %18 = sbr.rel (!%p16_p5) target bundleno = 1 (0x1), region = 117 }

// kernel: reverse
= control target key start
LH: loop header
LB: loop body
LE: loop exit
PB: predicated region body
PF: predicated region fallthrough
CT: control target
= control target key end

     0   :  { %v2_v0 = vlaneseq  ;;  %s206_s0 = inlined_call_operand.vmem [shape: f32[3,3,2,1], index: 0, kind: input, shape index: {}]   ;;  %s207_s1 = inlined_call_operand.vmem [shape: bf16[3,3,2,1], index: 1, kind: output, shape index: {}]  }
   0x2   :  { %v3_v1 = vsub.s32 2, %v2_v0 }
   0x4   :  { %4 = vset.pattern.permute.xlu0 %v3_v1 }
   0x5   :  { %188 = vset.pattern.permute.xlu1 %v3_v1  ;;  %v20_v2 = vld [vmem:[%s206_s0] sm:$0x3f]  ;;  %v189_v23 = vmov 0.0  }
   0x6   :  { %21 = vst [vmem:[#allocation1] sm:$0x3f] %v20_v2 }
   0xd   :  { %v55_v3 = vld [vmem:[#allocation1 + $0x2] sm:$0x1]  ;;  %v45_v4 = vld [vmem:[#allocation1 + $0x4] sm:$0x1]  ;;  %v50_v5 = vld [vmem:[#allocation1 + $0x3] sm:$0x1] }
   0xe   :  { %57 = vst [vmem:[#allocation0 + $0x10] sm:$0x1] %v55_v3  ;;  %47 = vst [vmem:[#allocation0 + $0x20] sm:$0x1] %v45_v4  ;;  %v40_v6 = vld [vmem:[#allocation1 + $0x5] sm:$0x1] }
   0xf   :  { %52 = vst [vmem:[#allocation0 + $0x18] sm:$0x1] %v50_v5  ;;  %v59_v7 = vld [vmem:[#allocation1 + $0x1] sm:$0x1]  ;;  %v62_v8 = vld [vmem:[#allocation1] sm:$0x1] }
  0x10   :  { %42 = vst [vmem:[#allocation0 + $0x28] sm:$0x1] %v40_v6  ;;  %61 = vst [vmem:[#allocation0 + $0x8] sm:$0x1] %v59_v7 }
  0x11   :  { %63 = vst [vmem:[#allocation0] sm:$0x1] %v62_v8 }
  0x15   :  { %v77_v9 = vld [vmem:[#allocation0 + $0x10] sm:$0xff]  ;;  %v65_v10 = vld [vmem:[#allocation0 + $0x20] sm:$0xff] }
  0x16   :  { %78 = vperm.xlu1 %188, %v77_v9   ;;  %66 = vperm.xlu0 %4, %v65_v10   ;;  %v83_v11 = vld [vmem:[#allocation0 + $0x18] sm:$0xff] }
  0x17   :  { %v71_v12 = vld [vmem:[#allocation0 + $0x28] sm:$0xff] }
  0x18   :  { %v94_v13 = vld [vmem:[#allocation0 + $0x8] sm:$0xff]  ;;  %v88_v14 = vld [vmem:[#allocation0] sm:$0xff] }
  0x1a   :  { %84 = vperm.xlu1 %188, %v83_v11   ;;  %72 = vperm.xlu0 %4, %v71_v12  }
  0x1e   :  { %95 = vperm.xlu1 %188, %v94_v13   ;;  %89 = vperm.xlu0 %4, %v88_v14  }
  0x95   :  { %v79_v15 = vpop.permute.xlu1 %78  ;;  %v67_v16 = vpop.permute.xlu0 %66 }
  0x96   :  { %80 = vst [vmem:[#allocation2 + $0x10] sm:$0xff] %v79_v15  ;;  %68 = vst [vmem:[#allocation2] sm:$0xff] %v67_v16 }
  0x99   :  { %v85_v17 = vpop.permute.xlu1 %84  ;;  %v73_v18 = vpop.permute.xlu0 %72 }
  0x9a   :  { %86 = vst [vmem:[#allocation2 + $0x18] sm:$0xff] %v85_v17  ;;  %74 = vst [vmem:[#allocation2 + $0x8] sm:$0xff] %v73_v18 }
  0x9d   :  { %v113_v19 = vld [vmem:[#allocation2 + $0x10] sm:$0x3]  ;;  %v102_v20 = vld [vmem:[#allocation2] sm:$0x3]  ;;  %v96_v21 = vpop.permute.xlu1 %95  ;;  %v90_v22 = vpop.permute.xlu0 %89 }
  0x9e   :  { %v114_v24 = vpack.c.bf16 %v189_v23, %v113_v19  ;;  %v103_v25 = vpack.c.bf16 %v189_v23, %v102_v20  ;;  %97 = vst [vmem:[#allocation2 + $0x28] sm:$0xff] %v96_v21  ;;  %91 = vst [vmem:[#allocation2 + $0x20] sm:$0xff] %v90_v22 }
  0xa0   :  { %118 = vst [vmem:[#allocation3 + $0x2] sm:$0x1] %v114_v24  ;;  %105 = vst [vmem:[#allocation3] sm:$0x1] %v103_v25 }
  0xa1   :  { %v120_v26 = vld [vmem:[#allocation2 + $0x18] sm:$0x3]  ;;  %v107_v27 = vld [vmem:[#allocation2 + $0x8] sm:$0x3] }
  0xa2   :  { %v121_v28 = vpack.c.bf16 %v189_v23, %v120_v26  ;;  %v108_v29 = vpack.c.bf16 %v189_v23, %v107_v27 }
  0xa4   :  { %125 = vst [vmem:[#allocation3 + $0x3] sm:$0x1] %v121_v28  ;;  %111 = vst [vmem:[#allocation3 + $0x1] sm:$0x1] %v108_v29 }
  0xa5   :  { %v134_v30 = vld [vmem:[#allocation2 + $0x28] sm:$0x3]  ;;  %v127_v31 = vld [vmem:[#allocation2 + $0x20] sm:$0x3] }
  0xa6   :  { %v135_v32 = vpack.c.bf16 %v189_v23, %v134_v30  ;;  %v128_v33 = vpack.c.bf16 %v189_v23, %v127_v31 }
  0xa8   :  { %139 = vst [vmem:[#allocation3 + $0x5] sm:$0x1] %v135_v32  ;;  %132 = vst [vmem:[#allocation3 + $0x4] sm:$0x1] %v128_v33 }
  0xaf   :  { %v155_v34 = vld [vmem:[#allocation3] sm:$0x3f] }
  0xb0   :  { %156 = vst [vmem:[%s207_s1] sm:$0x3f] %v155_v34 }

// kernel: mul.26
= control target key start
LH: loop header
LB: loop body
LE: loop exit
PB: predicated region body
PF: predicated region fallthrough
CT: control target
= control target key end

     0   :  { %s312_s0 = inlined_call_operand.vmem [shape: f32[2,1024], index: 0, kind: input, shape index: {}]   ;;  %s313_s1 = inlined_call_operand.vmem [shape: f32[2,2,2,1024], index: 1, kind: output, shape index: {}]  }
   0x1   :  { %v4_v0 = vld [vmem:[%s312_s0] ss:$0 sm:$0xff]  ;;  %v112_v1 = vld [vmem:[%s312_s0 + $0x1] ss:$0 sm:$0xff]  ;;  %v116_v2 = vld [vmem:[%s312_s0 + $0x2] ss:$0 sm:$0xff] }
   0x2   :  { %5 = vst [vmem:[%s313_s1] sm:$0x3] %v4_v0  ;;  %113 = vst [vmem:[%s313_s1 + $0x20] sm:$0x3] %v112_v1  ;;  %v118_v3 = vld [vmem:[%s312_s0 + $0x3] ss:$0 sm:$0xff] }
   0x3   :  { %114 = vst [vmem:[%s313_s1 + $0x10] sm:$0x3] %v4_v0  ;;  %115 = vst [vmem:[%s313_s1 + $0x30] sm:$0x3] %v112_v1  ;;  %v122_v4 = vld [vmem:[%s312_s0 + $0x4] ss:$0 sm:$0xff] }
   0x4   :  { %117 = vst [vmem:[%s313_s1 + $0x2] sm:$0x3] %v116_v2  ;;  %120 = vst [vmem:[%s313_s1 + $0x12] sm:$0x3] %v116_v2  ;;  %v124_v5 = vld [vmem:[%s312_s0 + $0x5] ss:$0 sm:$0xff] }
   0x5   :  { %119 = vst [vmem:[%s313_s1 + $0x22] sm:$0x3] %v118_v3  ;;  %121 = vst [vmem:[%s313_s1 + $0x32] sm:$0x3] %v118_v3  ;;  %v128_v6 = vld [vmem:[%s312_s0 + $0x6] ss:$0 sm:$0xff] }
   0x6   :  { %123 = vst [vmem:[%s313_s1 + $0x4] sm:$0x3] %v122_v4  ;;  %125 = vst [vmem:[%s313_s1 + $0x24] sm:$0x3] %v124_v5  ;;  %v130_v7 = vld [vmem:[%s312_s0 + $0x7] ss:$0 sm:$0xff] }
   0x7   :  { %126 = vst [vmem:[%s313_s1 + $0x14] sm:$0x3] %v122_v4  ;;  %127 = vst [vmem:[%s313_s1 + $0x34] sm:$0x3] %v124_v5  ;;  %v134_v8 = vld [vmem:[%s312_s0 + $0x8] ss:$0 sm:$0xff] }
   0x8   :  { %129 = vst [vmem:[%s313_s1 + $0x6] sm:$0x3] %v128_v6  ;;  %131 = vst [vmem:[%s313_s1 + $0x26] sm:$0x3] %v130_v7  ;;  %v136_v9 = vld [vmem:[%s312_s0 + $0x9] ss:$0 sm:$0xff] }
   0x9   :  { %132 = vst [vmem:[%s313_s1 + $0x16] sm:$0x3] %v128_v6  ;;  %133 = vst [vmem:[%s313_s1 + $0x36] sm:$0x3] %v130_v7  ;;  %v140_v10 = vld [vmem:[%s312_s0 + $0xa] ss:$0 sm:$0xff] }
   0xa   :  { %135 = vst [vmem:[%s313_s1 + $0x8] sm:$0x3] %v134_v8  ;;  %138 = vst [vmem:[%s313_s1 + $0x18] sm:$0x3] %v134_v8  ;;  %v142_v11 = vld [vmem:[%s312_s0 + $0xb] ss:$0 sm:$0xff] }
   0xb   :  { %137 = vst [vmem:[%s313_s1 + $0x28] sm:$0x3] %v136_v9  ;;  %139 = vst [vmem:[%s313_s1 + $0x38] sm:$0x3] %v136_v9  ;;  %v146_v12 = vld [vmem:[%s312_s0 + $0xc] ss:$0 sm:$0xff] }
   0xc   :  { %141 = vst [vmem:[%s313_s1 + $0xa] sm:$0x3] %v140_v10  ;;  %143 = vst [vmem:[%s313_s1 + $0x2a] sm:$0x3] %v142_v11  ;;  %v148_v13 = vld [vmem:[%s312_s0 + $0xd] ss:$0 sm:$0xff] }
   0xd   :  { %144 = vst [vmem:[%s313_s1 + $0x1a] sm:$0x3] %v140_v10  ;;  %145 = vst [vmem:[%s313_s1 + $0x3a] sm:$0x3] %v142_v11  ;;  %v152_v14 = vld [vmem:[%s312_s0 + $0xe] ss:$0 sm:$0xff] }
   0xe   :  { %147 = vst [vmem:[%s313_s1 + $0xc] sm:$0x3] %v146_v12  ;;  %149 = vst [vmem:[%s313_s1 + $0x2c] sm:$0x3] %v148_v13  ;;  %v154_v15 = vld [vmem:[%s312_s0 + $0xf] ss:$0 sm:$0xff] }
   0xf   :  { %150 = vst [vmem:[%s313_s1 + $0x1c] sm:$0x3] %v146_v12  ;;  %151 = vst [vmem:[%s313_s1 + $0x3c] sm:$0x3] %v148_v13 }
  0x10   :  { %153 = vst [vmem:[%s313_s1 + $0xe] sm:$0x3] %v152_v14  ;;  %156 = vst [vmem:[%s313_s1 + $0x1e] sm:$0x3] %v152_v14 }
  0x11   :  { %155 = vst [vmem:[%s313_s1 + $0x2e] sm:$0x3] %v154_v15  ;;  %157 = vst [vmem:[%s313_s1 + $0x3e] sm:$0x3] %v154_v15 }

// kernel: densenet_forward.11
= control target key start
LH: loop header
LB: loop body
LE: loop exit
PB: predicated region body
PF: predicated region fallthrough
CT: control target
= control target key end

     0   :  { %14 = vsyncpa [#allocation3], 0  ;;  %s3176_s30 = smov [#allocation2]   ;;  %s3641_s0 = inlined_call_operand.vmem [shape: bf16[8,256], index: 0, kind: input, shape index: {}]   ;;  %s3642_s1 = inlined_call_operand.vmem [shape: bf16[24,1024,128], index: 1, kind: input, shape index: {}]   ;;  %s3643_s2 = inlined_call_operand.vmem [shape: f32[24,1,128], index: 2, kind: input, shape index: {}]   ;;  %s3644_s3 = inlined_call_operand.vmem [shape: bf16[24,1152,32], index: 3, kind: input, shape index: {}]   ;;  %s3645_s4 = inlined_call_operand.vmem [shape: f32[24,1,32], index: 4, kind: input, shape index: {}]   ;;  %s3646_s5 = inlined_call_operand.hbm [shape: bf16[24,32,1024], index: 5, kind: input, shape index: {}]   ;;  %s3647_s6 = inlined_call_operand.vmem [shape: bf16[9,8,8], index: 6, kind: input, shape index: {}]   ;;  %s3648_s7 = inlined_call_operand.vmem [shape: f32[1,1024], index: 7, kind: input, shape index: {}]   ;;  %s3649_s8 = inlined_call_operand.vmem [shape: f32[1,1024], index: 8, kind: input, shape index: {}]   ;;  %s3650_s9 = inlined_call_operand.vmem [shape: f32[8,1024], index: 9, kind: output, shape index: {}]  }
   0x1   :  { %s30_s10 = sshll.u32 %s3176_s30, 4  ;;  %s3080_s13 = scalar_lea.hbm %s3646_s5, 49152  ;;  %s31_s10 = int_to_ptr.vmem [resolvable:$true] %s30_s10 }
   0x2   :  { %p3081_p0 = scmp.ne.s32.totalorder %s3646_s5, %s3080_s13  ;;  %p3084_p1 = scmp.lt.u32.totalorder %s3080_s13, %s3646_s5 }
   0x4   :  { %p3086_p2 = pnand %p3084_p1, %p3081_p0 }
   0x6   :  { %3089 = shalt.err (!%p3086_p2)
}
   0x7   :  { %s3090_s18 = scalar_lea.vmem %s31_s10, 49152  ;;  %p3095_p4 = scmp.lt.s32.totalorder %s31_s10, %s31_s10 }
   0x8   :  { %p3091_p3 = scmp.ne.s32.totalorder %s31_s10, %s3090_s18  ;;  %p3096_p5 = scmp.lt.s32.totalorder %s3090_s18, %s3090_s18 }
   0xa   :  { %p3097_p6 = por %p3096_p5, %p3095_p4 }
   0xc   :  { %p3098_p7 = pnand %p3097_p6, %p3091_p3 }
   0xe   :  { %3101 = shalt.err (!%p3098_p7)
}
   0xf   :  { %s3177_s19 = smov 512   ;;  %s3178_s20 = smov 32  }
  0x10   :  { %36 = dma.hbm_to_vmem [thread:$0]  %s3646_s5, 49152, %s31_s10, [#allocation3], %s3177_s19, %s3177_s19, %s3178_s20  }
  0x11   :  { %3138 = dma.done.wait [#allocation3], 49152  }
  0x12   :  { %3139 = vsyncadd [#allocation3], 4294918144  ;;  %v47_v0 = vld [vmem:[%s3641_s0] sm:$0xff]  ;;  %v3247_v3 = vmov 0   ;;  %v3249_v4 = vmov 0   ;;  %v3251_v5 = vmov 0  }
  0x13   :  { %v2402_v1 = vcombine.low %v47_v0, %v47_v0   ;;  %v2403_v2 = vcombine.high %v47_v0, %v47_v0   ;;  %v3253_v6 = vmov 0   ;;  %v3255_v7 = vmov 0   ;;  %s3263_s5 = smov 0  }
  0x14   :  { %v3257_v8 = vmov 0  }
  0x15 LB: > { %s2584_s0 = sshll.u32 %s3174_s5, 9  ;;  %624 = vmatprep.mubr.bf16.mxu0 %v3166_v2  ;;  %664 = vmatprep.mubr.bf16.mxu1 %v3158_v7  ;;  %s2585_s28 = smul.u32 576, %s3174_s5  ;;  %vm3180_vm0 = vmmov 0   ;;  %vm759_vm1 = vcmask 1043456   ;;  %vm755_vm2 = vcmask 64512   ;;  %vm2060_vm3 = vcmask 261120   ;;  %s3174_s5 = sphi %s3263_s5, %s60_s5   ;;  %v3170_v1 = vphi %v2402_v1, %v3665_v1   ;;  %v3166_v2 = vphi %v2403_v2, %v3664_v2   ;;  %v3162_v8 = vphi %v3257_v8, %v3663_v8   ;;  %v3158_v7 = vphi %v3255_v7, %v3662_v7   ;;  %v3154_v6 = vphi %v3253_v6, %v3661_v6   ;;  %v3150_v5 = vphi %v3251_v5, %v3660_v5   ;;  %v3146_v4 = vphi %v3249_v4, %v3659_v4   ;;  %v3142_v3 = vphi %v3247_v3, %v3658_v3  }
  0x16   : > { %s3298_s27 = scalar_lea.vmem %s3642_s1, %s2584_s0  ;;  %s200_s13 = scalar_lea.vmem %s3643_s2, %s3174_s5 }
  0x17   : > { %v2944_v9 = vld [vmem:[%s3298_s27 + $0x40] sm:$0xff]   ;;  %v2948_v13 = vld [vmem:[%s3298_s27 + $0x48] sm:$0xff]   ;;  %v2952_v17 = vld [vmem:[%s3298_s27 + $0x50] sm:$0xff]   ;;  %s3371_s10 = scalar_lea.vmem %s3644_s3, %s2585_s28  ;;  %s2586_s11 = sshll.u32 %s3174_s5, 7 }
  0x18   : > { %v2945_v10 = vld [vmem:[%s3298_s27 + $0xc0] sm:$0xff]   ;;  %2587 = vmatprep.subr.bf16.mxu0 %v2944_v9  ;;  %v2949_v14 = vld [vmem:[%s3298_s27 + $0xc8] sm:$0xff]   ;;  %v2953_v18 = vld [vmem:[%s3298_s27 + $0xd0] sm:$0xff]   ;;  %s3526_s12 = scalar_lea.vmem [#allocation2], %s2586_s11  ;;  %s1319_s14 = scalar_lea.vmem %s3645_s4, %s3174_s5 }
  0x19   : > { %v2946_v11 = vld [vmem:[%s3298_s27] sm:$0xff]   ;;  %2609 = vmatprep.subr.bf16.mxu1 %v2945_v10  ;;  %v2950_v15 = vld [vmem:[%s3298_s27 + $0x8] sm:$0xff]   ;;  %v2954_v19 = vld [vmem:[%s3298_s27 + $0x10] sm:$0xff]   ;;  %s60_s5 = sadd.s32 1, %s3174_s5  }
  0x1a   : > { %v2947_v12 = vld [vmem:[%s3298_s27 + $0x80] sm:$0xff]   ;;  %2588 = vmatpush3.bf16.msra.mxu0 %v2946_v11  ;;  %v2951_v16 = vld [vmem:[%s3298_s27 + $0x88] sm:$0xff]   ;;  %v2955_v20 = vld [vmem:[%s3298_s27 + $0x90] sm:$0xff]   ;;  %p57_p8 = scmp.ge.s32.totalorder %s60_s5, 24  }
  0x1b   : > { %2610 = vmatpush3.bf16.msra.mxu1 %v2947_v12  ;;  %2589 = vmatprep.subr.bf16.mxu0 %v2948_v13  ;;  %v2956_v21 = vld [vmem:[%s3298_s27 + $0x58] sm:$0xff]   ;;  %v2960_v25 = vld [vmem:[%s3298_s27 + $0x60] sm:$0xff]   ;;  %v2964_v29 = vld [vmem:[%s3298_s27 + $0x68] sm:$0xff]  }
  0x1c   : > { %2611 = vmatprep.subr.bf16.mxu1 %v2949_v14  ;;  %v2957_v22 = vld [vmem:[%s3298_s27 + $0xd8] sm:$0xff]   ;;  %v2961_v26 = vld [vmem:[%s3298_s27 + $0xe0] sm:$0xff]   ;;  %v2965_v30 = vld [vmem:[%s3298_s27 + $0xe8] sm:$0xff]  }
  0x1d   : > { %v2958_v23 = vld [vmem:[%s3298_s27 + $0x18] sm:$0xff]   ;;  %v2962_v27 = vld [vmem:[%s3298_s27 + $0x20] sm:$0xff]   ;;  %v2966_v31 = vld [vmem:[%s3298_s27 + $0x28] sm:$0xff]  }
  0x1e   : > { %2590 = vmatpush3.bf16.msra.mxu0 %v2950_v15  ;;  %v2959_v24 = vld [vmem:[%s3298_s27 + $0x98] sm:$0xff]   ;;  %v2963_v28 = vld [vmem:[%s3298_s27 + $0xa0] sm:$0xff]   ;;  %v2967_v32 = vld [vmem:[%s3298_s27 + $0xa8] sm:$0xff]  }
  0x1f   : > { %2612 = vmatpush3.bf16.msra.mxu1 %v2951_v16  ;;  %2591 = vmatprep.subr.bf16.mxu0 %v2952_v17  ;;  %v2968_v33 = vld [vmem:[%s3298_s27 + $0x70] sm:$0xff]   ;;  %v2972_v37 = vld [vmem:[%s3298_s27 + $0x78] sm:$0xff]   ;;  %v2976_v41 = vld [vmem:[%s3298_s27 + $0x140] sm:$0xff]   ;;  %v3179_v17 = vmov 0.0  }
  0x20   : > { %2613 = vmatprep.subr.bf16.mxu1 %v2953_v18  ;;  %v2969_v34 = vld [vmem:[%s3298_s27 + $0xf0] sm:$0xff]   ;;  %v2973_v38 = vld [vmem:[%s3298_s27 + $0xf8] sm:$0xff]   ;;  %v2977_v42 = vld [vmem:[%s3298_s27 + $0x1c0] sm:$0xff]  }
  0x21   : > { %v2970_v35 = vld [vmem:[%s3298_s27 + $0x30] sm:$0xff]   ;;  %v2974_v39 = vld [vmem:[%s3298_s27 + $0x38] sm:$0xff]   ;;  %v2978_v43 = vld [vmem:[%s3298_s27 + $0x100] sm:$0xff]  }
  0x22   : > { %2592 = vmatpush3.bf16.msra.mxu0 %v2954_v19  ;;  %v2971_v36 = vld [vmem:[%s3298_s27 + $0xb0] sm:$0xff]   ;;  %v2975_v40 = vld [vmem:[%s3298_s27 + $0xb8] sm:$0xff]   ;;  %v2979_v44 = vld [vmem:[%s3298_s27 + $0x180] sm:$0xff]  }
  0x23   : > { %2614 = vmatpush3.bf16.msra.mxu1 %v2955_v20  ;;  %2593 = vmatprep.subr.bf16.mxu0 %v2956_v21  ;;  %v2980_v45 = vld [vmem:[%s3298_s27 + $0x148] sm:$0xff]   ;;  %v2984_v49 = vld [vmem:[%s3298_s27 + $0x150] sm:$0xff]   ;;  %v2988_v53 = vld [vmem:[%s3298_s27 + $0x158] sm:$0xff]  }
  0x24   : > { %2615 = vmatprep.subr.bf16.mxu1 %v2957_v22  ;;  %v2981_v46 = vld [vmem:[%s3298_s27 + $0x1c8] sm:$0xff]   ;;  %v2985_v50 = vld [vmem:[%s3298_s27 + $0x1d0] sm:$0xff]   ;;  %v2989_v54 = vld [vmem:[%s3298_s27 + $0x1d8] sm:$0xff]  }
  0x25   : > { %v2982_v47 = vld [vmem:[%s3298_s27 + $0x108] sm:$0xff]   ;;  %v2986_v51 = vld [vmem:[%s3298_s27 + $0x110] sm:$0xff]   ;;  %v2990_v55 = vld [vmem:[%s3298_s27 + $0x118] sm:$0xff]  }
  0x26   : > { %2594 = vmatpush3.bf16.msra.mxu0 %v2958_v23  ;;  %v2983_v48 = vld [vmem:[%s3298_s27 + $0x188] sm:$0xff]   ;;  %v2987_v52 = vld [vmem:[%s3298_s27 + $0x190] sm:$0xff]   ;;  %v2991_v56 = vld [vmem:[%s3298_s27 + $0x198] sm:$0xff]  }
  0x27   : > { %2616 = vmatpush3.bf16.msra.mxu1 %v2959_v24  ;;  %2595 = vmatprep.subr.bf16.mxu0 %v2960_v25  ;;  %v2992_v57 = vld [vmem:[%s3298_s27 + $0x160] sm:$0xff]   ;;  %v2996_v61 = vld [vmem:[%s3298_s27 + $0x168] sm:$0xff]   ;;  %v3000_v9 = vld [vmem:[%s3298_s27 + $0x170] sm:$0xff]  }
  0x28   : > { %2617 = vmatprep.subr.bf16.mxu1 %v2961_v26  ;;  %v2993_v58 = vld [vmem:[%s3298_s27 + $0x1e0] sm:$0xff]   ;;  %v2997_v62 = vld [vmem:[%s3298_s27 + $0x1e8] sm:$0xff]   ;;  %v3001_v10 = vld [vmem:[%s3298_s27 + $0x1f0] sm:$0xff]  }
  0x29   : > { %v2994_v59 = vld [vmem:[%s3298_s27 + $0x120] sm:$0xff]   ;;  %v2998_v63 = vld [vmem:[%s3298_s27 + $0x128] sm:$0xff]   ;;  %v3002_v11 = vld [vmem:[%s3298_s27 + $0x130] sm:$0xff]  }
  0x2a   : > { %2596 = vmatpush3.bf16.msra.mxu0 %v2962_v27  ;;  %v2995_v60 = vld [vmem:[%s3298_s27 + $0x1a0] sm:$0xff]   ;;  %v2999_v0 = vld [vmem:[%s3298_s27 + $0x1a8] sm:$0xff]   ;;  %v3003_v12 = vld [vmem:[%s3298_s27 + $0x1b0] sm:$0xff]  }
  0x2b   : > { %2618 = vmatpush3.bf16.msra.mxu1 %v2963_v28  ;;  %2597 = vmatprep.subr.bf16.mxu0 %v2964_v29  ;;  %v3004_v13 = vld [vmem:[%s3298_s27 + $0x178] sm:$0xff]   ;;  %v2406_v20 = vld [vmem:[%s200_s13] ss:$0 sm:$0xff] }
  0x2c   : > { %2619 = vmatprep.subr.bf16.mxu1 %v2965_v30  ;;  %v3005_v14 = vld [vmem:[%s3298_s27 + $0x1f8] sm:$0xff]  }
  0x2d   : > { %v3006_v15 = vld [vmem:[%s3298_s27 + $0x138] sm:$0xff]  }
  0x2e   : > { %2598 = vmatpush3.bf16.msra.mxu0 %v2966_v31  ;;  %v3007_v16 = vld [vmem:[%s3298_s27 + $0x1b8] sm:$0xff]  }
  0x2f   : > { %2620 = vmatpush3.bf16.msra.mxu1 %v2967_v32  ;;  %2599 = vmatprep.subr.bf16.mxu0 %v2968_v33 }
  0x30   : > { %2621 = vmatprep.subr.bf16.mxu1 %v2969_v34 }
  0x32   : > { %2600 = vmatpush3.bf16.msra.mxu0 %v2970_v35 }
  0x33   : > { %2622 = vmatpush3.bf16.msra.mxu1 %v2971_v36  ;;  %2601 = vmatprep.subr.bf16.mxu0 %v2972_v37 }
  0x34   : > { %2623 = vmatprep.subr.bf16.mxu1 %v2973_v38 }
  0x36   : > { %2602 = vmatpush3.bf16.msra.mxu0 %v2974_v39 }
  0x37   : > { %2624 = vmatpush3.bf16.msra.mxu1 %v2975_v40  ;;  %2631 = vmatprep.subr.bf16.mxu0 %v2976_v41 }
  0x38   : > { %2653 = vmatprep.subr.bf16.mxu1 %v2977_v42 }
  0x39   : > { %625 = vmatmul.mubr.bf16.vlgmr.msra.gmra.mrb[0].mxu0 %v3170_v1 }
  0x3a   : > { %665 = vmatmul.mubr.bf16.vlgmr.msra.gmra.mrb[0].mxu1 %v3162_v8  ;;  %2632 = vmatpush3.bf16.msra.mxu0 %v2978_v43 }
  0x3b   : > { %2654 = vmatpush3.bf16.msra.mxu1 %v2979_v44  ;;  %704 = vmatprep.mubr.bf16.mxu0 %v3150_v5 }
  0x3c   : > { %2633 = vmatprep.subr.bf16.mxu0 %v2980_v45  ;;  %744 = vmatprep.mubr.bf16.mxu1 %v3142_v3 }
  0x3d   : > { %2655 = vmatprep.subr.bf16.mxu1 %v2981_v46  ;;  %v754_v46 = vld [vmem:[%s3647_s6] sm:$0xf] }
  0x3e   : > { %2634 = vmatpush3.bf16.msra.mxu0 %v2982_v47  ;;  %v2472_v47 = vld [vmem:[%s3647_s6 + $0x4] sm:$0xf] }
  0x3f   : > { %2656 = vmatpush3.bf16.msra.mxu1 %v2983_v48  ;;  %2635 = vmatprep.subr.bf16.mxu0 %v2984_v49  ;;  %v2474_v48 = vld [vmem:[%s3647_s6 + $0x8] sm:$0xf]  ;;  %v2476_v49 = vld [vmem:[%s3647_s6 + $0xc] sm:$0xf] }
  0x40   : > { %2657 = vmatprep.subr.bf16.mxu1 %v2985_v50  ;;  %v2478_v50 = vld [vmem:[%s3647_s6 + $0x10] sm:$0xf] }
  0x42   : > { %2636 = vmatpush3.bf16.msra.mxu0 %v2986_v51  ;;  %v2480_v51 = vld [vmem:[%s3647_s6 + $0x14] sm:$0xf] }
  0x43   : > { %2658 = vmatpush3.bf16.msra.mxu1 %v2987_v52  ;;  %2637 = vmatprep.subr.bf16.mxu0 %v2988_v53  ;;  %v3008_v52 = vld [vmem:[%s3371_s10 + $0x40] sm:$0xff]   ;;  %v2482_v53 = vld [vmem:[%s3647_s6 + $0x18] sm:$0xf] }
  0x44   : > { %2659 = vmatprep.subr.bf16.mxu1 %v2989_v54  ;;  %v2484_v54 = vld [vmem:[%s3647_s6 + $0x1c] sm:$0xf] }
  0x46   : > { %2638 = vmatpush3.bf16.msra.mxu0 %v2990_v55  ;;  %v3009_v55 = vld [vmem:[%s3371_s10] sm:$0xff]  }
  0x47   : > { %2660 = vmatpush3.bf16.msra.mxu1 %v2991_v56  ;;  %2639 = vmatprep.subr.bf16.mxu0 %v2992_v57  ;;  %v3013_v56 = vld [vmem:[%s3371_s10 + $0xc0] sm:$0xff]   ;;  %v3010_v57 = vld [vmem:[%s3371_s10 + $0x48] sm:$0xff]  }
  0x48   : > { %2661 = vmatprep.subr.bf16.mxu1 %v2993_v58  ;;  %v3011_v58 = vld [vmem:[%s3371_s10 + $0x8] sm:$0xff]  }
  0x4a   : > { %2640 = vmatpush3.bf16.msra.mxu0 %v2994_v59  ;;  %v3012_v59 = vld [vmem:[%s3371_s10 + $0x50] sm:$0xff]  }
  0x4b   : > { %2662 = vmatpush3.bf16.msra.mxu1 %v2995_v60  ;;  %2641 = vmatprep.subr.bf16.mxu0 %v2996_v61  ;;  %v2486_v60 = vld [vmem:[%s3647_s6 + $0x20] sm:$0xf] }
  0x4c   : > { %2663 = vmatprep.subr.bf16.mxu1 %v2997_v62  ;;  %v3015_v61 = vld [vmem:[%s3371_s10 + $0x80] sm:$0xff]   ;;  %v3014_v62 = vld [vmem:[%s3371_s10 + $0x10] sm:$0xff]  }
  0x4e   : > { %2642 = vmatpush3.bf16.msra.mxu0 %v2998_v63  ;;  %v3017_v63 = vld [vmem:[%s3371_s10 + $0xc8] sm:$0xff]  }
  0x4f   : > { %2664 = vmatpush3.bf16.msra.mxu1 %v2999_v0  ;;  %2643 = vmatprep.subr.bf16.mxu0 %v3000_v9  ;;  %v3016_v0 = vld [vmem:[%s3371_s10 + $0x58] sm:$0xff]   ;;  %v3019_v9 = vld [vmem:[%s3371_s10 + $0x88] sm:$0xff]  }
  0x50   : > { %2665 = vmatprep.subr.bf16.mxu1 %v3001_v10  ;;  %v3018_v10 = vld [vmem:[%s3371_s10 + $0x18] sm:$0xff]  }
  0x52   : > { %2644 = vmatpush3.bf16.msra.mxu0 %v3002_v11  ;;  %v3021_v11 = vld [vmem:[%s3371_s10 + $0xd0] sm:$0xff]  }
  0x53   : > { %2666 = vmatpush3.bf16.msra.mxu1 %v3003_v12  ;;  %2645 = vmatprep.subr.bf16.mxu0 %v3004_v13  ;;  %v3020_v12 = vld [vmem:[%s3371_s10 + $0x60] sm:$0xff]   ;;  %v3023_v13 = vld [vmem:[%s3371_s10 + $0x90] sm:$0xff]  }
  0x54   : > { %2667 = vmatprep.subr.bf16.mxu1 %v3005_v14  ;;  %v3022_v14 = vld [vmem:[%s3371_s10 + $0x20] sm:$0xff]  }
  0x56   : > { %2646 = vmatpush3.bf16.msra.mxu0 %v3006_v15  ;;  %v3025_v15 = vld [vmem:[%s3371_s10 + $0xd8] sm:$0xff]  }
  0x57   : > { %2668 = vmatpush3.bf16.msra.mxu1 %v3007_v16  ;;  %2790 = vmatprep.subr.bf16.mxu0 %v3179_v17  ;;  %v3024_v16 = vld [vmem:[%s3371_s10 + $0x68] sm:$0xff]  }
  0x58   : > { %2796 = vmatprep.subr.bf16.mxu1 %v3179_v17 }
  0x59   : > { %705 = vmatmul.mubr.bf16.vlgmr.msra.gmra.mrb[4].mxu0 %v3154_v6 }
  0x5a   : > { %745 = vmatmul.mubr.bf16.vlgmr.msra.gmra.mrb[4].mxu1 %v3146_v4  ;;  %2792 = vmatprep.mubr.msk.bf16.mxu0 %vm3180_vm0, %v3179_v17 }
  0x5b   : > { %2798 = vmatprep.mubr.msk.bf16.mxu1 %vm3180_vm0, %v3179_v17 }
 0x10c   : > { %v2603_v18 = vpop.f32.mrb[0].mxu0 }
 0x10d   : > { %v2625_v19 = vpop.f32.mrb[0].mxu1  ;;  %v2604_v21 = vpop.f32.mrb[1].mxu0 }
 0x10e   : > { %v2605_v22 = vadd.f32 %v2604_v21, %v2603_v18  ;;  %v2626_v23 = vpop.f32.mrb[1].mxu1  ;;  %v2606_v24 = vpop.f32.mrb[2].mxu0  ;;  %v3027_v18 = vld [vmem:[%s3371_s10 + $0x98] sm:$0xff]   ;;  %v3028_v21 = vld [vmem:[%s3371_s10 + $0x70] sm:$0xff]  }
 0x10f   : > { %v2627_v25 = vadd.f32 %v2626_v23, %v2625_v19  ;;  %v2628_v26 = vpop.f32.mrb[2].mxu1  ;;  %v2607_v27 = vpop.f32.mrb[3].mxu0  ;;  %v3026_v19 = vld [vmem:[%s3371_s10 + $0x28] sm:$0xff]   ;;  %v3030_v23 = vld [vmem:[%s3371_s10 + $0x30] sm:$0xff]  }
 0x110   : > { %v627_v28 = vadd.f32 %v2605_v22, %v2406_v20  ;;  %v2629_v29 = vpop.f32.mrb[3].mxu1  ;;  %v3029_v20 = vld [vmem:[%s3371_s10 + $0xe0] sm:$0xff]   ;;  %v3033_v24 = vld [vmem:[%s3371_s10 + $0xe8] sm:$0xff]   ;;  %v3034_v26 = vld [vmem:[%s3371_s10 + $0x38] sm:$0xff]  }
 0x111   : > { %v3031_v22 = vld [vmem:[%s3371_s10 + $0xa0] sm:$0xff]   ;;  %v3035_v27 = vld [vmem:[%s3371_s10 + $0xa8] sm:$0xff]  }
 0x112   : > { %v667_v30 = vadd.f32 %v2627_v25, %v627_v28  ;;  %v3032_v25 = vld [vmem:[%s3371_s10 + $0x78] sm:$0xff]   ;;  %v3036_v28 = vld [vmem:[%s3371_s10 + $0xf0] sm:$0xff]   ;;  %v3037_v29 = vld [vmem:[%s3371_s10 + $0x140] sm:$0xff]  }
 0x12c   : > { %v2647_v31 = vpop.f32.mrb[4].mxu0 }
 0x12d   : > { %v2669_v32 = vpop.f32.mrb[4].mxu1  ;;  %v2648_v33 = vpop.f32.mrb[5].mxu0 }
 0x12e   : > { %v2649_v34 = vadd.f32 %v2648_v33, %v2647_v31  ;;  %v2670_v35 = vpop.f32.mrb[5].mxu1  ;;  %v2650_v36 = vpop.f32.mrb[6].mxu0  ;;  %v3040_v31 = vld [vmem:[%s3371_s10 + $0xf8] sm:$0xff]   ;;  %v3045_v33 = vld [vmem:[%s3371_s10 + $0x1c0] sm:$0xff]  }
 0x12f   : > { %v2671_v37 = vadd.f32 %v2670_v35, %v2669_v32  ;;  %v2672_v38 = vpop.f32.mrb[6].mxu1  ;;  %v2651_v39 = vpop.f32.mrb[7].mxu0  ;;  %v3042_v32 = vld [vmem:[%s3371_s10 + $0xb8] sm:$0xff]  }
 0x130   : > { %v707_v40 = vadd.f32 %v2649_v34, %v667_v30  ;;  %v2673_v41 = vpop.f32.mrb[7].mxu1  ;;  %v3038_v30 = vld [vmem:[%s3371_s10 + $0xb0] sm:$0xff]  }
 0x132   : > { %v747_v42 = vadd.f32 %v2671_v37, %v707_v40  ;;  %v3039_v40 = vld [vmem:[%s3371_s10 + $0x100] sm:$0xff]  }
 0x134   : > { %v752_v43 = vmax.f32 %v747_v42, 0.0 }
 0x136   : > { %v753_v44 = vpack.c.bf16 %v752_v43, %v752_v43  ;;  %v3041_v43 = vld [vmem:[%s3371_s10 + $0x148] sm:$0xff]  }
 0x138   : > { %v761_v45 = vsel %vm759_vm1, %v753_v44, 0 }
 0x139   : > { %2791 = vmatpush3.bf16.msra.mxu0 %v761_v45  ;;  %2797 = vmatpush3.bf16.msra.mxu1 %v761_v45 }
 0x13a   : > { %2802 = vmatprep.subr.bf16.mxu0 %v3179_v17  ;;  %2808 = vmatprep.subr.bf16.mxu1 %v3179_v17 }
 0x13c   : > { %2793 = vmatmul.mubr.msk.bf16.vlgmr.msra.gmra.mrb[8].mxu0 %vm755_vm2, %v754_v46  ;;  %2799 = vmatmul.mubr.msk.bf16.vlgmr.msra.gmra.mrb[8].mxu1 %vm755_vm2, %v2472_v47  ;;  %v3043_v46 = vld [vmem:[%s3371_s10 + $0x108] sm:$0xff]   ;;  %v3044_v47 = vld [vmem:[%s3371_s10 + $0x150] sm:$0xff]  }
 0x13d   : > { %2803 = vmatpush3.bf16.msra.mxu0 %v761_v45  ;;  %2809 = vmatpush3.bf16.msra.mxu1 %v761_v45 }
 0x13e   : > { %2804 = vmatprep.mubr.msk.bf16.mxu0 %vm3180_vm0, %v3179_v17  ;;  %2810 = vmatprep.mubr.msk.bf16.mxu1 %vm3180_vm0, %v3179_v17 }
 0x13f   : > { %2814 = vmatprep.subr.bf16.mxu0 %v3179_v17  ;;  %2820 = vmatprep.subr.bf16.mxu1 %v3179_v17 }
 0x144   : > { %2805 = vmatmul.mubr.msk.bf16.vlgmr.msra.gmra.mrb[12].mxu0 %vm755_vm2, %v2474_v48  ;;  %2811 = vmatmul.mubr.msk.bf16.vlgmr.msra.gmra.mrb[12].mxu1 %vm755_vm2, %v2476_v49 }
 0x145   : > { %2815 = vmatpush3.bf16.msra.mxu0 %v761_v45  ;;  %2821 = vmatpush3.bf16.msra.mxu1 %v761_v45 }
 0x146   : > { %2816 = vmatprep.mubr.msk.bf16.mxu0 %vm3180_vm0, %v3179_v17  ;;  %2822 = vmatprep.mubr.msk.bf16.mxu1 %vm3180_vm0, %v3179_v17 }
 0x147   : > { %2826 = vmatprep.subr.bf16.mxu0 %v3179_v17  ;;  %2832 = vmatprep.subr.bf16.mxu1 %v3179_v17 }
 0x14c   : > { %2817 = vmatmul.mubr.msk.bf16.vlgmr.msra.gmra.mrb[16].mxu0 %vm755_vm2, %v2478_v50  ;;  %2823 = vmatmul.mubr.msk.bf16.vlgmr.msra.gmra.mrb[16].mxu1 %vm755_vm2, %v2480_v51 }
 0x14d   : > { %2827 = vmatpush3.bf16.msra.mxu0 %v761_v45  ;;  %2833 = vmatpush3.bf16.msra.mxu1 %v761_v45 }
 0x14e   : > { %2828 = vmatprep.mubr.msk.bf16.mxu0 %vm3180_vm0, %v3179_v17  ;;  %2838 = vmatprep.subr.bf16.mxu0 %v3179_v17 }
 0x14f   : > { %2834 = vmatprep.mubr.msk.bf16.mxu1 %vm3180_vm0, %v3179_v17  ;;  %2693 = vmatprep.subr.bf16.mxu1 %v3008_v52  ;;  %v3046_v52 = vld [vmem:[%s3371_s10 + $0x110] sm:$0xff]  }
 0x154   : > { %2829 = vmatmul.mubr.msk.bf16.vlgmr.msra.gmra.mrb[20].mxu0 %vm755_vm2, %v2482_v53  ;;  %2835 = vmatmul.mubr.msk.bf16.vlgmr.msra.gmra.mrb[20].mxu1 %vm755_vm2, %v2484_v54  ;;  %v3047_v53 = vld [vmem:[%s3371_s10 + $0x180] sm:$0xff]  }
 0x155   : > { %2839 = vmatpush3.bf16.msra.mxu0 %v761_v45  ;;  %2840 = vmatprep.mubr.msk.bf16.mxu0 %vm3180_vm0, %v3179_v17 }
 0x156   : > { %2694 = vmatpush3.bf16.msra.mxu1 %v3009_v55  ;;  %2715 = vmatprep.subr.bf16.mxu0 %v3013_v56  ;;  %v3048_v56 = vld [vmem:[%s3371_s10 + $0x158] sm:$0xff]  }
 0x157   : > { %2695 = vmatprep.subr.bf16.mxu1 %v3010_v57  ;;  %v3049_v57 = vld [vmem:[%s3371_s10 + $0x1c8] sm:$0xff]  }
 0x15a   : > { %2696 = vmatpush3.bf16.msra.mxu1 %v3011_v58 }
 0x15b   : > { %2697 = vmatprep.subr.bf16.mxu1 %v3012_v59 }
 0x15c   : > { %2841 = vmatmul.mubr.msk.bf16.vlgmr.msra.gmra.mrb[24].mxu0 %vm755_vm2, %v2486_v60 }
 0x15d   : > { %2716 = vmatpush3.bf16.msra.mxu0 %v3015_v61 }
 0x15e   : > { %2698 = vmatpush3.bf16.msra.mxu1 %v3014_v62  ;;  %2717 = vmatprep.subr.bf16.mxu0 %v3017_v63  ;;  %v3050_v62 = vld [vmem:[%s3371_s10 + $0x118] sm:$0xff]   ;;  %v3051_v63 = vld [vmem:[%s3371_s10 + $0x188] sm:$0xff]  }
 0x15f   : > { %2699 = vmatprep.subr.bf16.mxu1 %v3016_v0  ;;  %v3052_v0 = vld [vmem:[%s3371_s10 + $0x160] sm:$0xff]  }
 0x161   : > { %2718 = vmatpush3.bf16.msra.mxu0 %v3019_v9  ;;  %v3053_v9 = vld [vmem:[%s3371_s10 + $0x1d0] sm:$0xff]  }
 0x162   : > { %2700 = vmatpush3.bf16.msra.mxu1 %v3018_v10  ;;  %2719 = vmatprep.subr.bf16.mxu0 %v3021_v11 }
 0x163   : > { %2701 = vmatprep.subr.bf16.mxu1 %v3020_v12  ;;  %v3054_v12 = vld [vmem:[%s3371_s10 + $0x120] sm:$0xff]  }
 0x165   : > { %2720 = vmatpush3.bf16.msra.mxu0 %v3023_v13  ;;  %v3055_v13 = vld [vmem:[%s3371_s10 + $0x190] sm:$0xff]  }
 0x166   : > { %2702 = vmatpush3.bf16.msra.mxu1 %v3022_v14  ;;  %2721 = vmatprep.subr.bf16.mxu0 %v3025_v15 }
 0x167   : > { %2703 = vmatprep.subr.bf16.mxu1 %v3024_v16 }
 0x169   : > { %2722 = vmatpush3.bf16.msra.mxu0 %v3027_v18  ;;  %v3056_v18 = vld [vmem:[%s3371_s10 + $0x168] sm:$0xff]  }
 0x16a   : > { %2704 = vmatpush3.bf16.msra.mxu1 %v3026_v19  ;;  %2723 = vmatprep.subr.bf16.mxu0 %v3029_v20  ;;  %v3057_v19 = vld [vmem:[%s3371_s10 + $0x1d8] sm:$0xff]  }
 0x16b   : > { %2705 = vmatprep.subr.bf16.mxu1 %v3028_v21 }
 0x16d   : > { %2724 = vmatpush3.bf16.msra.mxu0 %v3031_v22 }
 0x16e   : > { %2706 = vmatpush3.bf16.msra.mxu1 %v3030_v23  ;;  %2725 = vmatprep.subr.bf16.mxu0 %v3033_v24  ;;  %v3058_v24 = vld [vmem:[%s3371_s10 + $0x128] sm:$0xff]  }
 0x16f   : > { %2707 = vmatprep.subr.bf16.mxu1 %v3032_v25  ;;  %v3059_v25 = vld [vmem:[%s3371_s10 + $0x198] sm:$0xff]  }
 0x171   : > { %2726 = vmatpush3.bf16.msra.mxu0 %v3035_v27  ;;  %v3061_v27 = vld [vmem:[%s3371_s10 + $0x1e0] sm:$0xff]  }
 0x172   : > { %2708 = vmatpush3.bf16.msra.mxu1 %v3034_v26  ;;  %2727 = vmatprep.subr.bf16.mxu0 %v3036_v28  ;;  %v3060_v26 = vld [vmem:[%s3371_s10 + $0x170] sm:$0xff]  }
 0x173   : > { %2737 = vmatprep.subr.bf16.mxu1 %v3037_v29 }
 0x175   : > { %2728 = vmatpush3.bf16.msra.mxu0 %v3038_v30  ;;  %v3062_v30 = vld [vmem:[%s3371_s10 + $0x130] sm:$0xff]  }
 0x176   : > { %2729 = vmatprep.subr.bf16.mxu0 %v3040_v31  ;;  %v3063_v31 = vld [vmem:[%s3371_s10 + $0x1a0] sm:$0xff]  }
 0x179   : > { %2730 = vmatpush3.bf16.msra.mxu0 %v3042_v32 }
 0x17a   : > { %2759 = vmatprep.subr.bf16.mxu0 %v3045_v33 }
 0x20f   : > { %v843_v34 = vpop.f32.mrb[8].mxu1  ;;  %v797_v35 = vpop.f32.mrb[8].mxu0 }
 0x210   : > { %v849_v36 = vpack.c.bf16 %v843_v34, %v843_v34  ;;  %v803_v37 = vpack.c.bf16 %v797_v35, %v797_v35  ;;  %v2800_v38 = vpop.f32.mrb[9].mxu1  ;;  %v2794_v39 = vpop.f32.mrb[9].mxu0  ;;  %v3064_v35 = vld [vmem:[%s3371_s10 + $0x178] sm:$0xff]  }
 0x211   : > { %v846_v41 = vpop.f32.mrb[10].mxu1  ;;  %v800_v42 = vpop.f32.mrb[10].mxu0 }
 0x212   : > { %1791 = vmatprep.mubr.bf16.mxu1 %v849_v36  ;;  %v2801_v44 = vpop.f32.mrb[11].mxu1  ;;  %v2795_v45 = vpop.f32.mrb[11].mxu0  ;;  %v3065_v36 = vld [vmem:[%s3371_s10 + $0x1e8] sm:$0xff]   ;;  %v3066_v41 = vld [vmem:[%s3371_s10 + $0x138] sm:$0xff]  }
 0x213   : > { %1792 = vmatmul.mubr.bf16.vlgmr.msra.gmra.mrb[24].mxu1 %v803_v37  ;;  %v3067_v42 = vld [vmem:[%s3371_s10 + $0x1a8] sm:$0xff]  }
 0x214   : > { %2738 = vmatpush3.bf16.msra.mxu1 %v3039_v40 }
 0x215   : > { %2739 = vmatprep.subr.bf16.mxu1 %v3041_v43  ;;  %v3068_v43 = vld [vmem:[%s3371_s10 + $0x1f0] sm:$0xff]  }
 0x217   : > { %v935_v48 = vpop.f32.mrb[12].mxu1  ;;  %v889_v49 = vpop.f32.mrb[12].mxu0 }
 0x218   : > { %v941_v50 = vpack.c.bf16 %v935_v48, %v935_v48  ;;  %2740 = vmatpush3.bf16.msra.mxu1 %v3043_v46  ;;  %v895_v51 = vpack.c.bf16 %v889_v49, %v889_v49  ;;  %v2812_v54 = vpop.f32.mrb[13].mxu1  ;;  %v2806_v55 = vpop.f32.mrb[13].mxu0  ;;  %v3069_v46 = vld [vmem:[%s3371_s10 + $0x1b0] sm:$0xff]   ;;  %v3071_v49 = vld [vmem:[%s3371_s10 + $0x1f8] sm:$0xff]  }
 0x219   : > { %2741 = vmatprep.subr.bf16.mxu1 %v3044_v47  ;;  %v938_v58 = vpop.f32.mrb[14].mxu1  ;;  %v892_v59 = vpop.f32.mrb[14].mxu0  ;;  %v3070_v47 = vld [vmem:[%s3371_s10 + $0x200] sm:$0xff]   ;;  %v3074_v55 = vld [vmem:[%s3371_s10 + $0x210] sm:$0xff]  }
 0x21a   : > { %1831 = vmatprep.mubr.bf16.mxu0 %v941_v50  ;;  %v2813_v60 = vpop.f32.mrb[15].mxu1  ;;  %v2807_v61 = vpop.f32.mrb[15].mxu0  ;;  %v3077_v58 = vld [vmem:[%s3371_s10 + $0x228] sm:$0xff]   ;;  %v3078_v59 = vld [vmem:[%s3371_s10 + $0x230] sm:$0xff]  }
 0x21b   : > { %1832 = vmatmul.mubr.bf16.vlgmr.msra.gmra.mrb[28].mxu0 %v895_v51  ;;  %v3079_v60 = vld [vmem:[%s3371_s10 + $0x238] sm:$0xff]  }
 0x21c   : > { %2742 = vmatpush3.bf16.msra.mxu1 %v3046_v52  ;;  %2760 = vmatpush3.bf16.msra.mxu0 %v3047_v53  ;;  %v3072_v52 = vld [vmem:[%s3371_s10 + $0x1b8] sm:$0xff]   ;;  %v3073_v53 = vld [vmem:[%s3371_s10 + $0x208] sm:$0xff]  }
 0x21d   : > { %2743 = vmatprep.subr.bf16.mxu1 %v3048_v56  ;;  %2761 = vmatprep.subr.bf16.mxu0 %v3049_v57  ;;  %v3075_v56 = vld [vmem:[%s3371_s10 + $0x218] sm:$0xff]   ;;  %v3076_v57 = vld [vmem:[%s3371_s10 + $0x220] sm:$0xff]  }
 0x21f   : > { %v1027_v10 = vpop.f32.mrb[16].mxu1  ;;  %v981_v11 = vpop.f32.mrb[16].mxu0 }
 0x220   : > { %2744 = vmatpush3.bf16.msra.mxu1 %v3050_v62  ;;  %2762 = vmatpush3.bf16.msra.mxu0 %v3051_v63  ;;  %v1033_v14 = vpack.c.bf16 %v1027_v10, %v1027_v10  ;;  %v2824_v15 = vpop.f32.mrb[17].mxu1  ;;  %v2818_v16 = vpop.f32.mrb[17].mxu0  ;;  %v987_v44 = vpack.c.bf16 %v981_v11, %v981_v11  ;;  %v1964_v62 = vld [vmem:[%s3526_s12] sm:$0xff] }
 0x221   : > { %2745 = vmatprep.subr.bf16.mxu1 %v3052_v0  ;;  %2763 = vmatprep.subr.bf16.mxu0 %v3053_v9  ;;  %v1030_v20 = vpop.f32.mrb[18].mxu1  ;;  %v984_v21 = vpop.f32.mrb[18].mxu0  ;;  %v1968_v63 = vld [vmem:[%s3526_s12 + $0x20] sm:$0xff]  ;;  %v3181_v16 = vmov 0  }
 0x222   : > { %1871 = vmatprep.mubr.bf16.mxu1 %v1033_v14  ;;  %v2825_v22 = vpop.f32.mrb[19].mxu1  ;;  %v2819_v23 = vpop.f32.mrb[19].mxu0  ;;  %v2564_v0 = vcombine.low %v1964_v62, %v1968_v63  ;;  %v2565_v9 = vcombine.high %v1964_v62, %v1968_v63  ;;  %v1972_v10 = vld [vmem:[%s3526_s12 + $0x40] sm:$0xff]  ;;  %v1969_v14 = vld [vmem:[%s3526_s12 + $0x28] sm:$0xff]  ;;  %v1967_v62 = vld [vmem:[%s3526_s12 + $0x18] sm:$0xff] }
 0x223   : > { %v1971_v63 = vld [vmem:[%s3526_s12 + $0x38] sm:$0xff] }
 0x224   : > { %2746 = vmatpush3.bf16.msra.mxu1 %v3054_v12  ;;  %2764 = vmatpush3.bf16.msra.mxu0 %v3055_v13  ;;  %v1965_v13 = vld [vmem:[%s3526_s12 + $0x8] sm:$0xff] }
 0x225   : > { %2747 = vmatprep.subr.bf16.mxu1 %v3056_v18  ;;  %2765 = vmatprep.subr.bf16.mxu0 %v3057_v19  ;;  %v2567_v15 = vcombine.high %v1965_v13, %v1969_v14  ;;  %v2566_v18 = vcombine.low %v1965_v13, %v1969_v14 }
 0x227   : > { %v1119_v28 = vpop.f32.mrb[20].mxu1  ;;  %v1073_v29 = vpop.f32.mrb[20].mxu0 }
 0x228   : > { %2748 = vmatpush3.bf16.msra.mxu1 %v3058_v24  ;;  %2766 = vmatpush3.bf16.msra.mxu0 %v3059_v25  ;;  %v1125_v32 = vpack.c.bf16 %v1119_v28, %v1119_v28  ;;  %v2830_v33 = vpop.f32.mrb[21].mxu0  ;;  %v2836_v34 = vpop.f32.mrb[21].mxu1  ;;  %v1079_v54 = vpack.c.bf16 %v1073_v29, %v1073_v29  ;;  %v2489_v24 = vld [vmem:[%s1319_s14] ss:$0 sm:$0xff] }
 0x229   : > { %2749 = vmatprep.subr.bf16.mxu1 %v3060_v26  ;;  %2767 = vmatprep.subr.bf16.mxu0 %v3061_v27  ;;  %v1076_v37 = vpop.f32.mrb[22].mxu0  ;;  %v1122_v38 = vpop.f32.mrb[22].mxu1 }
 0x22a   : > { %1911 = vmatprep.mubr.bf16.mxu0 %v1125_v32  ;;  %v2831_v39 = vpop.f32.mrb[23].mxu0  ;;  %v2837_v40 = vpop.f32.mrb[23].mxu1 }
 0x22c   : > { %2750 = vmatpush3.bf16.msra.mxu1 %v3062_v30  ;;  %2768 = vmatpush3.bf16.msra.mxu0 %v3063_v31 }
 0x22d   : > { %2751 = vmatprep.subr.bf16.mxu1 %v3064_v35  ;;  %2769 = vmatprep.subr.bf16.mxu0 %v3065_v36 }
 0x22f   : > { %v1165_v45 = vpop.f32.mrb[24].mxu0 }
 0x230   : > { %2752 = vmatpush3.bf16.msra.mxu1 %v3066_v41  ;;  %2770 = vmatpush3.bf16.msra.mxu0 %v3067_v42  ;;  %v2842_v48 = vpop.f32.mrb[25].mxu0  ;;  %v1171_v61 = vpack.c.bf16 %v1165_v45, %v1165_v45 }
 0x231   : > { %2771 = vmatprep.subr.bf16.mxu0 %v3068_v43  ;;  %2844 = vmatprep.subr.bf16.mxu1 %v3179_v17  ;;  %v1168_v50 = vpop.f32.mrb[26].mxu0  ;;  %v1973_v48 = vld [vmem:[%s3526_s12 + $0x48] sm:$0xff] }
 0x232   : > { %v2843_v51 = vpop.f32.mrb[27].mxu0 }
 0x233   : > { %1872 = vmatmul.mubr.bf16.vlgmr.msra.gmra.mrb[28].mxu1 %v987_v44 }
 0x234   : > { %2772 = vmatpush3.bf16.msra.mxu0 %v3069_v46  ;;  %2845 = vmatpush3.bf16.msra.mxu1 %v3070_v47 }
 0x235   : > { %2773 = vmatprep.subr.bf16.mxu0 %v3071_v49  ;;  %2846 = vmatprep.subr.bf16.mxu1 %v3179_v17  ;;  %v1977_v49 = vld [vmem:[%s3526_s12 + $0x68] sm:$0xff] }
 0x236   : > { %2860 = vmatprep.mubr.msk.bf16.mxu1 %vm3180_vm0, %v3179_v17 }
 0x238   : > { %2774 = vmatpush3.bf16.msra.mxu0 %v3072_v52  ;;  %2847 = vmatpush3.bf16.msra.mxu1 %v3073_v53  ;;  %v2575_v53 = vcombine.high %v1973_v48, %v1977_v49 }
 0x239   : > { %2848 = vmatprep.subr.bf16.mxu1 %v3179_v17  ;;  %2064 = vmatprep.subr.bf16.mxu0 %v2565_v9  ;;  %v2571_v9 = vcombine.high %v1967_v62, %v1971_v63 }
 0x23b   : > { %1912 = vmatmul.mubr.bf16.vlgmr.msra.gmra.mrb[32].mxu0 %v1079_v54  ;;  %v1966_v54 = vld [vmem:[%s3526_s12 + $0x10] sm:$0xff] }
 0x23c   : > { %2849 = vmatpush3.bf16.msra.mxu1 %v3074_v55  ;;  %2065 = vmatpush1.bf16.msra.mxu0 %v2564_v0  ;;  %v1970_v55 = vld [vmem:[%s3526_s12 + $0x30] sm:$0xff] }
 0x23d   : > { %2850 = vmatprep.subr.bf16.mxu1 %v3179_v17  ;;  %2096 = vmatprep.mubr.bf16.mxu0 %v3181_v16 }
 0x240   : > { %2851 = vmatpush3.bf16.msra.mxu1 %v3075_v56  ;;  %v2574_v56 = vcombine.low %v1973_v48, %v1977_v49  ;;  %v2252_v49 = vld [vmem:[%s3648_s7] sm:$0xff] (%p57_p8) }
 0x241   : > { %2852 = vmatprep.subr.bf16.mxu1 %v3179_v17 }
 0x244   : > { %2853 = vmatpush3.bf16.msra.mxu1 %v3076_v57  ;;  %v2569_v57 = vcombine.high %v1966_v54, %v1970_v55 }
 0x245   : > { %2854 = vmatprep.subr.bf16.mxu1 %v3179_v17 }
 0x248   : > { %2855 = vmatpush3.bf16.msra.mxu1 %v3077_v58  ;;  %v1974_v58 = vld [vmem:[%s3526_s12 + $0x50] sm:$0xff] }
 0x249   : > { %2856 = vmatprep.subr.bf16.mxu1 %v3179_v17 }
 0x24c   : > { %2857 = vmatpush3.bf16.msra.mxu1 %v3078_v59  ;;  %v1978_v59 = vld [vmem:[%s3526_s12 + $0x70] sm:$0xff] }
 0x24d   : > { %2858 = vmatprep.subr.bf16.mxu1 %v3179_v17  ;;  %v1976_v17 = vld [vmem:[%s3526_s12 + $0x60] sm:$0xff]  ;;  %v2576_v0 = vcombine.low %v1974_v58, %v1978_v59 }
 0x24e   : > { %v2573_v11 = vcombine.high %v1972_v10, %v1976_v17  ;;  %v2572_v12 = vcombine.low %v1972_v10, %v1976_v17  ;;  %v1975_v10 = vld [vmem:[%s3526_s12 + $0x58] sm:$0xff] }
 0x24f   : > { %v1979_v17 = vld [vmem:[%s3526_s12 + $0x78] sm:$0xff] }
 0x250   : > { %2859 = vmatpush3.bf16.msra.mxu1 %v3079_v60  ;;  %2066 = vmatprep.subr.bf16.mxu0 %v2573_v11  ;;  %v2568_v60 = vcombine.low %v1966_v54, %v1970_v55  ;;  %v2570_v11 = vcombine.low %v1967_v62, %v1971_v63  ;;  %v2578_v13 = vcombine.low %v1975_v10, %v1979_v17 }
 0x251   : > { %2067 = vmatpush1.bf16.msra.mxu0 %v2572_v12  ;;  %v2579_v12 = vcombine.high %v1975_v10, %v1979_v17 }
 0x252   : > { %2105 = vmatprep.subr.bf16.mxu0 %v2567_v15 }
 0x253   : > { %2861 = vmatmul.mubr.bf16.vlgmr.msra.gmra.mrb[32].mxu1 %v1171_v61  ;;  %v2577_v61 = vcombine.high %v1974_v58, %v1978_v59 }
 0x2e6   : > { %v2709_v19 = vpop.f32.mrb[24].mxu1 }
 0x2e7   : > { %v2710_v20 = vpop.f32.mrb[25].mxu1 }
 0x2e8   : > { %v2711_v21 = vadd.f32 %v2710_v20, %v2709_v19  ;;  %v2712_v22 = vpop.f32.mrb[26].mxu1 }
 0x2e9   : > { %v2713_v23 = vpop.f32.mrb[27].mxu1 }
 0x2ea   : > { %v1794_v27 = vadd.f32 %v2711_v21, %v2489_v24 }
 0x2ee   : > { %v2731_v25 = vpop.f32.mrb[28].mxu0 }
 0x2ef   : > { %v2732_v26 = vpop.f32.mrb[29].mxu0 }
 0x2f0   : > { %v2733_v28 = vadd.f32 %v2732_v26, %v2731_v25  ;;  %v2734_v29 = vpop.f32.mrb[30].mxu0 }
 0x2f1   : > { %v2735_v30 = vpop.f32.mrb[31].mxu0 }
 0x2f2   : > { %v1834_v31 = vadd.f32 %v2733_v28, %v1794_v27 }
 0x306   : > { %v2753_v32 = vpop.f32.mrb[28].mxu1 }
 0x307   : > { %v2754_v33 = vpop.f32.mrb[29].mxu1 }
 0x308   : > { %v2755_v34 = vadd.f32 %v2754_v33, %v2753_v32  ;;  %v2756_v35 = vpop.f32.mrb[30].mxu1 }
 0x309   : > { %v2757_v36 = vpop.f32.mrb[31].mxu1 }
 0x30a   : > { %v1874_v37 = vadd.f32 %v2755_v34, %v1834_v31 }
 0x30e   : > { %v2775_v38 = vpop.f32.mrb[32].mxu0 }
 0x30f   : > { %v2776_v39 = vpop.f32.mrb[33].mxu0 }
 0x310   : > { %v2777_v40 = vadd.f32 %v2776_v39, %v2775_v38  ;;  %v2778_v41 = vpop.f32.mrb[34].mxu0 }
 0x311   : > { %v2779_v42 = vpop.f32.mrb[35].mxu0 }
 0x312   : > { %v1914_v43 = vadd.f32 %v2777_v40, %v1874_v37 }
 0x326   : > { %v1953_v44 = vpop.f32.mrb[32].mxu1 }
 0x327   : > { %v1954_v45 = vadd.f32 %v1953_v44, %v1914_v43  ;;  %v2862_v46 = vpop.f32.mrb[33].mxu1  ;;  %v2254_v43 = vlaneseq (%p57_p8) }
 0x328   : > { %v1956_v47 = vpop.f32.mrb[34].mxu1 }
 0x329   : > { %v1959_v50 = vmax.f32 %v1954_v45, 0.0  ;;  %v2863_v51 = vpop.f32.mrb[35].mxu1  ;;  %v2255_v45 = vshrl.u32 (%p57_p8), %v2254_v43, 7 }
 0x32b   : > { %v1960_v52 = vpack.c.bf16 %v1959_v50, %v1959_v50  ;;  %v2302_v50 = vld [vmem:[%s3649_s8] sm:$0xff] (%p57_p8)  ;;  %v2268_v54 = vsub.s32 (%p57_p8), 3, %v2255_v45  ;;  %v2272_v55 = vsub.s32 (%p57_p8), 4, %v2255_v45  ;;  %v2284_v58 = vsub.s32 (%p57_p8), 7, %v2255_v45 }
 0x32d   : > { %2580 = vmatmul.mubr.msk.bf16.vlgmr.msra.gmra.mrb[36].mxu0 %vm2060_vm3, %v1960_v52  ;;  %v2319_v10 = vrot.slane (%p57_p8), %v2302_v50, %v2268_v54 }
 0x32e   : > { %2106 = vmatpush1.bf16.msra.mxu0 %v2566_v18  ;;  %2137 = vmatprep.mubr.bf16.mxu0 %v3181_v16 }
 0x32f   : > { %2107 = vmatprep.subr.bf16.mxu0 %v2575_v53  ;;  %v2264_v53 = vsub.s32 (%p57_p8), 2, %v2255_v45 }
 0x331   :  { %v2265_v63 = vrot.slane (%p57_p8), %v2252_v49, %v2264_v53 }
 0x332   : > { %2108 = vmatpush1.bf16.msra.mxu0 %v2574_v56  ;;  %v2276_v56 = vsub.s32 (%p57_p8), 5, %v2255_v45 }
 0x333   : > { %2146 = vmatprep.subr.bf16.mxu0 %v2569_v57  ;;  %v2280_v57 = vsub.s32 (%p57_p8), 6, %v2255_v45 }
 0x335   : > { %2581 = vmatmul.mubr.msk.bf16.vlgmr.msra.gmra.mrb[40].mxu0 %vm2060_vm3, %v1960_v52 }
 0x336   : > { %2147 = vmatpush1.bf16.msra.mxu0 %v2568_v60  ;;  %2178 = vmatprep.mubr.bf16.mxu0 %v3181_v16 }
 0x337   : > { %2148 = vmatprep.subr.bf16.mxu0 %v2577_v61 }
 0x33a   : > { %2149 = vmatpush1.bf16.msra.mxu0 %v2576_v0  ;;  %v2315_v0 = vrot.slane (%p57_p8), %v2302_v50, %v2264_v53 }
 0x33b   : > { %2187 = vmatprep.subr.bf16.mxu0 %v2571_v9  ;;  %v2269_v9 = vrot.slane (%p57_p8), %v2252_v49, %v2268_v54 }
 0x33d   : > { %2582 = vmatmul.mubr.msk.bf16.vlgmr.msra.gmra.mrb[44].mxu0 %vm2060_vm3, %v1960_v52 }
 0x33e   : > { %2188 = vmatpush1.bf16.msra.mxu0 %v2570_v11  ;;  %2219 = vmatprep.mubr.bf16.mxu0 %v3181_v16 }
 0x33f   : > { %2189 = vmatprep.subr.bf16.mxu0 %v2579_v12  ;;  %v2273_v12 = vrot.slane (%p57_p8), %v2252_v49, %v2272_v55 }
 0x342   : > { %2190 = vmatpush1.bf16.msra.mxu0 %v2578_v13  ;;  %v2323_v13 = vrot.slane (%p57_p8), %v2302_v50, %v2272_v55 }
 0x345   : > { %2583 = vmatmul.mubr.msk.bf16.vlgmr.msra.gmra.mrb[48].mxu0 %vm2060_vm3, %v1960_v52  ;;  %v2260_v52 = vsub.s32 (%p57_p8), 1, %v2255_v45 }
 0x347   :  { %v2261_v61 = vrot.slane (%p57_p8), %v2252_v49, %v2260_v52  ;;  %v2311_v62 = vrot.slane (%p57_p8), %v2302_v50, %v2260_v52 }
 0x400   : > { %v2098_v14 = vpop.f32.mrb[36].mxu0 }
 0x401   : > { %v2228_v15 = vpack.c.bf16 %v2098_v14, %v2098_v14  ;;  %v2100_v18 = vpop.f32.mrb[37].mxu0 }
 0x402   : > { %v2229_v19 = vpack.c.bf16 %v2100_v18, %v2100_v18  ;;  %v2102_v20 = vpop.f32.mrb[38].mxu0  ;;  %v2277_v18 = vrot.slane (%p57_p8), %v2252_v49, %v2276_v56 }
 0x403   : > { %v3557_v1 = vadd.bf16 %v3170_v1, %v2228_v15   ;;  %v2103_v22 = vpop.f32.mrb[39].mxu0 }
 0x404   : > { %v3560_v2 = vadd.bf16 %v3166_v2, %v2229_v19   ;;  %v2327_v19 = vrot.slane (%p57_p8), %v2302_v50, %v2276_v56 }
 0x405   : > { %v3651_v21 = vmov %v3557_v1 }
 0x406   : > { %v3652_v23 = vmov %v3560_v2  ;;  %v2244_v44 = vunpack.c.l.bf16 (%p57_p8), %v3651_v21 }
 0x407   :  { %v2245_v46 = vunpack.c.l.bf16 (%p57_p8), %v3652_v23 }
 0x408   : > { %v2139_v24 = vpop.f32.mrb[40].mxu0 }
 0x409   : > { %v2230_v25 = vpack.c.bf16 %v2139_v24, %v2139_v24  ;;  %v2141_v26 = vpop.f32.mrb[41].mxu0  ;;  %v2295_v11 = vmul.f32 (%p57_p8), %v2261_v61, %v2245_v46 }
 0x40a   : > { %v2231_v16 = vpack.c.bf16 %v2141_v26, %v2141_v26  ;;  %v2143_v27 = vpop.f32.mrb[42].mxu0 }
 0x40b   : > { %v3563_v8 = vadd.bf16 %v3162_v8, %v2230_v25   ;;  %v2144_v29 = vpop.f32.mrb[43].mxu0 }
 0x40c   : > { %v3566_v7 = vadd.bf16 %v3158_v7, %v2231_v16   ;;  %v2331_v16 = vrot.slane (%p57_p8), %v2302_v50, %v2280_v57  ;;  %v2285_v29 = vrot.slane (%p57_p8), %v2252_v49, %v2284_v58 }
 0x40d   : > { %v3653_v28 = vmov %v3563_v8 }
 0x40e   : > { %v3654_v30 = vmov %v3566_v7  ;;  %v2246_v47 = vunpack.c.l.bf16 (%p57_p8), %v3653_v28 }
 0x40f   :  { %v2247_v48 = vunpack.c.l.bf16 (%p57_p8), %v3654_v30 }
 0x410   : > { %v2180_v31 = vpop.f32.mrb[44].mxu0  ;;  %v2296_v14 = vmul.f32 (%p57_p8), %v2265_v63, %v2246_v47 }
 0x411   : > { %v2232_v32 = vpack.c.bf16 %v2180_v31, %v2180_v31  ;;  %v2182_v33 = vpop.f32.mrb[45].mxu0  ;;  %v2297_v15 = vmul.f32 (%p57_p8), %v2269_v9, %v2247_v48 }
 0x412   : > { %v2233_v1 = vpack.c.bf16 %v2182_v33, %v2182_v33  ;;  %v2184_v34 = vpop.f32.mrb[46].mxu0  ;;  %v2346_v24 = vadd.f32 (%p57_p8), %v2315_v0, %v2296_v14 }
 0x413   : > { %v2240_v35 = vadd.bf16 %v3154_v6, %v2232_v32   ;;  %v2185_v2 = vpop.f32.mrb[47].mxu0  ;;  %v2347_v25 = vadd.f32 (%p57_p8), %v2319_v10, %v2297_v15 }
 0x414   : > { %v3570_v5 = vadd.bf16 %v3150_v5, %v2233_v1   ;;  %v3664_v2 = vmov %v3652_v23  ;;  %v3665_v1 = vmov %v3651_v21  ;;  %v2345_v21 = vadd.f32 (%p57_p8), %v2311_v62, %v2295_v11  ;;  %2354 = vst [vmem:[%s3650_s9 + $0x10] sm:$0xff] (%p57_p8), %v2346_v24 }
 0x415   : > { %v3661_v6 = vmov %v2240_v35  ;;  %v2248_v51 = vunpack.c.l.bf16 (%p57_p8), %v2240_v35  ;;  %v2281_v23 = vrot.slane (%p57_p8), %v2252_v49, %v2280_v57  ;;  %2355 = vst [vmem:[%s3650_s9 + $0x18] sm:$0xff] (%p57_p8), %v2347_v25 }
 0x416   : > { %v3655_v36 = vmov %v3570_v5  ;;  %v2256_v6 = vsub.s32 (%p57_p8), 0, %v2255_v45  ;;  %2353 = vst [vmem:[%s3650_s9 + $0x8] sm:$0xff] (%p57_p8), %v2345_v21 }
 0x417   : > { %v3660_v5 = vmov %v3655_v36  ;;  %v2298_v22 = vmul.f32 (%p57_p8), %v2273_v12, %v2248_v51 }
 0x418   : > { %v2221_v37 = vpop.f32.mrb[48].mxu0  ;;  %v2257_v59 = vrot.slane (%p57_p8), %v2252_v49, %v2256_v6  ;;  %v2307_v60 = vrot.slane (%p57_p8), %v2302_v50, %v2256_v6 }
 0x419   : > { %v2234_v38 = vpack.c.bf16 %v2221_v37, %v2221_v37  ;;  %v2223_v39 = vpop.f32.mrb[49].mxu0  ;;  %59 = sbr.rel (!%p57_p8) target bundleno = 21 (0x15), region = 80  ;;  %v2348_v27 = vadd.f32 (%p57_p8), %v2323_v13, %v2298_v22 }
 0x41a   : > { %v2235_v40 = vpack.c.bf16 %v2223_v39, %v2223_v39  ;;  %v2225_v8 = vpop.f32.mrb[50].mxu0  ;;  %v2294_v17 = vmul.f32 (%p57_p8), %v2257_v59, %v2244_v44 }
 0x41b   : > { %v3573_v4 = vadd.bf16 %v3146_v4, %v2234_v38   ;;  %v2226_v7 = vpop.f32.mrb[51].mxu0  ;;  %v3663_v8 = vmov %v3653_v28  ;;  %2356 = vst [vmem:[%s3650_s9 + $0x20] sm:$0xff] (%p57_p8), %v2348_v27 }
 0x41c   : > { %v3576_v3 = vadd.bf16 %v3142_v3, %v2235_v40   ;;  %v3662_v7 = vmov %v3654_v30  ;;  %v2344_v20 = vadd.f32 (%p57_p8), %v2307_v60, %v2294_v17  ;;  %v2335_v30 = vrot.slane (%p57_p8), %v2302_v50, %v2284_v58 }
 0x41d   : > { %v3656_v41 = vmov %v3573_v4 }
 0x41e   : > { %v3657_v42 = vmov %v3576_v3  ;;  %v3659_v4 = vmov %v3656_v41  ;;  %2352 = vst [vmem:[%s3650_s9] sm:$0xff] (%p57_p8), %v2344_v20 }
 0x41f   : > { %v3658_v3 = vmov %v3657_v42  ;;  %v2250_v4 = vunpack.c.l.bf16 (%p57_p8), %v3656_v41  ;;  %v2251_v5 = vunpack.c.l.bf16 (%p57_p8), %v3657_v42 }
 0x420   :  { %v2249_v3 = vunpack.c.l.bf16 %v3655_v36 }
 0x421   :  { %v2300_v28 = vmul.f32 %v2281_v23, %v2250_v4  ;;  %v2301_v33 = vmul.f32 %v2285_v29, %v2251_v5 }
 0x422   :  { %v2299_v26 = vmul.f32 %v2277_v18, %v2249_v3 }
 0x423   :  { %v2350_v32 = vadd.f32 %v2331_v16, %v2300_v28  ;;  %v2351_v1 = vadd.f32 %v2335_v30, %v2301_v33 }
 0x424   :  { %v2349_v31 = vadd.f32 %v2327_v19, %v2299_v26 }
 0x425   :  { %2358 = vst [vmem:[%s3650_s9 + $0x30] sm:$0xff] %v2350_v32  ;;  %2359 = vst [vmem:[%s3650_s9 + $0x38] sm:$0xff] %v2351_v1 }
 0x426   :  { %2357 = vst [vmem:[%s3650_s9 + $0x28] sm:$0xff] %v2349_v31 }
 0x427   :  { %2364 = vsyncpa [#allocation3], 1 }

</bundles_post_ra>
